<compile_context>
chip_gen: v6e
topology: v6e:2x2x1
jax: 0.10.0
libtpu: 0.0.40
codegen_flags: <defaults>
</compile_context>

<pallas_src>
import functools

import jax
import jax.numpy as jnp
from jax import lax
from jax.experimental import pallas as pl
from jax.experimental.pallas import tpu as pltpu  # noqa: F401  (TPU backend)


# ---------------------------------------------------------------------------
# Pallas kernels (all grid-less: whole (tiny) arrays live in VMEM)
# ---------------------------------------------------------------------------

def _frontend_kernel(x_ref, w1_ref, b1_ref, w2_ref, b2_ref, o_ref):
    """Folded T2O linear + ReLU, then CA_NET linear + ReLU, for 2B stacked rows."""
    t = jnp.dot(x_ref[...], w1_ref[...], preferred_element_type=jnp.float32)
    t = jnp.maximum(t + b1_ref[...], 0.0)                       # T2O ReLU
    c = jnp.dot(t, w2_ref[...], preferred_element_type=jnp.float32)
    o_ref[...] = jnp.maximum(c + b2_ref[...], 0.0)              # CA_NET ReLU


def _fc_bn_relu_kernel(x_ref, w_ref, g_ref, b_ref, o_ref, *, eps):
    """Linear(no bias) + BatchNorm1d(train, batch stats) + ReLU, fused."""
    h = jnp.dot(x_ref[...], w_ref[...], preferred_element_type=jnp.float32)
    mean = jnp.mean(h, axis=0, keepdims=True)                   # (1, N)
    var = jnp.mean(jnp.square(h - mean), axis=0, keepdims=True)
    scale = g_ref[...] * lax.rsqrt(var + eps)
    shift = b_ref[...] - mean * scale
    o_ref[...] = jnp.maximum(h * scale + shift, 0.0)


def _conv_bn_relu_kernel(x_ref, w_ref, g_ref, b_ref, o_ref, *, batch, inv_n, eps):
    """3x3 conv (as one matmul per batch row over an im2col slab) + BatchNorm2d
    (train, batch stats over N,H,W) + ReLU, fused.  Output is (B, Cout, H*W)."""
    w = w_ref[...]                                              # (Cout, 9*Cin)
    accs = [jnp.dot(w, x_ref[i], preferred_element_type=jnp.float32)
            for i in range(batch)]                              # each (Cout, HW)
    # per-channel batch statistics (biased variance, like PyTorch train mode)
    s = accs[0].sum(axis=1, keepdims=True)
    for a in accs[1:]:
        s = s + a.sum(axis=1, keepdims=True)
    mean = s * inv_n                                            # (Cout, 1)
    ss = jnp.square(accs[0] - mean).sum(axis=1, keepdims=True)
    for a in accs[1:]:
        ss = ss + jnp.square(a - mean).sum(axis=1, keepdims=True)
    var = ss * inv_n
    scale = g_ref[...] * lax.rsqrt(var + eps)                   # (Cout, 1)
    shift = b_ref[...] - mean * scale
    for i in range(batch):
        o_ref[i] = jnp.maximum(accs[i] * scale + shift, 0.0)


def _conv_tanh_kernel(x_ref, w_ref, o_ref, *, batch):
    """Final 3x3 conv + tanh, written lane-dense as (B, 3, H*W) (== NCHW flat)."""
    w = w_ref[...]
    for i in range(batch):
        o_ref[i] = jnp.tanh(jnp.dot(w, x_ref[i],
                                    preferred_element_type=jnp.float32))


# ---------------------------------------------------------------------------
# Wrappers
# ---------------------------------------------------------------------------

def frontend(x, w1, b1, w2, b2):
    R = x.shape[0]
    n1 = w1.shape[1]
    n2 = w2.shape[1]
    return pl.pallas_call(
        _frontend_kernel,
        out_shape=jax.ShapeDtypeStruct((R, n2), jnp.float32),
    )(x, w1, b1.reshape(1, n1), w2, b2.reshape(1, n2))


def fc_bn_relu(x, w, gamma, beta, eps=1e-5):
    B = x.shape[0]
    N = w.shape[1]
    kern = functools.partial(_fc_bn_relu_kernel, eps=eps)
    return pl.pallas_call(
        kern,
        out_shape=jax.ShapeDtypeStruct((B, N), jnp.float32),
    )(x, w, gamma.reshape(1, N), beta.reshape(1, N))


def conv_bn_relu(xcol, wmat, gamma, beta, eps=1e-5):
    B, _, HW = xcol.shape
    cout = wmat.shape[0]
    kern = functools.partial(_conv_bn_relu_kernel, batch=B,
                             inv_n=1.0 / float(B * HW), eps=eps)
    return pl.pallas_call(
        kern,
        out_shape=jax.ShapeDtypeStruct((B, cout, HW), jnp.float32),
    )(xcol, wmat, gamma.reshape(cout, 1), beta.reshape(cout, 1))


def conv_tanh(xcol, wmat):
    B, _, HW = xcol.shape
    cout = wmat.shape[0]
    kern = functools.partial(_conv_tanh_kernel, batch=B)
    return pl.pallas_call(
        kern,
        out_shape=jax.ShapeDtypeStruct((B, cout, HW), jnp.float32),
    )(xcol, wmat)


# ---------------------------------------------------------------------------
# XLA-side glue: nearest 2x upsample, zero pad, im2col (fuses into one slab write)
# ---------------------------------------------------------------------------

def pad_im2col_3x3(h):
    """(B, C, H, W) -> (B, 9*C, H*W); column index = (dy*3+dx)*C + ci."""
    B, C, H, W = h.shape
    hp = jnp.pad(h, ((0, 0), (0, 0), (1, 1), (1, 1)))
    cols = [hp[:, :, dy:dy + H, dx:dx + W].reshape(B, C, H * W)
            for dy in range(3) for dx in range(3)]
    return jnp.concatenate(cols, axis=1)


def upsample_pad_im2col_3x3(h):
    h = jnp.repeat(jnp.repeat(h, 2, axis=2), 2, axis=3)        # nearest x2
    return pad_im2col_3x3(h)


# ---------------------------------------------------------------------------
# Model (parameters + forward)
# ---------------------------------------------------------------------------

def init_params(args, key):
    ngf = args['GF_DIM'] * 8
    c_dim = args['CONDITION_DIM']
    z_dim = args['Z_DIM']
    t_dim = args['DIMENSION']                 # == 1024 (T2O output width)
    emb_c, emb_l = args['EMBEDDDIM']
    feat = emb_l - 10 + 1
    ninput = z_dim + 2 * c_dim

    ks = jax.random.split(key, 16)

    def nrm(k, shape, s=0.05):
        return s * jax.random.normal(k, shape, jnp.float32)

    p = {}

    # ---- T2O (shared by text & audio): Conv1d(C,32,10) -> Flatten -> Linear -> ReLU
    conv_w = nrm(ks[0], (32, emb_c, 10))              # torch Conv1d weight (O, I, K)
    conv_b = nrm(ks[1], (32,))
    lin_w = nrm(ks[2], (32 * feat, t_dim), 0.02)      # torch Linear weight, transposed
    lin_b = nrm(ks[3], (t_dim,))
    # No nonlinearity between Conv1d and Linear -> fold both (done ONCE at init):
    #   t2o_w[c*L + m, j] = sum_{o,k,l : l+k==m} conv_w[o,c,k] * lin_w[o*feat+l, j]
    lw = lin_w.reshape(32, feat, t_dim)
    wc = jnp.zeros((emb_c, emb_l, t_dim), jnp.float32)
    for k in range(10):
        wc = wc.at[:, k:k + feat, :].add(jnp.einsum('oc,olj->clj', conv_w[:, :, k], lw))
    p['t2o_w'] = wc.reshape(emb_c * emb_l, t_dim)
    p['t2o_b'] = lin_b + jnp.einsum('o,olj->j', conv_b, lw)

    # ---- CA_NET fc
    p['ca_w'] = nrm(ks[4], (t_dim, 2 * c_dim), 0.02)
    p['ca_b'] = nrm(ks[5], (2 * c_dim,))

    # ---- fc (no bias) + BatchNorm1d
    p['fc_w'] = nrm(ks[6], (ninput, ngf * 16), 0.05)
    p['fc_bn_g'] = jnp.ones((ngf * 16,), jnp.float32)
    p['fc_bn_b'] = jnp.zeros((ngf * 16,), jnp.float32)

    # ---- four upBlock 3x3 conv weights, stored matmul-ready as (Cout, 9*Cin):
    #      wmat[co, (dy*3+dx)*Cin + ci] == torch_conv.weight[co, ci, dy, dx]
    cins = [ngf, ngf // 2, ngf // 4, ngf // 8]
    couts = [ngf // 2, ngf // 4, ngf // 8, ngf // 16]
    for i, (ci, co) in enumerate(zip(cins, couts)):
        p[f'up{i}_w'] = nrm(ks[7 + i], (co, 9 * ci), 0.1)
        p[f'up{i}_bn_g'] = jnp.ones((co,), jnp.float32)
        p[f'up{i}_bn_b'] = jnp.zeros((co,), jnp.float32)

    # ---- final img conv (-> 3 channels) + tanh
    p['img_w'] = nrm(ks[11], (3, 9 * (ngf // 16)), 0.1)
    return p


def stage1_g_forward(p, args, text_embedding, audio_embedding, noise, eps_key):
    ngf = args['GF_DIM'] * 8
    c_dim = args['CONDITION_DIM']
    B, C, L = text_embedding.shape

    # ----- front end: T2O(text) & T2O(audio) batched as 2B rows + CA_NET linear
    emb = jnp.concatenate([text_embedding, audio_embedding], axis=0)   # (2B, C, L)
    emb_flat = emb.reshape(2 * B, C * L)
    ca_out = frontend(emb_flat, p['t2o_w'], p['t2o_b'],
                      p['ca_w'], p['ca_b'])                            # (2B, 2*c_dim)
    x = ca_out[:B]                                                     # text branch
    y = ca_out[B:]                                                     # audio branch
    mu = jnp.concatenate([x[:, :c_dim], y[:, :c_dim]], axis=1)
    logvar = jnp.concatenate([x[:, c_dim:], y[:, c_dim:]], axis=1)
    std = jnp.exp(0.5 * logvar)
    eps = jax.random.normal(eps_key, std.shape, jnp.float32)
    c_code = eps * std + mu

    # ----- fc + BatchNorm1d(train) + ReLU (fused), then channel-major view
    z_c_code = jnp.concatenate([noise, c_code], axis=1)                # (B, z+ef)
    h = fc_bn_relu(z_c_code, p['fc_w'], p['fc_bn_g'], p['fc_bn_b'])    # (B, ngf*16)
    h = h.reshape(B, ngf, 4, 4)    # == PyTorch .view(-1, ngf, 4, 4) (NCHW, free)

    # ----- 4 upBlocks: upsample/pad/im2col glue + one fused conv+BN+ReLU kernel
    for i in range(4):
        cout = ngf >> (i + 1)
        hout = 2 * h.shape[2]
        xcol = upsample_pad_im2col_3x3(h)                              # (B, 9*Cin, HW)
        hflat = conv_bn_relu(xcol, p[f'up{i}_w'],
                             p[f'up{i}_bn_g'], p[f'up{i}_bn_b'])       # (B, Cout, HW)
        h = hflat.reshape(B, cout, hout, hout)

    # ----- final 3x3 conv + tanh, written directly in NCHW (lane-dense H*W)
    xcol = pad_im2col_3x3(h)                                           # (B, 18, 4096)
    img = conv_tanh(xcol, p['img_w'])                                  # (B, 3, 4096)
    fake_img = img.reshape(B, 3, 64, 64)
    return None, fake_img, mu, logvar


# ---------------------------------------------------------------------------

if __name__ == "__main__":
    ARGS = {
        'GF_DIM': 4,           # ngf = 32
        'CONDITION_DIM': 8,    # ef_dim = 16
        'Z_DIM': 16,
        'DIMENSION': 1024,     # must equal T2O output width
        'EMBEDDDIM': (8, 32),  # Conv1d(8, 32, 10) -> in_features = 23
    }
    key = jax.random.PRNGKey(0)
    k_params, k_text, k_audio, k_noise, k_eps = jax.random.split(key, 5)
    params = init_params(ARGS, k_params)

    B = 2
    emb_c, emb_l = ARGS['EMBEDDDIM']
    text_embedding = jax.random.normal(k_text, (B, emb_c, emb_l), jnp.float32)
    audio_embedding = jax.random.normal(k_audio, (B, emb_c, emb_l), jnp.float32)
    noise = jax.random.normal(k_noise, (B, ARGS['Z_DIM']), jnp.float32)

    fwd = jax.jit(functools.partial(stage1_g_forward, params, ARGS))
    _, fake_img, mu, logvar = fwd(text_embedding, audio_embedding, noise, k_eps)
    jax.block_until_ready((fake_img, mu, logvar))

    assert fake_img.shape == (B, 3, 64, 64), fake_img.shape
    assert mu.shape == (B, 2 * ARGS['CONDITION_DIM']), mu.shape
    assert logvar.shape == (B, 2 * ARGS['CONDITION_DIM']), logvar.shape
    assert bool(jnp.all(jnp.isfinite(fake_img)))
    print("KERNEL_OK")
</pallas_src>

<mosaic_0001>
module attributes {stable_mosaic.version = 11 : i64} {
  func.func @_frontend_kernel(%arg0: memref<4x256xf32, #tpu.memory_space<vmem>>, %arg1: memref<256x1024xf32, #tpu.memory_space<vmem>>, %arg2: memref<1x1024xf32, #tpu.memory_space<vmem>>, %arg3: memref<1024x16xf32, #tpu.memory_space<vmem>>, %arg4: memref<1x16xf32, #tpu.memory_space<vmem>>, %arg5: memref<4x16xf32, #tpu.memory_space<vmem>>) attributes {dimension_semantics = [], scalar_prefetch = 0 : i64, scratch_operands = 0 : i64, tpu.core_type = #tpu.core_type<tc>} {
    %c0 = arith.constant 0 : index
    %c0_0 = arith.constant 0 : index
    %0 = vector.load %arg0[%c0, %c0_0] : memref<4x256xf32, #tpu.memory_space<vmem>>, vector<4x256xf32>
    %c0_1 = arith.constant 0 : index
    %c0_2 = arith.constant 0 : index
    %1 = vector.load %arg1[%c0_1, %c0_2] : memref<256x1024xf32, #tpu.memory_space<vmem>>, vector<256x1024xf32>
    %cst = arith.constant dense<0.000000e+00> : vector<4x1024xf32>
    %2 = tpu.matmul %0, %1, %cst {dimension_numbers = #tpu.dot_dimension_numbers<[1], [0], [0], [1], [0, 0, 1, 1], [], []>} : vector<4x256xf32>, vector<256x1024xf32>, vector<4x1024xf32> -> vector<4x1024xf32>
    %c0_3 = arith.constant 0 : index
    %c0_4 = arith.constant 0 : index
    %3 = vector.load %arg2[%c0_3, %c0_4] : memref<1x1024xf32, #tpu.memory_space<vmem>>, vector<1x1024xf32>
    %4 = vector.broadcast %3 : vector<1x1024xf32> to vector<4x1024xf32>
    %5 = arith.addf %2, %4 : vector<4x1024xf32>
    %cst_5 = arith.constant 0.000000e+00 : f32
    %6 = vector.broadcast %cst_5 : f32 to vector<4x1024xf32>
    %7 = arith.maximumf %5, %6 : vector<4x1024xf32>
    %c0_6 = arith.constant 0 : index
    %c0_7 = arith.constant 0 : index
    %8 = vector.load %arg3[%c0_6, %c0_7] : memref<1024x16xf32, #tpu.memory_space<vmem>>, vector<1024x16xf32>
    %cst_8 = arith.constant dense<0.000000e+00> : vector<4x16xf32>
    %9 = tpu.matmul %7, %8, %cst_8 {dimension_numbers = #tpu.dot_dimension_numbers<[1], [0], [0], [1], [0, 0, 1, 1], [], []>} : vector<4x1024xf32>, vector<1024x16xf32>, vector<4x16xf32> -> vector<4x16xf32>
    %c0_9 = arith.constant 0 : index
    %c0_10 = arith.constant 0 : index
    %10 = vector.load %arg4[%c0_9, %c0_10] : memref<1x16xf32, #tpu.memory_space<vmem>>, vector<1x16xf32>
    %11 = vector.broadcast %10 : vector<1x16xf32> to vector<4x16xf32>
    %12 = arith.addf %9, %11 : vector<4x16xf32>
    %cst_11 = arith.constant 0.000000e+00 : f32
    %13 = vector.broadcast %cst_11 : f32 to vector<4x16xf32>
    %14 = arith.maximumf %12, %13 : vector<4x16xf32>
    %c0_12 = arith.constant 0 : index
    %c0_13 = arith.constant 0 : index
    %15 = vector.load %arg5[%c0_12, %c0_13] : memref<4x16xf32, #tpu.memory_space<vmem>>, vector<4x16xf32>
    tpu.vector_store %arg5[%c0_12, %c0_13], %14 {strides = array<i32>} : memref<4x16xf32, #tpu.memory_space<vmem>>, vector<4x16xf32>,
    return
  }
}

module attributes {stable_mosaic.version = 11 : i64} {
  func.func @_fc_bn_relu_kernel(%arg0: memref<2x32xf32, #tpu.memory_space<vmem>>, %arg1: memref<32x512xf32, #tpu.memory_space<vmem>>, %arg2: memref<1x512xf32, #tpu.memory_space<vmem>>, %arg3: memref<1x512xf32, #tpu.memory_space<vmem>>, %arg4: memref<2x512xf32, #tpu.memory_space<vmem>>) attributes {dimension_semantics = [], scalar_prefetch = 0 : i64, scratch_operands = 0 : i64, tpu.core_type = #tpu.core_type<tc>} {
    %c0 = arith.constant 0 : index
    %c0_0 = arith.constant 0 : index
    %0 = vector.load %arg0[%c0, %c0_0] : memref<2x32xf32, #tpu.memory_space<vmem>>, vector<2x32xf32>
    %c0_1 = arith.constant 0 : index
    %c0_2 = arith.constant 0 : index
    %1 = vector.load %arg1[%c0_1, %c0_2] : memref<32x512xf32, #tpu.memory_space<vmem>>, vector<32x512xf32>
    %cst = arith.constant dense<0.000000e+00> : vector<2x512xf32>
    %2 = tpu.matmul %0, %1, %cst {dimension_numbers = #tpu.dot_dimension_numbers<[1], [0], [0], [1], [0, 0, 1, 1], [], []>} : vector<2x32xf32>, vector<32x512xf32>, vector<2x512xf32> -> vector<2x512xf32>
    %cst_3 = arith.constant dense<0.000000e+00> : vector<512xf32>
    %3 = vector.multi_reduction <add>, %2, %cst_3 [0] : vector<2x512xf32> to vector<512xf32>
    %4 = vector.shape_cast %3 : vector<512xf32> to vector<1x512xf32>
    %cst_4 = arith.constant 2.000000e+00 : f32
    %5 = vector.broadcast %cst_4 : f32 to vector<1x512xf32>
    %6 = arith.divf %4, %5 : vector<1x512xf32>
    %7 = vector.broadcast %6 : vector<1x512xf32> to vector<2x512xf32>
    %8 = arith.subf %2, %7 : vector<2x512xf32>
    %9 = arith.mulf %8, %8 : vector<2x512xf32>
    %cst_5 = arith.constant dense<0.000000e+00> : vector<512xf32>
    %10 = vector.multi_reduction <add>, %9, %cst_5 [0] : vector<2x512xf32> to vector<512xf32>
    %11 = vector.shape_cast %10 : vector<512xf32> to vector<1x512xf32>
    %cst_6 = arith.constant 2.000000e+00 : f32
    %12 = vector.broadcast %cst_6 : f32 to vector<1x512xf32>
    %13 = arith.divf %11, %12 : vector<1x512xf32>
    %c0_7 = arith.constant 0 : index
    %c0_8 = arith.constant 0 : index
    %14 = vector.load %arg2[%c0_7, %c0_8] : memref<1x512xf32, #tpu.memory_space<vmem>>, vector<1x512xf32>
    %cst_9 = arith.constant 9.99999974E-6 : f32
    %15 = vector.broadcast %cst_9 : f32 to vector<1x512xf32>
    %16 = arith.addf %13, %15 : vector<1x512xf32>
    %17 = math.rsqrt %16 : vector<1x512xf32>
    %18 = arith.mulf %14, %17 : vector<1x512xf32>
    %c0_10 = arith.constant 0 : index
    %c0_11 = arith.constant 0 : index
    %19 = vector.load %arg3[%c0_10, %c0_11] : memref<1x512xf32, #tpu.memory_space<vmem>>, vector<1x512xf32>
    %20 = arith.mulf %6, %18 : vector<1x512xf32>
    %21 = arith.subf %19, %20 : vector<1x512xf32>
    %22 = vector.broadcast %18 : vector<1x512xf32> to vector<2x512xf32>
    %23 = arith.mulf %2, %22 : vector<2x512xf32>
    %24 = vector.broadcast %21 : vector<1x512xf32> to vector<2x512xf32>
    %25 = arith.addf %23, %24 : vector<2x512xf32>
    %cst_12 = arith.constant 0.000000e+00 : f32
    %26 = vector.broadcast %cst_12 : f32 to vector<2x512xf32>
    %27 = arith.maximumf %25, %26 : vector<2x512xf32>
    %c0_13 = arith.constant 0 : index
    %c0_14 = arith.constant 0 : index
    %28 = vector.load %arg4[%c0_13, %c0_14] : memref<2x512xf32, #tpu.memory_space<vmem>>, vector<2x512xf32>
    tpu.vector_store %arg4[%c0_13, %c0_14], %27 {strides = array<i32>} : memref<2x512xf32, #tpu.memory_space<vmem>>, vector<2x512xf32>,
    return
  }
}

module attributes {stable_mosaic.version = 11 : i64} {
  func.func @_conv_bn_relu_kernel(%arg0: memref<2x288x64xf32, #tpu.memory_space<vmem>>, %arg1: memref<16x288xf32, #tpu.memory_space<vmem>>, %arg2: memref<16x1xf32, #tpu.memory_space<vmem>>, %arg3: memref<16x1xf32, #tpu.memory_space<vmem>>, %arg4: memref<2x16x64xf32, #tpu.memory_space<vmem>>) attributes {dimension_semantics = [], scalar_prefetch = 0 : i64, scratch_operands = 0 : i64, tpu.core_type = #tpu.core_type<tc>} {
    %c0 = arith.constant 0 : index
    %c0_0 = arith.constant 0 : index
    %0 = vector.load %arg1[%c0, %c0_0] : memref<16x288xf32, #tpu.memory_space<vmem>>, vector<16x288xf32>
    %c0_1 = arith.constant 0 : index
    %c0_2 = arith.constant 0 : index
    %c0_3 = arith.constant 0 : index
    %1 = vector.load %arg0[%c0_1, %c0_2, %c0_3] : memref<2x288x64xf32, #tpu.memory_space<vmem>>, vector<1x288x64xf32>
    %2 = vector.shape_cast %1 : vector<1x288x64xf32> to vector<288x64xf32>
    %cst = arith.constant dense<0.000000e+00> : vector<16x64xf32>
    %3 = tpu.matmul %0, %2, %cst {dimension_numbers = #tpu.dot_dimension_numbers<[1], [0], [0], [1], [0, 0, 1, 1], [], []>} : vector<16x288xf32>, vector<288x64xf32>, vector<16x64xf32> -> vector<16x64xf32>
    %c1 = arith.constant 1 : index
    %c0_4 = arith.constant 0 : index
    %c0_5 = arith.constant 0 : index
    %4 = vector.load %arg0[%c1, %c0_4, %c0_5] : memref<2x288x64xf32, #tpu.memory_space<vmem>>, vector<1x288x64xf32>
    %5 = vector.shape_cast %4 : vector<1x288x64xf32> to vector<288x64xf32>
    %cst_6 = arith.constant dense<0.000000e+00> : vector<16x64xf32>
    %6 = tpu.matmul %0, %5, %cst_6 {dimension_numbers = #tpu.dot_dimension_numbers<[1], [0], [0], [1], [0, 0, 1, 1], [], []>} : vector<16x288xf32>, vector<288x64xf32>, vector<16x64xf32> -> vector<16x64xf32>
    %cst_7 = arith.constant dense<0.000000e+00> : vector<16xf32>
    %7 = vector.multi_reduction <add>, %3, %cst_7 [1] : vector<16x64xf32> to vector<16xf32>
    %8 = vector.shape_cast %7 : vector<16xf32> to vector<16x1xf32>
    %cst_8 = arith.constant dense<0.000000e+00> : vector<16xf32>
    %9 = vector.multi_reduction <add>, %6, %cst_8 [1] : vector<16x64xf32> to vector<16xf32>
    %10 = vector.shape_cast %9 : vector<16xf32> to vector<16x1xf32>
    %11 = arith.addf %8, %10 : vector<16x1xf32>
    %cst_9 = arith.constant 7.812500e-03 : f32
    %12 = vector.broadcast %cst_9 : f32 to vector<16x1xf32>
    %13 = arith.mulf %11, %12 : vector<16x1xf32>
    %14 = vector.broadcast %13 : vector<16x1xf32> to vector<16x64xf32>
    %15 = arith.subf %3, %14 : vector<16x64xf32>
    %16 = arith.mulf %15, %15 : vector<16x64xf32>
    %cst_10 = arith.constant dense<0.000000e+00> : vector<16xf32>
    %17 = vector.multi_reduction <add>, %16, %cst_10 [1] : vector<16x64xf32> to vector<16xf32>
    %18 = vector.shape_cast %17 : vector<16xf32> to vector<16x1xf32>
    %19 = vector.broadcast %13 : vector<16x1xf32> to vector<16x64xf32>
    %20 = arith.subf %6, %19 : vector<16x64xf32>
    %21 = arith.mulf %20, %20 : vector<16x64xf32>
    %cst_11 = arith.constant dense<0.000000e+00> : vector<16xf32>
    %22 = vector.multi_reduction <add>, %21, %cst_11 [1] : vector<16x64xf32> to vector<16xf32>
    %23 = vector.shape_cast %22 : vector<16xf32> to vector<16x1xf32>
    %24 = arith.addf %18, %23 : vector<16x1xf32>
    %cst_12 = arith.constant 7.812500e-03 : f32
    %25 = vector.broadcast %cst_12 : f32 to vector<16x1xf32>
    %26 = arith.mulf %24, %25 : vector<16x1xf32>
    %c0_13 = arith.constant 0 : index
    %c0_14 = arith.constant 0 : index
    %27 = vector.load %arg2[%c0_13, %c0_14] : memref<16x1xf32, #tpu.memory_space<vmem>>, vector<16x1xf32>
    %cst_15 = arith.constant 9.99999974E-6 : f32
    %28 = vector.broadcast %cst_15 : f32 to vector<16x1xf32>
    %29 = arith.addf %26, %28 : vector<16x1xf32>
    %30 = math.rsqrt %29 : vector<16x1xf32>
    %31 = arith.mulf %27, %30 : vector<16x1xf32>
    %c0_16 = arith.constant 0 : index
    %c0_17 = arith.constant 0 : index
    %32 = vector.load %arg3[%c0_16, %c0_17] : memref<16x1xf32, #tpu.memory_space<vmem>>, vector<16x1xf32>
    %33 = arith.mulf %13, %31 : vector<16x1xf32>
    %34 = arith.subf %32, %33 : vector<16x1xf32>
    %35 = vector.broadcast %31 : vector<16x1xf32> to vector<16x64xf32>
    %36 = arith.mulf %3, %35 : vector<16x64xf32>
    %37 = vector.broadcast %34 : vector<16x1xf32> to vector<16x64xf32>
    %38 = arith.addf %36, %37 : vector<16x64xf32>
    %cst_18 = arith.constant 0.000000e+00 : f32
    %39 = vector.broadcast %cst_18 : f32 to vector<16x64xf32>
    %40 = arith.maximumf %38, %39 : vector<16x64xf32>
    %c0_19 = arith.constant 0 : index
    %c0_20 = arith.constant 0 : index
    %c0_21 = arith.constant 0 : index
    %41 = vector.load %arg4[%c0_19, %c0_20, %c0_21] : memref<2x16x64xf32, #tpu.memory_space<vmem>>, vector<1x16x64xf32>
    %42 = vector.shape_cast %41 : vector<1x16x64xf32> to vector<16x64xf32>
    %43 = vector.shape_cast %40 : vector<16x64xf32> to vector<1x16x64xf32>
    tpu.vector_store %arg4[%c0_19, %c0_20, %c0_21], %43 {strides = array<i32>} : memref<2x16x64xf32, #tpu.memory_space<vmem>>, vector<1x16x64xf32>,
    %44 = vector.broadcast %31 : vector<16x1xf32> to vector<16x64xf32>
    %45 = arith.mulf %6, %44 : vector<16x64xf32>
    %46 = vector.broadcast %34 : vector<16x1xf32> to vector<16x64xf32>
    %47 = arith.addf %45, %46 : vector<16x64xf32>
    %cst_22 = arith.constant 0.000000e+00 : f32
    %48 = vector.broadcast %cst_22 : f32 to vector<16x64xf32>
    %49 = arith.maximumf %47, %48 : vector<16x64xf32>
    %c1_23 = arith.constant 1 : index
    %c0_24 = arith.constant 0 : index
    %c0_25 = arith.constant 0 : index
    %50 = vector.load %arg4[%c1_23, %c0_24, %c0_25] : memref<2x16x64xf32, #tpu.memory_space<vmem>>, vector<1x16x64xf32>
    %51 = vector.shape_cast %50 : vector<1x16x64xf32> to vector<16x64xf32>
    %52 = vector.shape_cast %49 : vector<16x64xf32> to vector<1x16x64xf32>
    tpu.vector_store %arg4[%c1_23, %c0_24, %c0_25], %52 {strides = array<i32>} : memref<2x16x64xf32, #tpu.memory_space<vmem>>, vector<1x16x64xf32>,
    return
  }
}

module attributes {stable_mosaic.version = 11 : i64} {
  func.func @_conv_bn_relu_kernel(%arg0: memref<2x144x256xf32, #tpu.memory_space<vmem>>, %arg1: memref<8x144xf32, #tpu.memory_space<vmem>>, %arg2: memref<8x1xf32, #tpu.memory_space<vmem>>, %arg3: memref<8x1xf32, #tpu.memory_space<vmem>>, %arg4: memref<2x8x256xf32, #tpu.memory_space<vmem>>) attributes {dimension_semantics = [], scalar_prefetch = 0 : i64, scratch_operands = 0 : i64, tpu.core_type = #tpu.core_type<tc>} {
    %c0 = arith.constant 0 : index
    %c0_0 = arith.constant 0 : index
    %0 = vector.load %arg1[%c0, %c0_0] : memref<8x144xf32, #tpu.memory_space<vmem>>, vector<8x144xf32>
    %c0_1 = arith.constant 0 : index
    %c0_2 = arith.constant 0 : index
    %c0_3 = arith.constant 0 : index
    %1 = vector.load %arg0[%c0_1, %c0_2, %c0_3] : memref<2x144x256xf32, #tpu.memory_space<vmem>>, vector<1x144x256xf32>
    %2 = vector.shape_cast %1 : vector<1x144x256xf32> to vector<144x256xf32>
    %cst = arith.constant dense<0.000000e+00> : vector<8x256xf32>
    %3 = tpu.matmul %0, %2, %cst {dimension_numbers = #tpu.dot_dimension_numbers<[1], [0], [0], [1], [0, 0, 1, 1], [], []>} : vector<8x144xf32>, vector<144x256xf32>, vector<8x256xf32> -> vector<8x256xf32>
    %c1 = arith.constant 1 : index
    %c0_4 = arith.constant 0 : index
    %c0_5 = arith.constant 0 : index
    %4 = vector.load %arg0[%c1, %c0_4, %c0_5] : memref<2x144x256xf32, #tpu.memory_space<vmem>>, vector<1x144x256xf32>
    %5 = vector.shape_cast %4 : vector<1x144x256xf32> to vector<144x256xf32>
    %cst_6 = arith.constant dense<0.000000e+00> : vector<8x256xf32>
    %6 = tpu.matmul %0, %5, %cst_6 {dimension_numbers = #tpu.dot_dimension_numbers<[1], [0], [0], [1], [0, 0, 1, 1], [], []>} : vector<8x144xf32>, vector<144x256xf32>, vector<8x256xf32> -> vector<8x256xf32>
    %cst_7 = arith.constant dense<0.000000e+00> : vector<8xf32>
    %7 = vector.multi_reduction <add>, %3, %cst_7 [1] : vector<8x256xf32> to vector<8xf32>
    %8 = vector.shape_cast %7 : vector<8xf32> to vector<8x1xf32>
    %cst_8 = arith.constant dense<0.000000e+00> : vector<8xf32>
    %9 = vector.multi_reduction <add>, %6, %cst_8 [1] : vector<8x256xf32> to vector<8xf32>
    %10 = vector.shape_cast %9 : vector<8xf32> to vector<8x1xf32>
    %11 = arith.addf %8, %10 : vector<8x1xf32>
    %cst_9 = arith.constant 0.001953125 : f32
    %12 = vector.broadcast %cst_9 : f32 to vector<8x1xf32>
    %13 = arith.mulf %11, %12 : vector<8x1xf32>
    %14 = vector.broadcast %13 : vector<8x1xf32> to vector<8x256xf32>
    %15 = arith.subf %3, %14 : vector<8x256xf32>
    %16 = arith.mulf %15, %15 : vector<8x256xf32>
    %cst_10 = arith.constant dense<0.000000e+00> : vector<8xf32>
    %17 = vector.multi_reduction <add>, %16, %cst_10 [1] : vector<8x256xf32> to vector<8xf32>
    %18 = vector.shape_cast %17 : vector<8xf32> to vector<8x1xf32>
    %19 = vector.broadcast %13 : vector<8x1xf32> to vector<8x256xf32>
    %20 = arith.subf %6, %19 : vector<8x256xf32>
    %21 = arith.mulf %20, %20 : vector<8x256xf32>
    %cst_11 = arith.constant dense<0.000000e+00> : vector<8xf32>
    %22 = vector.multi_reduction <add>, %21, %cst_11 [1] : vector<8x256xf32> to vector<8xf32>
    %23 = vector.shape_cast %22 : vector<8xf32> to vector<8x1xf32>
    %24 = arith.addf %18, %23 : vector<8x1xf32>
    %cst_12 = arith.constant 0.001953125 : f32
    %25 = vector.broadcast %cst_12 : f32 to vector<8x1xf32>
    %26 = arith.mulf %24, %25 : vector<8x1xf32>
    %c0_13 = arith.constant 0 : index
    %c0_14 = arith.constant 0 : index
    %27 = vector.load %arg2[%c0_13, %c0_14] : memref<8x1xf32, #tpu.memory_space<vmem>>, vector<8x1xf32>
    %cst_15 = arith.constant 9.99999974E-6 : f32
    %28 = vector.broadcast %cst_15 : f32 to vector<8x1xf32>
    %29 = arith.addf %26, %28 : vector<8x1xf32>
    %30 = math.rsqrt %29 : vector<8x1xf32>
    %31 = arith.mulf %27, %30 : vector<8x1xf32>
    %c0_16 = arith.constant 0 : index
    %c0_17 = arith.constant 0 : index
    %32 = vector.load %arg3[%c0_16, %c0_17] : memref<8x1xf32, #tpu.memory_space<vmem>>, vector<8x1xf32>
    %33 = arith.mulf %13, %31 : vector<8x1xf32>
    %34 = arith.subf %32, %33 : vector<8x1xf32>
    %35 = vector.broadcast %31 : vector<8x1xf32> to vector<8x256xf32>
    %36 = arith.mulf %3, %35 : vector<8x256xf32>
    %37 = vector.broadcast %34 : vector<8x1xf32> to vector<8x256xf32>
    %38 = arith.addf %36, %37 : vector<8x256xf32>
    %cst_18 = arith.constant 0.000000e+00 : f32
    %39 = vector.broadcast %cst_18 : f32 to vector<8x256xf32>
    %40 = arith.maximumf %38, %39 : vector<8x256xf32>
    %c0_19 = arith.constant 0 : index
    %c0_20 = arith.constant 0 : index
    %c0_21 = arith.constant 0 : index
    %41 = vector.load %arg4[%c0_19, %c0_20, %c0_21] : memref<2x8x256xf32, #tpu.memory_space<vmem>>, vector<1x8x256xf32>
    %42 = vector.shape_cast %41 : vector<1x8x256xf32> to vector<8x256xf32>
    %43 = vector.shape_cast %40 : vector<8x256xf32> to vector<1x8x256xf32>
    tpu.vector_store %arg4[%c0_19, %c0_20, %c0_21], %43 {strides = array<i32>} : memref<2x8x256xf32, #tpu.memory_space<vmem>>, vector<1x8x256xf32>,
    %44 = vector.broadcast %31 : vector<8x1xf32> to vector<8x256xf32>
    %45 = arith.mulf %6, %44 : vector<8x256xf32>
    %46 = vector.broadcast %34 : vector<8x1xf32> to vector<8x256xf32>
    %47 = arith.addf %45, %46 : vector<8x256xf32>
    %cst_22 = arith.constant 0.000000e+00 : f32
    %48 = vector.broadcast %cst_22 : f32 to vector<8x256xf32>
    %49 = arith.maximumf %47, %48 : vector<8x256xf32>
    %c1_23 = arith.constant 1 : index
    %c0_24 = arith.constant 0 : index
    %c0_25 = arith.constant 0 : index
    %50 = vector.load %arg4[%c1_23, %c0_24, %c0_25] : memref<2x8x256xf32, #tpu.memory_space<vmem>>, vector<1x8x256xf32>
    %51 = vector.shape_cast %50 : vector<1x8x256xf32> to vector<8x256xf32>
    %52 = vector.shape_cast %49 : vector<8x256xf32> to vector<1x8x256xf32>
    tpu.vector_store %arg4[%c1_23, %c0_24, %c0_25], %52 {strides = array<i32>} : memref<2x8x256xf32, #tpu.memory_space<vmem>>, vector<1x8x256xf32>,
    return
  }
}

module attributes {stable_mosaic.version = 11 : i64} {
  func.func @_conv_bn_relu_kernel(%arg0: memref<2x72x1024xf32, #tpu.memory_space<vmem>>, %arg1: memref<4x72xf32, #tpu.memory_space<vmem>>, %arg2: memref<4x1xf32, #tpu.memory_space<vmem>>, %arg3: memref<4x1xf32, #tpu.memory_space<vmem>>, %arg4: memref<2x4x1024xf32, #tpu.memory_space<vmem>>) attributes {dimension_semantics = [], scalar_prefetch = 0 : i64, scratch_operands = 0 : i64, tpu.core_type = #tpu.core_type<tc>} {
    %c0 = arith.constant 0 : index
    %c0_0 = arith.constant 0 : index
    %0 = vector.load %arg1[%c0, %c0_0] : memref<4x72xf32, #tpu.memory_space<vmem>>, vector<4x72xf32>
    %c0_1 = arith.constant 0 : index
    %c0_2 = arith.constant 0 : index
    %c0_3 = arith.constant 0 : index
    %1 = vector.load %arg0[%c0_1, %c0_2, %c0_3] : memref<2x72x1024xf32, #tpu.memory_space<vmem>>, vector<1x72x1024xf32>
    %2 = vector.shape_cast %1 : vector<1x72x1024xf32> to vector<72x1024xf32>
    %cst = arith.constant dense<0.000000e+00> : vector<4x1024xf32>
    %3 = tpu.matmul %0, %2, %cst {dimension_numbers = #tpu.dot_dimension_numbers<[1], [0], [0], [1], [0, 0, 1, 1], [], []>} : vector<4x72xf32>, vector<72x1024xf32>, vector<4x1024xf32> -> vector<4x1024xf32>
    %c1 = arith.constant 1 : index
    %c0_4 = arith.constant 0 : index
    %c0_5 = arith.constant 0 : index
    %4 = vector.load %arg0[%c1, %c0_4, %c0_5] : memref<2x72x1024xf32, #tpu.memory_space<vmem>>, vector<1x72x1024xf32>
    %5 = vector.shape_cast %4 : vector<1x72x1024xf32> to vector<72x1024xf32>
    %cst_6 = arith.constant dense<0.000000e+00> : vector<4x1024xf32>
    %6 = tpu.matmul %0, %5, %cst_6 {dimension_numbers = #tpu.dot_dimension_numbers<[1], [0], [0], [1], [0, 0, 1, 1], [], []>} : vector<4x72xf32>, vector<72x1024xf32>, vector<4x1024xf32> -> vector<4x1024xf32>
    %cst_7 = arith.constant dense<0.000000e+00> : vector<4xf32>
    %7 = vector.multi_reduction <add>, %3, %cst_7 [1] : vector<4x1024xf32> to vector<4xf32>
    %8 = vector.shape_cast %7 : vector<4xf32> to vector<4x1xf32>
    %cst_8 = arith.constant dense<0.000000e+00> : vector<4xf32>
    %9 = vector.multi_reduction <add>, %6, %cst_8 [1] : vector<4x1024xf32> to vector<4xf32>
    %10 = vector.shape_cast %9 : vector<4xf32> to vector<4x1xf32>
    %11 = arith.addf %8, %10 : vector<4x1xf32>
    %cst_9 = arith.constant 4.8828125E-4 : f32
    %12 = vector.broadcast %cst_9 : f32 to vector<4x1xf32>
    %13 = arith.mulf %11, %12 : vector<4x1xf32>
    %14 = vector.broadcast %13 : vector<4x1xf32> to vector<4x1024xf32>
    %15 = arith.subf %3, %14 : vector<4x1024xf32>
    %16 = arith.mulf %15, %15 : vector<4x1024xf32>
    %cst_10 = arith.constant dense<0.000000e+00> : vector<4xf32>
    %17 = vector.multi_reduction <add>, %16, %cst_10 [1] : vector<4x1024xf32> to vector<4xf32>
    %18 = vector.shape_cast %17 : vector<4xf32> to vector<4x1xf32>
    %19 = vector.broadcast %13 : vector<4x1xf32> to vector<4x1024xf32>
    %20 = arith.subf %6, %19 : vector<4x1024xf32>
    %21 = arith.mulf %20, %20 : vector<4x1024xf32>
    %cst_11 = arith.constant dense<0.000000e+00> : vector<4xf32>
    %22 = vector.multi_reduction <add>, %21, %cst_11 [1] : vector<4x1024xf32> to vector<4xf32>
    %23 = vector.shape_cast %22 : vector<4xf32> to vector<4x1xf32>
    %24 = arith.addf %18, %23 : vector<4x1xf32>
    %cst_12 = arith.constant 4.8828125E-4 : f32
    %25 = vector.broadcast %cst_12 : f32 to vector<4x1xf32>
    %26 = arith.mulf %24, %25 : vector<4x1xf32>
    %c0_13 = arith.constant 0 : index
    %c0_14 = arith.constant 0 : index
    %27 = vector.load %arg2[%c0_13, %c0_14] : memref<4x1xf32, #tpu.memory_space<vmem>>, vector<4x1xf32>
    %cst_15 = arith.constant 9.99999974E-6 : f32
    %28 = vector.broadcast %cst_15 : f32 to vector<4x1xf32>
    %29 = arith.addf %26, %28 : vector<4x1xf32>
    %30 = math.rsqrt %29 : vector<4x1xf32>
    %31 = arith.mulf %27, %30 : vector<4x1xf32>
    %c0_16 = arith.constant 0 : index
    %c0_17 = arith.constant 0 : index
    %32 = vector.load %arg3[%c0_16, %c0_17] : memref<4x1xf32, #tpu.memory_space<vmem>>, vector<4x1xf32>
    %33 = arith.mulf %13, %31 : vector<4x1xf32>
    %34 = arith.subf %32, %33 : vector<4x1xf32>
    %35 = vector.broadcast %31 : vector<4x1xf32> to vector<4x1024xf32>
    %36 = arith.mulf %3, %35 : vector<4x1024xf32>
    %37 = vector.broadcast %34 : vector<4x1xf32> to vector<4x1024xf32>
    %38 = arith.addf %36, %37 : vector<4x1024xf32>
    %cst_18 = arith.constant 0.000000e+00 : f32
    %39 = vector.broadcast %cst_18 : f32 to vector<4x1024xf32>
    %40 = arith.maximumf %38, %39 : vector<4x1024xf32>
    %c0_19 = arith.constant 0 : index
    %c0_20 = arith.constant 0 : index
    %c0_21 = arith.constant 0 : index
    %41 = vector.load %arg4[%c0_19, %c0_20, %c0_21] : memref<2x4x1024xf32, #tpu.memory_space<vmem>>, vector<1x4x1024xf32>
    %42 = vector.shape_cast %41 : vector<1x4x1024xf32> to vector<4x1024xf32>
    %43 = vector.shape_cast %40 : vector<4x1024xf32> to vector<1x4x1024xf32>
    tpu.vector_store %arg4[%c0_19, %c0_20, %c0_21], %43 {strides = array<i32>} : memref<2x4x1024xf32, #tpu.memory_space<vmem>>, vector<1x4x1024xf32>,
    %44 = vector.broadcast %31 : vector<4x1xf32> to vector<4x1024xf32>
    %45 = arith.mulf %6, %44 : vector<4x1024xf32>
    %46 = vector.broadcast %34 : vector<4x1xf32> to vector<4x1024xf32>
    %47 = arith.addf %45, %46 : vector<4x1024xf32>
    %cst_22 = arith.constant 0.000000e+00 : f32
    %48 = vector.broadcast %cst_22 : f32 to vector<4x1024xf32>
    %49 = arith.maximumf %47, %48 : vector<4x1024xf32>
    %c1_23 = arith.constant 1 : index
    %c0_24 = arith.constant 0 : index
    %c0_25 = arith.constant 0 : index
    %50 = vector.load %arg4[%c1_23, %c0_24, %c0_25] : memref<2x4x1024xf32, #tpu.memory_space<vmem>>, vector<1x4x1024xf32>
    %51 = vector.shape_cast %50 : vector<1x4x1024xf32> to vector<4x1024xf32>
    %52 = vector.shape_cast %49 : vector<4x1024xf32> to vector<1x4x1024xf32>
    tpu.vector_store %arg4[%c1_23, %c0_24, %c0_25], %52 {strides = array<i32>} : memref<2x4x1024xf32, #tpu.memory_space<vmem>>, vector<1x4x1024xf32>,
    return
  }
}

module attributes {stable_mosaic.version = 11 : i64} {
  func.func @_conv_bn_relu_kernel(%arg0: memref<2x36x4096xf32, #tpu.memory_space<vmem>>, %arg1: memref<2x36xf32, #tpu.memory_space<vmem>>, %arg2: memref<2x1xf32, #tpu.memory_space<vmem>>, %arg3: memref<2x1xf32, #tpu.memory_space<vmem>>, %arg4: memref<2x2x4096xf32, #tpu.memory_space<vmem>>) attributes {dimension_semantics = [], scalar_prefetch = 0 : i64, scratch_operands = 0 : i64, tpu.core_type = #tpu.core_type<tc>} {
    %c0 = arith.constant 0 : index
    %c0_0 = arith.constant 0 : index
    %0 = vector.load %arg1[%c0, %c0_0] : memref<2x36xf32, #tpu.memory_space<vmem>>, vector<2x36xf32>
    %c0_1 = arith.constant 0 : index
    %c0_2 = arith.constant 0 : index
    %c0_3 = arith.constant 0 : index
    %1 = vector.load %arg0[%c0_1, %c0_2, %c0_3] : memref<2x36x4096xf32, #tpu.memory_space<vmem>>, vector<1x36x4096xf32>
    %2 = vector.shape_cast %1 : vector<1x36x4096xf32> to vector<36x4096xf32>
    %cst = arith.constant dense<0.000000e+00> : vector<2x4096xf32>
    %3 = tpu.matmul %0, %2, %cst {dimension_numbers = #tpu.dot_dimension_numbers<[1], [0], [0], [1], [0, 0, 1, 1], [], []>} : vector<2x36xf32>, vector<36x4096xf32>, vector<2x4096xf32> -> vector<2x4096xf32>
    %c1 = arith.constant 1 : index
    %c0_4 = arith.constant 0 : index
    %c0_5 = arith.constant 0 : index
    %4 = vector.load %arg0[%c1, %c0_4, %c0_5] : memref<2x36x4096xf32, #tpu.memory_space<vmem>>, vector<1x36x4096xf32>
    %5 = vector.shape_cast %4 : vector<1x36x4096xf32> to vector<36x4096xf32>
    %cst_6 = arith.constant dense<0.000000e+00> : vector<2x4096xf32>
    %6 = tpu.matmul %0, %5, %cst_6 {dimension_numbers = #tpu.dot_dimension_numbers<[1], [0], [0], [1], [0, 0, 1, 1], [], []>} : vector<2x36xf32>, vector<36x4096xf32>, vector<2x4096xf32> -> vector<2x4096xf32>
    %cst_7 = arith.constant dense<0.000000e+00> : vector<2xf32>
    %7 = vector.multi_reduction <add>, %3, %cst_7 [1] : vector<2x4096xf32> to vector<2xf32>
    %8 = vector.shape_cast %7 : vector<2xf32> to vector<2x1xf32>
    %cst_8 = arith.constant dense<0.000000e+00> : vector<2xf32>
    %9 = vector.multi_reduction <add>, %6, %cst_8 [1] : vector<2x4096xf32> to vector<2xf32>
    %10 = vector.shape_cast %9 : vector<2xf32> to vector<2x1xf32>
    %11 = arith.addf %8, %10 : vector<2x1xf32>
    %cst_9 = arith.constant 1.22070313E-4 : f32
    %12 = vector.broadcast %cst_9 : f32 to vector<2x1xf32>
    %13 = arith.mulf %11, %12 : vector<2x1xf32>
    %14 = vector.broadcast %13 : vector<2x1xf32> to vector<2x4096xf32>
    %15 = arith.subf %3, %14 : vector<2x4096xf32>
    %16 = arith.mulf %15, %15 : vector<2x4096xf32>
    %cst_10 = arith.constant dense<0.000000e+00> : vector<2xf32>
    %17 = vector.multi_reduction <add>, %16, %cst_10 [1] : vector<2x4096xf32> to vector<2xf32>
    %18 = vector.shape_cast %17 : vector<2xf32> to vector<2x1xf32>
    %19 = vector.broadcast %13 : vector<2x1xf32> to vector<2x4096xf32>
    %20 = arith.subf %6, %19 : vector<2x4096xf32>
    %21 = arith.mulf %20, %20 : vector<2x4096xf32>
    %cst_11 = arith.constant dense<0.000000e+00> : vector<2xf32>
    %22 = vector.multi_reduction <add>, %21, %cst_11 [1] : vector<2x4096xf32> to vector<2xf32>
    %23 = vector.shape_cast %22 : vector<2xf32> to vector<2x1xf32>
    %24 = arith.addf %18, %23 : vector<2x1xf32>
    %cst_12 = arith.constant 1.22070313E-4 : f32
    %25 = vector.broadcast %cst_12 : f32 to vector<2x1xf32>
    %26 = arith.mulf %24, %25 : vector<2x1xf32>
    %c0_13 = arith.constant 0 : index
    %c0_14 = arith.constant 0 : index
    %27 = vector.load %arg2[%c0_13, %c0_14] : memref<2x1xf32, #tpu.memory_space<vmem>>, vector<2x1xf32>
    %cst_15 = arith.constant 9.99999974E-6 : f32
    %28 = vector.broadcast %cst_15 : f32 to vector<2x1xf32>
    %29 = arith.addf %26, %28 : vector<2x1xf32>
    %30 = math.rsqrt %29 : vector<2x1xf32>
    %31 = arith.mulf %27, %30 : vector<2x1xf32>
    %c0_16 = arith.constant 0 : index
    %c0_17 = arith.constant 0 : index
    %32 = vector.load %arg3[%c0_16, %c0_17] : memref<2x1xf32, #tpu.memory_space<vmem>>, vector<2x1xf32>
    %33 = arith.mulf %13, %31 : vector<2x1xf32>
    %34 = arith.subf %32, %33 : vector<2x1xf32>
    %35 = vector.broadcast %31 : vector<2x1xf32> to vector<2x4096xf32>
    %36 = arith.mulf %3, %35 : vector<2x4096xf32>
    %37 = vector.broadcast %34 : vector<2x1xf32> to vector<2x4096xf32>
    %38 = arith.addf %36, %37 : vector<2x4096xf32>
    %cst_18 = arith.constant 0.000000e+00 : f32
    %39 = vector.broadcast %cst_18 : f32 to vector<2x4096xf32>
    %40 = arith.maximumf %38, %39 : vector<2x4096xf32>
    %c0_19 = arith.constant 0 : index
    %c0_20 = arith.constant 0 : index
    %c0_21 = arith.constant 0 : index
    %41 = vector.load %arg4[%c0_19, %c0_20, %c0_21] : memref<2x2x4096xf32, #tpu.memory_space<vmem>>, vector<1x2x4096xf32>
    %42 = vector.shape_cast %41 : vector<1x2x4096xf32> to vector<2x4096xf32>
    %43 = vector.shape_cast %40 : vector<2x4096xf32> to vector<1x2x4096xf32>
    tpu.vector_store %arg4[%c0_19, %c0_20, %c0_21], %43 {strides = array<i32>} : memref<2x2x4096xf32, #tpu.memory_space<vmem>>, vector<1x2x4096xf32>,
    %44 = vector.broadcast %31 : vector<2x1xf32> to vector<2x4096xf32>
    %45 = arith.mulf %6, %44 : vector<2x4096xf32>
    %46 = vector.broadcast %34 : vector<2x1xf32> to vector<2x4096xf32>
    %47 = arith.addf %45, %46 : vector<2x4096xf32>
    %cst_22 = arith.constant 0.000000e+00 : f32
    %48 = vector.broadcast %cst_22 : f32 to vector<2x4096xf32>
    %49 = arith.maximumf %47, %48 : vector<2x4096xf32>
    %c1_23 = arith.constant 1 : index
    %c0_24 = arith.constant 0 : index
    %c0_25 = arith.constant 0 : index
    %50 = vector.load %arg4[%c1_23, %c0_24, %c0_25] : memref<2x2x4096xf32, #tpu.memory_space<vmem>>, vector<1x2x4096xf32>
    %51 = vector.shape_cast %50 : vector<1x2x4096xf32> to vector<2x4096xf32>
    %52 = vector.shape_cast %49 : vector<2x4096xf32> to vector<1x2x4096xf32>
    tpu.vector_store %arg4[%c1_23, %c0_24, %c0_25], %52 {strides = array<i32>} : memref<2x2x4096xf32, #tpu.memory_space<vmem>>, vector<1x2x4096xf32>,
    return
  }
}

module attributes {stable_mosaic.version = 11 : i64} {
  func.func @_conv_tanh_kernel(%arg0: memref<2x18x4096xf32, #tpu.memory_space<vmem>>, %arg1: memref<3x18xf32, #tpu.memory_space<vmem>>, %arg2: memref<2x3x4096xf32, #tpu.memory_space<vmem>>) attributes {dimension_semantics = [], scalar_prefetch = 0 : i64, scratch_operands = 0 : i64, tpu.core_type = #tpu.core_type<tc>} {
    %c0 = arith.constant 0 : index
    %c0_0 = arith.constant 0 : index
    %0 = vector.load %arg1[%c0, %c0_0] : memref<3x18xf32, #tpu.memory_space<vmem>>, vector<3x18xf32>
    %c0_1 = arith.constant 0 : index
    %c0_2 = arith.constant 0 : index
    %c0_3 = arith.constant 0 : index
    %1 = vector.load %arg0[%c0_1, %c0_2, %c0_3] : memref<2x18x4096xf32, #tpu.memory_space<vmem>>, vector<1x18x4096xf32>
    %2 = vector.shape_cast %1 : vector<1x18x4096xf32> to vector<18x4096xf32>
    %cst = arith.constant dense<0.000000e+00> : vector<3x4096xf32>
    %3 = tpu.matmul %0, %2, %cst {dimension_numbers = #tpu.dot_dimension_numbers<[1], [0], [0], [1], [0, 0, 1, 1], [], []>} : vector<3x18xf32>, vector<18x4096xf32>, vector<3x4096xf32> -> vector<3x4096xf32>
    %4 = math.tanh %3 : vector<3x4096xf32>
    %c0_4 = arith.constant 0 : index
    %c0_5 = arith.constant 0 : index
    %c0_6 = arith.constant 0 : index
    %5 = vector.load %arg2[%c0_4, %c0_5, %c0_6] : memref<2x3x4096xf32, #tpu.memory_space<vmem>>, vector<1x3x4096xf32>
    %6 = vector.shape_cast %5 : vector<1x3x4096xf32> to vector<3x4096xf32>
    %7 = vector.shape_cast %4 : vector<3x4096xf32> to vector<1x3x4096xf32>
    tpu.vector_store %arg2[%c0_4, %c0_5, %c0_6], %7 {strides = array<i32>} : memref<2x3x4096xf32, #tpu.memory_space<vmem>>, vector<1x3x4096xf32>,
    %c1 = arith.constant 1 : index
    %c0_7 = arith.constant 0 : index
    %c0_8 = arith.constant 0 : index
    %8 = vector.load %arg0[%c1, %c0_7, %c0_8] : memref<2x18x4096xf32, #tpu.memory_space<vmem>>, vector<1x18x4096xf32>
    %9 = vector.shape_cast %8 : vector<1x18x4096xf32> to vector<18x4096xf32>
    %cst_9 = arith.constant dense<0.000000e+00> : vector<3x4096xf32>
    %10 = tpu.matmul %0, %9, %cst_9 {dimension_numbers = #tpu.dot_dimension_numbers<[1], [0], [0], [1], [0, 0, 1, 1], [], []>} : vector<3x18xf32>, vector<18x4096xf32>, vector<3x4096xf32> -> vector<3x4096xf32>
    %11 = math.tanh %10 : vector<3x4096xf32>
    %c1_10 = arith.constant 1 : index
    %c0_11 = arith.constant 0 : index
    %c0_12 = arith.constant 0 : index
    %12 = vector.load %arg2[%c1_10, %c0_11, %c0_12] : memref<2x3x4096xf32, #tpu.memory_space<vmem>>, vector<1x3x4096xf32>
    %13 = vector.shape_cast %12 : vector<1x3x4096xf32> to vector<3x4096xf32>
    %14 = vector.shape_cast %11 : vector<3x4096xf32> to vector<1x3x4096xf32>
    tpu.vector_store %arg2[%c1_10, %c0_11, %c0_12], %14 {strides = array<i32>} : memref<2x3x4096xf32, #tpu.memory_space<vmem>>, vector<1x3x4096xf32>,
    return
  }
}

</mosaic_0001>

<bundles_post_ra>
// kernel: stage1_g_forward.8
= control target key start
LH: loop header
LB: loop body
LE: loop exit
PB: predicated region body
PF: predicated region fallthrough
CT: control target
= control target key end

     0   :  { %9 = vsyncpa [#allocation3], 0  ;;  %s462_s15 = smov [#allocation2]   ;;  %s552_s0 = inlined_call_operand.vmem [shape: f32[2,32], index: 0, kind: input, shape index: {}]   ;;  %s553_s1 = inlined_call_operand.hbm [shape: f32[32,512], index: 1, kind: input, shape index: {}]   ;;  %s554_s2 = inlined_call_operand.vmem [shape: f32[1,512], index: 2, kind: input, shape index: {}]   ;;  %s555_s3 = inlined_call_operand.vmem [shape: f32[1,512], index: 3, kind: input, shape index: {}]   ;;  %s556_s4 = inlined_call_operand.vmem [shape: f32[2,512], index: 4, kind: output, shape index: {}]  }
   0x1   :  { %s17_s16 = sshll.u32 %s462_s15, 4  ;;  %s18_s16 = int_to_ptr.vmem [resolvable:$true] %s17_s16 }
   0x2   :  { %s448_s17 = scalar_lea.vmem %s18_s16, 2048  ;;  %p453_p1 = scmp.lt.s32.totalorder %s18_s16, %s18_s16 }
   0x3   :  { %p449_p0 = scmp.ne.s32.totalorder %s18_s16, %s448_s17  ;;  %p454_p2 = scmp.lt.s32.totalorder %s448_s17, %s448_s17 }
   0x5   :  { %p455_p3 = por %p454_p2, %p453_p1 }
   0x7   :  { %p456_p4 = pnand %p455_p3, %p449_p0 }
   0x9   :  { %459 = shalt.err (!%p456_p4)
}
   0xa   :  { %s463_s18 = smov 512   ;;  %s464_s19 = smov 32  }
   0xb   :  { %23 = dma.hbm_to_vmem [thread:$0]  %s553_s1, 2048, %s18_s16, [#allocation3], %s463_s18, %s463_s18, %s464_s19  }
   0xc   :  { %460 = dma.done.wait [#allocation3], 2048  }
   0xd   :  { %461 = vsyncadd [#allocation3], 4294965248  ;;  %v465_v0 = vmov 0.0   ;;  %v45_v1 = vld [vmem:[#allocation2 + $0x68] sm:$0xff]  ;;  %v47_v2 = vld [vmem:[#allocation2 + $0x78] sm:$0xff]  ;;  %vm48_vm0 = vcmask 261120  }
   0xe   :  { %116 = vmatprep.mubr.f32.mxu0 %v465_v0  ;;  %187 = vmatprep.mubr.f32.mxu1 %v465_v0  ;;  %v44_v3 = vld [vmem:[#allocation2 + $0x60] sm:$0xff]  ;;  %v46_v4 = vld [vmem:[#allocation2 + $0x70] sm:$0xff]  ;;  %v41_v5 = vld [vmem:[#allocation2 + $0x48] sm:$0xff]  ;;  %vm194_vm1 = vcmask 1041408  }
   0xf   :  { %76 = vmatprep.subr.mxu0 %v45_v1  ;;  %147 = vmatprep.subr.mxu1 %v47_v2  ;;  %v43_v6 = vld [vmem:[#allocation2 + $0x58] sm:$0xff]  ;;  %v40_v7 = vld [vmem:[#allocation2 + $0x40] sm:$0xff]  ;;  %v42_v8 = vld [vmem:[#allocation2 + $0x50] sm:$0xff] }
  0x10   :  { %77 = vmatpush1.msra.mxu0 %v44_v3  ;;  %148 = vmatpush1.msra.mxu1 %v46_v4  ;;  %v37_v9 = vld [vmem:[#allocation2 + $0x28] sm:$0xff]  ;;  %v39_v10 = vld [vmem:[#allocation2 + $0x38] sm:$0xff]  ;;  %v36_v11 = vld [vmem:[#allocation2 + $0x20] sm:$0xff] }
  0x11   :  { %78 = vmatprep.subr.mxu0 %v41_v5  ;;  %149 = vmatprep.subr.mxu1 %v43_v6  ;;  %v38_v12 = vld [vmem:[#allocation2 + $0x30] sm:$0xff]  ;;  %v33_v13 = vld [vmem:[#allocation2 + $0x8] sm:$0xff]  ;;  %v35_v14 = vld [vmem:[#allocation2 + $0x18] sm:$0xff] }
  0x12   :  { %79 = vmatpush1.msra.mxu0 %v40_v7  ;;  %150 = vmatpush1.msra.mxu1 %v42_v8  ;;  %v32_v15 = vld [vmem:[#allocation2] sm:$0xff]  ;;  %v34_v16 = vld [vmem:[#allocation2 + $0x10] sm:$0xff] }
  0x13   :  { %80 = vmatprep.subr.mxu0 %v37_v9  ;;  %151 = vmatprep.subr.mxu1 %v39_v10  ;;  %v31_v17 = vld [vmem:[%s552_s0] sm:$0x3] }
  0x14   :  { %81 = vmatpush1.msra.mxu0 %v36_v11  ;;  %152 = vmatpush1.msra.mxu1 %v38_v12 }
  0x15   :  { %82 = vmatprep.subr.mxu0 %v33_v13  ;;  %153 = vmatprep.subr.mxu1 %v35_v14 }
  0x16   :  { %83 = vmatpush1.msra.mxu0 %v32_v15  ;;  %154 = vmatpush1.msra.mxu1 %v34_v16 }
  0x17   :  { %424 = vmatmul.mubr.msk.f32.vlgmr.msra.gmra.mxu0 %vm48_vm0, %v31_v17  ;;  %425 = vmatmul.mubr.msk.f32.vlgmr.msra.gmra.mxu1 %vm48_vm0, %v31_v17 }
  0xd7   :  { %v499_v18 = vpop.f32.mrf.mxu0  ;;  %v501_v19 = vpop.f32.mrf.mxu1 }
  0xd8   :  { %v195_v20 = vsel %vm194_vm1, %v499_v18, 0.0  ;;  %v209_v21 = vsel %vm194_vm1, %v501_v19, 0.0 }
  0xd9   :  { %v196_v22 = vrot.slane %v195_v20, 4  ;;  %v210_v23 = vrot.slane %v209_v21, 4  ;;  %v507_v24 = vpop.f32.mrf.mxu0  ;;  %v509_v25 = vpop.f32.mrf.mxu1 }
  0xda   :  { %v202_v26 = vsel %vm194_vm1, %v507_v24, 0.0  ;;  %v216_v27 = vsel %vm194_vm1, %v509_v25, 0.0 }
  0xdb   :  { %v197_v28 = vadd.f32 %v196_v22, %v195_v20  ;;  %v211_v29 = vadd.f32 %v210_v23, %v209_v21  ;;  %v203_v30 = vrot.slane %v202_v26, 4  ;;  %v217_v31 = vrot.slane %v216_v27, 4 }
  0xdd   :  { %v198_v32 = vrot.slane %v197_v28, 2  ;;  %v212_v33 = vrot.slane %v211_v29, 2  ;;  %v204_v34 = vadd.f32 %v203_v30, %v202_v26  ;;  %v218_v35 = vadd.f32 %v217_v31, %v216_v27 }
  0xdf   :  { %v199_v36 = vadd.f32 %v198_v32, %v197_v28  ;;  %v213_v37 = vadd.f32 %v212_v33, %v211_v29  ;;  %v205_v38 = vrot.slane %v204_v34, 2  ;;  %v219_v39 = vrot.slane %v218_v35, 2 }
  0xe1   :  { %v200_v40 = vrot.slane %v199_v36, 1  ;;  %v214_v41 = vrot.slane %v213_v37, 1  ;;  %v206_v42 = vadd.f32 %v205_v38, %v204_v34  ;;  %v220_v43 = vadd.f32 %v219_v39, %v218_v35 }
  0xe2   :  { %v466_v38 = vmov 1966171168  }
  0xe3   :  { %v201_v44 = vadd.f32 %v200_v40, %v199_v36  ;;  %v215_v45 = vadd.f32 %v214_v41, %v213_v37  ;;  %v207_v46 = vrot.slane %v206_v42, 1  ;;  %v221_v47 = vrot.slane %v220_v43, 1 }
  0xe4   :  { %v284_v39 = vunpack.c.l.s4 %v466_v38  ;;  %v286_v40 = vlaneseq }
  0xe5   :  { %v515_v48 = vmul.f32 0.5, %v201_v44  ;;  %v517_v49 = vmul.f32 0.5, %v215_v45  ;;  %v208_v50 = vadd.f32 %v207_v46, %v206_v42  ;;  %v222_v51 = vadd.f32 %v221_v47, %v220_v43 }
  0xe6   :  { %v285_v41 = vunpack.c.0.s8 %v284_v39  ;;  %v287_v42 = vshrl.u32 %v286_v40, 7 }
  0xe7   :  { %v228_v52 = vsub.f32 %v499_v18, %v515_v48  ;;  %v230_v53 = vsub.f32 %v501_v19, %v517_v49  ;;  %v523_v54 = vmul.f32 0.5, %v208_v50  ;;  %v525_v55 = vmul.f32 0.5, %v222_v51 }
  0xe8   :  { %v288_v45 = vsub.s32 %v285_v41, %v287_v42 }
  0xe9   :  { %v232_v56 = vmul.f32 %v228_v52, %v228_v52  ;;  %v234_v57 = vmul.f32 %v230_v53, %v230_v53  ;;  %v229_v58 = vsub.f32 %v507_v24, %v523_v54  ;;  %v231_v59 = vsub.f32 %v509_v25, %v525_v55 }
  0xeb   :  { %v236_v60 = vsel %vm194_vm1, %v232_v56, 0.0  ;;  %v250_v61 = vsel %vm194_vm1, %v234_v57, 0.0  ;;  %v233_v62 = vmul.f32 %v229_v58, %v229_v58  ;;  %v235_v63 = vmul.f32 %v231_v59, %v231_v59  ;;  %v268_v57 = vld [vmem:[%s554_s2] sm:$0xf] }
  0xec   :  { %v237_v0 = vrot.slane %v236_v60, 4  ;;  %v251_v1 = vrot.slane %v250_v61, 4  ;;  %v311_v58 = vsub.s32 0, %v287_v42 }
  0xed   :  { %v243_v2 = vsel %vm194_vm1, %v233_v62, 0.0  ;;  %v257_v3 = vsel %vm194_vm1, %v235_v63, 0.0  ;;  %v323_v62 = vsub.s32 3, %v287_v42 }
  0xee   :  { %v238_v4 = vadd.f32 %v237_v0, %v236_v60  ;;  %v252_v5 = vadd.f32 %v251_v1, %v250_v61  ;;  %v244_v6 = vrot.slane %v243_v2, 4  ;;  %v258_v7 = vrot.slane %v257_v3, 4 }
  0xef   :  { %v315_v60 = vsub.s32 1, %v287_v42  ;;  %v319_v61 = vsub.s32 2, %v287_v42 }
  0xf0   :  { %v239_v8 = vrot.slane %v238_v4, 2  ;;  %v253_v9 = vrot.slane %v252_v5, 2  ;;  %v245_v10 = vadd.f32 %v244_v6, %v243_v2  ;;  %v259_v11 = vadd.f32 %v258_v7, %v257_v3 }
  0xf2   :  { %v240_v12 = vadd.f32 %v239_v8, %v238_v4  ;;  %v254_v13 = vadd.f32 %v253_v9, %v252_v5  ;;  %v246_v14 = vrot.slane %v245_v10, 2  ;;  %v260_v15 = vrot.slane %v259_v11, 2 }
  0xf4   :  { %v241_v16 = vrot.slane %v240_v12, 1  ;;  %v255_v17 = vrot.slane %v254_v13, 1  ;;  %v247_v20 = vadd.f32 %v246_v14, %v245_v10  ;;  %v261_v21 = vadd.f32 %v260_v15, %v259_v11  ;;  %v307_v15 = vld [vmem:[%s555_s3] sm:$0xf] }
  0xf6   :  { %v242_v22 = vadd.f32 %v241_v16, %v240_v12  ;;  %v256_v23 = vadd.f32 %v255_v17, %v254_v13  ;;  %v248_v26 = vrot.slane %v247_v20, 1  ;;  %v262_v27 = vrot.slane %v261_v21, 1 }
  0xf7   :  { %v467_v13 = vmov 1983009808  }
  0xf8   :  { %v264_v28 = vmul.f32 0.5, %v242_v22  ;;  %v266_v29 = vmul.f32 0.5, %v256_v23  ;;  %v249_v30 = vadd.f32 %v248_v26, %v247_v20  ;;  %v263_v31 = vadd.f32 %v262_v27, %v261_v21 }
  0xf9   :  { %v403_v14 = vunpack.c.l.s4 %v467_v13 }
  0xfa   :  { %v269_v32 = vadd.f32 1e-05, %v264_v28  ;;  %v271_v33 = vadd.f32 1e-05, %v266_v29  ;;  %v265_v34 = vmul.f32 0.5, %v249_v30  ;;  %v267_v35 = vmul.f32 0.5, %v263_v31 }
  0xfc   :  { %432 = vrsqrt.f32 %v269_v32  ;;  %v270_v36 = vadd.f32 1e-05, %v265_v34  ;;  %v272_v37 = vadd.f32 1e-05, %v267_v35 }
  0xfd   :  { %434 = vrsqrt.f32 %v271_v33 }
  0xfe   :  { %436 = vrsqrt.f32 %v270_v36 }
  0xff   :  { %438 = vrsqrt.f32 %v272_v37 }
 0x109   :  { %v433_v43 = vpop.eup %432 }
 0x10a   :  { %v435_v44 = vpop.eup %434 }
 0x10b   :  { %v437_v46 = vpop.eup %436 }
 0x10c   :  { %v439_v47 = vpop.eup %438  ;;  %v281_v50 = vcombine.low %v433_v43, %v437_v46 }
 0x10d   :  { %v282_v51 = vcombine.low %v435_v44, %v439_v47 }
 0x10e   :  { %v289_v52 = vrot.slane %v281_v50, %v288_v45 }
 0x10f   :  { %v296_v53 = vrot.slane %v282_v51, %v288_v45 }
 0x111   :  { %v297_v56 = vcombine.low %v289_v52, %v296_v53 }
 0x113   :  { %v304_v59 = vrot.slane %v297_v56, %v288_v45 }
 0x115   :  { %v306_v63 = vmul.f32 %v304_v59, %v268_v57 }
 0x117   :  { %v312_v0 = vrot.slane %v306_v63, %v311_v58  ;;  %v316_v1 = vrot.slane %v306_v63, %v315_v60  ;;  %v320_v2 = vrot.slane %v306_v63, %v319_v61  ;;  %v324_v3 = vrot.slane %v306_v63, %v323_v62 }
 0x119   :  { %v329_v4 = vmul.f32 %v312_v0, %v515_v48  ;;  %v330_v5 = vmul.f32 %v316_v1, %v523_v54  ;;  %v331_v6 = vmul.f32 %v320_v2, %v517_v49  ;;  %v332_v7 = vmul.f32 %v324_v3, %v525_v55 }
 0x11a   :  { %v404_v48 = vunpack.c.0.s8 %v403_v14  ;;  %v363_v54 = vmul.f32 %v312_v0, %v499_v18  ;;  %v364_v49 = vmul.f32 %v316_v1, %v507_v24  ;;  %v365_v55 = vmul.f32 %v320_v2, %v501_v19 }
 0x11b   :  { %v337_v8 = vcombine.low %v329_v4, %v330_v5  ;;  %v338_v9 = vcombine.low %v331_v6, %v332_v7  ;;  %v366_v20 = vmul.f32 %v324_v3, %v509_v25 }
 0x11c   :  { %v407_v31 = vsub.s32 %v404_v48, %v287_v42 }
 0x11d   :  { %v345_v10 = vrot.slane %v337_v8, %v288_v45  ;;  %v352_v11 = vrot.slane %v338_v9, %v288_v45 }
 0x11f   :  { %v353_v12 = vcombine.low %v345_v10, %v352_v11 }
 0x121   :  { %v360_v16 = vrot.slane %v353_v12, %v288_v45 }
 0x123   :  { %v362_v17 = vsub.f32 %v307_v15, %v360_v16 }
 0x125   :  { %v371_v21 = vrot.slane %v362_v17, %v311_v58  ;;  %v375_v22 = vrot.slane %v362_v17, %v315_v60  ;;  %v379_v23 = vrot.slane %v362_v17, %v319_v61  ;;  %v383_v26 = vrot.slane %v362_v17, %v323_v62 }
 0x127   :  { %v388_v27 = vadd.f32 %v371_v21, %v363_v54  ;;  %v389_v28 = vadd.f32 %v375_v22, %v364_v49  ;;  %v390_v29 = vadd.f32 %v379_v23, %v365_v55  ;;  %v391_v30 = vadd.f32 %v383_v26, %v366_v20 }
 0x129   :  { %v392_v32 = vmax.f32 %v388_v27, 0.0  ;;  %v393_v33 = vmax.f32 %v389_v28, 0.0  ;;  %v394_v34 = vmax.f32 %v390_v29, 0.0  ;;  %v395_v35 = vmax.f32 %v391_v30, 0.0 }
 0x12b   :  { %v400_v18 = vcombine.low %v392_v32, %v393_v33  ;;  %v401_v36 = vcombine.low %v394_v34, %v395_v35 }
 0x12d   :  { %v408_v24 = vrot.slane %v400_v18, %v407_v31  ;;  %v415_v37 = vrot.slane %v401_v36, %v407_v31 }
 0x12f   :  { %v416_v19 = vcombine.low %v408_v24, %v415_v37 }
 0x131   :  { %418 = vst [vmem:[%s556_s4] sm:$0xff] %v416_v19 }
 0x132   :  { %423 = vsyncpa [#allocation3], 1 }

// kernel: stage1_g_forward.7
= control target key start
LH: loop header
LB: loop body
LE: loop exit
PB: predicated region body
PF: predicated region fallthrough
CT: control target
= control target key end

     0   :  { %10 = vsyncpa [#allocation3], 0  ;;  %s1416_s0 = inlined_call_operand.vmem [shape: f32[4,256], index: 0, kind: input, shape index: {}]   ;;  %s1417_s1 = inlined_call_operand.hbm [shape: f32[256,1024], index: 1, kind: input, shape index: {}]   ;;  %s1418_s2 = inlined_call_operand.hbm [shape: f32[1,1024], index: 2, kind: input, shape index: {}]   ;;  %s1419_s3 = inlined_call_operand.hbm [shape: f32[1024,16], index: 3, kind: input, shape index: {}]   ;;  %s1420_s4 = inlined_call_operand.hbm [shape: f32[1,16], index: 4, kind: input, shape index: {}]   ;;  %s1421_s5 = inlined_call_operand.vmem [shape: f32[4,16], index: 5, kind: output, shape index: {}]  }
   0x1   :  { %11 = vsyncpa [#allocation5], 0 }
   0x2   :  { %12 = vsyncpa [#allocation8], 0  ;;  %s1326_s18 = smov [#allocation4]   ;;  %s1327_s20 = smov [#allocation2]  }
   0x3   :  { %s33_s19 = sshll.u32 %s1326_s18, 4  ;;  %s20_s21 = sshll.u32 %s1327_s20, 4  ;;  %s34_s19 = int_to_ptr.vmem [resolvable:$true] %s33_s19  ;;  %s21_s21 = int_to_ptr.vmem [resolvable:$true] %s20_s21 }
   0x4   :  { %s1248_s22 = scalar_lea.vmem %s34_s19, 128  ;;  %p1253_p1 = scmp.lt.s32.totalorder %s34_s19, %s34_s19 }
   0x5   :  { %p1249_p0 = scmp.ne.s32.totalorder %s34_s19, %s1248_s22  ;;  %p1254_p2 = scmp.lt.s32.totalorder %s1248_s22, %s1248_s22 }
   0x7   :  { %p1255_p3 = por %p1254_p2, %p1253_p1 }
   0x9   :  { %p1256_p4 = pnand %p1255_p3, %p1249_p0 }
   0xb   :  { %1259 = shalt.err (!%p1256_p4)
}
   0xc   :  { %36 = dma.hbm_to_vmem [thread:$0]  %s1418_s2, 128, %s34_s19, [#allocation5]  }
   0xd   :  { %s1268_s25 = scalar_lea.vmem %s21_s21, 32768  ;;  %p1273_p6 = scmp.lt.s32.totalorder %s21_s21, %s21_s21 }
   0xe   :  { %p1269_p5 = scmp.ne.s32.totalorder %s21_s21, %s1268_s25  ;;  %p1274_p7 = scmp.lt.s32.totalorder %s1268_s25, %s1268_s25 }
  0x10   :  { %p1275_p8 = por %p1274_p7, %p1273_p6 }
  0x12   :  { %p1276_p9 = pnand %p1275_p8, %p1269_p5 }
  0x14   :  { %1279 = shalt.err (!%p1276_p9)
}
  0x15   :  { %s1328_s26 = smov 1024   ;;  %s1329_s27 = smov 64  }
  0x16   :  { %26 = dma.hbm_to_vmem [thread:$0]  %s1417_s1, 32768, %s21_s21, [#allocation3], %s1328_s26, %s1328_s26, %s1329_s27  }
  0x17   :  { %s1330_s30 = smov [#allocation6]  }
  0x18   :  { %s42_s6 = sshll.u32 %s1330_s30, 4  ;;  %s43_s6 = int_to_ptr.vmem [resolvable:$true] %s42_s6 }
  0x19   :  { %s1288_s7 = scalar_lea.vmem %s43_s6, 16384  ;;  %p1293_p11 = scmp.lt.s32.totalorder %s43_s6, %s43_s6 }
  0x1a   :  { %p1289_p10 = scmp.ne.s32.totalorder %s43_s6, %s1288_s7  ;;  %p1294_p12 = scmp.lt.s32.totalorder %s1288_s7, %s1288_s7 }
  0x1c   :  { %p1295_p13 = por %p1294_p12, %p1293_p11 }
  0x1e   :  { %p1296_p0 = pnand %p1295_p13, %p1289_p10 }
  0x20   :  { %1299 = shalt.err (!%p1296_p0)
}
  0x21   :  { %s1331_s2 = smov 128   ;;  %s1332_s8 = smov 8  }
  0x22   :  { %48 = dma.hbm_to_vmem [thread:$0]  %s1419_s3, 16384, %s43_s6, [#allocation5], %s1331_s2, %s1331_s2, %s1332_s8  }
  0x23   :  { %s1333_s11 = smov [#allocation7]  }
  0x24   :  { %s55_s12 = sshll.u32 %s1333_s11, 4  ;;  %s56_s12 = int_to_ptr.vmem [resolvable:$true] %s55_s12 }
  0x25   :  { %s1308_s1 = scalar_lea.vmem %s56_s12, 16  ;;  %s1312_s13 = scalar_lea.vmem %s56_s12, 32 }
  0x26   :  { %p1309_p1 = scmp.ne.s32.totalorder %s56_s12, %s1308_s1  ;;  %p1313_p2 = scmp.lt.s32.totalorder %s56_s12, %s56_s12 }
  0x27   :  { %p1314_p3 = scmp.lt.s32.totalorder %s1312_s13, %s1308_s1 }
  0x29   :  { %p1315_p4 = por %p1314_p3, %p1313_p2 }
  0x2b   :  { %p1316_p5 = pnand %p1315_p4, %p1309_p1 }
  0x2d   :  { %1319 = shalt.err (!%p1316_p5)
}
  0x2e   :  { %58 = dma.hbm_to_vmem [thread:$0]  %s1420_s4, 16, %s56_s12, [#allocation8]  }
  0x2f   :  { %1320 = dma.done.wait [#allocation3], 32768  }
  0x30   :  { %1321 = vsyncadd [#allocation3], 4294934528 }
  0x31   :  { %1322 = dma.done.wait [#allocation5], 16512  }
  0x32   :  { %1323 = vsyncadd [#allocation5], 4294950784 }
  0x33   :  { %1324 = dma.done.wait [#allocation8], 16  }
  0x34   :  { %1325 = vsyncadd [#allocation8], 4294967280  ;;  %v193_v0 = vld [vmem:[#allocation2 + $0x3c8] sm:$0xff]  ;;  %v195_v1 = vld [vmem:[#allocation2 + $0x3d8] sm:$0xff]  ;;  %vm1081_vm0 = vcmask 125952  }
  0x35   :  { %v192_v2 = vld [vmem:[#allocation2 + $0x3c0] sm:$0xff]  ;;  %373 = vmatprep.subr.mxu0 %v193_v0  ;;  %444 = vmatprep.subr.mxu1 %v195_v1  ;;  %v194_v3 = vld [vmem:[#allocation2 + $0x3d0] sm:$0xff]  ;;  %v185_v4 = vld [vmem:[#allocation2 + $0x388] sm:$0xff] }
  0x36   :  { %v187_v5 = vld [vmem:[#allocation2 + $0x398] sm:$0xff]  ;;  %374 = vmatpush1.msra.mxu0 %v192_v2  ;;  %445 = vmatpush1.msra.mxu1 %v194_v3  ;;  %v184_v6 = vld [vmem:[#allocation2 + $0x380] sm:$0xff]  ;;  %v186_v7 = vld [vmem:[#allocation2 + $0x390] sm:$0xff] }
  0x37   :  { %v177_v8 = vld [vmem:[#allocation2 + $0x348] sm:$0xff]  ;;  %375 = vmatprep.subr.mxu0 %v185_v4  ;;  %446 = vmatprep.subr.mxu1 %v187_v5  ;;  %v179_v9 = vld [vmem:[#allocation2 + $0x358] sm:$0xff]  ;;  %v176_v10 = vld [vmem:[#allocation2 + $0x340] sm:$0xff] }
  0x38   :  { %v178_v11 = vld [vmem:[#allocation2 + $0x350] sm:$0xff]  ;;  %376 = vmatpush1.msra.mxu0 %v184_v6  ;;  %447 = vmatpush1.msra.mxu1 %v186_v7  ;;  %v169_v12 = vld [vmem:[#allocation2 + $0x308] sm:$0xff]  ;;  %v171_v13 = vld [vmem:[#allocation2 + $0x318] sm:$0xff] }
  0x39   :  { %377 = vmatprep.subr.mxu0 %v177_v8  ;;  %448 = vmatprep.subr.mxu1 %v179_v9  ;;  %v168_v14 = vld [vmem:[#allocation2 + $0x300] sm:$0xff]  ;;  %v170_v15 = vld [vmem:[#allocation2 + $0x310] sm:$0xff]  ;;  %v161_v16 = vld [vmem:[#allocation2 + $0x2c8] sm:$0xff] }
  0x3a   :  { %378 = vmatpush1.msra.mxu0 %v176_v10  ;;  %449 = vmatpush1.msra.mxu1 %v178_v11  ;;  %v163_v17 = vld [vmem:[#allocation2 + $0x2d8] sm:$0xff]  ;;  %v160_v18 = vld [vmem:[#allocation2 + $0x2c0] sm:$0xff]  ;;  %v162_v19 = vld [vmem:[#allocation2 + $0x2d0] sm:$0xff] }
  0x3b   :  { %379 = vmatprep.subr.mxu0 %v169_v12  ;;  %450 = vmatprep.subr.mxu1 %v171_v13  ;;  %v153_v20 = vld [vmem:[#allocation2 + $0x288] sm:$0xff]  ;;  %v155_v21 = vld [vmem:[#allocation2 + $0x298] sm:$0xff]  ;;  %v152_v22 = vld [vmem:[#allocation2 + $0x280] sm:$0xff] }
  0x3c   :  { %380 = vmatpush1.msra.mxu0 %v168_v14  ;;  %451 = vmatpush1.msra.mxu1 %v170_v15  ;;  %v154_v23 = vld [vmem:[#allocation2 + $0x290] sm:$0xff]  ;;  %v145_v24 = vld [vmem:[#allocation2 + $0x248] sm:$0xff]  ;;  %v147_v25 = vld [vmem:[#allocation2 + $0x258] sm:$0xff] }
  0x3d   :  { %381 = vmatprep.subr.mxu0 %v161_v16  ;;  %452 = vmatprep.subr.mxu1 %v163_v17  ;;  %v144_v26 = vld [vmem:[#allocation2 + $0x240] sm:$0xff]  ;;  %v146_v27 = vld [vmem:[#allocation2 + $0x250] sm:$0xff]  ;;  %v137_v28 = vld [vmem:[#allocation2 + $0x208] sm:$0xff] }
  0x3e   :  { %382 = vmatpush1.msra.mxu0 %v160_v18  ;;  %453 = vmatpush1.msra.mxu1 %v162_v19  ;;  %v139_v29 = vld [vmem:[#allocation2 + $0x218] sm:$0xff]  ;;  %v136_v30 = vld [vmem:[#allocation2 + $0x200] sm:$0xff]  ;;  %v138_v31 = vld [vmem:[#allocation2 + $0x210] sm:$0xff] }
  0x3f   :  { %383 = vmatprep.subr.mxu0 %v153_v20  ;;  %454 = vmatprep.subr.mxu1 %v155_v21  ;;  %v129_v32 = vld [vmem:[#allocation2 + $0x1c8] sm:$0xff]  ;;  %v131_v33 = vld [vmem:[#allocation2 + $0x1d8] sm:$0xff]  ;;  %v128_v34 = vld [vmem:[#allocation2 + $0x1c0] sm:$0xff] }
  0x40   :  { %384 = vmatpush1.msra.mxu0 %v152_v22  ;;  %455 = vmatpush1.msra.mxu1 %v154_v23  ;;  %v130_v35 = vld [vmem:[#allocation2 + $0x1d0] sm:$0xff]  ;;  %v121_v36 = vld [vmem:[#allocation2 + $0x188] sm:$0xff]  ;;  %v123_v37 = vld [vmem:[#allocation2 + $0x198] sm:$0xff] }
  0x41   :  { %385 = vmatprep.subr.mxu0 %v145_v24  ;;  %456 = vmatprep.subr.mxu1 %v147_v25  ;;  %v120_v38 = vld [vmem:[#allocation2 + $0x180] sm:$0xff]  ;;  %v122_v39 = vld [vmem:[#allocation2 + $0x190] sm:$0xff]  ;;  %v113_v40 = vld [vmem:[#allocation2 + $0x148] sm:$0xff] }
  0x42   :  { %386 = vmatpush1.msra.mxu0 %v144_v26  ;;  %457 = vmatpush1.msra.mxu1 %v146_v27  ;;  %v115_v41 = vld [vmem:[#allocation2 + $0x158] sm:$0xff]  ;;  %v112_v42 = vld [vmem:[#allocation2 + $0x140] sm:$0xff]  ;;  %v114_v43 = vld [vmem:[#allocation2 + $0x150] sm:$0xff] }
  0x43   :  { %387 = vmatprep.subr.mxu0 %v137_v28  ;;  %458 = vmatprep.subr.mxu1 %v139_v29  ;;  %v105_v44 = vld [vmem:[#allocation2 + $0x108] sm:$0xff]  ;;  %v107_v45 = vld [vmem:[#allocation2 + $0x118] sm:$0xff]  ;;  %v104_v46 = vld [vmem:[#allocation2 + $0x100] sm:$0xff] }
  0x44   :  { %388 = vmatpush1.msra.mxu0 %v136_v30  ;;  %459 = vmatpush1.msra.mxu1 %v138_v31  ;;  %v106_v47 = vld [vmem:[#allocation2 + $0x110] sm:$0xff]  ;;  %v97_v48 = vld [vmem:[#allocation2 + $0xc8] sm:$0xff]  ;;  %v99_v49 = vld [vmem:[#allocation2 + $0xd8] sm:$0xff] }
  0x45   :  { %389 = vmatprep.subr.mxu0 %v129_v32  ;;  %460 = vmatprep.subr.mxu1 %v131_v33  ;;  %v96_v50 = vld [vmem:[#allocation2 + $0xc0] sm:$0xff]  ;;  %v98_v51 = vld [vmem:[#allocation2 + $0xd0] sm:$0xff]  ;;  %v89_v52 = vld [vmem:[#allocation2 + $0x88] sm:$0xff] }
  0x46   :  { %390 = vmatpush1.msra.mxu0 %v128_v34  ;;  %461 = vmatpush1.msra.mxu1 %v130_v35  ;;  %v91_v53 = vld [vmem:[#allocation2 + $0x98] sm:$0xff]  ;;  %v88_v54 = vld [vmem:[#allocation2 + $0x80] sm:$0xff]  ;;  %v90_v55 = vld [vmem:[#allocation2 + $0x90] sm:$0xff] }
  0x47   :  { %391 = vmatprep.subr.mxu0 %v121_v36  ;;  %462 = vmatprep.subr.mxu1 %v123_v37  ;;  %v81_v56 = vld [vmem:[#allocation2 + $0x48] sm:$0xff]  ;;  %v83_v57 = vld [vmem:[#allocation2 + $0x58] sm:$0xff]  ;;  %v80_v58 = vld [vmem:[#allocation2 + $0x40] sm:$0xff] }
  0x48   :  { %392 = vmatpush1.msra.mxu0 %v120_v38  ;;  %463 = vmatpush1.msra.mxu1 %v122_v39  ;;  %v82_v59 = vld [vmem:[#allocation2 + $0x50] sm:$0xff]  ;;  %v73_v60 = vld [vmem:[#allocation2 + $0x8] sm:$0xff]  ;;  %v75_v61 = vld [vmem:[#allocation2 + $0x18] sm:$0xff] }
  0x49   :  { %393 = vmatprep.subr.mxu0 %v113_v40  ;;  %464 = vmatprep.subr.mxu1 %v115_v41  ;;  %v72_v62 = vld [vmem:[#allocation2] sm:$0xff]  ;;  %v74_v63 = vld [vmem:[#allocation2 + $0x10] sm:$0xff]  ;;  %v321_v0 = vld [vmem:[#allocation2 + $0x7c8] sm:$0xff] }
  0x4a   :  { %394 = vmatpush1.msra.mxu0 %v112_v42  ;;  %465 = vmatpush1.msra.mxu1 %v114_v43  ;;  %v323_v1 = vld [vmem:[#allocation2 + $0x7d8] sm:$0xff]  ;;  %v320_v2 = vld [vmem:[#allocation2 + $0x7c0] sm:$0xff]  ;;  %v322_v3 = vld [vmem:[#allocation2 + $0x7d0] sm:$0xff] }
  0x4b   :  { %395 = vmatprep.subr.mxu0 %v105_v44  ;;  %466 = vmatprep.subr.mxu1 %v107_v45  ;;  %v313_v4 = vld [vmem:[#allocation2 + $0x788] sm:$0xff]  ;;  %v315_v5 = vld [vmem:[#allocation2 + $0x798] sm:$0xff]  ;;  %v312_v6 = vld [vmem:[#allocation2 + $0x780] sm:$0xff] }
  0x4c   :  { %396 = vmatpush1.msra.mxu0 %v104_v46  ;;  %467 = vmatpush1.msra.mxu1 %v106_v47  ;;  %v314_v7 = vld [vmem:[#allocation2 + $0x790] sm:$0xff]  ;;  %v305_v8 = vld [vmem:[#allocation2 + $0x748] sm:$0xff]  ;;  %v307_v9 = vld [vmem:[#allocation2 + $0x758] sm:$0xff] }
  0x4d   :  { %397 = vmatprep.subr.mxu0 %v97_v48  ;;  %468 = vmatprep.subr.mxu1 %v99_v49  ;;  %v304_v10 = vld [vmem:[#allocation2 + $0x740] sm:$0xff]  ;;  %v306_v11 = vld [vmem:[#allocation2 + $0x750] sm:$0xff]  ;;  %v297_v12 = vld [vmem:[#allocation2 + $0x708] sm:$0xff] }
  0x4e   :  { %398 = vmatpush1.msra.mxu0 %v96_v50  ;;  %469 = vmatpush1.msra.mxu1 %v98_v51  ;;  %v299_v13 = vld [vmem:[#allocation2 + $0x718] sm:$0xff]  ;;  %v296_v14 = vld [vmem:[#allocation2 + $0x700] sm:$0xff]  ;;  %v298_v15 = vld [vmem:[#allocation2 + $0x710] sm:$0xff] }
  0x4f   :  { %399 = vmatprep.subr.mxu0 %v89_v52  ;;  %470 = vmatprep.subr.mxu1 %v91_v53  ;;  %v289_v16 = vld [vmem:[#allocation2 + $0x6c8] sm:$0xff]  ;;  %v291_v17 = vld [vmem:[#allocation2 + $0x6d8] sm:$0xff]  ;;  %v288_v18 = vld [vmem:[#allocation2 + $0x6c0] sm:$0xff] }
  0x50   :  { %400 = vmatpush1.msra.mxu0 %v88_v54  ;;  %471 = vmatpush1.msra.mxu1 %v90_v55  ;;  %v290_v19 = vld [vmem:[#allocation2 + $0x6d0] sm:$0xff]  ;;  %v281_v20 = vld [vmem:[#allocation2 + $0x688] sm:$0xff]  ;;  %v283_v21 = vld [vmem:[#allocation2 + $0x698] sm:$0xff] }
  0x51   :  { %401 = vmatprep.subr.mxu0 %v81_v56  ;;  %472 = vmatprep.subr.mxu1 %v83_v57  ;;  %v280_v22 = vld [vmem:[#allocation2 + $0x680] sm:$0xff]  ;;  %v282_v23 = vld [vmem:[#allocation2 + $0x690] sm:$0xff]  ;;  %v273_v24 = vld [vmem:[#allocation2 + $0x648] sm:$0xff] }
  0x52   :  { %402 = vmatpush1.msra.mxu0 %v80_v58  ;;  %473 = vmatpush1.msra.mxu1 %v82_v59  ;;  %v275_v25 = vld [vmem:[#allocation2 + $0x658] sm:$0xff]  ;;  %v272_v26 = vld [vmem:[#allocation2 + $0x640] sm:$0xff]  ;;  %v274_v27 = vld [vmem:[#allocation2 + $0x650] sm:$0xff] }
  0x53   :  { %403 = vmatprep.subr.mxu0 %v73_v60  ;;  %474 = vmatprep.subr.mxu1 %v75_v61  ;;  %v265_v28 = vld [vmem:[#allocation2 + $0x608] sm:$0xff]  ;;  %v267_v29 = vld [vmem:[#allocation2 + $0x618] sm:$0xff]  ;;  %v264_v30 = vld [vmem:[#allocation2 + $0x600] sm:$0xff] }
  0x54   :  { %404 = vmatpush1.msra.mxu0 %v72_v62  ;;  %475 = vmatpush1.msra.mxu1 %v74_v63  ;;  %v266_v31 = vld [vmem:[#allocation2 + $0x610] sm:$0xff]  ;;  %v257_v32 = vld [vmem:[#allocation2 + $0x5c8] sm:$0xff]  ;;  %v259_v33 = vld [vmem:[#allocation2 + $0x5d8] sm:$0xff] }
  0x55   :  { %405 = vmatprep.subr.mxu0 %v321_v0  ;;  %476 = vmatprep.subr.mxu1 %v323_v1  ;;  %v256_v34 = vld [vmem:[#allocation2 + $0x5c0] sm:$0xff]  ;;  %v258_v35 = vld [vmem:[#allocation2 + $0x5d0] sm:$0xff]  ;;  %v249_v36 = vld [vmem:[#allocation2 + $0x588] sm:$0xff] }
  0x56   :  { %406 = vmatpush2.msra.mxu0 %v320_v2  ;;  %477 = vmatpush2.msra.mxu1 %v322_v3  ;;  %v251_v37 = vld [vmem:[#allocation2 + $0x598] sm:$0xff]  ;;  %v248_v38 = vld [vmem:[#allocation2 + $0x580] sm:$0xff]  ;;  %v250_v39 = vld [vmem:[#allocation2 + $0x590] sm:$0xff] }
  0x57   :  { %407 = vmatprep.subr.mxu0 %v313_v4  ;;  %478 = vmatprep.subr.mxu1 %v315_v5  ;;  %v241_v40 = vld [vmem:[#allocation2 + $0x548] sm:$0xff]  ;;  %v243_v41 = vld [vmem:[#allocation2 + $0x558] sm:$0xff]  ;;  %v240_v42 = vld [vmem:[#allocation2 + $0x540] sm:$0xff] }
  0x58   :  { %408 = vmatpush2.msra.mxu0 %v312_v6  ;;  %479 = vmatpush2.msra.mxu1 %v314_v7  ;;  %v242_v43 = vld [vmem:[#allocation2 + $0x550] sm:$0xff]  ;;  %v233_v44 = vld [vmem:[#allocation2 + $0x508] sm:$0xff]  ;;  %v235_v45 = vld [vmem:[#allocation2 + $0x518] sm:$0xff] }
  0x59   :  { %409 = vmatprep.subr.mxu0 %v305_v8  ;;  %480 = vmatprep.subr.mxu1 %v307_v9  ;;  %v232_v46 = vld [vmem:[#allocation2 + $0x500] sm:$0xff]  ;;  %v234_v47 = vld [vmem:[#allocation2 + $0x510] sm:$0xff]  ;;  %v225_v48 = vld [vmem:[#allocation2 + $0x4c8] sm:$0xff] }
  0x5a   :  { %410 = vmatpush2.msra.mxu0 %v304_v10  ;;  %481 = vmatpush2.msra.mxu1 %v306_v11  ;;  %v227_v49 = vld [vmem:[#allocation2 + $0x4d8] sm:$0xff]  ;;  %v224_v50 = vld [vmem:[#allocation2 + $0x4c0] sm:$0xff]  ;;  %v226_v51 = vld [vmem:[#allocation2 + $0x4d0] sm:$0xff] }
  0x5b   :  { %411 = vmatprep.subr.mxu0 %v297_v12  ;;  %482 = vmatprep.subr.mxu1 %v299_v13  ;;  %v217_v52 = vld [vmem:[#allocation2 + $0x488] sm:$0xff]  ;;  %v219_v53 = vld [vmem:[#allocation2 + $0x498] sm:$0xff]  ;;  %v216_v54 = vld [vmem:[#allocation2 + $0x480] sm:$0xff] }
  0x5c   :  { %412 = vmatpush2.msra.mxu0 %v296_v14  ;;  %483 = vmatpush2.msra.mxu1 %v298_v15  ;;  %v218_v55 = vld [vmem:[#allocation2 + $0x490] sm:$0xff]  ;;  %v1379_v56 = vld [vmem:[%s1416_s0] sm:$0xff]  ;;  %v209_v57 = vld [vmem:[#allocation2 + $0x448] sm:$0xff] }
  0x5d   :  { %413 = vmatprep.subr.mxu0 %v289_v16  ;;  %484 = vmatprep.subr.mxu1 %v291_v17  ;;  %v211_v58 = vld [vmem:[#allocation2 + $0x458] sm:$0xff]  ;;  %v208_v59 = vld [vmem:[#allocation2 + $0x440] sm:$0xff]  ;;  %v210_v60 = vld [vmem:[#allocation2 + $0x450] sm:$0xff]  ;;  %v1383_v63 = vcombine.high %v1379_v56, %v1379_v56 }
  0x5e   :  { %414 = vmatpush2.msra.mxu0 %v288_v18  ;;  %485 = vmatpush2.msra.mxu1 %v290_v19  ;;  %v201_v61 = vld [vmem:[#allocation2 + $0x408] sm:$0xff]  ;;  %v203_v62 = vld [vmem:[#allocation2 + $0x418] sm:$0xff]  ;;  %v200_v0 = vld [vmem:[#allocation2 + $0x400] sm:$0xff] }
  0x5f   :  { %415 = vmatprep.subr.mxu0 %v281_v20  ;;  %486 = vmatprep.subr.mxu1 %v283_v21  ;;  %v202_v1 = vld [vmem:[#allocation2 + $0x410] sm:$0xff]  ;;  %v197_v2 = vld [vmem:[#allocation2 + $0x3e8] sm:$0xff]  ;;  %v199_v3 = vld [vmem:[#allocation2 + $0x3f8] sm:$0xff] }
  0x60   :  { %416 = vmatpush2.msra.mxu0 %v280_v22  ;;  %487 = vmatpush2.msra.mxu1 %v282_v23  ;;  %v196_v4 = vld [vmem:[#allocation2 + $0x3e0] sm:$0xff]  ;;  %v198_v5 = vld [vmem:[#allocation2 + $0x3f0] sm:$0xff]  ;;  %v189_v6 = vld [vmem:[#allocation2 + $0x3a8] sm:$0xff] }
  0x61   :  { %417 = vmatprep.subr.mxu0 %v273_v24  ;;  %488 = vmatprep.subr.mxu1 %v275_v25  ;;  %v191_v7 = vld [vmem:[#allocation2 + $0x3b8] sm:$0xff]  ;;  %v188_v8 = vld [vmem:[#allocation2 + $0x3a0] sm:$0xff]  ;;  %v190_v9 = vld [vmem:[#allocation2 + $0x3b0] sm:$0xff] }
  0x62   :  { %418 = vmatpush2.msra.mxu0 %v272_v26  ;;  %489 = vmatpush2.msra.mxu1 %v274_v27  ;;  %v181_v10 = vld [vmem:[#allocation2 + $0x368] sm:$0xff]  ;;  %v183_v11 = vld [vmem:[#allocation2 + $0x378] sm:$0xff]  ;;  %v180_v12 = vld [vmem:[#allocation2 + $0x360] sm:$0xff] }
  0x63   :  { %419 = vmatprep.subr.mxu0 %v265_v28  ;;  %490 = vmatprep.subr.mxu1 %v267_v29  ;;  %v182_v13 = vld [vmem:[#allocation2 + $0x370] sm:$0xff]  ;;  %v173_v14 = vld [vmem:[#allocation2 + $0x328] sm:$0xff]  ;;  %v175_v15 = vld [vmem:[#allocation2 + $0x338] sm:$0xff] }
  0x64   :  { %420 = vmatpush2.msra.mxu0 %v264_v30  ;;  %491 = vmatpush2.msra.mxu1 %v266_v31  ;;  %v172_v16 = vld [vmem:[#allocation2 + $0x320] sm:$0xff]  ;;  %v174_v17 = vld [vmem:[#allocation2 + $0x330] sm:$0xff]  ;;  %v165_v18 = vld [vmem:[#allocation2 + $0x2e8] sm:$0xff] }
  0x65   :  { %421 = vmatprep.subr.mxu0 %v257_v32  ;;  %492 = vmatprep.subr.mxu1 %v259_v33  ;;  %v167_v19 = vld [vmem:[#allocation2 + $0x2f8] sm:$0xff]  ;;  %v164_v20 = vld [vmem:[#allocation2 + $0x2e0] sm:$0xff]  ;;  %v166_v21 = vld [vmem:[#allocation2 + $0x2f0] sm:$0xff] }
  0x66   :  { %422 = vmatpush2.msra.mxu0 %v256_v34  ;;  %493 = vmatpush2.msra.mxu1 %v258_v35  ;;  %v157_v22 = vld [vmem:[#allocation2 + $0x2a8] sm:$0xff]  ;;  %v159_v23 = vld [vmem:[#allocation2 + $0x2b8] sm:$0xff]  ;;  %v156_v24 = vld [vmem:[#allocation2 + $0x2a0] sm:$0xff] }
  0x67   :  { %423 = vmatprep.subr.mxu0 %v249_v36  ;;  %494 = vmatprep.subr.mxu1 %v251_v37  ;;  %v158_v25 = vld [vmem:[#allocation2 + $0x2b0] sm:$0xff]  ;;  %v149_v26 = vld [vmem:[#allocation2 + $0x268] sm:$0xff]  ;;  %v151_v27 = vld [vmem:[#allocation2 + $0x278] sm:$0xff] }
  0x68   :  { %424 = vmatpush2.msra.mxu0 %v248_v38  ;;  %495 = vmatpush2.msra.mxu1 %v250_v39  ;;  %v148_v28 = vld [vmem:[#allocation2 + $0x260] sm:$0xff]  ;;  %v150_v29 = vld [vmem:[#allocation2 + $0x270] sm:$0xff]  ;;  %v141_v30 = vld [vmem:[#allocation2 + $0x228] sm:$0xff] }
  0x69   :  { %425 = vmatprep.subr.mxu0 %v241_v40  ;;  %496 = vmatprep.subr.mxu1 %v243_v41  ;;  %v143_v31 = vld [vmem:[#allocation2 + $0x238] sm:$0xff]  ;;  %v140_v32 = vld [vmem:[#allocation2 + $0x220] sm:$0xff]  ;;  %v142_v33 = vld [vmem:[#allocation2 + $0x230] sm:$0xff] }
  0x6a   :  { %426 = vmatpush2.msra.mxu0 %v240_v42  ;;  %497 = vmatpush2.msra.mxu1 %v242_v43  ;;  %v133_v34 = vld [vmem:[#allocation2 + $0x1e8] sm:$0xff]  ;;  %v135_v35 = vld [vmem:[#allocation2 + $0x1f8] sm:$0xff]  ;;  %v132_v36 = vld [vmem:[#allocation2 + $0x1e0] sm:$0xff] }
  0x6b   :  { %427 = vmatprep.subr.mxu0 %v233_v44  ;;  %498 = vmatprep.subr.mxu1 %v235_v45  ;;  %v134_v37 = vld [vmem:[#allocation2 + $0x1f0] sm:$0xff]  ;;  %v125_v38 = vld [vmem:[#allocation2 + $0x1a8] sm:$0xff]  ;;  %v127_v39 = vld [vmem:[#allocation2 + $0x1b8] sm:$0xff] }
  0x6c   :  { %428 = vmatpush2.msra.mxu0 %v232_v46  ;;  %499 = vmatpush2.msra.mxu1 %v234_v47  ;;  %v124_v40 = vld [vmem:[#allocation2 + $0x1a0] sm:$0xff]  ;;  %v126_v41 = vld [vmem:[#allocation2 + $0x1b0] sm:$0xff]  ;;  %v117_v42 = vld [vmem:[#allocation2 + $0x168] sm:$0xff] }
  0x6d   :  { %429 = vmatprep.subr.mxu0 %v225_v48  ;;  %500 = vmatprep.subr.mxu1 %v227_v49  ;;  %v119_v43 = vld [vmem:[#allocation2 + $0x178] sm:$0xff]  ;;  %v116_v44 = vld [vmem:[#allocation2 + $0x160] sm:$0xff]  ;;  %v118_v45 = vld [vmem:[#allocation2 + $0x170] sm:$0xff] }
  0x6e   :  { %430 = vmatpush2.msra.mxu0 %v224_v50  ;;  %501 = vmatpush2.msra.mxu1 %v226_v51  ;;  %v109_v46 = vld [vmem:[#allocation2 + $0x128] sm:$0xff]  ;;  %v111_v47 = vld [vmem:[#allocation2 + $0x138] sm:$0xff]  ;;  %v108_v48 = vld [vmem:[#allocation2 + $0x120] sm:$0xff] }
  0x6f   :  { %431 = vmatprep.subr.mxu0 %v217_v52  ;;  %502 = vmatprep.subr.mxu1 %v219_v53  ;;  %v110_v49 = vld [vmem:[#allocation2 + $0x130] sm:$0xff]  ;;  %v101_v50 = vld [vmem:[#allocation2 + $0xe8] sm:$0xff]  ;;  %v103_v51 = vld [vmem:[#allocation2 + $0xf8] sm:$0xff] }
  0x70   :  { %432 = vmatpush2.msra.mxu0 %v216_v54  ;;  %503 = vmatpush2.msra.mxu1 %v218_v55  ;;  %v100_v52 = vld [vmem:[#allocation2 + $0xe0] sm:$0xff]  ;;  %v102_v53 = vld [vmem:[#allocation2 + $0xf0] sm:$0xff]  ;;  %v93_v54 = vld [vmem:[#allocation2 + $0xa8] sm:$0xff] }
  0x71   :  { %433 = vmatprep.subr.mxu0 %v209_v57  ;;  %504 = vmatprep.subr.mxu1 %v211_v58  ;;  %v95_v55 = vld [vmem:[#allocation2 + $0xb8] sm:$0xff]  ;;  %v92_v57 = vld [vmem:[#allocation2 + $0xa0] sm:$0xff]  ;;  %v94_v58 = vld [vmem:[#allocation2 + $0xb0] sm:$0xff] }
  0x72   :  { %434 = vmatpush2.msra.mxu0 %v208_v59  ;;  %505 = vmatpush2.msra.mxu1 %v210_v60  ;;  %v85_v59 = vld [vmem:[#allocation2 + $0x68] sm:$0xff]  ;;  %v87_v60 = vld [vmem:[#allocation2 + $0x78] sm:$0xff] }
  0x73   :  { %435 = vmatprep.subr.mxu0 %v201_v61  ;;  %506 = vmatprep.subr.mxu1 %v203_v62  ;;  %v84_v61 = vld [vmem:[#allocation2 + $0x60] sm:$0xff]  ;;  %v86_v62 = vld [vmem:[#allocation2 + $0x70] sm:$0xff] }
  0x74   :  { %436 = vmatpush2.msra.mxu0 %v200_v0  ;;  %437 = vmatprep.mubr.f32.mxu0 %v1383_v63  ;;  %v77_v0 = vld [vmem:[#allocation2 + $0x28] sm:$0xff] }
  0x75   :  { %507 = vmatpush2.msra.mxu1 %v202_v1  ;;  %508 = vmatprep.mubr.f32.mxu1 %v1383_v63  ;;  %v79_v1 = vld [vmem:[#allocation2 + $0x38] sm:$0xff] }
  0x76   :  { %438 = vmatmul.mubr.f32.vlgmr.msra.gmra.mxu0 %v1379_v56  ;;  %509 = vmatmul.mubr.f32.vlgmr.msra.gmra.mxu1 %v1379_v56 }
  0x77   :  { %515 = vmatprep.subr.mxu0 %v197_v2  ;;  %586 = vmatprep.subr.mxu1 %v199_v3  ;;  %v76_v2 = vld [vmem:[#allocation2 + $0x20] sm:$0xff]  ;;  %v78_v3 = vld [vmem:[#allocation2 + $0x30] sm:$0xff] }
  0x78   :  { %516 = vmatpush1.msra.mxu0 %v196_v4  ;;  %587 = vmatpush1.msra.mxu1 %v198_v5  ;;  %v325_v4 = vld [vmem:[#allocation2 + $0x7e8] sm:$0xff]  ;;  %v327_v5 = vld [vmem:[#allocation2 + $0x7f8] sm:$0xff] }
  0x79   :  { %517 = vmatprep.subr.mxu0 %v189_v6  ;;  %588 = vmatprep.subr.mxu1 %v191_v7  ;;  %v324_v6 = vld [vmem:[#allocation2 + $0x7e0] sm:$0xff]  ;;  %v326_v7 = vld [vmem:[#allocation2 + $0x7f0] sm:$0xff] }
  0x7a   :  { %518 = vmatpush1.msra.mxu0 %v188_v8  ;;  %589 = vmatpush1.msra.mxu1 %v190_v9  ;;  %v317_v8 = vld [vmem:[#allocation2 + $0x7a8] sm:$0xff]  ;;  %v319_v9 = vld [vmem:[#allocation2 + $0x7b8] sm:$0xff] }
  0x7b   :  { %519 = vmatprep.subr.mxu0 %v181_v10  ;;  %590 = vmatprep.subr.mxu1 %v183_v11  ;;  %v316_v10 = vld [vmem:[#allocation2 + $0x7a0] sm:$0xff]  ;;  %v318_v11 = vld [vmem:[#allocation2 + $0x7b0] sm:$0xff] }
  0x7c   :  { %520 = vmatpush1.msra.mxu0 %v180_v12  ;;  %591 = vmatpush1.msra.mxu1 %v182_v13  ;;  %v309_v12 = vld [vmem:[#allocation2 + $0x768] sm:$0xff]  ;;  %v311_v13 = vld [vmem:[#allocation2 + $0x778] sm:$0xff] }
  0x7d   :  { %521 = vmatprep.subr.mxu0 %v173_v14  ;;  %592 = vmatprep.subr.mxu1 %v175_v15  ;;  %v308_v14 = vld [vmem:[#allocation2 + $0x760] sm:$0xff]  ;;  %v310_v15 = vld [vmem:[#allocation2 + $0x770] sm:$0xff] }
  0x7e   :  { %522 = vmatpush1.msra.mxu0 %v172_v16  ;;  %593 = vmatpush1.msra.mxu1 %v174_v17  ;;  %v301_v16 = vld [vmem:[#allocation2 + $0x728] sm:$0xff]  ;;  %v303_v17 = vld [vmem:[#allocation2 + $0x738] sm:$0xff] }
  0x7f   :  { %523 = vmatprep.subr.mxu0 %v165_v18  ;;  %594 = vmatprep.subr.mxu1 %v167_v19  ;;  %v300_v18 = vld [vmem:[#allocation2 + $0x720] sm:$0xff]  ;;  %v302_v19 = vld [vmem:[#allocation2 + $0x730] sm:$0xff] }
  0x80   :  { %524 = vmatpush1.msra.mxu0 %v164_v20  ;;  %595 = vmatpush1.msra.mxu1 %v166_v21  ;;  %v293_v20 = vld [vmem:[#allocation2 + $0x6e8] sm:$0xff]  ;;  %v295_v21 = vld [vmem:[#allocation2 + $0x6f8] sm:$0xff] }
  0x81   :  { %525 = vmatprep.subr.mxu0 %v157_v22  ;;  %596 = vmatprep.subr.mxu1 %v159_v23  ;;  %v292_v22 = vld [vmem:[#allocation2 + $0x6e0] sm:$0xff]  ;;  %v294_v23 = vld [vmem:[#allocation2 + $0x6f0] sm:$0xff] }
  0x82   :  { %526 = vmatpush1.msra.mxu0 %v156_v24  ;;  %597 = vmatpush1.msra.mxu1 %v158_v25  ;;  %v285_v24 = vld [vmem:[#allocation2 + $0x6a8] sm:$0xff]  ;;  %v287_v25 = vld [vmem:[#allocation2 + $0x6b8] sm:$0xff] }
  0x83   :  { %527 = vmatprep.subr.mxu0 %v149_v26  ;;  %598 = vmatprep.subr.mxu1 %v151_v27  ;;  %v284_v26 = vld [vmem:[#allocation2 + $0x6a0] sm:$0xff]  ;;  %v286_v27 = vld [vmem:[#allocation2 + $0x6b0] sm:$0xff] }
  0x84   :  { %528 = vmatpush1.msra.mxu0 %v148_v28  ;;  %599 = vmatpush1.msra.mxu1 %v150_v29  ;;  %v277_v28 = vld [vmem:[#allocation2 + $0x668] sm:$0xff]  ;;  %v279_v29 = vld [vmem:[#allocation2 + $0x678] sm:$0xff] }
  0x85   :  { %529 = vmatprep.subr.mxu0 %v141_v30  ;;  %600 = vmatprep.subr.mxu1 %v143_v31  ;;  %v276_v30 = vld [vmem:[#allocation2 + $0x660] sm:$0xff]  ;;  %v278_v31 = vld [vmem:[#allocation2 + $0x670] sm:$0xff] }
  0x86   :  { %530 = vmatpush1.msra.mxu0 %v140_v32  ;;  %601 = vmatpush1.msra.mxu1 %v142_v33  ;;  %v269_v32 = vld [vmem:[#allocation2 + $0x628] sm:$0xff]  ;;  %v271_v33 = vld [vmem:[#allocation2 + $0x638] sm:$0xff] }
  0x87   :  { %531 = vmatprep.subr.mxu0 %v133_v34  ;;  %602 = vmatprep.subr.mxu1 %v135_v35  ;;  %v268_v34 = vld [vmem:[#allocation2 + $0x620] sm:$0xff]  ;;  %v270_v35 = vld [vmem:[#allocation2 + $0x630] sm:$0xff] }
  0x88   :  { %532 = vmatpush1.msra.mxu0 %v132_v36  ;;  %603 = vmatpush1.msra.mxu1 %v134_v37  ;;  %v261_v36 = vld [vmem:[#allocation2 + $0x5e8] sm:$0xff]  ;;  %v263_v37 = vld [vmem:[#allocation2 + $0x5f8] sm:$0xff] }
  0x89   :  { %533 = vmatprep.subr.mxu0 %v125_v38  ;;  %604 = vmatprep.subr.mxu1 %v127_v39  ;;  %v260_v38 = vld [vmem:[#allocation2 + $0x5e0] sm:$0xff]  ;;  %v262_v39 = vld [vmem:[#allocation2 + $0x5f0] sm:$0xff] }
  0x8a   :  { %534 = vmatpush1.msra.mxu0 %v124_v40  ;;  %605 = vmatpush1.msra.mxu1 %v126_v41  ;;  %v253_v40 = vld [vmem:[#allocation2 + $0x5a8] sm:$0xff]  ;;  %v255_v41 = vld [vmem:[#allocation2 + $0x5b8] sm:$0xff] }
  0x8b   :  { %535 = vmatprep.subr.mxu0 %v117_v42  ;;  %606 = vmatprep.subr.mxu1 %v119_v43  ;;  %v252_v42 = vld [vmem:[#allocation2 + $0x5a0] sm:$0xff]  ;;  %v254_v43 = vld [vmem:[#allocation2 + $0x5b0] sm:$0xff] }
  0x8c   :  { %536 = vmatpush1.msra.mxu0 %v116_v44  ;;  %607 = vmatpush1.msra.mxu1 %v118_v45  ;;  %v245_v44 = vld [vmem:[#allocation2 + $0x568] sm:$0xff]  ;;  %v247_v45 = vld [vmem:[#allocation2 + $0x578] sm:$0xff] }
  0x8d   :  { %537 = vmatprep.subr.mxu0 %v109_v46  ;;  %608 = vmatprep.subr.mxu1 %v111_v47  ;;  %v244_v46 = vld [vmem:[#allocation2 + $0x560] sm:$0xff]  ;;  %v246_v47 = vld [vmem:[#allocation2 + $0x570] sm:$0xff] }
  0x8e   :  { %538 = vmatpush1.msra.mxu0 %v108_v48  ;;  %609 = vmatpush1.msra.mxu1 %v110_v49  ;;  %v237_v48 = vld [vmem:[#allocation2 + $0x528] sm:$0xff]  ;;  %v239_v49 = vld [vmem:[#allocation2 + $0x538] sm:$0xff] }
  0x8f   :  { %539 = vmatprep.subr.mxu0 %v101_v50  ;;  %610 = vmatprep.subr.mxu1 %v103_v51  ;;  %v236_v50 = vld [vmem:[#allocation2 + $0x520] sm:$0xff]  ;;  %v238_v51 = vld [vmem:[#allocation2 + $0x530] sm:$0xff] }
  0x90   :  { %540 = vmatpush1.msra.mxu0 %v100_v52  ;;  %611 = vmatpush1.msra.mxu1 %v102_v53  ;;  %v229_v52 = vld [vmem:[#allocation2 + $0x4e8] sm:$0xff]  ;;  %v231_v53 = vld [vmem:[#allocation2 + $0x4f8] sm:$0xff] }
  0x91   :  { %541 = vmatprep.subr.mxu0 %v93_v54  ;;  %612 = vmatprep.subr.mxu1 %v95_v55  ;;  %v228_v54 = vld [vmem:[#allocation2 + $0x4e0] sm:$0xff]  ;;  %v230_v55 = vld [vmem:[#allocation2 + $0x4f0] sm:$0xff] }
  0x92   :  { %542 = vmatpush1.msra.mxu0 %v92_v57  ;;  %613 = vmatpush1.msra.mxu1 %v94_v58  ;;  %v221_v57 = vld [vmem:[#allocation2 + $0x4a8] sm:$0xff]  ;;  %v223_v58 = vld [vmem:[#allocation2 + $0x4b8] sm:$0xff] }
  0x93   :  { %543 = vmatprep.subr.mxu0 %v85_v59  ;;  %614 = vmatprep.subr.mxu1 %v87_v60  ;;  %v220_v59 = vld [vmem:[#allocation2 + $0x4a0] sm:$0xff]  ;;  %v222_v60 = vld [vmem:[#allocation2 + $0x4b0] sm:$0xff] }
  0x94   :  { %544 = vmatpush1.msra.mxu0 %v84_v61  ;;  %615 = vmatpush1.msra.mxu1 %v86_v62  ;;  %v213_v61 = vld [vmem:[#allocation2 + $0x468] sm:$0xff]  ;;  %v215_v62 = vld [vmem:[#allocation2 + $0x478] sm:$0xff] }
  0x95   :  { %545 = vmatprep.subr.mxu0 %v77_v0  ;;  %616 = vmatprep.subr.mxu1 %v79_v1  ;;  %v212_v0 = vld [vmem:[#allocation2 + $0x460] sm:$0xff]  ;;  %v214_v1 = vld [vmem:[#allocation2 + $0x470] sm:$0xff] }
  0x96   :  { %546 = vmatpush1.msra.mxu0 %v76_v2  ;;  %617 = vmatpush1.msra.mxu1 %v78_v3  ;;  %v205_v2 = vld [vmem:[#allocation2 + $0x428] sm:$0xff]  ;;  %v207_v3 = vld [vmem:[#allocation2 + $0x438] sm:$0xff] }
  0x97   :  { %547 = vmatprep.subr.mxu0 %v325_v4  ;;  %618 = vmatprep.subr.mxu1 %v327_v5  ;;  %v204_v4 = vld [vmem:[#allocation2 + $0x420] sm:$0xff]  ;;  %v206_v5 = vld [vmem:[#allocation2 + $0x430] sm:$0xff] }
  0x98   :  { %548 = vmatpush2.msra.mxu0 %v324_v6  ;;  %619 = vmatpush2.msra.mxu1 %v326_v7  ;;  %v696_v6 = vld [vmem:[#allocation6 + $0xf8] sm:$0xff] }
  0x99   :  { %549 = vmatprep.subr.mxu0 %v317_v8  ;;  %620 = vmatprep.subr.mxu1 %v319_v9  ;;  %v728_v7 = vld [vmem:[#allocation6 + $0x1f8] sm:$0xff] }
  0x9a   :  { %550 = vmatpush2.msra.mxu0 %v316_v10  ;;  %621 = vmatpush2.msra.mxu1 %v318_v11  ;;  %v680_v8 = vld [vmem:[#allocation6 + $0x78] sm:$0xff]  ;;  %v695_v10 = vld [vmem:[#allocation6 + $0xf0] sm:$0xff] }
  0x9b   :  { %551 = vmatprep.subr.mxu0 %v309_v12  ;;  %622 = vmatprep.subr.mxu1 %v311_v13  ;;  %v712_v9 = vld [vmem:[#allocation6 + $0x178] sm:$0xff]  ;;  %v727_v11 = vld [vmem:[#allocation6 + $0x1f0] sm:$0xff] }
  0x9c   :  { %552 = vmatpush2.msra.mxu0 %v308_v14  ;;  %623 = vmatpush2.msra.mxu1 %v310_v15  ;;  %v679_v12 = vld [vmem:[#allocation6 + $0x70] sm:$0xff]  ;;  %v694_v14 = vld [vmem:[#allocation6 + $0xe8] sm:$0xff] }
  0x9d   :  { %553 = vmatprep.subr.mxu0 %v301_v16  ;;  %624 = vmatprep.subr.mxu1 %v303_v17  ;;  %v711_v13 = vld [vmem:[#allocation6 + $0x170] sm:$0xff]  ;;  %v726_v15 = vld [vmem:[#allocation6 + $0x1e8] sm:$0xff]  ;;  %v693_v17 = vld [vmem:[#allocation6 + $0xe0] sm:$0xff] }
  0x9e   :  { %554 = vmatpush2.msra.mxu0 %v300_v18  ;;  %625 = vmatpush2.msra.mxu1 %v302_v19  ;;  %v678_v16 = vld [vmem:[#allocation6 + $0x68] sm:$0xff]  ;;  %v725_v18 = vld [vmem:[#allocation6 + $0x1e0] sm:$0xff] }
  0x9f   :  { %555 = vmatprep.subr.mxu0 %v293_v20  ;;  %626 = vmatprep.subr.mxu1 %v295_v21  ;;  %v709_v19 = vld [vmem:[#allocation6 + $0x160] sm:$0xff]  ;;  %v692_v20 = vld [vmem:[#allocation6 + $0xd8] sm:$0xff] }
  0xa0   :  { %556 = vmatpush2.msra.mxu0 %v292_v22  ;;  %627 = vmatpush2.msra.mxu1 %v294_v23  ;;  %v724_v21 = vld [vmem:[#allocation6 + $0x1d8] sm:$0xff] }
  0xa1   :  { %557 = vmatprep.subr.mxu0 %v285_v24  ;;  %628 = vmatprep.subr.mxu1 %v287_v25  ;;  %v676_v22 = vld [vmem:[#allocation6 + $0x58] sm:$0xff]  ;;  %v691_v24 = vld [vmem:[#allocation6 + $0xd0] sm:$0xff] }
  0xa2   :  { %558 = vmatpush2.msra.mxu0 %v284_v26  ;;  %629 = vmatpush2.msra.mxu1 %v286_v27  ;;  %v708_v23 = vld [vmem:[#allocation6 + $0x158] sm:$0xff]  ;;  %v723_v25 = vld [vmem:[#allocation6 + $0x1d0] sm:$0xff] }
  0xa3   :  { %559 = vmatprep.subr.mxu0 %v277_v28  ;;  %630 = vmatprep.subr.mxu1 %v279_v29  ;;  %v675_v26 = vld [vmem:[#allocation6 + $0x50] sm:$0xff]  ;;  %v690_v28 = vld [vmem:[#allocation6 + $0xc8] sm:$0xff] }
  0xa4   :  { %560 = vmatpush2.msra.mxu0 %v276_v30  ;;  %631 = vmatpush2.msra.mxu1 %v278_v31  ;;  %v707_v27 = vld [vmem:[#allocation6 + $0x150] sm:$0xff]  ;;  %v722_v29 = vld [vmem:[#allocation6 + $0x1c8] sm:$0xff] }
  0xa5   :  { %561 = vmatprep.subr.mxu0 %v269_v32  ;;  %632 = vmatprep.subr.mxu1 %v271_v33  ;;  %v674_v30 = vld [vmem:[#allocation6 + $0x48] sm:$0xff]  ;;  %v689_v32 = vld [vmem:[#allocation6 + $0xc0] sm:$0xff] }
  0xa6   :  { %562 = vmatpush2.msra.mxu0 %v268_v34  ;;  %633 = vmatpush2.msra.mxu1 %v270_v35  ;;  %v706_v31 = vld [vmem:[#allocation6 + $0x148] sm:$0xff]  ;;  %v721_v33 = vld [vmem:[#allocation6 + $0x1c0] sm:$0xff] }
  0xa7   :  { %563 = vmatprep.subr.mxu0 %v261_v36  ;;  %634 = vmatprep.subr.mxu1 %v263_v37  ;;  %v673_v34 = vld [vmem:[#allocation6 + $0x40] sm:$0xff]  ;;  %v688_v36 = vld [vmem:[#allocation6 + $0xb8] sm:$0xff] }
  0xa8   :  { %564 = vmatpush2.msra.mxu0 %v260_v38  ;;  %635 = vmatpush2.msra.mxu1 %v262_v39  ;;  %v705_v35 = vld [vmem:[#allocation6 + $0x140] sm:$0xff]  ;;  %v720_v37 = vld [vmem:[#allocation6 + $0x1b8] sm:$0xff] }
  0xa9   :  { %565 = vmatprep.subr.mxu0 %v253_v40  ;;  %636 = vmatprep.subr.mxu1 %v255_v41  ;;  %v672_v38 = vld [vmem:[#allocation6 + $0x38] sm:$0xff]  ;;  %v687_v40 = vld [vmem:[#allocation6 + $0xb0] sm:$0xff] }
  0xaa   :  { %566 = vmatpush2.msra.mxu0 %v252_v42  ;;  %637 = vmatpush2.msra.mxu1 %v254_v43  ;;  %v704_v39 = vld [vmem:[#allocation6 + $0x138] sm:$0xff]  ;;  %v719_v41 = vld [vmem:[#allocation6 + $0x1b0] sm:$0xff] }
  0xab   :  { %567 = vmatprep.subr.mxu0 %v245_v44  ;;  %638 = vmatprep.subr.mxu1 %v247_v45  ;;  %v671_v42 = vld [vmem:[#allocation6 + $0x30] sm:$0xff]  ;;  %v686_v44 = vld [vmem:[#allocation6 + $0xa8] sm:$0xff] }
  0xac   :  { %568 = vmatpush2.msra.mxu0 %v244_v46  ;;  %639 = vmatpush2.msra.mxu1 %v246_v47  ;;  %v703_v43 = vld [vmem:[#allocation6 + $0x130] sm:$0xff]  ;;  %v718_v45 = vld [vmem:[#allocation6 + $0x1a8] sm:$0xff] }
  0xad   :  { %569 = vmatprep.subr.mxu0 %v237_v48  ;;  %640 = vmatprep.subr.mxu1 %v239_v49  ;;  %v670_v46 = vld [vmem:[#allocation6 + $0x28] sm:$0xff]  ;;  %v685_v48 = vld [vmem:[#allocation6 + $0xa0] sm:$0xff] }
  0xae   :  { %570 = vmatpush2.msra.mxu0 %v236_v50  ;;  %641 = vmatpush2.msra.mxu1 %v238_v51  ;;  %v702_v47 = vld [vmem:[#allocation6 + $0x128] sm:$0xff]  ;;  %v717_v49 = vld [vmem:[#allocation6 + $0x1a0] sm:$0xff] }
  0xaf   :  { %571 = vmatprep.subr.mxu0 %v229_v52  ;;  %642 = vmatprep.subr.mxu1 %v231_v53  ;;  %v669_v50 = vld [vmem:[#allocation6 + $0x20] sm:$0xff]  ;;  %v684_v52 = vld [vmem:[#allocation6 + $0x98] sm:$0xff] }
  0xb0   :  { %572 = vmatpush2.msra.mxu0 %v228_v54  ;;  %643 = vmatpush2.msra.mxu1 %v230_v55  ;;  %v701_v51 = vld [vmem:[#allocation6 + $0x120] sm:$0xff]  ;;  %v716_v53 = vld [vmem:[#allocation6 + $0x198] sm:$0xff] }
  0xb1   :  { %573 = vmatprep.subr.mxu0 %v221_v57  ;;  %644 = vmatprep.subr.mxu1 %v223_v58  ;;  %v668_v54 = vld [vmem:[#allocation6 + $0x18] sm:$0xff]  ;;  %v683_v57 = vld [vmem:[#allocation6 + $0x90] sm:$0xff] }
  0xb2   :  { %574 = vmatpush2.msra.mxu0 %v220_v59  ;;  %645 = vmatpush2.msra.mxu1 %v222_v60  ;;  %v700_v55 = vld [vmem:[#allocation6 + $0x118] sm:$0xff]  ;;  %v715_v58 = vld [vmem:[#allocation6 + $0x190] sm:$0xff] }
  0xb3   :  { %575 = vmatprep.subr.mxu0 %v213_v61  ;;  %646 = vmatprep.subr.mxu1 %v215_v62  ;;  %v667_v59 = vld [vmem:[#allocation6 + $0x10] sm:$0xff]  ;;  %v682_v61 = vld [vmem:[#allocation6 + $0x88] sm:$0xff] }
  0xb4   :  { %576 = vmatpush2.msra.mxu0 %v212_v0  ;;  %647 = vmatpush2.msra.mxu1 %v214_v1  ;;  %v699_v60 = vld [vmem:[#allocation6 + $0x110] sm:$0xff]  ;;  %v714_v62 = vld [vmem:[#allocation6 + $0x188] sm:$0xff] }
  0xb5   :  { %577 = vmatprep.subr.mxu0 %v205_v2  ;;  %648 = vmatprep.subr.mxu1 %v207_v3  ;;  %v666_v0 = vld [vmem:[#allocation6 + $0x8] sm:$0xff]  ;;  %v681_v2 = vld [vmem:[#allocation6 + $0x80] sm:$0xff] }
  0xb6   :  { %578 = vmatpush2.msra.mxu0 %v204_v4  ;;  %579 = vmatprep.mubr.f32.mxu0 %v1383_v63  ;;  %v698_v1 = vld [vmem:[#allocation6 + $0x108] sm:$0xff]  ;;  %v713_v3 = vld [vmem:[#allocation6 + $0x180] sm:$0xff] }
  0xb7   :  { %649 = vmatpush2.msra.mxu1 %v206_v5  ;;  %650 = vmatprep.mubr.f32.mxu1 %v1383_v63  ;;  %v710_v63 = vld [vmem:[#allocation6 + $0x168] sm:$0xff]  ;;  %v665_v4 = vld [vmem:[#allocation6] sm:$0xff] }
  0xb8   :  { %580 = vmatmul.mubr.f32.vlgmr.msra.gmra.mxu0 %v1379_v56  ;;  %651 = vmatmul.mubr.f32.vlgmr.msra.gmra.mxu1 %v1379_v56  ;;  %v677_v56 = vld [vmem:[#allocation6 + $0x60] sm:$0xff] }
  0xb9   :  { %1091 = vmatprep.subr.mxu0 %v696_v6  ;;  %1126 = vmatprep.subr.mxu1 %v728_v7  ;;  %v697_v5 = vld [vmem:[#allocation6 + $0x100] sm:$0xff]  ;;  %v760_v6 = vld [vmem:[#allocation6 + $0x2f8] sm:$0xff] }
  0xba   :  { %1092 = vmatpush3.msra.mxu0 %v680_v8  ;;  %1127 = vmatpush3.msra.mxu1 %v712_v9  ;;  %v792_v7 = vld [vmem:[#allocation6 + $0x3f8] sm:$0xff]  ;;  %v330_v8 = vlaneseq }
  0xbb   :  { %1093 = vmatprep.subr.mxu0 %v695_v10  ;;  %1128 = vmatprep.subr.mxu1 %v727_v11 }
  0xbc   :  { %1094 = vmatpush3.msra.mxu0 %v679_v12  ;;  %1129 = vmatpush3.msra.mxu1 %v711_v13  ;;  %v1393_v9 = vshrl.u32 %v330_v8, 7  ;;  %v1397_v12 = vld [vmem:[#allocation4] sm:$0xff]  ;;  %v766_v8 = vld [vmem:[#allocation6 + $0x328] sm:$0xff] }
  0xbd   :  { %1095 = vmatprep.subr.mxu0 %v694_v14  ;;  %1130 = vmatprep.subr.mxu1 %v726_v15 }
  0xbe   :  { %1096 = vmatpush3.msra.mxu0 %v678_v16  ;;  %1131 = vmatpush3.msra.mxu1 %v710_v63  ;;  %v340_v10 = vsub.s32 2, %v1393_v9  ;;  %v332_v11 = vsub.s32 0, %v1393_v9  ;;  %v336_v13 = vsub.s32 1, %v1393_v9  ;;  %v344_v14 = vsub.s32 3, %v1393_v9 }
  0xbf   :  { %1097 = vmatprep.subr.mxu0 %v693_v17  ;;  %1132 = vmatprep.subr.mxu1 %v725_v18 }
  0xc0   :  { %1098 = vmatpush3.msra.mxu0 %v677_v56  ;;  %1133 = vmatpush3.msra.mxu1 %v709_v19  ;;  %v341_v15 = vrot.slane %v1397_v12, %v340_v10  ;;  %v333_v16 = vrot.slane %v1397_v12, %v332_v11  ;;  %v337_v63 = vrot.slane %v1397_v12, %v336_v13  ;;  %v749_v10 = vld [vmem:[#allocation6 + $0x2a0] sm:$0xff] }
  0xc1   :  { %1099 = vmatprep.subr.mxu0 %v692_v20  ;;  %1134 = vmatprep.subr.mxu1 %v724_v21  ;;  %v345_v17 = vrot.slane %v1397_v12, %v344_v14  ;;  %v781_v11 = vld [vmem:[#allocation6 + $0x3a0] sm:$0xff] }
  0xc2   :  { %1100 = vmatpush3.msra.mxu0 %v676_v22  ;;  %1135 = vmatpush3.msra.mxu1 %v708_v23  ;;  %v733_v13 = vld [vmem:[#allocation6 + $0x220] sm:$0xff] }
  0xc3   :  { %1101 = vmatprep.subr.mxu0 %v691_v24  ;;  %1136 = vmatprep.subr.mxu1 %v723_v25  ;;  %v765_v14 = vld [vmem:[#allocation6 + $0x320] sm:$0xff] }
  0xc4   :  { %1102 = vmatpush3.msra.mxu0 %v675_v26  ;;  %1137 = vmatpush3.msra.mxu1 %v707_v27 }
  0xc5   :  { %1103 = vmatprep.subr.mxu0 %v690_v28  ;;  %1138 = vmatprep.subr.mxu1 %v722_v29  ;;  %v744_v29 = vld [vmem:[#allocation6 + $0x278] sm:$0xff] }
  0xc6   :  { %1104 = vmatpush3.msra.mxu0 %v674_v30  ;;  %1139 = vmatpush3.msra.mxu1 %v706_v31  ;;  %v776_v30 = vld [vmem:[#allocation6 + $0x378] sm:$0xff]  ;;  %v759_v31 = vld [vmem:[#allocation6 + $0x2f0] sm:$0xff] }
  0xc7   :  { %1105 = vmatprep.subr.mxu0 %v689_v32  ;;  %1140 = vmatprep.subr.mxu1 %v721_v33  ;;  %v791_v32 = vld [vmem:[#allocation6 + $0x3f0] sm:$0xff] }
  0xc8   :  { %1106 = vmatpush3.msra.mxu0 %v673_v34  ;;  %1141 = vmatpush3.msra.mxu1 %v705_v35  ;;  %v743_v33 = vld [vmem:[#allocation6 + $0x270] sm:$0xff]  ;;  %v758_v35 = vld [vmem:[#allocation6 + $0x2e8] sm:$0xff] }
  0xc9   :  { %1107 = vmatprep.subr.mxu0 %v688_v36  ;;  %1142 = vmatprep.subr.mxu1 %v720_v37  ;;  %v775_v34 = vld [vmem:[#allocation6 + $0x370] sm:$0xff]  ;;  %v790_v36 = vld [vmem:[#allocation6 + $0x3e8] sm:$0xff] }
  0xca   :  { %1108 = vmatpush3.msra.mxu0 %v672_v38  ;;  %1143 = vmatpush3.msra.mxu1 %v704_v39  ;;  %v742_v37 = vld [vmem:[#allocation6 + $0x268] sm:$0xff]  ;;  %v757_v39 = vld [vmem:[#allocation6 + $0x2e0] sm:$0xff] }
  0xcb   :  { %1109 = vmatprep.subr.mxu0 %v687_v40  ;;  %1144 = vmatprep.subr.mxu1 %v719_v41  ;;  %v774_v38 = vld [vmem:[#allocation6 + $0x368] sm:$0xff]  ;;  %v789_v40 = vld [vmem:[#allocation6 + $0x3e0] sm:$0xff] }
  0xcc   :  { %1110 = vmatpush3.msra.mxu0 %v671_v42  ;;  %1145 = vmatpush3.msra.mxu1 %v703_v43  ;;  %v741_v41 = vld [vmem:[#allocation6 + $0x260] sm:$0xff]  ;;  %v756_v43 = vld [vmem:[#allocation6 + $0x2d8] sm:$0xff] }
  0xcd   :  { %1111 = vmatprep.subr.mxu0 %v686_v44  ;;  %1146 = vmatprep.subr.mxu1 %v718_v45  ;;  %v773_v42 = vld [vmem:[#allocation6 + $0x360] sm:$0xff]  ;;  %v788_v44 = vld [vmem:[#allocation6 + $0x3d8] sm:$0xff] }
  0xce   :  { %1112 = vmatpush3.msra.mxu0 %v670_v46  ;;  %1147 = vmatpush3.msra.mxu1 %v702_v47  ;;  %v740_v45 = vld [vmem:[#allocation6 + $0x258] sm:$0xff]  ;;  %v755_v47 = vld [vmem:[#allocation6 + $0x2d0] sm:$0xff] }
  0xcf   :  { %1113 = vmatprep.subr.mxu0 %v685_v48  ;;  %1148 = vmatprep.subr.mxu1 %v717_v49  ;;  %v772_v46 = vld [vmem:[#allocation6 + $0x358] sm:$0xff]  ;;  %v787_v48 = vld [vmem:[#allocation6 + $0x3d0] sm:$0xff] }
  0xd0   :  { %1114 = vmatpush3.msra.mxu0 %v669_v50  ;;  %1149 = vmatpush3.msra.mxu1 %v701_v51  ;;  %v739_v49 = vld [vmem:[#allocation6 + $0x250] sm:$0xff]  ;;  %v754_v51 = vld [vmem:[#allocation6 + $0x2c8] sm:$0xff] }
  0xd1   :  { %1115 = vmatprep.subr.mxu0 %v684_v52  ;;  %1150 = vmatprep.subr.mxu1 %v716_v53  ;;  %v771_v50 = vld [vmem:[#allocation6 + $0x350] sm:$0xff]  ;;  %v786_v52 = vld [vmem:[#allocation6 + $0x3c8] sm:$0xff] }
  0xd2   :  { %1116 = vmatpush3.msra.mxu0 %v668_v54  ;;  %1151 = vmatpush3.msra.mxu1 %v700_v55  ;;  %v738_v53 = vld [vmem:[#allocation6 + $0x248] sm:$0xff]  ;;  %v753_v55 = vld [vmem:[#allocation6 + $0x2c0] sm:$0xff] }
  0xd3   :  { %1117 = vmatprep.subr.mxu0 %v683_v57  ;;  %1152 = vmatprep.subr.mxu1 %v715_v58  ;;  %v770_v54 = vld [vmem:[#allocation6 + $0x348] sm:$0xff]  ;;  %v785_v57 = vld [vmem:[#allocation6 + $0x3c0] sm:$0xff] }
  0xd4   :  { %1118 = vmatpush3.msra.mxu0 %v667_v59  ;;  %1153 = vmatpush3.msra.mxu1 %v699_v60  ;;  %v737_v58 = vld [vmem:[#allocation6 + $0x240] sm:$0xff]  ;;  %v752_v60 = vld [vmem:[#allocation6 + $0x2b8] sm:$0xff] }
  0xd5   :  { %1119 = vmatprep.subr.mxu0 %v682_v61  ;;  %1154 = vmatprep.subr.mxu1 %v714_v62  ;;  %v769_v59 = vld [vmem:[#allocation6 + $0x340] sm:$0xff]  ;;  %v784_v61 = vld [vmem:[#allocation6 + $0x3b8] sm:$0xff] }
  0xd6   :  { %1120 = vmatpush3.msra.mxu0 %v666_v0  ;;  %1155 = vmatpush3.msra.mxu1 %v698_v1  ;;  %v736_v62 = vld [vmem:[#allocation6 + $0x238] sm:$0xff]  ;;  %v751_v1 = vld [vmem:[#allocation6 + $0x2b0] sm:$0xff] }
  0xd7   :  { %1121 = vmatprep.subr.mxu0 %v681_v2  ;;  %1156 = vmatprep.subr.mxu1 %v713_v3  ;;  %v768_v0 = vld [vmem:[#allocation6 + $0x338] sm:$0xff]  ;;  %v783_v2 = vld [vmem:[#allocation6 + $0x3b0] sm:$0xff] }
  0xd8   :  { %1122 = vmatpush3.msra.mxu0 %v665_v4  ;;  %1157 = vmatpush3.msra.mxu1 %v697_v5  ;;  %v735_v3 = vld [vmem:[#allocation6 + $0x230] sm:$0xff]  ;;  %v750_v5 = vld [vmem:[#allocation6 + $0x2a8] sm:$0xff] }
  0xd9   :  { %1161 = vmatprep.subr.mxu0 %v760_v6  ;;  %1196 = vmatprep.subr.mxu1 %v792_v7  ;;  %v767_v4 = vld [vmem:[#allocation6 + $0x330] sm:$0xff]  ;;  %v782_v6 = vld [vmem:[#allocation6 + $0x3a8] sm:$0xff] }
  0xda   :  { %v734_v7 = vld [vmem:[#allocation6 + $0x228] sm:$0xff] }
 0x136   :  { %v439_v18 = vpop.f32.mrf.mxu0  ;;  %v510_v56 = vpop.f32.mrf.mxu1 }
 0x137   :  { %v511_v19 = vadd.f32 %v510_v56, %v341_v15  ;;  %v440_v20 = vadd.f32 %v439_v18, %v333_v16  ;;  %v748_v15 = vld [vmem:[#allocation6 + $0x298] sm:$0xff]  ;;  %v747_v18 = vld [vmem:[#allocation6 + $0x290] sm:$0xff] }
 0x138   :  { %v441_v21 = vpop.f32.mrf.mxu0  ;;  %v512_v22 = vpop.f32.mrf.mxu1  ;;  %v780_v16 = vld [vmem:[#allocation6 + $0x398] sm:$0xff]  ;;  %v779_v56 = vld [vmem:[#allocation6 + $0x390] sm:$0xff] }
 0x139   :  { %v442_v23 = vadd.f32 %v441_v21, %v337_v63  ;;  %v513_v24 = vadd.f32 %v512_v22, %v345_v17  ;;  %v659_v25 = vmax.f32 %v511_v19, 0.0  ;;  %v657_v28 = vmax.f32 %v440_v20, 0.0  ;;  %v732_v63 = vld [vmem:[#allocation6 + $0x218] sm:$0xff]  ;;  %v731_v19 = vld [vmem:[#allocation6 + $0x210] sm:$0xff]  ;;  %v746_v21 = vld [vmem:[#allocation6 + $0x288] sm:$0xff] }
 0x13a   :  { %v764_v17 = vld [vmem:[#allocation6 + $0x318] sm:$0xff]  ;;  %v763_v20 = vld [vmem:[#allocation6 + $0x310] sm:$0xff]  ;;  %v778_v22 = vld [vmem:[#allocation6 + $0x388] sm:$0xff] }
 0x13b   :  { %v658_v26 = vmax.f32 %v442_v23, 0.0  ;;  %v660_v27 = vmax.f32 %v513_v24, 0.0  ;;  %v730_v23 = vld [vmem:[#allocation6 + $0x208] sm:$0xff] }
 0x13c   :  { %v762_v24 = vld [vmem:[#allocation6 + $0x308] sm:$0xff] }
 0x13d   :  { %864 = vmatprep.mubr.f32.mxu0 %v658_v26  ;;  %934 = vmatprep.mubr.f32.mxu1 %v660_v27  ;;  %v777_v26 = vld [vmem:[#allocation6 + $0x380] sm:$0xff] }
 0x13e   :  { %865 = vmatmul.mubr.f32.vlgmr.msra.gmra.mxu0 %v657_v28  ;;  %935 = vmatmul.mubr.f32.vlgmr.msra.gmra.mxu1 %v659_v25  ;;  %v745_v25 = vld [vmem:[#allocation6 + $0x280] sm:$0xff] }
 0x13f   :  { %1162 = vmatpush3.msra.mxu0 %v744_v29  ;;  %1197 = vmatpush3.msra.mxu1 %v776_v30  ;;  %v729_v27 = vld [vmem:[#allocation6 + $0x200] sm:$0xff]  ;;  %v356_v29 = vsub.s32 6, %v1393_v9  ;;  %v348_v30 = vsub.s32 4, %v1393_v9 }
 0x140   :  { %1163 = vmatprep.subr.mxu0 %v759_v31  ;;  %1198 = vmatprep.subr.mxu1 %v791_v32  ;;  %v761_v28 = vld [vmem:[#allocation6 + $0x300] sm:$0xff]  ;;  %v352_v31 = vsub.s32 5, %v1393_v9  ;;  %v360_v32 = vsub.s32 7, %v1393_v9 }
 0x141   :  { %1164 = vmatpush3.msra.mxu0 %v743_v33  ;;  %1199 = vmatpush3.msra.mxu1 %v775_v34  ;;  %v357_v33 = vrot.slane %v1397_v12, %v356_v29  ;;  %v349_v34 = vrot.slane %v1397_v12, %v348_v30 }
 0x142   :  { %1165 = vmatprep.subr.mxu0 %v758_v35  ;;  %1200 = vmatprep.subr.mxu1 %v790_v36  ;;  %v353_v35 = vrot.slane %v1397_v12, %v352_v31  ;;  %v361_v36 = vrot.slane %v1397_v12, %v360_v32 }
 0x143   :  { %1166 = vmatpush3.msra.mxu0 %v742_v37  ;;  %1201 = vmatpush3.msra.mxu1 %v774_v38 }
 0x144   :  { %1167 = vmatprep.subr.mxu0 %v757_v39  ;;  %1202 = vmatprep.subr.mxu1 %v789_v40 }
 0x145   :  { %1168 = vmatpush3.msra.mxu0 %v741_v41  ;;  %1203 = vmatpush3.msra.mxu1 %v773_v42 }
 0x146   :  { %1169 = vmatprep.subr.mxu0 %v756_v43  ;;  %1204 = vmatprep.subr.mxu1 %v788_v44 }
 0x147   :  { %1170 = vmatpush3.msra.mxu0 %v740_v45  ;;  %1205 = vmatpush3.msra.mxu1 %v772_v46 }
 0x148   :  { %1171 = vmatprep.subr.mxu0 %v755_v47  ;;  %1206 = vmatprep.subr.mxu1 %v787_v48 }
 0x149   :  { %1172 = vmatpush3.msra.mxu0 %v739_v49  ;;  %1207 = vmatpush3.msra.mxu1 %v771_v50 }
 0x14a   :  { %1173 = vmatprep.subr.mxu0 %v754_v51  ;;  %1208 = vmatprep.subr.mxu1 %v786_v52  ;;  %v1090_v51 = vld [vmem:[#allocation7] ss:$0 sm:$0xff] }
 0x14b   :  { %1174 = vmatpush3.msra.mxu0 %v738_v53  ;;  %1209 = vmatpush3.msra.mxu1 %v770_v54 }
 0x14c   :  { %1175 = vmatprep.subr.mxu0 %v753_v55  ;;  %1210 = vmatprep.subr.mxu1 %v785_v57 }
 0x14d   :  { %1176 = vmatpush3.msra.mxu0 %v737_v58  ;;  %1211 = vmatpush3.msra.mxu1 %v769_v59 }
 0x14e   :  { %1177 = vmatprep.subr.mxu0 %v752_v60  ;;  %1212 = vmatprep.subr.mxu1 %v784_v61 }
 0x14f   :  { %1178 = vmatpush3.msra.mxu0 %v736_v62  ;;  %1213 = vmatpush3.msra.mxu1 %v768_v0 }
 0x150   :  { %1179 = vmatprep.subr.mxu0 %v751_v1  ;;  %1214 = vmatprep.subr.mxu1 %v783_v2 }
 0x151   :  { %1180 = vmatpush3.msra.mxu0 %v735_v3  ;;  %1215 = vmatpush3.msra.mxu1 %v767_v4 }
 0x152   :  { %1181 = vmatprep.subr.mxu0 %v750_v5  ;;  %1216 = vmatprep.subr.mxu1 %v782_v6 }
 0x153   :  { %1182 = vmatpush3.msra.mxu0 %v734_v7  ;;  %1217 = vmatpush3.msra.mxu1 %v766_v8 }
 0x154   :  { %1183 = vmatprep.subr.mxu0 %v749_v10  ;;  %1218 = vmatprep.subr.mxu1 %v781_v11 }
 0x155   :  { %1184 = vmatpush3.msra.mxu0 %v733_v13  ;;  %1219 = vmatpush3.msra.mxu1 %v765_v14 }
 0x156   :  { %1185 = vmatprep.subr.mxu0 %v748_v15  ;;  %1220 = vmatprep.subr.mxu1 %v780_v16 }
 0x157   :  { %1186 = vmatpush3.msra.mxu0 %v732_v63  ;;  %1221 = vmatpush3.msra.mxu1 %v764_v17 }
 0x158   :  { %1187 = vmatprep.subr.mxu0 %v747_v18  ;;  %1222 = vmatprep.subr.mxu1 %v779_v56 }
 0x159   :  { %1188 = vmatpush3.msra.mxu0 %v731_v19  ;;  %1223 = vmatpush3.msra.mxu1 %v763_v20 }
 0x15a   :  { %1189 = vmatprep.subr.mxu0 %v746_v21  ;;  %1224 = vmatprep.subr.mxu1 %v778_v22 }
 0x15b   :  { %1190 = vmatpush3.msra.mxu0 %v730_v23  ;;  %1225 = vmatpush3.msra.mxu1 %v762_v24 }
 0x15c   :  { %1191 = vmatprep.subr.mxu0 %v745_v25  ;;  %1226 = vmatprep.subr.mxu1 %v777_v26 }
 0x15d   :  { %1192 = vmatpush3.msra.mxu0 %v729_v27  ;;  %1227 = vmatpush3.msra.mxu1 %v761_v28 }
 0x178   :  { %v581_v37 = vpop.f32.mrf.mxu0  ;;  %v652_v38 = vpop.f32.mrf.mxu1 }
 0x179   :  { %v653_v39 = vadd.f32 %v652_v38, %v357_v33  ;;  %v582_v40 = vadd.f32 %v581_v37, %v349_v34 }
 0x17a   :  { %v583_v41 = vpop.f32.mrf.mxu0  ;;  %v654_v42 = vpop.f32.mrf.mxu1 }
 0x17b   :  { %v584_v43 = vadd.f32 %v583_v41, %v353_v35  ;;  %v655_v44 = vadd.f32 %v654_v42, %v361_v36  ;;  %v663_v45 = vmax.f32 %v653_v39, 0.0  ;;  %v661_v9 = vmax.f32 %v582_v40, 0.0 }
 0x17d   :  { %v662_v46 = vmax.f32 %v584_v43, 0.0  ;;  %v664_v47 = vmax.f32 %v655_v44, 0.0 }
 0x17f   :  { %1004 = vmatprep.mubr.f32.mxu0 %v662_v46  ;;  %1074 = vmatprep.mubr.f32.mxu1 %v664_v47 }
 0x180   :  { %1005 = vmatmul.mubr.f32.vlgmr.msra.gmra.mxu0 %v661_v9  ;;  %1075 = vmatmul.mubr.f32.vlgmr.msra.gmra.mxu1 %v663_v45 }
 0x1fe   :  { %v1123_v48 = vpop.f32.mrf.mxu0  ;;  %v1158_v50 = vpop.f32.mrf.mxu1 }
 0x200   :  { %v1124_v49 = vpop.f32.mrf.mxu0  ;;  %v1159_v52 = vpop.f32.mrf.mxu1 }
 0x201   :  { %v1125_v12 = vadd.f32 %v1124_v49, %v1123_v48  ;;  %v1160_v57 = vadd.f32 %v1159_v52, %v1158_v50 }
 0x203   :  { %v867_v53 = vadd.f32 %v1125_v12, %v1090_v51 }
 0x205   :  { %v937_v60 = vadd.f32 %v1160_v57, %v867_v53 }
 0x240   :  { %v1193_v54 = vpop.f32.mrf.mxu0  ;;  %v1228_v55 = vpop.f32.mrf.mxu1 }
 0x242   :  { %v1194_v58 = vpop.f32.mrf.mxu0  ;;  %v1229_v59 = vpop.f32.mrf.mxu1 }
 0x243   :  { %v1195_v61 = vadd.f32 %v1194_v58, %v1193_v54  ;;  %v1230_v0 = vadd.f32 %v1229_v59, %v1228_v55 }
 0x245   :  { %v1007_v62 = vadd.f32 %v1195_v61, %v937_v60 }
 0x247   :  { %v1077_v1 = vadd.f32 %v1230_v0, %v1007_v62 }
 0x249   :  { %v1080_v2 = vmax.f32 %v1077_v1, 0.0 }
 0x24b   :  { %1082 = vst.msk [vmem:[%s1421_s5] sm:$0xf] %vm1081_vm0, %v1080_v2 }
 0x24c   :  { %1087 = vsyncpa [#allocation3], 1 }
 0x24d   :  { %1088 = vsyncpa [#allocation5], 1 }
 0x24e   :  { %1089 = vsyncpa [#allocation8], 1 }

// kernel: stage1_g_forward.9
= control target key start
LH: loop header
LB: loop body
LE: loop exit
PB: predicated region body
PF: predicated region fallthrough
CT: control target
= control target key end

     0   :  { %vm59_vm0 = vcmask 261120   ;;  %vm403_vm1 = vcmask 523264   ;;  %s986_s0 = inlined_call_operand.vmem [shape: f32[2,288,64], index: 0, kind: input, shape index: {}]   ;;  %s987_s1 = inlined_call_operand.vmem [shape: f32[16,288], index: 1, kind: input, shape index: {}]   ;;  %s988_s2 = inlined_call_operand.vmem [shape: f32[16,1], index: 2, kind: input, shape index: {}]   ;;  %s989_s3 = inlined_call_operand.vmem [shape: f32[16,1], index: 3, kind: input, shape index: {}]   ;;  %s990_s4 = inlined_call_operand.vmem [shape: f32[2,16,64], index: 4, kind: output, shape index: {}]  }
   0x1   :  { %v54_v0 = vld [vmem:[%s986_s0 + $0xf8] sm:$0xff]  ;;  %v53_v3 = vld [vmem:[%s986_s0 + $0xf0] sm:$0xff]  ;;  %v52_v6 = vld [vmem:[%s986_s0 + $0xe8] sm:$0xff] }
   0x2   :  { %v58_v1 = vld [vmem:[%s986_s0 + $0x118] sm:$0xff]  ;;  %541 = vmatprep.subr.mxu0 %v54_v0  ;;  %v57_v4 = vld [vmem:[%s986_s0 + $0x110] sm:$0xff]  ;;  %v56_v7 = vld [vmem:[%s986_s0 + $0x108] sm:$0xff] }
   0x3   :  { %v38_v2 = vld [vmem:[%s986_s0 + $0x78] sm:$0xff]  ;;  %629 = vmatprep.subr.mxu1 %v58_v1  ;;  %v37_v5 = vld [vmem:[%s986_s0 + $0x70] sm:$0xff]  ;;  %v36_v8 = vld [vmem:[%s986_s0 + $0x68] sm:$0xff] }
   0x4   :  { %542 = vmatpush3.msra.mxu0 %v38_v2  ;;  %630 = vmatpush3.msra.mxu1 %v58_v1  ;;  %v51_v9 = vld [vmem:[%s986_s0 + $0xe0] sm:$0xff]  ;;  %v723_v12 = vld [vmem:[%s987_s1 + $0x10] sm:$0xff]  ;;  %v50_v13 = vld [vmem:[%s986_s0 + $0xd8] sm:$0xff] }
   0x5   :  { %543 = vmatprep.subr.mxu0 %v53_v3  ;;  %631 = vmatprep.subr.mxu1 %v57_v4  ;;  %v55_v10 = vld [vmem:[%s986_s0 + $0x100] sm:$0xff]  ;;  %v731_v14 = vld [vmem:[%s987_s1 + $0x28] sm:$0xff]  ;;  %v532_v15 = vld [vmem:[%s986_s0 + $0x218] sm:$0xff] }
   0x6   :  { %544 = vmatpush3.msra.mxu0 %v37_v5  ;;  %632 = vmatpush3.msra.mxu1 %v57_v4  ;;  %v35_v11 = vld [vmem:[%s986_s0 + $0x60] sm:$0xff]  ;;  %v34_v16 = vld [vmem:[%s986_s0 + $0x58] sm:$0xff]  ;;  %v49_v18 = vld [vmem:[%s986_s0 + $0xd0] sm:$0xff] }
   0x7   :  { %545 = vmatprep.subr.mxu0 %v52_v6  ;;  %633 = vmatprep.subr.mxu1 %v56_v7  ;;  %v516_v17 = vld [vmem:[%s986_s0 + $0x198] sm:$0xff]  ;;  %v531_v19 = vld [vmem:[%s986_s0 + $0x210] sm:$0xff]  ;;  %v48_v22 = vld [vmem:[%s986_s0 + $0xc8] sm:$0xff] }
   0x8   :  { %546 = vmatpush3.msra.mxu0 %v36_v8  ;;  %634 = vmatpush3.msra.mxu1 %v56_v7  ;;  %v33_v20 = vld [vmem:[%s986_s0 + $0x50] sm:$0xff]  ;;  %v530_v23 = vld [vmem:[%s986_s0 + $0x208] sm:$0xff]  ;;  %v47_v26 = vld [vmem:[%s986_s0 + $0xc0] sm:$0xff] }
   0x9   :  { %547 = vmatprep.subr.mxu0 %v51_v9  ;;  %635 = vmatprep.subr.mxu1 %v55_v10  ;;  %v515_v21 = vld [vmem:[%s986_s0 + $0x190] sm:$0xff]  ;;  %v32_v24 = vld [vmem:[%s986_s0 + $0x48] sm:$0xff]  ;;  %v529_v27 = vld [vmem:[%s986_s0 + $0x200] sm:$0xff] }
   0xa   :  { %548 = vmatpush3.msra.mxu0 %v35_v11  ;;  %636 = vmatpush3.msra.mxu1 %v55_v10  ;;  %v514_v25 = vld [vmem:[%s986_s0 + $0x188] sm:$0xff]  ;;  %v31_v28 = vld [vmem:[%s986_s0 + $0x40] sm:$0xff]  ;;  %v46_v30 = vld [vmem:[%s986_s0 + $0xb8] sm:$0xff] }
   0xb   :  { %637 = vmatprep.mubr.msk.f32.mxu1 %vm59_vm0, %v723_v12  ;;  %549 = vmatprep.subr.mxu0 %v50_v13  ;;  %v513_v29 = vld [vmem:[%s986_s0 + $0x180] sm:$0xff]  ;;  %v528_v31 = vld [vmem:[%s986_s0 + $0x1f8] sm:$0xff]  ;;  %v45_v34 = vld [vmem:[%s986_s0 + $0xb0] sm:$0xff] }
   0xc   :  { %638 = vmatmul.mubr.msk.f32.vlgmr.msra.gmra.mxu1 %vm59_vm0, %v731_v14  ;;  %585 = vmatprep.subr.mxu1 %v532_v15  ;;  %v30_v32 = vld [vmem:[%s986_s0 + $0x38] sm:$0xff]  ;;  %v527_v35 = vld [vmem:[%s986_s0 + $0x1f0] sm:$0xff]  ;;  %v44_v38 = vld [vmem:[%s986_s0 + $0xa8] sm:$0xff] }
   0xd   :  { %550 = vmatpush3.msra.mxu0 %v34_v16  ;;  %586 = vmatpush3.msra.mxu1 %v516_v17  ;;  %v512_v33 = vld [vmem:[%s986_s0 + $0x178] sm:$0xff]  ;;  %v29_v36 = vld [vmem:[%s986_s0 + $0x30] sm:$0xff]  ;;  %v526_v39 = vld [vmem:[%s986_s0 + $0x1e8] sm:$0xff] }
   0xe   :  { %551 = vmatprep.subr.mxu0 %v49_v18  ;;  %587 = vmatprep.subr.mxu1 %v531_v19  ;;  %v511_v37 = vld [vmem:[%s986_s0 + $0x170] sm:$0xff]  ;;  %v28_v40 = vld [vmem:[%s986_s0 + $0x28] sm:$0xff]  ;;  %v43_v42 = vld [vmem:[%s986_s0 + $0xa0] sm:$0xff] }
   0xf   :  { %552 = vmatpush3.msra.mxu0 %v33_v20  ;;  %588 = vmatpush3.msra.mxu1 %v515_v21  ;;  %v510_v41 = vld [vmem:[%s986_s0 + $0x168] sm:$0xff]  ;;  %v525_v43 = vld [vmem:[%s986_s0 + $0x1e0] sm:$0xff]  ;;  %v42_v46 = vld [vmem:[%s986_s0 + $0x98] sm:$0xff] }
  0x10   :  { %553 = vmatprep.subr.mxu0 %v48_v22  ;;  %589 = vmatprep.subr.mxu1 %v530_v23  ;;  %v27_v44 = vld [vmem:[%s986_s0 + $0x20] sm:$0xff]  ;;  %v524_v47 = vld [vmem:[%s986_s0 + $0x1d8] sm:$0xff]  ;;  %v41_v50 = vld [vmem:[%s986_s0 + $0x90] sm:$0xff] }
  0x11   :  { %554 = vmatpush3.msra.mxu0 %v32_v24  ;;  %590 = vmatpush3.msra.mxu1 %v514_v25  ;;  %v509_v45 = vld [vmem:[%s986_s0 + $0x160] sm:$0xff]  ;;  %v26_v48 = vld [vmem:[%s986_s0 + $0x18] sm:$0xff]  ;;  %v523_v51 = vld [vmem:[%s986_s0 + $0x1d0] sm:$0xff] }
  0x12   :  { %555 = vmatprep.subr.mxu0 %v47_v26  ;;  %591 = vmatprep.subr.mxu1 %v529_v27  ;;  %v508_v49 = vld [vmem:[%s986_s0 + $0x158] sm:$0xff]  ;;  %v25_v52 = vld [vmem:[%s986_s0 + $0x10] sm:$0xff]  ;;  %v40_v54 = vld [vmem:[%s986_s0 + $0x88] sm:$0xff] }
  0x13   :  { %556 = vmatpush3.msra.mxu0 %v31_v28  ;;  %592 = vmatpush3.msra.mxu1 %v513_v29  ;;  %v507_v53 = vld [vmem:[%s986_s0 + $0x150] sm:$0xff]  ;;  %v522_v55 = vld [vmem:[%s986_s0 + $0x1c8] sm:$0xff]  ;;  %v39_v58 = vld [vmem:[%s986_s0 + $0x80] sm:$0xff] }
  0x14   :  { %557 = vmatprep.subr.mxu0 %v46_v30  ;;  %593 = vmatprep.subr.mxu1 %v528_v31  ;;  %v24_v56 = vld [vmem:[%s986_s0 + $0x8] sm:$0xff]  ;;  %v521_v59 = vld [vmem:[%s986_s0 + $0x1c0] sm:$0xff]  ;;  %v520_v0 = vld [vmem:[%s986_s0 + $0x1b8] sm:$0xff] }
  0x15   :  { %558 = vmatpush3.msra.mxu0 %v30_v32  ;;  %594 = vmatpush3.msra.mxu1 %v512_v33  ;;  %v506_v57 = vld [vmem:[%s986_s0 + $0x148] sm:$0xff]  ;;  %v23_v60 = vld [vmem:[%s986_s0] sm:$0xff]  ;;  %v536_v1 = vld [vmem:[%s986_s0 + $0x238] sm:$0xff] }
  0x16   :  { %559 = vmatprep.subr.mxu0 %v45_v34  ;;  %595 = vmatprep.subr.mxu1 %v527_v35  ;;  %v18_v61 = vld [vmem:[%s987_s1 + $0x8] sm:$0xff]  ;;  %v505_v62 = vld [vmem:[%s986_s0 + $0x140] sm:$0xff]  ;;  %v504_v2 = vld [vmem:[%s986_s0 + $0x138] sm:$0xff] }
  0x17   :  { %560 = vmatpush3.msra.mxu0 %v29_v36  ;;  %596 = vmatpush3.msra.mxu1 %v511_v37  ;;  %v17_v63 = vld [vmem:[%s987_s1] sm:$0xff]  ;;  %v519_v3 = vld [vmem:[%s986_s0 + $0x1b0] sm:$0xff]  ;;  %v518_v7 = vld [vmem:[%s986_s0 + $0x1a8] sm:$0xff] }
  0x18   :  { %561 = vmatprep.subr.mxu0 %v44_v38  ;;  %597 = vmatprep.subr.mxu1 %v526_v39  ;;  %v535_v4 = vld [vmem:[%s986_s0 + $0x230] sm:$0xff]  ;;  %v21_v5 = vld [vmem:[%s987_s1 + $0x20] sm:$0xff]  ;;  %v20_v8 = vld [vmem:[%s987_s1 + $0x18] sm:$0xff] }
  0x19   :  { %562 = vmatpush3.msra.mxu0 %v28_v40  ;;  %598 = vmatpush3.msra.mxu1 %v510_v41  ;;  %v503_v6 = vld [vmem:[%s986_s0 + $0x130] sm:$0xff]  ;;  %v534_v9 = vld [vmem:[%s986_s0 + $0x228] sm:$0xff]  ;;  %v517_v11 = vld [vmem:[%s986_s0 + $0x1a0] sm:$0xff] }
  0x1a   :  { %563 = vmatprep.subr.mxu0 %v43_v42  ;;  %599 = vmatprep.subr.mxu1 %v525_v43  ;;  %v502_v10 = vld [vmem:[%s986_s0 + $0x128] sm:$0xff]  ;;  %v533_v13 = vld [vmem:[%s986_s0 + $0x220] sm:$0xff] }
  0x1b   :  { %564 = vmatpush3.msra.mxu0 %v27_v44  ;;  %600 = vmatpush3.msra.mxu1 %v509_v45  ;;  %v501_v15 = vld [vmem:[%s986_s0 + $0x120] sm:$0xff] }
  0x1c   :  { %565 = vmatprep.subr.mxu0 %v42_v46  ;;  %601 = vmatprep.subr.mxu1 %v524_v47 }
  0x1d   :  { %566 = vmatpush3.msra.mxu0 %v26_v48  ;;  %602 = vmatpush3.msra.mxu1 %v508_v49 }
  0x1e   :  { %567 = vmatprep.subr.mxu0 %v41_v50  ;;  %603 = vmatprep.subr.mxu1 %v523_v51 }
  0x1f   :  { %568 = vmatpush3.msra.mxu0 %v25_v52  ;;  %604 = vmatpush3.msra.mxu1 %v507_v53 }
  0x20   :  { %569 = vmatprep.subr.mxu0 %v40_v54  ;;  %605 = vmatprep.subr.mxu1 %v522_v55 }
  0x21   :  { %570 = vmatpush3.msra.mxu0 %v24_v56  ;;  %606 = vmatpush3.msra.mxu1 %v506_v57 }
  0x22   :  { %571 = vmatprep.subr.mxu0 %v39_v58  ;;  %607 = vmatprep.subr.mxu1 %v521_v59  ;;  %v658_v58 = vmov 0  }
  0x23   :  { %572 = vmatpush3.msra.mxu0 %v23_v60  ;;  %130 = vmatprep.mubr.f32.mxu0 %v18_v61 }
  0x24   :  { %608 = vmatpush3.msra.mxu1 %v505_v62  ;;  %131 = vmatmul.mubr.f32.vlgmr.msra.gmra.mxu0 %v17_v63 }
  0x25   :  { %609 = vmatprep.subr.mxu1 %v520_v0  ;;  %640 = vmatprep.subr.mxu0 %v536_v1 }
  0x26   :  { %610 = vmatpush3.msra.mxu1 %v504_v2  ;;  %641 = vmatpush3.msra.mxu0 %v536_v1 }
  0x27   :  { %611 = vmatprep.subr.mxu1 %v519_v3  ;;  %642 = vmatprep.subr.mxu0 %v535_v4 }
  0x28   :  { %135 = vmatprep.mubr.f32.mxu0 %v21_v5  ;;  %612 = vmatpush3.msra.mxu1 %v503_v6 }
  0x29   :  { %643 = vmatpush3.msra.mxu0 %v535_v4  ;;  %613 = vmatprep.subr.mxu1 %v518_v7 }
  0x2a   :  { %136 = vmatmul.mubr.f32.gmra.mxu0 %v20_v8  ;;  %644 = vmatprep.subr.mxu0 %v534_v9 }
  0x2b   :  { %614 = vmatpush3.msra.mxu1 %v502_v10  ;;  %645 = vmatpush3.msra.mxu0 %v534_v9 }
  0x2c   :  { %615 = vmatprep.subr.mxu1 %v517_v11  ;;  %646 = vmatprep.subr.mxu0 %v533_v13 }
  0x2d   :  { %616 = vmatpush3.msra.mxu1 %v501_v15  ;;  %317 = vmatprep.mubr.f32.mxu1 %v18_v61 }
  0x2e   :  { %647 = vmatpush3.msra.mxu0 %v533_v13  ;;  %648 = vmatprep.mubr.msk.f32.mxu0 %vm59_vm0, %v723_v12  ;;  %v452_v13 = vld [vmem:[%s989_s3] sm:$0xff] }
  0x2f   :  { %318 = vmatmul.mubr.f32.vlgmr.msra.gmra.mxu1 %v17_v63  ;;  %649 = vmatmul.mubr.msk.f32.vlgmr.msra.gmra.mxu0 %vm59_vm0, %v731_v14 }
  0x30   :  { %322 = vmatprep.mubr.f32.mxu1 %v21_v5  ;;  %652 = vset.pattern.permute.xlu0 %v658_v58  ;;  %v444_v5 = vld [vmem:[%s988_s2] sm:$0xff] }
  0x31   :  { %653 = vset.pattern.permute.xlu1 %v658_v58 }
  0x33   :  { %323 = vmatmul.mubr.f32.gmra.mxu1 %v20_v8  ;;  %v445_v8 = vld [vmem:[%s988_s2 + $0x8] sm:$0xff] }
  0xcc   :  { %v639_v16 = vpop.f32.mrf.mxu1 }
  0xce   :  { %v207_v20 = vpop.f32.mrf.mxu1 }
  0xe4   :  { %v573_v17 = vpop.f32.mrf.mxu0 }
  0xe6   :  { %v574_v18 = vpop.f32.mrf.mxu0 }
  0xe7   :  { %v575_v19 = vadd.f32 %v574_v18, %v573_v17  ;;  %v453_v17 = vld [vmem:[%s989_s3 + $0x8] sm:$0xff] }
  0xe9   :  { %v930_v21 = vadd.f32 %v575_v19, %v207_v20 }
  0xea   :  { %v576_v22 = vpop.f32.mrf.mxu0 }
  0xeb   :  { %v404_v23 = vsel %vm403_vm1, %v930_v21, 0.0 }
  0xec   :  { %v577_v24 = vpop.f32.mrf.mxu0  ;;  %405 = vadd.xlane.f32.xlu0 %v404_v23 }
  0xed   :  { %v578_v12 = vadd.f32 %v577_v24, %v576_v22 }
  0xef   :  { %v934_v25 = vadd.f32 %v639_v16, %v578_v12  ;;  %v617_v14 = vpop.f32.mrf.mxu1  ;;  %v650_v26 = vpop.f32.mrf.mxu0 }
  0xf1   :  { %v618_v27 = vpop.f32.mrf.mxu1  ;;  %v407_v28 = vsel %vm403_vm1, %v934_v25, 0.0  ;;  %v394_v30 = vpop.f32.mrf.mxu0 }
  0xf2   :  { %v619_v29 = vadd.f32 %v618_v27, %v617_v14  ;;  %408 = vadd.xlane.f32.xlu0 %v407_v28 }
  0xf3   :  { %v620_v31 = vpop.f32.mrf.mxu1 }
  0xf4   :  { %v938_v32 = vadd.f32 %v619_v29, %v394_v30 }
  0xf5   :  { %v621_v33 = vpop.f32.mrf.mxu1 }
  0xf6   :  { %v622_v34 = vadd.f32 %v621_v33, %v620_v31  ;;  %v410_v35 = vsel %vm403_vm1, %v938_v32, 0.0 }
  0xf7   :  { %411 = vadd.xlane.f32.xlu1 %v410_v35 }
  0xf8   :  { %v942_v36 = vadd.f32 %v650_v26, %v622_v34 }
  0xfa   :  { %v413_v37 = vsel %vm403_vm1, %v942_v36, 0.0 }
  0xfb   :  { %414 = vadd.xlane.f32.xlu1 %v413_v37 }
 0x175   :  { %v406_v38 = vpop.xlane.xlu0 %405 }
 0x17b   :  { %v409_v42 = vpop.xlane.xlu0 %408 }
 0x180   :  { %v412_v39 = vpop.xlane.xlu1 %411 }
 0x181   :  { %v416_v40 = vadd.f32 %v412_v39, %v406_v38 }
 0x183   :  { %v418_v41 = vmul.f32 0.0078125, %v416_v40 }
 0x184   :  { %v415_v43 = vpop.xlane.xlu1 %414 }
 0x185   :  { %v417_v44 = vadd.f32 %v415_v43, %v409_v42  ;;  %v420_v45 = vsub.f32 %v930_v21, %v418_v41  ;;  %v430_v46 = vsub.f32 %v938_v32, %v418_v41 }
 0x187   :  { %v419_v47 = vmul.f32 0.0078125, %v417_v44  ;;  %v422_v48 = vmul.f32 %v420_v45, %v420_v45  ;;  %v432_v50 = vmul.f32 %v430_v46, %v430_v46 }
 0x189   :  { %v424_v49 = vsel %vm403_vm1, %v422_v48, 0.0  ;;  %v421_v51 = vsub.f32 %v934_v25, %v419_v47  ;;  %v431_v52 = vsub.f32 %v942_v36, %v419_v47  ;;  %v434_v54 = vsel %vm403_vm1, %v432_v50, 0.0 }
 0x18a   :  { %425 = vadd.xlane.f32.xlu0 %v424_v49 }
 0x18b   :  { %v423_v53 = vmul.f32 %v421_v51, %v421_v51  ;;  %v433_v56 = vmul.f32 %v431_v52, %v431_v52 }
 0x18d   :  { %v427_v55 = vsel %vm403_vm1, %v423_v53, 0.0  ;;  %v437_v57 = vsel %vm403_vm1, %v433_v56, 0.0 }
 0x18e   :  { %435 = vadd.xlane.f32.xlu0 %v434_v54  ;;  %428 = vadd.xlane.f32.xlu1 %v427_v55 }
 0x192   :  { %438 = vadd.xlane.f32.xlu1 %v437_v57 }
 0x213   :  { %v426_v59 = vpop.xlane.xlu0 %425 }
 0x217   :  { %v429_v60 = vpop.xlane.xlu1 %428  ;;  %v436_v61 = vpop.xlane.xlu0 %435 }
 0x218   :  { %v440_v62 = vadd.f32 %v436_v61, %v426_v59 }
 0x21a   :  { %v442_v63 = vmul.f32 0.0078125, %v440_v62 }
 0x21b   :  { %v439_v0 = vpop.xlane.xlu1 %438 }
 0x21c   :  { %v446_v1 = vadd.f32 1e-05, %v442_v63  ;;  %v441_v2 = vadd.f32 %v439_v0, %v429_v60 }
 0x21e   :  { %654 = vrsqrt.f32 %v446_v1  ;;  %v443_v3 = vmul.f32 0.0078125, %v441_v2 }
 0x220   :  { %v447_v4 = vadd.f32 1e-05, %v443_v3 }
 0x222   :  { %656 = vrsqrt.f32 %v447_v4 }
 0x22b   :  { %v655_v6 = vpop.eup %654 }
 0x22c   :  { %v450_v7 = vmul.f32 %v655_v6, %v444_v5 }
 0x22e   :  { %460 = vperm.xlu0 %652, %v450_v7   ;;  %v454_v11 = vmul.f32 %v450_v7, %v418_v41 }
 0x22f   :  { %v657_v9 = vpop.eup %656 }
 0x230   :  { %v451_v10 = vmul.f32 %v657_v9, %v445_v8  ;;  %v456_v15 = vsub.f32 %v452_v13, %v454_v11 }
 0x232   :  { %465 = vperm.xlu1 %653, %v451_v10   ;;  %v455_v16 = vmul.f32 %v451_v10, %v419_v47 }
 0x234   :  { %v457_v18 = vsub.f32 %v453_v17, %v455_v16 }
 0x236   :  { %472 = vperm.xlu1 %653, %v456_v15  }
 0x23a   :  { %477 = vperm.xlu1 %653, %v457_v18  }
 0x2a9   :  { %v461_v19 = vpop.permute.xlu0 %460 }
 0x2aa   :  { %v468_v22 = vmul.f32 %v461_v19, %v930_v21  ;;  %v486_v23 = vmul.f32 %v461_v19, %v938_v32 }
 0x2ad   :  { %v466_v20 = vpop.permute.xlu1 %465 }
 0x2ae   :  { %v469_v26 = vmul.f32 %v466_v20, %v934_v25  ;;  %v487_v27 = vmul.f32 %v466_v20, %v942_v36 }
 0x2b1   :  { %v473_v24 = vpop.permute.xlu1 %472 }
 0x2b2   :  { %v480_v12 = vadd.f32 %v473_v24, %v468_v22  ;;  %v488_v14 = vadd.f32 %v486_v23, %v473_v24 }
 0x2b4   :  { %v482_v28 = vmax.f32 %v480_v12, 0.0  ;;  %v490_v29 = vmax.f32 %v488_v14, 0.0 }
 0x2b5   :  { %v478_v30 = vpop.permute.xlu1 %477 }
 0x2b6   :  { %484 = vst.msk [vmem:[%s990_s4] sm:$0xff] %vm403_vm1, %v482_v28  ;;  %539 = vst.msk [vmem:[%s990_s4 + $0x10] sm:$0xff] %vm403_vm1, %v490_v29  ;;  %v481_v21 = vadd.f32 %v478_v30, %v469_v26  ;;  %v489_v31 = vadd.f32 %v487_v27, %v478_v30 }
 0x2b8   :  { %v483_v32 = vmax.f32 %v481_v21, 0.0  ;;  %v491_v33 = vmax.f32 %v489_v31, 0.0 }
 0x2ba   :  { %485 = vst.msk [vmem:[%s990_s4 + $0x8] sm:$0xff] %vm403_vm1, %v483_v32  ;;  %540 = vst.msk [vmem:[%s990_s4 + $0x18] sm:$0xff] %vm403_vm1, %v491_v33 }

// kernel: stage1_g_forward.10
= control target key start
LH: loop header
LB: loop body
LE: loop exit
PB: predicated region body
PF: predicated region fallthrough
CT: control target
= control target key end

     0   :  { %vm55_vm0 = vcmask 130048   ;;  %s613_s0 = inlined_call_operand.vmem [shape: f32[2,144,256], index: 0, kind: input, shape index: {}]   ;;  %s614_s1 = inlined_call_operand.vmem [shape: f32[8,144], index: 1, kind: input, shape index: {}]   ;;  %s615_s2 = inlined_call_operand.vmem [shape: f32[8,1], index: 2, kind: input, shape index: {}]   ;;  %s616_s3 = inlined_call_operand.vmem [shape: f32[8,1], index: 3, kind: input, shape index: {}]   ;;  %s617_s4 = inlined_call_operand.vmem [shape: f32[2,8,256], index: 4, kind: output, shape index: {}]  }
   0x1   :  { %v50_v0 = vld [vmem:[%s613_s0 + $0xf8] sm:$0xff]  ;;  %v49_v1 = vld [vmem:[%s613_s0 + $0xf0] sm:$0xff]  ;;  %v48_v2 = vld [vmem:[%s613_s0 + $0xe8] sm:$0xff] }
   0x2   :  { %59 = vmatprep.subr.mxu0 %v50_v0  ;;  %v332_v3 = vld [vmem:[%s613_s0 + $0x218] sm:$0xff]  ;;  %v47_v4 = vld [vmem:[%s613_s0 + $0xe0] sm:$0xff]  ;;  %v331_v5 = vld [vmem:[%s613_s0 + $0x210] sm:$0xff] }
   0x3   :  { %60 = vmatpush1.msra.mxu0 %v49_v1  ;;  %167 = vmatprep.subr.mxu1 %v332_v3  ;;  %v46_v6 = vld [vmem:[%s613_s0 + $0xd8] sm:$0xff]  ;;  %v330_v7 = vld [vmem:[%s613_s0 + $0x208] sm:$0xff]  ;;  %v45_v8 = vld [vmem:[%s613_s0 + $0xd0] sm:$0xff] }
   0x4   :  { %61 = vmatprep.subr.mxu0 %v48_v2  ;;  %168 = vmatpush1.msra.mxu1 %v331_v5  ;;  %v329_v9 = vld [vmem:[%s613_s0 + $0x200] sm:$0xff]  ;;  %v328_v10 = vld [vmem:[%s613_s0 + $0x1f8] sm:$0xff]  ;;  %v44_v11 = vld [vmem:[%s613_s0 + $0xc8] sm:$0xff] }
   0x5   :  { %62 = vmatpush1.msra.mxu0 %v47_v4  ;;  %169 = vmatprep.subr.mxu1 %v330_v7  ;;  %v327_v12 = vld [vmem:[%s613_s0 + $0x1f0] sm:$0xff]  ;;  %v43_v13 = vld [vmem:[%s613_s0 + $0xc0] sm:$0xff]  ;;  %v326_v14 = vld [vmem:[%s613_s0 + $0x1e8] sm:$0xff] }
   0x6   :  { %63 = vmatprep.subr.mxu0 %v46_v6  ;;  %170 = vmatpush1.msra.mxu1 %v329_v9  ;;  %v42_v15 = vld [vmem:[%s613_s0 + $0xb8] sm:$0xff]  ;;  %v325_v16 = vld [vmem:[%s613_s0 + $0x1e0] sm:$0xff]  ;;  %v41_v17 = vld [vmem:[%s613_s0 + $0xb0] sm:$0xff] }
   0x7   :  { %64 = vmatpush1.msra.mxu0 %v45_v8  ;;  %171 = vmatprep.subr.mxu1 %v328_v10  ;;  %v324_v18 = vld [vmem:[%s613_s0 + $0x1d8] sm:$0xff]  ;;  %v40_v19 = vld [vmem:[%s613_s0 + $0xa8] sm:$0xff]  ;;  %v323_v20 = vld [vmem:[%s613_s0 + $0x1d0] sm:$0xff] }
   0x8   :  { %65 = vmatprep.subr.mxu0 %v44_v11  ;;  %172 = vmatpush1.msra.mxu1 %v327_v12  ;;  %v39_v21 = vld [vmem:[%s613_s0 + $0xa0] sm:$0xff]  ;;  %v322_v22 = vld [vmem:[%s613_s0 + $0x1c8] sm:$0xff]  ;;  %v38_v23 = vld [vmem:[%s613_s0 + $0x98] sm:$0xff] }
   0x9   :  { %66 = vmatpush1.msra.mxu0 %v43_v13  ;;  %173 = vmatprep.subr.mxu1 %v326_v14  ;;  %v321_v24 = vld [vmem:[%s613_s0 + $0x1c0] sm:$0xff]  ;;  %v37_v25 = vld [vmem:[%s613_s0 + $0x90] sm:$0xff]  ;;  %v320_v26 = vld [vmem:[%s613_s0 + $0x1b8] sm:$0xff] }
   0xa   :  { %67 = vmatprep.subr.mxu0 %v42_v15  ;;  %174 = vmatpush1.msra.mxu1 %v325_v16  ;;  %v36_v27 = vld [vmem:[%s613_s0 + $0x88] sm:$0xff]  ;;  %v319_v28 = vld [vmem:[%s613_s0 + $0x1b0] sm:$0xff]  ;;  %v35_v29 = vld [vmem:[%s613_s0 + $0x80] sm:$0xff] }
   0xb   :  { %68 = vmatpush1.msra.mxu0 %v41_v17  ;;  %175 = vmatprep.subr.mxu1 %v324_v18  ;;  %v318_v30 = vld [vmem:[%s613_s0 + $0x1a8] sm:$0xff]  ;;  %v34_v31 = vld [vmem:[%s613_s0 + $0x78] sm:$0xff]  ;;  %v317_v32 = vld [vmem:[%s613_s0 + $0x1a0] sm:$0xff] }
   0xc   :  { %69 = vmatprep.subr.mxu0 %v40_v19  ;;  %176 = vmatpush1.msra.mxu1 %v323_v20  ;;  %v33_v33 = vld [vmem:[%s613_s0 + $0x70] sm:$0xff]  ;;  %v316_v34 = vld [vmem:[%s613_s0 + $0x198] sm:$0xff]  ;;  %v32_v35 = vld [vmem:[%s613_s0 + $0x68] sm:$0xff] }
   0xd   :  { %70 = vmatpush1.msra.mxu0 %v39_v21  ;;  %177 = vmatprep.subr.mxu1 %v322_v22  ;;  %v315_v36 = vld [vmem:[%s613_s0 + $0x190] sm:$0xff]  ;;  %v31_v37 = vld [vmem:[%s613_s0 + $0x60] sm:$0xff]  ;;  %v314_v38 = vld [vmem:[%s613_s0 + $0x188] sm:$0xff] }
   0xe   :  { %71 = vmatprep.subr.mxu0 %v38_v23  ;;  %178 = vmatpush1.msra.mxu1 %v321_v24  ;;  %v30_v39 = vld [vmem:[%s613_s0 + $0x58] sm:$0xff]  ;;  %v313_v40 = vld [vmem:[%s613_s0 + $0x180] sm:$0xff]  ;;  %v29_v41 = vld [vmem:[%s613_s0 + $0x50] sm:$0xff] }
   0xf   :  { %72 = vmatpush1.msra.mxu0 %v37_v25  ;;  %179 = vmatprep.subr.mxu1 %v320_v26  ;;  %v312_v42 = vld [vmem:[%s613_s0 + $0x178] sm:$0xff]  ;;  %v28_v43 = vld [vmem:[%s613_s0 + $0x48] sm:$0xff]  ;;  %v311_v44 = vld [vmem:[%s613_s0 + $0x170] sm:$0xff] }
  0x10   :  { %73 = vmatprep.subr.mxu0 %v36_v27  ;;  %180 = vmatpush1.msra.mxu1 %v319_v28  ;;  %v27_v45 = vld [vmem:[%s613_s0 + $0x40] sm:$0xff]  ;;  %v310_v46 = vld [vmem:[%s613_s0 + $0x168] sm:$0xff]  ;;  %v26_v47 = vld [vmem:[%s613_s0 + $0x38] sm:$0xff] }
  0x11   :  { %74 = vmatpush1.msra.mxu0 %v35_v29  ;;  %181 = vmatprep.subr.mxu1 %v318_v30  ;;  %v309_v48 = vld [vmem:[%s613_s0 + $0x160] sm:$0xff]  ;;  %v25_v49 = vld [vmem:[%s613_s0 + $0x30] sm:$0xff]  ;;  %v308_v50 = vld [vmem:[%s613_s0 + $0x158] sm:$0xff]  ;;  %v345_v30 = vmov 0  }
  0x12   :  { %75 = vmatprep.subr.mxu0 %v34_v31  ;;  %182 = vmatpush1.msra.mxu1 %v317_v32  ;;  %v24_v51 = vld [vmem:[%s613_s0 + $0x28] sm:$0xff]  ;;  %v307_v52 = vld [vmem:[%s613_s0 + $0x150] sm:$0xff]  ;;  %v23_v53 = vld [vmem:[%s613_s0 + $0x20] sm:$0xff] }
  0x13   :  { %76 = vmatpush1.msra.mxu0 %v33_v33  ;;  %183 = vmatprep.subr.mxu1 %v316_v34  ;;  %v306_v54 = vld [vmem:[%s613_s0 + $0x148] sm:$0xff]  ;;  %v22_v55 = vld [vmem:[%s613_s0 + $0x18] sm:$0xff]  ;;  %v305_v56 = vld [vmem:[%s613_s0 + $0x140] sm:$0xff] }
  0x14   :  { %77 = vmatprep.subr.mxu0 %v32_v35  ;;  %184 = vmatpush1.msra.mxu1 %v315_v36  ;;  %v21_v57 = vld [vmem:[%s613_s0 + $0x10] sm:$0xff]  ;;  %v304_v58 = vld [vmem:[%s613_s0 + $0x138] sm:$0xff]  ;;  %v20_v59 = vld [vmem:[%s613_s0 + $0x8] sm:$0xff] }
  0x15   :  { %78 = vmatpush1.msra.mxu0 %v31_v37  ;;  %185 = vmatprep.subr.mxu1 %v314_v38  ;;  %v303_v60 = vld [vmem:[%s613_s0 + $0x130] sm:$0xff]  ;;  %v19_v61 = vld [vmem:[%s613_s0] sm:$0xff]  ;;  %v302_v62 = vld [vmem:[%s613_s0 + $0x128] sm:$0xff] }
  0x16   :  { %79 = vmatprep.subr.mxu0 %v30_v39  ;;  %186 = vmatpush1.msra.mxu1 %v313_v40  ;;  %v54_v63 = vld [vmem:[%s613_s0 + $0x118] sm:$0xff]  ;;  %v301_v0 = vld [vmem:[%s613_s0 + $0x120] sm:$0xff]  ;;  %v53_v1 = vld [vmem:[%s613_s0 + $0x110] sm:$0xff] }
  0x17   :  { %80 = vmatpush1.msra.mxu0 %v29_v41  ;;  %187 = vmatprep.subr.mxu1 %v312_v42  ;;  %v336_v2 = vld [vmem:[%s613_s0 + $0x238] sm:$0xff]  ;;  %v52_v3 = vld [vmem:[%s613_s0 + $0x108] sm:$0xff]  ;;  %v51_v5 = vld [vmem:[%s613_s0 + $0x100] sm:$0xff] }
  0x18   :  { %81 = vmatprep.subr.mxu0 %v28_v43  ;;  %188 = vmatpush1.msra.mxu1 %v311_v44  ;;  %v18_v4 = vld [vmem:[%s614_s1 + $0x8] sm:$0xff]  ;;  %v335_v6 = vld [vmem:[%s613_s0 + $0x230] sm:$0xff]  ;;  %v17_v7 = vld [vmem:[%s614_s1] sm:$0xff] }
  0x19   :  { %82 = vmatpush1.msra.mxu0 %v27_v45  ;;  %189 = vmatprep.subr.mxu1 %v310_v46  ;;  %v334_v8 = vld [vmem:[%s613_s0 + $0x228] sm:$0xff]  ;;  %v333_v9 = vld [vmem:[%s613_s0 + $0x220] sm:$0xff] }
  0x1a   :  { %83 = vmatprep.subr.mxu0 %v26_v47  ;;  %190 = vmatpush1.msra.mxu1 %v309_v48  ;;  %v262_v36 = vld [vmem:[%s615_s2] sm:$0xff] }
  0x1b   :  { %84 = vmatpush1.msra.mxu0 %v25_v49  ;;  %191 = vmatprep.subr.mxu1 %v308_v50  ;;  %v266_v39 = vld [vmem:[%s616_s3] sm:$0xff] }
  0x1c   :  { %85 = vmatprep.subr.mxu0 %v24_v51  ;;  %192 = vmatpush1.msra.mxu1 %v307_v52 }
  0x1d   :  { %86 = vmatpush1.msra.mxu0 %v23_v53  ;;  %193 = vmatprep.subr.mxu1 %v306_v54 }
  0x1e   :  { %87 = vmatprep.subr.mxu0 %v22_v55  ;;  %194 = vmatpush1.msra.mxu1 %v305_v56 }
  0x1f   :  { %88 = vmatpush1.msra.mxu0 %v21_v57  ;;  %195 = vmatprep.subr.mxu1 %v304_v58 }
  0x20   :  { %89 = vmatprep.subr.mxu0 %v20_v59  ;;  %196 = vmatpush1.msra.mxu1 %v303_v60 }
  0x21   :  { %90 = vmatpush1.msra.mxu0 %v19_v61  ;;  %197 = vmatprep.subr.mxu1 %v302_v62 }
  0x22   :  { %119 = vmatprep.subr.mxu0 %v54_v63  ;;  %198 = vmatpush1.msra.mxu1 %v301_v0 }
  0x23   :  { %120 = vmatpush2.msra.mxu0 %v53_v1  ;;  %227 = vmatprep.subr.mxu1 %v336_v2 }
  0x24   :  { %121 = vmatprep.subr.mxu0 %v52_v3  ;;  %300 = vmatprep.mubr.msk.f32.mxu0 %vm55_vm0, %v18_v4 }
  0x25   :  { %122 = vmatpush2.msra.mxu0 %v51_v5  ;;  %228 = vmatpush2.msra.mxu1 %v335_v6 }
  0x26   :  { %124 = vmatmul.mubr.f32.vlgmr.msra.gmra.mxu0 %v17_v7  ;;  %229 = vmatprep.subr.mxu1 %v334_v8 }
  0x27   :  { %230 = vmatpush2.msra.mxu1 %v333_v9  ;;  %337 = vmatprep.mubr.msk.f32.mxu1 %vm55_vm0, %v18_v4 }
  0x28   :  { %232 = vmatmul.mubr.f32.vlgmr.msra.gmra.mxu1 %v17_v7  ;;  %341 = vset.pattern.permute.xlu0 %v345_v30 }
  0x29   :  { %342 = vset.pattern.permute.xlu1 %v345_v30 }
  0xe6   :  { %v125_v10 = vpop.f32.mrf.mxu0 }
  0xe8   :  { %v127_v11 = vpop.f32.mrf.mxu0  ;;  %v233_v12 = vpop.f32.mrf.mxu1 }
  0xe9   :  { %v238_v13 = vadd.f32 %v127_v11, %v125_v10 }
  0xea   :  { %v235_v14 = vpop.f32.mrf.mxu1 }
  0xeb   :  { %239 = vadd.xlane.f32.xlu0 %v238_v13  ;;  %v241_v15 = vadd.f32 %v235_v14, %v233_v12 }
  0xef   :  { %242 = vadd.xlane.f32.xlu0 %v241_v15 }
 0x174   :  { %v240_v16 = vpop.xlane.xlu0 %239 }
 0x178   :  { %v243_v17 = vpop.xlane.xlu0 %242 }
 0x179   :  { %v244_v18 = vadd.f32 %v243_v17, %v240_v16 }
 0x17b   :  { %v245_v19 = vmul.f32 0.001953125, %v244_v18 }
 0x17d   :  { %v246_v20 = vsub.f32 %v125_v10, %v245_v19  ;;  %v247_v21 = vsub.f32 %v127_v11, %v245_v19  ;;  %v253_v22 = vsub.f32 %v233_v12, %v245_v19  ;;  %v254_v23 = vsub.f32 %v235_v14, %v245_v19 }
 0x17f   :  { %v248_v24 = vmul.f32 %v246_v20, %v246_v20  ;;  %v249_v25 = vmul.f32 %v247_v21, %v247_v21  ;;  %v255_v27 = vmul.f32 %v253_v22, %v253_v22  ;;  %v256_v28 = vmul.f32 %v254_v23, %v254_v23 }
 0x181   :  { %v250_v26 = vadd.f32 %v249_v25, %v248_v24  ;;  %v257_v29 = vadd.f32 %v256_v28, %v255_v27 }
 0x183   :  { %251 = vadd.xlane.f32.xlu1 %v250_v26 }
 0x187   :  { %258 = vadd.xlane.f32.xlu1 %v257_v29 }
 0x20c   :  { %v252_v31 = vpop.xlane.xlu1 %251 }
 0x210   :  { %v259_v32 = vpop.xlane.xlu1 %258 }
 0x211   :  { %v260_v33 = vadd.f32 %v259_v32, %v252_v31 }
 0x213   :  { %v261_v34 = vmul.f32 0.001953125, %v260_v33 }
 0x215   :  { %v263_v35 = vadd.f32 1e-05, %v261_v34 }
 0x217   :  { %343 = vrsqrt.f32 %v263_v35 }
 0x224   :  { %v344_v37 = vpop.eup %343 }
 0x225   :  { %v265_v38 = vmul.f32 %v344_v37, %v262_v36 }
 0x227   :  { %271 = vperm.xlu0 %341, %v265_v38   ;;  %v267_v40 = vmul.f32 %v265_v38, %v245_v19 }
 0x229   :  { %v268_v41 = vsub.f32 %v266_v39, %v267_v40 }
 0x22b   :  { %278 = vperm.xlu1 %342, %v268_v41  }
 0x2a2   :  { %v272_v42 = vpop.permute.xlu0 %271 }
 0x2a3   :  { %v274_v43 = vmul.f32 %v272_v42, %v125_v10  ;;  %v275_v44 = vmul.f32 %v272_v42, %v127_v11  ;;  %v287_v45 = vmul.f32 %v272_v42, %v233_v12  ;;  %v288_v46 = vmul.f32 %v272_v42, %v235_v14 }
 0x2a6   :  { %v279_v47 = vpop.permute.xlu1 %278 }
 0x2a7   :  { %v281_v48 = vadd.f32 %v279_v47, %v274_v43  ;;  %v282_v49 = vadd.f32 %v279_v47, %v275_v44  ;;  %v289_v50 = vadd.f32 %v287_v45, %v279_v47  ;;  %v290_v51 = vadd.f32 %v288_v46, %v279_v47 }
 0x2a9   :  { %v283_v52 = vmax.f32 %v281_v48, 0.0  ;;  %v284_v53 = vmax.f32 %v282_v49, 0.0  ;;  %v291_v54 = vmax.f32 %v289_v50, 0.0  ;;  %v292_v55 = vmax.f32 %v290_v51, 0.0 }
 0x2ab   :  { %285 = vst [vmem:[%s617_s4] sm:$0xff] %v283_v52  ;;  %286 = vst [vmem:[%s617_s4 + $0x8] sm:$0xff] %v284_v53 }
 0x2ac   :  { %338 = vst [vmem:[%s617_s4 + $0x10] sm:$0xff] %v291_v54  ;;  %339 = vst [vmem:[%s617_s4 + $0x18] sm:$0xff] %v292_v55 }

// kernel: stage1_g_forward.11
= control target key start
LH: loop header
LB: loop body
LE: loop exit
PB: predicated region body
PF: predicated region fallthrough
CT: control target
= control target key end

     0   :  { %v1040_v3 = vmov 0.0   ;;  %vm90_vm0 = vcmask 588800   ;;  %vm735_vm1 = vcmask 1043456   ;;  %s1689_s0 = inlined_call_operand.vmem [shape: f32[2,72,1024], index: 0, kind: input, shape index: {}]   ;;  %s1690_s1 = inlined_call_operand.vmem [shape: f32[4,72], index: 1, kind: input, shape index: {}]   ;;  %s1691_s2 = inlined_call_operand.vmem [shape: f32[4,1], index: 2, kind: input, shape index: {}]   ;;  %s1692_s3 = inlined_call_operand.vmem [shape: f32[4,1], index: 3, kind: input, shape index: {}]   ;;  %s1693_s4 = inlined_call_operand.vmem [shape: f32[2,4,1024], index: 4, kind: output, shape index: {}]  }
   0x1   :  { %v83_v0 = vld [vmem:[%s1689_s0 + $0x208] sm:$0xff]  ;;  %v82_v1 = vld [vmem:[%s1689_s0 + $0x200] sm:$0xff]  ;;  %158 = vmatprep.mubr.f32.mxu0 %v1040_v3  ;;  %229 = vmatprep.mubr.f32.mxu1 %v1040_v3  ;;  %v85_v4 = vld [vmem:[%s1689_s0 + $0x218] sm:$0xff] }
   0x2   :  { %v75_v2 = vld [vmem:[%s1689_s0 + $0x1c8] sm:$0xff]  ;;  %108 = vmatprep.subr.mxu0 %v83_v0  ;;  %v74_v5 = vld [vmem:[%s1689_s0 + $0x1c0] sm:$0xff]  ;;  %v84_v6 = vld [vmem:[%s1689_s0 + $0x210] sm:$0xff]  ;;  %179 = vmatprep.subr.mxu1 %v85_v4 }
   0x3   :  { %109 = vmatpush1.msra.mxu0 %v82_v1  ;;  %v67_v7 = vld [vmem:[%s1689_s0 + $0x188] sm:$0xff]  ;;  %v77_v8 = vld [vmem:[%s1689_s0 + $0x1d8] sm:$0xff]  ;;  %180 = vmatpush1.msra.mxu1 %v84_v6  ;;  %v66_v9 = vld [vmem:[%s1689_s0 + $0x180] sm:$0xff] }
   0x4   :  { %110 = vmatprep.subr.mxu0 %v75_v2  ;;  %v76_v10 = vld [vmem:[%s1689_s0 + $0x1d0] sm:$0xff]  ;;  %v69_v11 = vld [vmem:[%s1689_s0 + $0x198] sm:$0xff]  ;;  %181 = vmatprep.subr.mxu1 %v77_v8  ;;  %v59_v12 = vld [vmem:[%s1689_s0 + $0x148] sm:$0xff] }
   0x5   :  { %111 = vmatpush1.msra.mxu0 %v74_v5  ;;  %v68_v13 = vld [vmem:[%s1689_s0 + $0x190] sm:$0xff]  ;;  %182 = vmatpush1.msra.mxu1 %v76_v10  ;;  %v58_v14 = vld [vmem:[%s1689_s0 + $0x140] sm:$0xff]  ;;  %v61_v15 = vld [vmem:[%s1689_s0 + $0x158] sm:$0xff] }
   0x6   :  { %112 = vmatprep.subr.mxu0 %v67_v7  ;;  %183 = vmatprep.subr.mxu1 %v69_v11  ;;  %v51_v16 = vld [vmem:[%s1689_s0 + $0x108] sm:$0xff]  ;;  %v60_v17 = vld [vmem:[%s1689_s0 + $0x150] sm:$0xff]  ;;  %v50_v18 = vld [vmem:[%s1689_s0 + $0x100] sm:$0xff] }
   0x7   :  { %113 = vmatpush1.msra.mxu0 %v66_v9  ;;  %184 = vmatpush1.msra.mxu1 %v68_v13  ;;  %v53_v19 = vld [vmem:[%s1689_s0 + $0x118] sm:$0xff]  ;;  %v43_v20 = vld [vmem:[%s1689_s0 + $0xc8] sm:$0xff]  ;;  %v52_v21 = vld [vmem:[%s1689_s0 + $0x110] sm:$0xff] }
   0x8   :  { %114 = vmatprep.subr.mxu0 %v59_v12  ;;  %185 = vmatprep.subr.mxu1 %v61_v15  ;;  %v42_v22 = vld [vmem:[%s1689_s0 + $0xc0] sm:$0xff]  ;;  %v45_v23 = vld [vmem:[%s1689_s0 + $0xd8] sm:$0xff]  ;;  %v35_v24 = vld [vmem:[%s1689_s0 + $0x88] sm:$0xff] }
   0x9   :  { %115 = vmatpush1.msra.mxu0 %v58_v14  ;;  %186 = vmatpush1.msra.mxu1 %v60_v17  ;;  %v44_v25 = vld [vmem:[%s1689_s0 + $0xd0] sm:$0xff]  ;;  %v34_v26 = vld [vmem:[%s1689_s0 + $0x80] sm:$0xff]  ;;  %v37_v27 = vld [vmem:[%s1689_s0 + $0x98] sm:$0xff] }
   0xa   :  { %116 = vmatprep.subr.mxu0 %v51_v16  ;;  %187 = vmatprep.subr.mxu1 %v53_v19  ;;  %v27_v28 = vld [vmem:[%s1689_s0 + $0x48] sm:$0xff]  ;;  %v36_v29 = vld [vmem:[%s1689_s0 + $0x90] sm:$0xff]  ;;  %v26_v30 = vld [vmem:[%s1689_s0 + $0x40] sm:$0xff] }
   0xb   :  { %117 = vmatpush1.msra.mxu0 %v50_v18  ;;  %188 = vmatpush1.msra.mxu1 %v52_v21  ;;  %v29_v31 = vld [vmem:[%s1689_s0 + $0x58] sm:$0xff]  ;;  %v19_v32 = vld [vmem:[%s1689_s0 + $0x8] sm:$0xff]  ;;  %v28_v33 = vld [vmem:[%s1689_s0 + $0x50] sm:$0xff] }
   0xc   :  { %118 = vmatprep.subr.mxu0 %v43_v20  ;;  %189 = vmatprep.subr.mxu1 %v45_v23  ;;  %v18_v34 = vld [vmem:[%s1689_s0] sm:$0xff]  ;;  %v21_v35 = vld [vmem:[%s1689_s0 + $0x18] sm:$0xff]  ;;  %v87_v37 = vld [vmem:[%s1689_s0 + $0x228] sm:$0xff] }
   0xd   :  { %119 = vmatpush1.msra.mxu0 %v42_v22  ;;  %190 = vmatpush1.msra.mxu1 %v44_v25  ;;  %v1177_v36 = vld [vmem:[%s1690_s1] sm:$0xf]  ;;  %v20_v38 = vld [vmem:[%s1689_s0 + $0x10] sm:$0xff]  ;;  %v79_v40 = vld [vmem:[%s1689_s0 + $0x1e8] sm:$0xff] }
   0xe   :  { %120 = vmatprep.subr.mxu0 %v35_v24  ;;  %191 = vmatprep.subr.mxu1 %v37_v27  ;;  %v86_v39 = vld [vmem:[%s1689_s0 + $0x220] sm:$0xff]  ;;  %v89_v41 = vld [vmem:[%s1689_s0 + $0x238] sm:$0xff]  ;;  %v88_v43 = vld [vmem:[%s1689_s0 + $0x230] sm:$0xff] }
   0xf   :  { %121 = vmatpush1.msra.mxu0 %v34_v26  ;;  %192 = vmatpush1.msra.mxu1 %v36_v29  ;;  %v78_v42 = vld [vmem:[%s1689_s0 + $0x1e0] sm:$0xff]  ;;  %v71_v44 = vld [vmem:[%s1689_s0 + $0x1a8] sm:$0xff]  ;;  %v81_v45 = vld [vmem:[%s1689_s0 + $0x1f8] sm:$0xff] }
  0x10   :  { %122 = vmatprep.subr.mxu0 %v27_v28  ;;  %193 = vmatprep.subr.mxu1 %v29_v31  ;;  %v70_v46 = vld [vmem:[%s1689_s0 + $0x1a0] sm:$0xff]  ;;  %v80_v47 = vld [vmem:[%s1689_s0 + $0x1f0] sm:$0xff]  ;;  %v63_v48 = vld [vmem:[%s1689_s0 + $0x168] sm:$0xff] }
  0x11   :  { %123 = vmatpush1.msra.mxu0 %v26_v30  ;;  %194 = vmatpush1.msra.mxu1 %v28_v33  ;;  %v73_v49 = vld [vmem:[%s1689_s0 + $0x1b8] sm:$0xff]  ;;  %v62_v50 = vld [vmem:[%s1689_s0 + $0x160] sm:$0xff]  ;;  %v72_v51 = vld [vmem:[%s1689_s0 + $0x1b0] sm:$0xff] }
  0x12   :  { %124 = vmatprep.subr.mxu0 %v19_v32  ;;  %195 = vmatprep.subr.mxu1 %v21_v35  ;;  %v55_v52 = vld [vmem:[%s1689_s0 + $0x128] sm:$0xff]  ;;  %v65_v53 = vld [vmem:[%s1689_s0 + $0x178] sm:$0xff]  ;;  %v54_v54 = vld [vmem:[%s1689_s0 + $0x120] sm:$0xff] }
  0x13   :  { %125 = vmatpush1.msra.mxu0 %v18_v34  ;;  %196 = vmatpush1.msra.mxu1 %v20_v38  ;;  %v64_v55 = vld [vmem:[%s1689_s0 + $0x170] sm:$0xff]  ;;  %v47_v56 = vld [vmem:[%s1689_s0 + $0xe8] sm:$0xff]  ;;  %v57_v57 = vld [vmem:[%s1689_s0 + $0x138] sm:$0xff] }
  0x14   :  { %950 = vmatmul.mubr.msk.f32.vlgmr.msra.gmra.mxu0 %vm90_vm0, %v1177_v36  ;;  %250 = vmatprep.subr.mxu0 %v87_v37  ;;  %v46_v58 = vld [vmem:[%s1689_s0 + $0xe0] sm:$0xff]  ;;  %v56_v59 = vld [vmem:[%s1689_s0 + $0x130] sm:$0xff]  ;;  %v39_v60 = vld [vmem:[%s1689_s0 + $0xa8] sm:$0xff] }
  0x15   :  { %251 = vmatpush1.msra.mxu0 %v86_v39  ;;  %321 = vmatprep.subr.mxu1 %v89_v41  ;;  %v49_v61 = vld [vmem:[%s1689_s0 + $0xf8] sm:$0xff]  ;;  %v38_v62 = vld [vmem:[%s1689_s0 + $0xa0] sm:$0xff]  ;;  %v48_v63 = vld [vmem:[%s1689_s0 + $0xf0] sm:$0xff] }
  0x16   :  { %252 = vmatprep.subr.mxu0 %v79_v40  ;;  %951 = vmatmul.mubr.msk.f32.vlgmr.msra.gmra.mxu1 %vm90_vm0, %v1177_v36  ;;  %v31_v0 = vld [vmem:[%s1689_s0 + $0x68] sm:$0xff]  ;;  %v41_v1 = vld [vmem:[%s1689_s0 + $0xb8] sm:$0xff]  ;;  %v30_v2 = vld [vmem:[%s1689_s0 + $0x60] sm:$0xff] }
  0x17   :  { %253 = vmatpush1.msra.mxu0 %v78_v42  ;;  %322 = vmatpush1.msra.mxu1 %v88_v43  ;;  %v40_v4 = vld [vmem:[%s1689_s0 + $0xb0] sm:$0xff]  ;;  %v23_v5 = vld [vmem:[%s1689_s0 + $0x28] sm:$0xff]  ;;  %v33_v6 = vld [vmem:[%s1689_s0 + $0x78] sm:$0xff] }
  0x18   :  { %254 = vmatprep.subr.mxu0 %v71_v44  ;;  %323 = vmatprep.subr.mxu1 %v81_v45  ;;  %v22_v7 = vld [vmem:[%s1689_s0 + $0x20] sm:$0xff]  ;;  %v32_v8 = vld [vmem:[%s1689_s0 + $0x70] sm:$0xff]  ;;  %v25_v9 = vld [vmem:[%s1689_s0 + $0x38] sm:$0xff] }
  0x19   :  { %255 = vmatpush1.msra.mxu0 %v70_v46  ;;  %324 = vmatpush1.msra.mxu1 %v80_v47  ;;  %v1019_v10 = vld [vmem:[%s1689_s0 + $0x448] sm:$0xff]  ;;  %v24_v11 = vld [vmem:[%s1689_s0 + $0x30] sm:$0xff]  ;;  %v1018_v12 = vld [vmem:[%s1689_s0 + $0x440] sm:$0xff] }
  0x1a   :  { %256 = vmatprep.subr.mxu0 %v63_v48  ;;  %325 = vmatprep.subr.mxu1 %v73_v49  ;;  %v1011_v13 = vld [vmem:[%s1689_s0 + $0x408] sm:$0xff]  ;;  %v1021_v14 = vld [vmem:[%s1689_s0 + $0x458] sm:$0xff]  ;;  %v1010_v15 = vld [vmem:[%s1689_s0 + $0x400] sm:$0xff] }
  0x1b   :  { %257 = vmatpush1.msra.mxu0 %v62_v50  ;;  %326 = vmatpush1.msra.mxu1 %v72_v51  ;;  %v1020_v16 = vld [vmem:[%s1689_s0 + $0x450] sm:$0xff]  ;;  %v1003_v17 = vld [vmem:[%s1689_s0 + $0x3c8] sm:$0xff]  ;;  %v1013_v18 = vld [vmem:[%s1689_s0 + $0x418] sm:$0xff] }
  0x1c   :  { %258 = vmatprep.subr.mxu0 %v55_v52  ;;  %327 = vmatprep.subr.mxu1 %v65_v53  ;;  %v1002_v19 = vld [vmem:[%s1689_s0 + $0x3c0] sm:$0xff]  ;;  %v1012_v20 = vld [vmem:[%s1689_s0 + $0x410] sm:$0xff]  ;;  %v995_v21 = vld [vmem:[%s1689_s0 + $0x388] sm:$0xff] }
  0x1d   :  { %259 = vmatpush1.msra.mxu0 %v54_v54  ;;  %328 = vmatpush1.msra.mxu1 %v64_v55  ;;  %v1005_v22 = vld [vmem:[%s1689_s0 + $0x3d8] sm:$0xff]  ;;  %v994_v23 = vld [vmem:[%s1689_s0 + $0x380] sm:$0xff]  ;;  %v1004_v24 = vld [vmem:[%s1689_s0 + $0x3d0] sm:$0xff] }
  0x1e   :  { %260 = vmatprep.subr.mxu0 %v47_v56  ;;  %329 = vmatprep.subr.mxu1 %v57_v57  ;;  %v987_v25 = vld [vmem:[%s1689_s0 + $0x348] sm:$0xff]  ;;  %v997_v26 = vld [vmem:[%s1689_s0 + $0x398] sm:$0xff]  ;;  %v986_v27 = vld [vmem:[%s1689_s0 + $0x340] sm:$0xff] }
  0x1f   :  { %261 = vmatpush1.msra.mxu0 %v46_v58  ;;  %330 = vmatpush1.msra.mxu1 %v56_v59  ;;  %v996_v28 = vld [vmem:[%s1689_s0 + $0x390] sm:$0xff]  ;;  %v979_v29 = vld [vmem:[%s1689_s0 + $0x308] sm:$0xff]  ;;  %v989_v30 = vld [vmem:[%s1689_s0 + $0x358] sm:$0xff] }
  0x20   :  { %262 = vmatprep.subr.mxu0 %v39_v60  ;;  %331 = vmatprep.subr.mxu1 %v49_v61  ;;  %v978_v31 = vld [vmem:[%s1689_s0 + $0x300] sm:$0xff]  ;;  %v988_v32 = vld [vmem:[%s1689_s0 + $0x350] sm:$0xff]  ;;  %v971_v33 = vld [vmem:[%s1689_s0 + $0x2c8] sm:$0xff] }
  0x21   :  { %263 = vmatpush1.msra.mxu0 %v38_v62  ;;  %332 = vmatpush1.msra.mxu1 %v48_v63  ;;  %v981_v34 = vld [vmem:[%s1689_s0 + $0x318] sm:$0xff]  ;;  %v970_v35 = vld [vmem:[%s1689_s0 + $0x2c0] sm:$0xff]  ;;  %v980_v37 = vld [vmem:[%s1689_s0 + $0x310] sm:$0xff] }
  0x22   :  { %264 = vmatprep.subr.mxu0 %v31_v0  ;;  %333 = vmatprep.subr.mxu1 %v41_v1  ;;  %v963_v38 = vld [vmem:[%s1689_s0 + $0x288] sm:$0xff]  ;;  %v973_v39 = vld [vmem:[%s1689_s0 + $0x2d8] sm:$0xff]  ;;  %v962_v40 = vld [vmem:[%s1689_s0 + $0x280] sm:$0xff] }
  0x23   :  { %265 = vmatpush1.msra.mxu0 %v30_v2  ;;  %334 = vmatpush1.msra.mxu1 %v40_v4  ;;  %v972_v41 = vld [vmem:[%s1689_s0 + $0x2d0] sm:$0xff]  ;;  %v955_v42 = vld [vmem:[%s1689_s0 + $0x248] sm:$0xff]  ;;  %v965_v43 = vld [vmem:[%s1689_s0 + $0x298] sm:$0xff] }
  0x24   :  { %266 = vmatprep.subr.mxu0 %v23_v5  ;;  %335 = vmatprep.subr.mxu1 %v33_v6  ;;  %v954_v44 = vld [vmem:[%s1689_s0 + $0x240] sm:$0xff]  ;;  %v964_v45 = vld [vmem:[%s1689_s0 + $0x290] sm:$0xff]  ;;  %v957_v46 = vld [vmem:[%s1689_s0 + $0x258] sm:$0xff] }
  0x25   :  { %267 = vmatpush1.msra.mxu0 %v22_v7  ;;  %300 = vmatprep.mubr.f32.mxu0 %v1040_v3  ;;  %v1023_v47 = vld [vmem:[%s1689_s0 + $0x468] sm:$0xff]  ;;  %v956_v48 = vld [vmem:[%s1689_s0 + $0x250] sm:$0xff]  ;;  %v1022_v49 = vld [vmem:[%s1689_s0 + $0x460] sm:$0xff] }
  0x26   :  { %336 = vmatpush1.msra.mxu1 %v32_v8  ;;  %952 = vmatmul.mubr.msk.f32.vlgmr.msra.gmra.mxu0 %vm90_vm0, %v1177_v36  ;;  %v1015_v50 = vld [vmem:[%s1689_s0 + $0x428] sm:$0xff]  ;;  %v1025_v51 = vld [vmem:[%s1689_s0 + $0x478] sm:$0xff]  ;;  %v1014_v52 = vld [vmem:[%s1689_s0 + $0x420] sm:$0xff] }
  0x27   :  { %337 = vmatprep.subr.mxu1 %v25_v9  ;;  %465 = vmatprep.subr.mxu0 %v1019_v10  ;;  %v1024_v53 = vld [vmem:[%s1689_s0 + $0x470] sm:$0xff]  ;;  %v1007_v54 = vld [vmem:[%s1689_s0 + $0x3e8] sm:$0xff]  ;;  %v1017_v55 = vld [vmem:[%s1689_s0 + $0x438] sm:$0xff] }
  0x28   :  { %338 = vmatpush1.msra.mxu1 %v24_v11  ;;  %466 = vmatpush1.msra.mxu0 %v1018_v12  ;;  %v1006_v56 = vld [vmem:[%s1689_s0 + $0x3e0] sm:$0xff]  ;;  %v1016_v57 = vld [vmem:[%s1689_s0 + $0x430] sm:$0xff]  ;;  %v999_v58 = vld [vmem:[%s1689_s0 + $0x3a8] sm:$0xff] }
  0x29   :  { %371 = vmatprep.mubr.f32.mxu1 %v1040_v3  ;;  %467 = vmatprep.subr.mxu0 %v1011_v13  ;;  %v1009_v59 = vld [vmem:[%s1689_s0 + $0x3f8] sm:$0xff]  ;;  %v998_v60 = vld [vmem:[%s1689_s0 + $0x3a0] sm:$0xff]  ;;  %v1008_v61 = vld [vmem:[%s1689_s0 + $0x3f0] sm:$0xff] }
  0x2a   :  { %536 = vmatprep.subr.mxu1 %v1021_v14  ;;  %953 = vmatmul.mubr.msk.f32.vlgmr.msra.gmra.mxu1 %vm90_vm0, %v1177_v36  ;;  %v991_v62 = vld [vmem:[%s1689_s0 + $0x368] sm:$0xff]  ;;  %v1001_v63 = vld [vmem:[%s1689_s0 + $0x3b8] sm:$0xff]  ;;  %v990_v0 = vld [vmem:[%s1689_s0 + $0x360] sm:$0xff] }
  0x2b   :  { %468 = vmatpush1.msra.mxu0 %v1010_v15  ;;  %537 = vmatpush1.msra.mxu1 %v1020_v16  ;;  %v1000_v1 = vld [vmem:[%s1689_s0 + $0x3b0] sm:$0xff]  ;;  %v983_v2 = vld [vmem:[%s1689_s0 + $0x328] sm:$0xff]  ;;  %v993_v4 = vld [vmem:[%s1689_s0 + $0x378] sm:$0xff] }
  0x2c   :  { %469 = vmatprep.subr.mxu0 %v1003_v17  ;;  %538 = vmatprep.subr.mxu1 %v1013_v18  ;;  %v982_v5 = vld [vmem:[%s1689_s0 + $0x320] sm:$0xff]  ;;  %v992_v6 = vld [vmem:[%s1689_s0 + $0x370] sm:$0xff]  ;;  %v975_v7 = vld [vmem:[%s1689_s0 + $0x2e8] sm:$0xff] }
  0x2d   :  { %470 = vmatpush1.msra.mxu0 %v1002_v19  ;;  %539 = vmatpush1.msra.mxu1 %v1012_v20  ;;  %v985_v8 = vld [vmem:[%s1689_s0 + $0x338] sm:$0xff]  ;;  %v974_v9 = vld [vmem:[%s1689_s0 + $0x2e0] sm:$0xff]  ;;  %v984_v10 = vld [vmem:[%s1689_s0 + $0x330] sm:$0xff] }
  0x2e   :  { %471 = vmatprep.subr.mxu0 %v995_v21  ;;  %540 = vmatprep.subr.mxu1 %v1005_v22  ;;  %v967_v11 = vld [vmem:[%s1689_s0 + $0x2a8] sm:$0xff]  ;;  %v977_v12 = vld [vmem:[%s1689_s0 + $0x2f8] sm:$0xff]  ;;  %v966_v13 = vld [vmem:[%s1689_s0 + $0x2a0] sm:$0xff] }
  0x2f   :  { %472 = vmatpush1.msra.mxu0 %v994_v23  ;;  %541 = vmatpush1.msra.mxu1 %v1004_v24  ;;  %v976_v14 = vld [vmem:[%s1689_s0 + $0x2f0] sm:$0xff]  ;;  %v959_v15 = vld [vmem:[%s1689_s0 + $0x268] sm:$0xff]  ;;  %v969_v16 = vld [vmem:[%s1689_s0 + $0x2b8] sm:$0xff] }
  0x30   :  { %473 = vmatprep.subr.mxu0 %v987_v25  ;;  %542 = vmatprep.subr.mxu1 %v997_v26  ;;  %v958_v17 = vld [vmem:[%s1689_s0 + $0x260] sm:$0xff]  ;;  %v968_v18 = vld [vmem:[%s1689_s0 + $0x2b0] sm:$0xff]  ;;  %v961_v19 = vld [vmem:[%s1689_s0 + $0x278] sm:$0xff] }
  0x31   :  { %474 = vmatpush1.msra.mxu0 %v986_v27  ;;  %543 = vmatpush1.msra.mxu1 %v996_v28  ;;  %v960_v20 = vld [vmem:[%s1689_s0 + $0x270] sm:$0xff] }
  0x32   :  { %475 = vmatprep.subr.mxu0 %v979_v29  ;;  %544 = vmatprep.subr.mxu1 %v989_v30 }
  0x33   :  { %476 = vmatpush1.msra.mxu0 %v978_v31  ;;  %545 = vmatpush1.msra.mxu1 %v988_v32 }
  0x34   :  { %477 = vmatprep.subr.mxu0 %v971_v33  ;;  %546 = vmatprep.subr.mxu1 %v981_v34 }
  0x35   :  { %478 = vmatpush1.msra.mxu0 %v970_v35  ;;  %547 = vmatpush1.msra.mxu1 %v980_v37 }
  0x36   :  { %479 = vmatprep.subr.mxu0 %v963_v38  ;;  %548 = vmatprep.subr.mxu1 %v973_v39 }
  0x37   :  { %480 = vmatpush1.msra.mxu0 %v962_v40  ;;  %549 = vmatpush1.msra.mxu1 %v972_v41 }
  0x38   :  { %481 = vmatprep.subr.mxu0 %v955_v42  ;;  %550 = vmatprep.subr.mxu1 %v965_v43 }
  0x39   :  { %482 = vmatpush1.msra.mxu0 %v954_v44  ;;  %515 = vmatprep.mubr.f32.mxu0 %v1040_v3 }
  0x3a   :  { %551 = vmatpush1.msra.mxu1 %v964_v45  ;;  %1026 = vmatmul.mubr.msk.f32.vlgmr.msra.gmra.mxu0 %vm90_vm0, %v1177_v36 }
  0x3b   :  { %552 = vmatprep.subr.mxu1 %v957_v46  ;;  %607 = vmatprep.subr.mxu0 %v1023_v47 }
  0x3c   :  { %553 = vmatpush1.msra.mxu1 %v956_v48  ;;  %608 = vmatpush1.msra.mxu0 %v1022_v49 }
  0x3d   :  { %586 = vmatprep.mubr.f32.mxu1 %v1040_v3  ;;  %609 = vmatprep.subr.mxu0 %v1015_v50 }
  0x3e   :  { %678 = vmatprep.subr.mxu1 %v1025_v51  ;;  %1027 = vmatmul.mubr.msk.f32.vlgmr.msra.gmra.mxu1 %vm90_vm0, %v1177_v36 }
  0x3f   :  { %610 = vmatpush1.msra.mxu0 %v1014_v52  ;;  %679 = vmatpush1.msra.mxu1 %v1024_v53 }
  0x40   :  { %611 = vmatprep.subr.mxu0 %v1007_v54  ;;  %680 = vmatprep.subr.mxu1 %v1017_v55 }
  0x41   :  { %612 = vmatpush1.msra.mxu0 %v1006_v56  ;;  %681 = vmatpush1.msra.mxu1 %v1016_v57 }
  0x42   :  { %613 = vmatprep.subr.mxu0 %v999_v58  ;;  %682 = vmatprep.subr.mxu1 %v1009_v59 }
  0x43   :  { %614 = vmatpush1.msra.mxu0 %v998_v60  ;;  %683 = vmatpush1.msra.mxu1 %v1008_v61 }
  0x44   :  { %615 = vmatprep.subr.mxu0 %v991_v62  ;;  %684 = vmatprep.subr.mxu1 %v1001_v63 }
  0x45   :  { %616 = vmatpush1.msra.mxu0 %v990_v0  ;;  %685 = vmatpush1.msra.mxu1 %v1000_v1 }
  0x46   :  { %617 = vmatprep.subr.mxu0 %v983_v2  ;;  %686 = vmatprep.subr.mxu1 %v993_v4 }
  0x47   :  { %618 = vmatpush1.msra.mxu0 %v982_v5  ;;  %687 = vmatpush1.msra.mxu1 %v992_v6 }
  0x48   :  { %619 = vmatprep.subr.mxu0 %v975_v7  ;;  %688 = vmatprep.subr.mxu1 %v985_v8 }
  0x49   :  { %620 = vmatpush1.msra.mxu0 %v974_v9  ;;  %689 = vmatpush1.msra.mxu1 %v984_v10 }
  0x4a   :  { %621 = vmatprep.subr.mxu0 %v967_v11  ;;  %690 = vmatprep.subr.mxu1 %v977_v12 }
  0x4b   :  { %622 = vmatpush1.msra.mxu0 %v966_v13  ;;  %691 = vmatpush1.msra.mxu1 %v976_v14 }
  0x4c   :  { %623 = vmatprep.subr.mxu0 %v959_v15  ;;  %692 = vmatprep.subr.mxu1 %v969_v16 }
  0x4d   :  { %624 = vmatpush1.msra.mxu0 %v958_v17  ;;  %657 = vmatprep.mubr.f32.mxu0 %v1040_v3 }
  0x4e   :  { %693 = vmatpush1.msra.mxu1 %v968_v18  ;;  %1028 = vmatmul.mubr.msk.f32.vlgmr.msra.gmra.mxu0 %vm90_vm0, %v1177_v36 }
  0x4f   :  { %694 = vmatprep.subr.mxu1 %v961_v19  ;;  %728 = vmatprep.mubr.f32.mxu1 %v1040_v3 }
  0x50   :  { %695 = vmatpush1.msra.mxu1 %v960_v20 }
  0x51   :  { %1029 = vmatmul.mubr.msk.f32.vlgmr.msra.gmra.mxu1 %vm90_vm0, %v1177_v36 }
  0xd4   :  { %v1528_v21 = vpop.f32.mrf.mxu0 }
  0xd5   :  { %v736_v23 = vsel %vm735_vm1, %v1528_v21, 0.0 }
  0xd6   :  { %v1530_v22 = vpop.f32.mrf.mxu0  ;;  %v1536_v25 = vpop.f32.mrf.mxu1 }
  0xd7   :  { %v737_v24 = vsel %vm735_vm1, %v1530_v22, 0.0  ;;  %v739_v3 = vsel %vm735_vm1, %v1536_v25, 0.0 }
  0xd8   :  { %v738_v26 = vadd.f32 %v737_v24, %v736_v23  ;;  %v1540_v27 = vpop.f32.mrf.mxu1 }
  0xd9   :  { %v741_v28 = vsel %vm735_vm1, %v1540_v27, 0.0 }
  0xda   :  { %v740_v36 = vadd.f32 %v739_v3, %v738_v26 }
  0xdc   :  { %v742_v29 = vadd.f32 %v741_v28, %v740_v36 }
  0xe6   :  { %v1544_v30 = vpop.f32.mrf.mxu0 }
  0xe7   :  { %v743_v31 = vsel %vm735_vm1, %v1544_v30, 0.0 }
  0xe8   :  { %v744_v32 = vadd.f32 %v743_v31, %v742_v29  ;;  %v1548_v33 = vpop.f32.mrf.mxu0 }
  0xe9   :  { %v745_v34 = vsel %vm735_vm1, %v1548_v33, 0.0 }
  0xea   :  { %v1552_v35 = vpop.f32.mrf.mxu1  ;;  %v746_v37 = vadd.f32 %v745_v34, %v744_v32 }
  0xeb   :  { %v747_v38 = vsel %vm735_vm1, %v1552_v35, 0.0 }
  0xec   :  { %v1556_v39 = vpop.f32.mrf.mxu1  ;;  %v748_v40 = vadd.f32 %v747_v38, %v746_v37 }
  0xed   :  { %v749_v41 = vsel %vm735_vm1, %v1556_v39, 0.0 }
  0xee   :  { %v750_v42 = vadd.f32 %v749_v41, %v748_v40 }
  0xf0   :  { %751 = vadd.xlane.f32.xlu0 %v750_v42 }
  0xfa   :  { %v1560_v43 = vpop.f32.mrf.mxu0 }
  0xfb   :  { %v753_v45 = vsel %vm735_vm1, %v1560_v43, 0.0 }
  0xfc   :  { %v1562_v44 = vpop.f32.mrf.mxu0 }
  0xfd   :  { %v754_v46 = vsel %vm735_vm1, %v1562_v44, 0.0 }
  0xfe   :  { %v1568_v47 = vpop.f32.mrf.mxu1  ;;  %v755_v48 = vadd.f32 %v754_v46, %v753_v45 }
  0xff   :  { %v756_v49 = vsel %vm735_vm1, %v1568_v47, 0.0 }
 0x100   :  { %v1572_v50 = vpop.f32.mrf.mxu1  ;;  %v757_v51 = vadd.f32 %v756_v49, %v755_v48 }
 0x101   :  { %v758_v52 = vsel %vm735_vm1, %v1572_v50, 0.0 }
 0x102   :  { %v759_v53 = vadd.f32 %v758_v52, %v757_v51 }
 0x10e   :  { %v1576_v54 = vpop.f32.mrf.mxu0 }
 0x10f   :  { %v760_v55 = vsel %vm735_vm1, %v1576_v54, 0.0 }
 0x110   :  { %v761_v56 = vadd.f32 %v760_v55, %v759_v53  ;;  %v1580_v57 = vpop.f32.mrf.mxu0 }
 0x111   :  { %v1582_v58 = vpop.f32.mrf.mxu1  ;;  %v762_v59 = vsel %vm735_vm1, %v1580_v57, 0.0 }
 0x112   :  { %v764_v60 = vsel %vm735_vm1, %v1582_v58, 0.0  ;;  %v763_v61 = vadd.f32 %v762_v59, %v761_v56 }
 0x113   :  { %v1588_v62 = vpop.f32.mrf.mxu1 }
 0x114   :  { %v765_v63 = vadd.f32 %v764_v60, %v763_v61  ;;  %v766_v0 = vsel %vm735_vm1, %v1588_v62, 0.0 }
 0x116   :  { %v767_v1 = vadd.f32 %v766_v0, %v765_v63 }
 0x118   :  { %768 = vadd.xlane.f32.xlu0 %v767_v1 }
 0x179   :  { %v752_v2 = vpop.xlane.xlu0 %751 }
 0x1a1   :  { %v769_v4 = vpop.xlane.xlu0 %768 }
 0x1a2   :  { %v770_v5 = vadd.f32 %v769_v4, %v752_v2 }
 0x1a4   :  { %v1592_v6 = vmul.f32 0.00048828125, %v770_v5 }
 0x1a6   :  { %v772_v7 = vsub.f32 %v1528_v21, %v1592_v6  ;;  %v773_v8 = vsub.f32 %v1530_v22, %v1592_v6  ;;  %v774_v9 = vsub.f32 %v1536_v25, %v1592_v6  ;;  %v775_v10 = vsub.f32 %v1540_v27, %v1592_v6 }
 0x1a7   :  { %v776_v11 = vsub.f32 %v1544_v30, %v1592_v6  ;;  %v777_v15 = vsub.f32 %v1548_v33, %v1592_v6  ;;  %v778_v19 = vsub.f32 %v1552_v35, %v1592_v6  ;;  %v805_v26 = vsub.f32 %v1560_v43, %v1592_v6 }
 0x1a8   :  { %v780_v12 = vmul.f32 %v772_v7, %v772_v7  ;;  %v781_v13 = vmul.f32 %v773_v8, %v773_v8  ;;  %v782_v14 = vmul.f32 %v774_v9, %v774_v9  ;;  %v783_v16 = vmul.f32 %v775_v10, %v775_v10 }
 0x1a9   :  { %v784_v20 = vmul.f32 %v776_v11, %v776_v11  ;;  %v806_v3 = vsub.f32 %v1562_v44, %v1592_v6  ;;  %v807_v36 = vsub.f32 %v1568_v47, %v1592_v6  ;;  %v779_v28 = vsub.f32 %v1556_v39, %v1592_v6 }
 0x1aa   :  { %v788_v17 = vsel %vm735_vm1, %v780_v12, 0.0  ;;  %v789_v18 = vsel %vm735_vm1, %v781_v13, 0.0  ;;  %v791_v24 = vsel %vm735_vm1, %v782_v14, 0.0  ;;  %v808_v31 = vsub.f32 %v1572_v50, %v1592_v6 }
 0x1ab   :  { %v790_v23 = vadd.f32 %v789_v18, %v788_v17  ;;  %v785_v32 = vmul.f32 %v777_v15, %v777_v15  ;;  %v793_v34 = vsel %vm735_vm1, %v783_v16, 0.0  ;;  %v813_v37 = vmul.f32 %v805_v26, %v805_v26 }
 0x1ac   :  { %v814_v38 = vmul.f32 %v806_v3, %v806_v3  ;;  %v809_v41 = vsub.f32 %v1576_v54, %v1592_v6  ;;  %v815_v42 = vmul.f32 %v807_v36, %v807_v36  ;;  %v786_v45 = vmul.f32 %v778_v19, %v778_v19 }
 0x1ad   :  { %v792_v29 = vadd.f32 %v791_v24, %v790_v23  ;;  %v795_v46 = vsel %vm735_vm1, %v784_v20, 0.0  ;;  %v821_v48 = vsel %vm735_vm1, %v813_v37, 0.0  ;;  %v810_v51 = vsub.f32 %v1580_v57, %v1592_v6  ;;  %v844_v37 = vld [vmem:[%s1692_s3] sm:$0xf] }
 0x1ae   :  { %v816_v52 = vmul.f32 %v808_v31, %v808_v31  ;;  %v822_v53 = vsel %vm735_vm1, %v814_v38, 0.0  ;;  %v787_v55 = vmul.f32 %v779_v28, %v779_v28  ;;  %v797_v56 = vsel %vm735_vm1, %v785_v32, 0.0  ;;  %v840_v31 = vld [vmem:[%s1691_s2] sm:$0xf] }
 0x1af   :  { %v794_v40 = vadd.f32 %v793_v34, %v792_v29  ;;  %v823_v59 = vadd.f32 %v822_v53, %v821_v48  ;;  %v811_v61 = vsub.f32 %v1582_v58, %v1592_v6  ;;  %v817_v63 = vmul.f32 %v809_v41, %v809_v41 }
 0x1b0   :  { %v824_v0 = vsel %vm735_vm1, %v815_v42, 0.0  ;;  %v799_v1 = vsel %vm735_vm1, %v786_v45, 0.0  ;;  %v812_v5 = vsub.f32 %v1588_v62, %v1592_v6  ;;  %v818_v7 = vmul.f32 %v810_v51, %v810_v51 }
 0x1b1   :  { %v796_v49 = vadd.f32 %v795_v46, %v794_v40  ;;  %v825_v2 = vadd.f32 %v824_v0, %v823_v59  ;;  %v826_v8 = vsel %vm735_vm1, %v816_v52, 0.0  ;;  %v801_v9 = vsel %vm735_vm1, %v787_v55, 0.0 }
 0x1b2   :  { %v819_v12 = vmul.f32 %v811_v61, %v811_v61  ;;  %v828_v13 = vsel %vm735_vm1, %v817_v63, 0.0  ;;  %v820_v15 = vmul.f32 %v812_v5, %v812_v5  ;;  %v830_v16 = vsel %vm735_vm1, %v818_v7, 0.0 }
 0x1b3   :  { %v798_v60 = vadd.f32 %v797_v56, %v796_v49  ;;  %v827_v10 = vadd.f32 %v826_v8, %v825_v2  ;;  %v1041_v24 = vmov 0  }
 0x1b4   :  { %v832_v18 = vsel %vm735_vm1, %v819_v12, 0.0  ;;  %v834_v20 = vsel %vm735_vm1, %v820_v15, 0.0  ;;  %1036 = vset.pattern.permute.xlu0 %v1041_v24  ;;  %1037 = vset.pattern.permute.xlu1 %v1041_v24 }
 0x1b5   :  { %v800_v4 = vadd.f32 %v799_v1, %v798_v60  ;;  %v829_v14 = vadd.f32 %v828_v13, %v827_v10 }
 0x1b7   :  { %v802_v11 = vadd.f32 %v801_v9, %v800_v4  ;;  %v831_v17 = vadd.f32 %v830_v16, %v829_v14 }
 0x1b9   :  { %803 = vadd.xlane.f32.xlu1 %v802_v11  ;;  %v833_v19 = vadd.f32 %v832_v18, %v831_v17 }
 0x1bb   :  { %v835_v23 = vadd.f32 %v834_v20, %v833_v19 }
 0x1bd   :  { %836 = vadd.xlane.f32.xlu1 %v835_v23 }
 0x242   :  { %v804_v26 = vpop.xlane.xlu1 %803 }
 0x246   :  { %v837_v3 = vpop.xlane.xlu1 %836 }
 0x247   :  { %v838_v36 = vadd.f32 %v837_v3, %v804_v26 }
 0x249   :  { %v839_v28 = vmul.f32 0.00048828125, %v838_v36 }
 0x24b   :  { %v841_v29 = vadd.f32 1e-05, %v839_v28 }
 0x24d   :  { %1038 = vrsqrt.f32 %v841_v29 }
 0x25a   :  { %v1039_v32 = vpop.eup %1038 }
 0x25b   :  { %v843_v34 = vmul.f32 %v1039_v32, %v840_v31 }
 0x25d   :  { %849 = vperm.xlu0 %1036, %v843_v34   ;;  %v845_v38 = vmul.f32 %v843_v34, %v1592_v6 }
 0x25f   :  { %v846_v40 = vsub.f32 %v844_v37, %v845_v38 }
 0x261   :  { %862 = vperm.xlu1 %1037, %v846_v40  }
 0x2d8   :  { %v850_v41 = vpop.permute.xlu0 %849 }
 0x2d9   :  { %v852_v42 = vmul.f32 %v850_v41, %v1528_v21  ;;  %v853_v45 = vmul.f32 %v850_v41, %v1530_v22  ;;  %v854_v46 = vmul.f32 %v850_v41, %v1536_v25  ;;  %v855_v48 = vmul.f32 %v850_v41, %v1540_v27 }
 0x2da   :  { %v856_v49 = vmul.f32 %v850_v41, %v1544_v30  ;;  %v857_v51 = vmul.f32 %v850_v41, %v1548_v33  ;;  %v858_v52 = vmul.f32 %v850_v41, %v1552_v35  ;;  %v859_v53 = vmul.f32 %v850_v41, %v1556_v39 }
 0x2db   :  { %v901_v6 = vmul.f32 %v850_v41, %v1560_v43  ;;  %v902_v55 = vmul.f32 %v850_v41, %v1562_v44  ;;  %v903_v21 = vmul.f32 %v850_v41, %v1568_v47  ;;  %v904_v22 = vmul.f32 %v850_v41, %v1572_v50 }
 0x2dc   :  { %v905_v25 = vmul.f32 %v850_v41, %v1576_v54  ;;  %v906_v27 = vmul.f32 %v850_v41, %v1580_v57  ;;  %v907_v30 = vmul.f32 %v850_v41, %v1582_v58  ;;  %v908_v33 = vmul.f32 %v850_v41, %v1588_v62  ;;  %v863_v56 = vpop.permute.xlu1 %862 }
 0x2dd   :  { %v865_v35 = vadd.f32 %v863_v56, %v852_v42  ;;  %v866_v59 = vadd.f32 %v863_v56, %v853_v45  ;;  %v867_v39 = vadd.f32 %v863_v56, %v854_v46  ;;  %v868_v60 = vadd.f32 %v863_v56, %v855_v48 }
 0x2de   :  { %v869_v43 = vadd.f32 %v863_v56, %v856_v49  ;;  %v870_v61 = vadd.f32 %v863_v56, %v857_v51  ;;  %v871_v44 = vadd.f32 %v863_v56, %v858_v52  ;;  %v872_v63 = vadd.f32 %v863_v56, %v859_v53 }
 0x2df   :  { %v873_v47 = vmax.f32 %v865_v35, 0.0  ;;  %v874_v0 = vmax.f32 %v866_v59, 0.0  ;;  %v875_v50 = vmax.f32 %v867_v39, 0.0  ;;  %v876_v1 = vmax.f32 %v868_v60, 0.0 }
 0x2e0   :  { %v877_v54 = vmax.f32 %v869_v43, 0.0  ;;  %v878_v2 = vmax.f32 %v870_v61, 0.0  ;;  %v879_v57 = vmax.f32 %v871_v44, 0.0  ;;  %v880_v4 = vmax.f32 %v872_v63, 0.0 }
 0x2e1   :  { %v889_v58 = vcombine.low %v873_v47, %v874_v0  ;;  %v890_v5 = vcombine.low %v875_v50, %v876_v1  ;;  %v909_v62 = vadd.f32 %v901_v6, %v863_v56  ;;  %v910_v7 = vadd.f32 %v902_v55, %v863_v56 }
 0x2e2   :  { %v891_v8 = vcombine.low %v877_v54, %v878_v2  ;;  %v892_v9 = vcombine.low %v879_v57, %v880_v4  ;;  %v911_v10 = vadd.f32 %v903_v21, %v863_v56  ;;  %v912_v11 = vadd.f32 %v904_v22, %v863_v56 }
 0x2e3   :  { %897 = vst [vmem:[%s1693_s4] sm:$0xff] %v889_v58  ;;  %898 = vst [vmem:[%s1693_s4 + $0x8] sm:$0xff] %v890_v5  ;;  %v913_v12 = vadd.f32 %v905_v25, %v863_v56  ;;  %v914_v13 = vadd.f32 %v906_v27, %v863_v56  ;;  %v915_v14 = vadd.f32 %v907_v30, %v863_v56  ;;  %v917_v16 = vmax.f32 %v909_v62, 0.0 }
 0x2e4   :  { %v916_v15 = vadd.f32 %v908_v33, %v863_v56  ;;  %899 = vst [vmem:[%s1693_s4 + $0x10] sm:$0xff] %v891_v8  ;;  %900 = vst [vmem:[%s1693_s4 + $0x18] sm:$0xff] %v892_v9  ;;  %v918_v17 = vmax.f32 %v910_v7, 0.0  ;;  %v919_v18 = vmax.f32 %v911_v10, 0.0  ;;  %v920_v19 = vmax.f32 %v912_v11, 0.0 }
 0x2e5   :  { %v921_v20 = vmax.f32 %v913_v12, 0.0  ;;  %v922_v23 = vmax.f32 %v914_v13, 0.0  ;;  %v923_v24 = vmax.f32 %v915_v14, 0.0 }
 0x2e6   :  { %v924_v26 = vmax.f32 %v916_v15, 0.0  ;;  %v933_v3 = vcombine.low %v917_v16, %v918_v17  ;;  %v934_v36 = vcombine.low %v919_v18, %v920_v19 }
 0x2e7   :  { %v935_v28 = vcombine.low %v921_v20, %v922_v23 }
 0x2e8   :  { %v936_v29 = vcombine.low %v923_v24, %v924_v26  ;;  %1030 = vst [vmem:[%s1693_s4 + $0x20] sm:$0xff] %v933_v3  ;;  %1031 = vst [vmem:[%s1693_s4 + $0x28] sm:$0xff] %v934_v36 }
 0x2e9   :  { %1032 = vst [vmem:[%s1693_s4 + $0x30] sm:$0xff] %v935_v28 }
 0x2ea   :  { %1033 = vst [vmem:[%s1693_s4 + $0x38] sm:$0xff] %v936_v29 }

// kernel: stage1_g_forward.12
= control target key start
LH: loop header
LB: loop body
LE: loop exit
PB: predicated region body
PF: predicated region fallthrough
CT: control target
= control target key end

     0   :  { %vm182_vm0 = vcmask 1043456   ;;  %v4055_v3 = vmov 0.0   ;;  %vm178_vm1 = vcmask 293888   ;;  %vm2808_vm2 = vcmask 1041408   ;;  %s6275_s0 = inlined_call_operand.vmem [shape: f32[2,36,4096], index: 0, kind: input, shape index: {}]   ;;  %s6276_s1 = inlined_call_operand.vmem [shape: f32[2,36], index: 1, kind: input, shape index: {}]   ;;  %s6277_s2 = inlined_call_operand.vmem [shape: f32[2,1], index: 2, kind: input, shape index: {}]   ;;  %s6278_s3 = inlined_call_operand.vmem [shape: f32[2,1], index: 3, kind: input, shape index: {}]   ;;  %s6279_s4 = inlined_call_operand.vmem [shape: f32[2,2,4096], index: 4, kind: output, shape index: {}]  }
   0x1   :  { %v147_v0 = vld [vmem:[%s6275_s0 + $0x408] sm:$0xf]  ;;  %v146_v1 = vld [vmem:[%s6275_s0 + $0x400] sm:$0xf]  ;;  %343 = vmatprep.mubr.f32.mxu0 %v4055_v3  ;;  %414 = vmatprep.mubr.f32.mxu1 %v4055_v3  ;;  %v149_v4 = vld [vmem:[%s6275_s0 + $0x418] sm:$0xf] }
   0x2   :  { %v115_v2 = vld [vmem:[%s6275_s0 + $0x308] sm:$0xff]  ;;  %3783 = vmatprep.subr.msk.mxu0 %vm182_vm0, %v147_v0  ;;  %v114_v5 = vld [vmem:[%s6275_s0 + $0x300] sm:$0xff]  ;;  %v148_v6 = vld [vmem:[%s6275_s0 + $0x410] sm:$0xf]  ;;  %3786 = vmatprep.subr.msk.mxu1 %vm182_vm0, %v149_v4 }
   0x3   :  { %3784 = vmatpush1.msk.msra.mxu0 %vm182_vm0, %v146_v1  ;;  %v83_v7 = vld [vmem:[%s6275_s0 + $0x208] sm:$0xff]  ;;  %v117_v8 = vld [vmem:[%s6275_s0 + $0x318] sm:$0xff]  ;;  %3787 = vmatpush1.msk.msra.mxu1 %vm182_vm0, %v148_v6  ;;  %v82_v9 = vld [vmem:[%s6275_s0 + $0x200] sm:$0xff] }
   0x4   :  { %303 = vmatprep.subr.mxu0 %v115_v2  ;;  %v116_v10 = vld [vmem:[%s6275_s0 + $0x310] sm:$0xff]  ;;  %v85_v11 = vld [vmem:[%s6275_s0 + $0x218] sm:$0xff]  ;;  %374 = vmatprep.subr.mxu1 %v117_v8  ;;  %v51_v12 = vld [vmem:[%s6275_s0 + $0x108] sm:$0xff] }
   0x5   :  { %304 = vmatpush1.msra.mxu0 %v114_v5  ;;  %v84_v13 = vld [vmem:[%s6275_s0 + $0x210] sm:$0xff]  ;;  %375 = vmatpush1.msra.mxu1 %v116_v10  ;;  %v50_v14 = vld [vmem:[%s6275_s0 + $0x100] sm:$0xff]  ;;  %v53_v15 = vld [vmem:[%s6275_s0 + $0x118] sm:$0xff] }
   0x6   :  { %305 = vmatprep.subr.mxu0 %v83_v7  ;;  %376 = vmatprep.subr.mxu1 %v85_v11  ;;  %v19_v16 = vld [vmem:[%s6275_s0 + $0x8] sm:$0xff]  ;;  %v52_v17 = vld [vmem:[%s6275_s0 + $0x110] sm:$0xff]  ;;  %v18_v18 = vld [vmem:[%s6275_s0] sm:$0xff] }
   0x7   :  { %306 = vmatpush1.msra.mxu0 %v82_v9  ;;  %377 = vmatpush1.msra.mxu1 %v84_v13  ;;  %v21_v19 = vld [vmem:[%s6275_s0 + $0x18] sm:$0xff]  ;;  %v4149_v20 = vld [vmem:[%s6276_s1] sm:$0x3]  ;;  %v151_v21 = vld [vmem:[%s6275_s0 + $0x428] sm:$0xf] }
   0x8   :  { %307 = vmatprep.subr.mxu0 %v51_v12  ;;  %378 = vmatprep.subr.mxu1 %v53_v15  ;;  %v20_v22 = vld [vmem:[%s6275_s0 + $0x10] sm:$0xff]  ;;  %v150_v23 = vld [vmem:[%s6275_s0 + $0x420] sm:$0xf]  ;;  %v119_v24 = vld [vmem:[%s6275_s0 + $0x328] sm:$0xff] }
   0x9   :  { %308 = vmatpush1.msra.mxu0 %v50_v14  ;;  %379 = vmatpush1.msra.mxu1 %v52_v17  ;;  %v153_v25 = vld [vmem:[%s6275_s0 + $0x438] sm:$0xf]  ;;  %v118_v26 = vld [vmem:[%s6275_s0 + $0x320] sm:$0xff]  ;;  %v152_v27 = vld [vmem:[%s6275_s0 + $0x430] sm:$0xf] }
   0xa   :  { %309 = vmatprep.subr.mxu0 %v19_v16  ;;  %380 = vmatprep.subr.mxu1 %v21_v19  ;;  %v87_v28 = vld [vmem:[%s6275_s0 + $0x228] sm:$0xff]  ;;  %v121_v29 = vld [vmem:[%s6275_s0 + $0x338] sm:$0xff]  ;;  %v86_v30 = vld [vmem:[%s6275_s0 + $0x220] sm:$0xff] }
   0xb   :  { %310 = vmatpush1.msra.mxu0 %v18_v18  ;;  %381 = vmatpush1.msra.mxu1 %v20_v22  ;;  %v120_v31 = vld [vmem:[%s6275_s0 + $0x330] sm:$0xff]  ;;  %v55_v32 = vld [vmem:[%s6275_s0 + $0x128] sm:$0xff]  ;;  %v89_v33 = vld [vmem:[%s6275_s0 + $0x238] sm:$0xff] }
   0xc   :  { %3785 = vmatmul.mubr.msk.f32.vlgmr.msra.gmra.mxu0 %vm178_vm1, %v4149_v20  ;;  %3789 = vmatprep.subr.msk.mxu0 %vm182_vm0, %v151_v21  ;;  %v54_v34 = vld [vmem:[%s6275_s0 + $0x120] sm:$0xff]  ;;  %v88_v35 = vld [vmem:[%s6275_s0 + $0x230] sm:$0xff]  ;;  %v23_v36 = vld [vmem:[%s6275_s0 + $0x28] sm:$0xff] }
   0xd   :  { %3790 = vmatpush1.msk.msra.mxu0 %vm182_vm0, %v150_v23  ;;  %3792 = vmatprep.subr.msk.mxu1 %vm182_vm0, %v153_v25  ;;  %v57_v37 = vld [vmem:[%s6275_s0 + $0x138] sm:$0xff]  ;;  %v22_v38 = vld [vmem:[%s6275_s0 + $0x20] sm:$0xff]  ;;  %v56_v39 = vld [vmem:[%s6275_s0 + $0x130] sm:$0xff] }
   0xe   :  { %445 = vmatprep.subr.mxu0 %v119_v24  ;;  %3788 = vmatmul.mubr.msk.f32.vlgmr.msra.gmra.mxu1 %vm178_vm1, %v4149_v20  ;;  %v25_v40 = vld [vmem:[%s6275_s0 + $0x38] sm:$0xff]  ;;  %v155_v41 = vld [vmem:[%s6275_s0 + $0x448] sm:$0xf]  ;;  %v24_v42 = vld [vmem:[%s6275_s0 + $0x30] sm:$0xff] }
   0xf   :  { %446 = vmatpush1.msra.mxu0 %v118_v26  ;;  %3793 = vmatpush1.msk.msra.mxu1 %vm182_vm0, %v152_v27  ;;  %v154_v43 = vld [vmem:[%s6275_s0 + $0x440] sm:$0xf]  ;;  %v123_v44 = vld [vmem:[%s6275_s0 + $0x348] sm:$0xff]  ;;  %v157_v45 = vld [vmem:[%s6275_s0 + $0x458] sm:$0xf] }
  0x10   :  { %447 = vmatprep.subr.mxu0 %v87_v28  ;;  %516 = vmatprep.subr.mxu1 %v121_v29  ;;  %v122_v46 = vld [vmem:[%s6275_s0 + $0x340] sm:$0xff]  ;;  %v156_v47 = vld [vmem:[%s6275_s0 + $0x450] sm:$0xf]  ;;  %v91_v48 = vld [vmem:[%s6275_s0 + $0x248] sm:$0xff] }
  0x11   :  { %448 = vmatpush1.msra.mxu0 %v86_v30  ;;  %517 = vmatpush1.msra.mxu1 %v120_v31  ;;  %v125_v49 = vld [vmem:[%s6275_s0 + $0x358] sm:$0xff]  ;;  %v90_v50 = vld [vmem:[%s6275_s0 + $0x240] sm:$0xff]  ;;  %v124_v51 = vld [vmem:[%s6275_s0 + $0x350] sm:$0xff] }
  0x12   :  { %449 = vmatprep.subr.mxu0 %v55_v32  ;;  %518 = vmatprep.subr.mxu1 %v89_v33  ;;  %v59_v52 = vld [vmem:[%s6275_s0 + $0x148] sm:$0xff]  ;;  %v93_v53 = vld [vmem:[%s6275_s0 + $0x258] sm:$0xff]  ;;  %v58_v54 = vld [vmem:[%s6275_s0 + $0x140] sm:$0xff] }
  0x13   :  { %450 = vmatpush1.msra.mxu0 %v54_v34  ;;  %519 = vmatpush1.msra.mxu1 %v88_v35  ;;  %v92_v55 = vld [vmem:[%s6275_s0 + $0x250] sm:$0xff]  ;;  %v27_v56 = vld [vmem:[%s6275_s0 + $0x48] sm:$0xff]  ;;  %v61_v57 = vld [vmem:[%s6275_s0 + $0x158] sm:$0xff] }
  0x14   :  { %451 = vmatprep.subr.mxu0 %v23_v36  ;;  %520 = vmatprep.subr.mxu1 %v57_v37  ;;  %v26_v58 = vld [vmem:[%s6275_s0 + $0x40] sm:$0xff]  ;;  %v60_v59 = vld [vmem:[%s6275_s0 + $0x150] sm:$0xff]  ;;  %v29_v60 = vld [vmem:[%s6275_s0 + $0x58] sm:$0xff] }
  0x15   :  { %452 = vmatpush1.msra.mxu0 %v22_v38  ;;  %485 = vmatprep.mubr.f32.mxu0 %v4055_v3  ;;  %v159_v61 = vld [vmem:[%s6275_s0 + $0x468] sm:$0xf]  ;;  %v28_v62 = vld [vmem:[%s6275_s0 + $0x50] sm:$0xff]  ;;  %v158_v63 = vld [vmem:[%s6275_s0 + $0x460] sm:$0xf] }
  0x16   :  { %521 = vmatpush1.msra.mxu1 %v56_v39  ;;  %3791 = vmatmul.mubr.msk.f32.vlgmr.msra.gmra.mxu0 %vm178_vm1, %v4149_v20  ;;  %v127_v0 = vld [vmem:[%s6275_s0 + $0x368] sm:$0xff]  ;;  %v161_v1 = vld [vmem:[%s6275_s0 + $0x478] sm:$0xf]  ;;  %v126_v2 = vld [vmem:[%s6275_s0 + $0x360] sm:$0xff] }
  0x17   :  { %522 = vmatprep.subr.mxu1 %v25_v40  ;;  %3795 = vmatprep.subr.msk.mxu0 %vm182_vm0, %v155_v41  ;;  %v160_v4 = vld [vmem:[%s6275_s0 + $0x470] sm:$0xf]  ;;  %v95_v5 = vld [vmem:[%s6275_s0 + $0x268] sm:$0xff]  ;;  %v129_v6 = vld [vmem:[%s6275_s0 + $0x378] sm:$0xff] }
  0x18   :  { %523 = vmatpush1.msra.mxu1 %v24_v42  ;;  %3796 = vmatpush1.msk.msra.mxu0 %vm182_vm0, %v154_v43  ;;  %v94_v7 = vld [vmem:[%s6275_s0 + $0x260] sm:$0xff]  ;;  %v128_v8 = vld [vmem:[%s6275_s0 + $0x370] sm:$0xff]  ;;  %v63_v9 = vld [vmem:[%s6275_s0 + $0x168] sm:$0xff] }
  0x19   :  { %556 = vmatprep.mubr.f32.mxu1 %v4055_v3  ;;  %587 = vmatprep.subr.mxu0 %v123_v44  ;;  %v97_v10 = vld [vmem:[%s6275_s0 + $0x278] sm:$0xff]  ;;  %v62_v11 = vld [vmem:[%s6275_s0 + $0x160] sm:$0xff]  ;;  %v96_v12 = vld [vmem:[%s6275_s0 + $0x270] sm:$0xff] }
  0x1a   :  { %3798 = vmatprep.subr.msk.mxu1 %vm182_vm0, %v157_v45  ;;  %3794 = vmatmul.mubr.msk.f32.vlgmr.msra.gmra.mxu1 %vm178_vm1, %v4149_v20  ;;  %v31_v13 = vld [vmem:[%s6275_s0 + $0x68] sm:$0xff]  ;;  %v65_v14 = vld [vmem:[%s6275_s0 + $0x178] sm:$0xff]  ;;  %v30_v15 = vld [vmem:[%s6275_s0 + $0x60] sm:$0xff] }
  0x1b   :  { %588 = vmatpush1.msra.mxu0 %v122_v46  ;;  %3799 = vmatpush1.msk.msra.mxu1 %vm182_vm0, %v156_v47  ;;  %v64_v16 = vld [vmem:[%s6275_s0 + $0x170] sm:$0xff]  ;;  %v33_v17 = vld [vmem:[%s6275_s0 + $0x78] sm:$0xff]  ;;  %v163_v18 = vld [vmem:[%s6275_s0 + $0x488] sm:$0xf] }
  0x1c   :  { %589 = vmatprep.subr.mxu0 %v91_v48  ;;  %658 = vmatprep.subr.mxu1 %v125_v49  ;;  %v32_v19 = vld [vmem:[%s6275_s0 + $0x70] sm:$0xff]  ;;  %v162_v21 = vld [vmem:[%s6275_s0 + $0x480] sm:$0xf]  ;;  %v131_v22 = vld [vmem:[%s6275_s0 + $0x388] sm:$0xff] }
  0x1d   :  { %590 = vmatpush1.msra.mxu0 %v90_v50  ;;  %659 = vmatpush1.msra.mxu1 %v124_v51  ;;  %v165_v23 = vld [vmem:[%s6275_s0 + $0x498] sm:$0xf]  ;;  %v130_v24 = vld [vmem:[%s6275_s0 + $0x380] sm:$0xff]  ;;  %v164_v25 = vld [vmem:[%s6275_s0 + $0x490] sm:$0xf] }
  0x1e   :  { %591 = vmatprep.subr.mxu0 %v59_v52  ;;  %660 = vmatprep.subr.mxu1 %v93_v53  ;;  %v99_v26 = vld [vmem:[%s6275_s0 + $0x288] sm:$0xff]  ;;  %v133_v27 = vld [vmem:[%s6275_s0 + $0x398] sm:$0xff]  ;;  %v98_v28 = vld [vmem:[%s6275_s0 + $0x280] sm:$0xff] }
  0x1f   :  { %592 = vmatpush1.msra.mxu0 %v58_v54  ;;  %661 = vmatpush1.msra.mxu1 %v92_v55  ;;  %v132_v29 = vld [vmem:[%s6275_s0 + $0x390] sm:$0xff]  ;;  %v67_v30 = vld [vmem:[%s6275_s0 + $0x188] sm:$0xff]  ;;  %v101_v31 = vld [vmem:[%s6275_s0 + $0x298] sm:$0xff] }
  0x20   :  { %593 = vmatprep.subr.mxu0 %v27_v56  ;;  %662 = vmatprep.subr.mxu1 %v61_v57  ;;  %v66_v32 = vld [vmem:[%s6275_s0 + $0x180] sm:$0xff]  ;;  %v100_v33 = vld [vmem:[%s6275_s0 + $0x290] sm:$0xff]  ;;  %v35_v34 = vld [vmem:[%s6275_s0 + $0x88] sm:$0xff] }
  0x21   :  { %594 = vmatpush1.msra.mxu0 %v26_v58  ;;  %627 = vmatprep.mubr.f32.mxu0 %v4055_v3  ;;  %v69_v35 = vld [vmem:[%s6275_s0 + $0x198] sm:$0xff]  ;;  %v34_v36 = vld [vmem:[%s6275_s0 + $0x80] sm:$0xff]  ;;  %v68_v37 = vld [vmem:[%s6275_s0 + $0x190] sm:$0xff] }
  0x22   :  { %663 = vmatpush1.msra.mxu1 %v60_v59  ;;  %3797 = vmatmul.mubr.msk.f32.vlgmr.msra.gmra.mxu0 %vm178_vm1, %v4149_v20  ;;  %v37_v38 = vld [vmem:[%s6275_s0 + $0x98] sm:$0xff]  ;;  %v167_v39 = vld [vmem:[%s6275_s0 + $0x4a8] sm:$0xf]  ;;  %v36_v40 = vld [vmem:[%s6275_s0 + $0x90] sm:$0xff] }
  0x23   :  { %664 = vmatprep.subr.mxu1 %v29_v60  ;;  %3801 = vmatprep.subr.msk.mxu0 %vm182_vm0, %v159_v61  ;;  %v166_v41 = vld [vmem:[%s6275_s0 + $0x4a0] sm:$0xf]  ;;  %v135_v42 = vld [vmem:[%s6275_s0 + $0x3a8] sm:$0xff]  ;;  %v169_v43 = vld [vmem:[%s6275_s0 + $0x4b8] sm:$0xf] }
  0x24   :  { %665 = vmatpush1.msra.mxu1 %v28_v62  ;;  %3802 = vmatpush1.msk.msra.mxu0 %vm182_vm0, %v158_v63  ;;  %v134_v44 = vld [vmem:[%s6275_s0 + $0x3a0] sm:$0xff]  ;;  %v168_v45 = vld [vmem:[%s6275_s0 + $0x4b0] sm:$0xf]  ;;  %v103_v46 = vld [vmem:[%s6275_s0 + $0x2a8] sm:$0xff] }
  0x25   :  { %698 = vmatprep.mubr.f32.mxu1 %v4055_v3  ;;  %729 = vmatprep.subr.mxu0 %v127_v0  ;;  %v137_v47 = vld [vmem:[%s6275_s0 + $0x3b8] sm:$0xff]  ;;  %v102_v48 = vld [vmem:[%s6275_s0 + $0x2a0] sm:$0xff]  ;;  %v136_v49 = vld [vmem:[%s6275_s0 + $0x3b0] sm:$0xff] }
  0x26   :  { %3804 = vmatprep.subr.msk.mxu1 %vm182_vm0, %v161_v1  ;;  %3800 = vmatmul.mubr.msk.f32.vlgmr.msra.gmra.mxu1 %vm178_vm1, %v4149_v20  ;;  %v71_v50 = vld [vmem:[%s6275_s0 + $0x1a8] sm:$0xff]  ;;  %v105_v51 = vld [vmem:[%s6275_s0 + $0x2b8] sm:$0xff]  ;;  %v70_v52 = vld [vmem:[%s6275_s0 + $0x1a0] sm:$0xff] }
  0x27   :  { %730 = vmatpush1.msra.mxu0 %v126_v2  ;;  %3805 = vmatpush1.msk.msra.mxu1 %vm182_vm0, %v160_v4  ;;  %v104_v53 = vld [vmem:[%s6275_s0 + $0x2b0] sm:$0xff]  ;;  %v39_v54 = vld [vmem:[%s6275_s0 + $0xa8] sm:$0xff]  ;;  %v73_v55 = vld [vmem:[%s6275_s0 + $0x1b8] sm:$0xff] }
  0x28   :  { %731 = vmatprep.subr.mxu0 %v95_v5  ;;  %800 = vmatprep.subr.mxu1 %v129_v6  ;;  %v38_v56 = vld [vmem:[%s6275_s0 + $0xa0] sm:$0xff]  ;;  %v72_v57 = vld [vmem:[%s6275_s0 + $0x1b0] sm:$0xff]  ;;  %v41_v58 = vld [vmem:[%s6275_s0 + $0xb8] sm:$0xff] }
  0x29   :  { %732 = vmatpush1.msra.mxu0 %v94_v7  ;;  %801 = vmatpush1.msra.mxu1 %v128_v8  ;;  %v171_v59 = vld [vmem:[%s6275_s0 + $0x4c8] sm:$0xf]  ;;  %v40_v60 = vld [vmem:[%s6275_s0 + $0xb0] sm:$0xff]  ;;  %v170_v61 = vld [vmem:[%s6275_s0 + $0x4c0] sm:$0xf] }
  0x2a   :  { %733 = vmatprep.subr.mxu0 %v63_v9  ;;  %802 = vmatprep.subr.mxu1 %v97_v10  ;;  %v139_v62 = vld [vmem:[%s6275_s0 + $0x3c8] sm:$0xff]  ;;  %v173_v63 = vld [vmem:[%s6275_s0 + $0x4d8] sm:$0xf]  ;;  %v138_v0 = vld [vmem:[%s6275_s0 + $0x3c0] sm:$0xff] }
  0x2b   :  { %734 = vmatpush1.msra.mxu0 %v62_v11  ;;  %803 = vmatpush1.msra.mxu1 %v96_v12  ;;  %v172_v1 = vld [vmem:[%s6275_s0 + $0x4d0] sm:$0xf]  ;;  %v107_v2 = vld [vmem:[%s6275_s0 + $0x2c8] sm:$0xff]  ;;  %v141_v4 = vld [vmem:[%s6275_s0 + $0x3d8] sm:$0xff] }
  0x2c   :  { %735 = vmatprep.subr.mxu0 %v31_v13  ;;  %804 = vmatprep.subr.mxu1 %v65_v14  ;;  %v106_v5 = vld [vmem:[%s6275_s0 + $0x2c0] sm:$0xff]  ;;  %v140_v6 = vld [vmem:[%s6275_s0 + $0x3d0] sm:$0xff]  ;;  %v75_v7 = vld [vmem:[%s6275_s0 + $0x1c8] sm:$0xff] }
  0x2d   :  { %736 = vmatpush1.msra.mxu0 %v30_v15  ;;  %769 = vmatprep.mubr.f32.mxu0 %v4055_v3  ;;  %v109_v8 = vld [vmem:[%s6275_s0 + $0x2d8] sm:$0xff]  ;;  %v74_v9 = vld [vmem:[%s6275_s0 + $0x1c0] sm:$0xff]  ;;  %v108_v10 = vld [vmem:[%s6275_s0 + $0x2d0] sm:$0xff] }
  0x2e   :  { %805 = vmatpush1.msra.mxu1 %v64_v16  ;;  %3803 = vmatmul.mubr.msk.f32.vlgmr.msra.gmra.mxu0 %vm178_vm1, %v4149_v20  ;;  %v43_v11 = vld [vmem:[%s6275_s0 + $0xc8] sm:$0xff]  ;;  %v77_v12 = vld [vmem:[%s6275_s0 + $0x1d8] sm:$0xff]  ;;  %v42_v13 = vld [vmem:[%s6275_s0 + $0xc0] sm:$0xff] }
  0x2f   :  { %806 = vmatprep.subr.mxu1 %v33_v17  ;;  %3807 = vmatprep.subr.msk.mxu0 %vm182_vm0, %v163_v18  ;;  %v76_v14 = vld [vmem:[%s6275_s0 + $0x1d0] sm:$0xff]  ;;  %v45_v15 = vld [vmem:[%s6275_s0 + $0xd8] sm:$0xff]  ;;  %v175_v16 = vld [vmem:[%s6275_s0 + $0x4e8] sm:$0xf] }
  0x30   :  { %807 = vmatpush1.msra.mxu1 %v32_v19  ;;  %3808 = vmatpush1.msk.msra.mxu0 %vm182_vm0, %v162_v21  ;;  %v44_v17 = vld [vmem:[%s6275_s0 + $0xd0] sm:$0xff]  ;;  %v174_v18 = vld [vmem:[%s6275_s0 + $0x4e0] sm:$0xf]  ;;  %v143_v19 = vld [vmem:[%s6275_s0 + $0x3e8] sm:$0xff] }
  0x31   :  { %840 = vmatprep.mubr.f32.mxu1 %v4055_v3  ;;  %871 = vmatprep.subr.mxu0 %v131_v22  ;;  %v177_v21 = vld [vmem:[%s6275_s0 + $0x4f8] sm:$0xf]  ;;  %v142_v22 = vld [vmem:[%s6275_s0 + $0x3e0] sm:$0xff] }
  0x32   :  { %3810 = vmatprep.subr.msk.mxu1 %vm182_vm0, %v165_v23  ;;  %3806 = vmatmul.mubr.msk.f32.vlgmr.msra.gmra.mxu1 %vm178_vm1, %v4149_v20  ;;  %v176_v23 = vld [vmem:[%s6275_s0 + $0x4f0] sm:$0xf] }
  0x33   :  { %872 = vmatpush1.msra.mxu0 %v130_v24  ;;  %3811 = vmatpush1.msk.msra.mxu1 %vm182_vm0, %v164_v25  ;;  %v111_v24 = vld [vmem:[%s6275_s0 + $0x2e8] sm:$0xff]  ;;  %v145_v25 = vld [vmem:[%s6275_s0 + $0x3f8] sm:$0xff] }
  0x34   :  { %873 = vmatprep.subr.mxu0 %v99_v26  ;;  %942 = vmatprep.subr.mxu1 %v133_v27  ;;  %v110_v26 = vld [vmem:[%s6275_s0 + $0x2e0] sm:$0xff]  ;;  %v144_v27 = vld [vmem:[%s6275_s0 + $0x3f0] sm:$0xff] }
  0x35   :  { %874 = vmatpush1.msra.mxu0 %v98_v28  ;;  %943 = vmatpush1.msra.mxu1 %v132_v29  ;;  %v79_v28 = vld [vmem:[%s6275_s0 + $0x1e8] sm:$0xff]  ;;  %v113_v29 = vld [vmem:[%s6275_s0 + $0x2f8] sm:$0xff] }
  0x36   :  { %875 = vmatprep.subr.mxu0 %v67_v30  ;;  %944 = vmatprep.subr.mxu1 %v101_v31  ;;  %v78_v30 = vld [vmem:[%s6275_s0 + $0x1e0] sm:$0xff]  ;;  %v112_v31 = vld [vmem:[%s6275_s0 + $0x2f0] sm:$0xff] }
  0x37   :  { %876 = vmatpush1.msra.mxu0 %v66_v32  ;;  %945 = vmatpush1.msra.mxu1 %v100_v33  ;;  %v47_v32 = vld [vmem:[%s6275_s0 + $0xe8] sm:$0xff]  ;;  %v81_v33 = vld [vmem:[%s6275_s0 + $0x1f8] sm:$0xff] }
  0x38   :  { %877 = vmatprep.subr.mxu0 %v35_v34  ;;  %946 = vmatprep.subr.mxu1 %v69_v35  ;;  %v46_v34 = vld [vmem:[%s6275_s0 + $0xe0] sm:$0xff]  ;;  %v80_v35 = vld [vmem:[%s6275_s0 + $0x1f0] sm:$0xff] }
  0x39   :  { %878 = vmatpush1.msra.mxu0 %v34_v36  ;;  %911 = vmatprep.mubr.f32.mxu0 %v4055_v3  ;;  %v49_v36 = vld [vmem:[%s6275_s0 + $0xf8] sm:$0xff] }
  0x3a   :  { %947 = vmatpush1.msra.mxu1 %v68_v37  ;;  %3809 = vmatmul.mubr.msk.f32.vlgmr.msra.gmra.mxu0 %vm178_vm1, %v4149_v20  ;;  %v3960_v37 = vld [vmem:[%s6275_s0 + $0x908] sm:$0xf] }
  0x3b   :  { %948 = vmatprep.subr.mxu1 %v37_v38  ;;  %3813 = vmatprep.subr.msk.mxu0 %vm182_vm0, %v167_v39  ;;  %v48_v38 = vld [vmem:[%s6275_s0 + $0xf0] sm:$0xff]  ;;  %v3959_v39 = vld [vmem:[%s6275_s0 + $0x900] sm:$0xf] }
  0x3c   :  { %949 = vmatpush1.msra.mxu1 %v36_v40  ;;  %3814 = vmatpush1.msk.msra.mxu0 %vm182_vm0, %v166_v41  ;;  %v3928_v40 = vld [vmem:[%s6275_s0 + $0x808] sm:$0xff]  ;;  %v3962_v41 = vld [vmem:[%s6275_s0 + $0x918] sm:$0xf] }
  0x3d   :  { %982 = vmatprep.mubr.f32.mxu1 %v4055_v3  ;;  %1013 = vmatprep.subr.mxu0 %v135_v42  ;;  %v3927_v42 = vld [vmem:[%s6275_s0 + $0x800] sm:$0xff] }
  0x3e   :  { %3816 = vmatprep.subr.msk.mxu1 %vm182_vm0, %v169_v43  ;;  %3812 = vmatmul.mubr.msk.f32.vlgmr.msra.gmra.mxu1 %vm178_vm1, %v4149_v20  ;;  %v3961_v43 = vld [vmem:[%s6275_s0 + $0x910] sm:$0xf] }
  0x3f   :  { %1014 = vmatpush1.msra.mxu0 %v134_v44  ;;  %3817 = vmatpush1.msk.msra.mxu1 %vm182_vm0, %v168_v45  ;;  %v3896_v44 = vld [vmem:[%s6275_s0 + $0x708] sm:$0xff]  ;;  %v3930_v45 = vld [vmem:[%s6275_s0 + $0x818] sm:$0xff] }
  0x40   :  { %1015 = vmatprep.subr.mxu0 %v103_v46  ;;  %1084 = vmatprep.subr.mxu1 %v137_v47  ;;  %v3895_v46 = vld [vmem:[%s6275_s0 + $0x700] sm:$0xff]  ;;  %v3929_v47 = vld [vmem:[%s6275_s0 + $0x810] sm:$0xff] }
  0x41   :  { %1016 = vmatpush1.msra.mxu0 %v102_v48  ;;  %1085 = vmatpush1.msra.mxu1 %v136_v49  ;;  %v3864_v48 = vld [vmem:[%s6275_s0 + $0x608] sm:$0xff]  ;;  %v3898_v49 = vld [vmem:[%s6275_s0 + $0x718] sm:$0xff] }
  0x42   :  { %1017 = vmatprep.subr.mxu0 %v71_v50  ;;  %1086 = vmatprep.subr.mxu1 %v105_v51  ;;  %v3863_v50 = vld [vmem:[%s6275_s0 + $0x600] sm:$0xff]  ;;  %v3897_v51 = vld [vmem:[%s6275_s0 + $0x710] sm:$0xff] }
  0x43   :  { %1018 = vmatpush1.msra.mxu0 %v70_v52  ;;  %1087 = vmatpush1.msra.mxu1 %v104_v53  ;;  %v3832_v52 = vld [vmem:[%s6275_s0 + $0x508] sm:$0xff]  ;;  %v3866_v53 = vld [vmem:[%s6275_s0 + $0x618] sm:$0xff] }
  0x44   :  { %1019 = vmatprep.subr.mxu0 %v39_v54  ;;  %1088 = vmatprep.subr.mxu1 %v73_v55  ;;  %v3831_v54 = vld [vmem:[%s6275_s0 + $0x500] sm:$0xff]  ;;  %v3865_v55 = vld [vmem:[%s6275_s0 + $0x610] sm:$0xff] }
  0x45   :  { %1020 = vmatpush1.msra.mxu0 %v38_v56  ;;  %1053 = vmatprep.mubr.f32.mxu0 %v4055_v3  ;;  %v3834_v56 = vld [vmem:[%s6275_s0 + $0x518] sm:$0xff] }
  0x46   :  { %1089 = vmatpush1.msra.mxu1 %v72_v57  ;;  %3815 = vmatmul.mubr.msk.f32.vlgmr.msra.gmra.mxu0 %vm178_vm1, %v4149_v20  ;;  %v3964_v57 = vld [vmem:[%s6275_s0 + $0x928] sm:$0xf] }
  0x47   :  { %1090 = vmatprep.subr.mxu1 %v41_v58  ;;  %3819 = vmatprep.subr.msk.mxu0 %vm182_vm0, %v171_v59  ;;  %v3833_v58 = vld [vmem:[%s6275_s0 + $0x510] sm:$0xff]  ;;  %v3963_v59 = vld [vmem:[%s6275_s0 + $0x920] sm:$0xf] }
  0x48   :  { %1091 = vmatpush1.msra.mxu1 %v40_v60  ;;  %3820 = vmatpush1.msk.msra.mxu0 %vm182_vm0, %v170_v61  ;;  %v3932_v60 = vld [vmem:[%s6275_s0 + $0x828] sm:$0xff]  ;;  %v3966_v61 = vld [vmem:[%s6275_s0 + $0x938] sm:$0xf] }
  0x49   :  { %1124 = vmatprep.mubr.f32.mxu1 %v4055_v3  ;;  %1155 = vmatprep.subr.mxu0 %v139_v62  ;;  %v3931_v62 = vld [vmem:[%s6275_s0 + $0x820] sm:$0xff] }
  0x4a   :  { %3822 = vmatprep.subr.msk.mxu1 %vm182_vm0, %v173_v63  ;;  %3818 = vmatmul.mubr.msk.f32.vlgmr.msra.gmra.mxu1 %vm178_vm1, %v4149_v20  ;;  %v3965_v63 = vld [vmem:[%s6275_s0 + $0x930] sm:$0xf] }
  0x4b   :  { %1156 = vmatpush1.msra.mxu0 %v138_v0  ;;  %3823 = vmatpush1.msk.msra.mxu1 %vm182_vm0, %v172_v1  ;;  %v3900_v0 = vld [vmem:[%s6275_s0 + $0x728] sm:$0xff]  ;;  %v3934_v1 = vld [vmem:[%s6275_s0 + $0x838] sm:$0xff] }
  0x4c   :  { %1157 = vmatprep.subr.mxu0 %v107_v2  ;;  %1226 = vmatprep.subr.mxu1 %v141_v4  ;;  %v3899_v2 = vld [vmem:[%s6275_s0 + $0x720] sm:$0xff]  ;;  %v3933_v4 = vld [vmem:[%s6275_s0 + $0x830] sm:$0xff] }
  0x4d   :  { %1158 = vmatpush1.msra.mxu0 %v106_v5  ;;  %1227 = vmatpush1.msra.mxu1 %v140_v6  ;;  %v3868_v5 = vld [vmem:[%s6275_s0 + $0x628] sm:$0xff]  ;;  %v3902_v6 = vld [vmem:[%s6275_s0 + $0x738] sm:$0xff] }
  0x4e   :  { %1159 = vmatprep.subr.mxu0 %v75_v7  ;;  %1228 = vmatprep.subr.mxu1 %v109_v8  ;;  %v3867_v7 = vld [vmem:[%s6275_s0 + $0x620] sm:$0xff]  ;;  %v3901_v8 = vld [vmem:[%s6275_s0 + $0x730] sm:$0xff] }
  0x4f   :  { %1160 = vmatpush1.msra.mxu0 %v74_v9  ;;  %1229 = vmatpush1.msra.mxu1 %v108_v10  ;;  %v3836_v9 = vld [vmem:[%s6275_s0 + $0x528] sm:$0xff]  ;;  %v3870_v10 = vld [vmem:[%s6275_s0 + $0x638] sm:$0xff] }
  0x50   :  { %1161 = vmatprep.subr.mxu0 %v43_v11  ;;  %1230 = vmatprep.subr.mxu1 %v77_v12  ;;  %v3835_v11 = vld [vmem:[%s6275_s0 + $0x520] sm:$0xff]  ;;  %v3869_v12 = vld [vmem:[%s6275_s0 + $0x630] sm:$0xff] }
  0x51   :  { %1162 = vmatpush1.msra.mxu0 %v42_v13  ;;  %1195 = vmatprep.mubr.f32.mxu0 %v4055_v3  ;;  %v3838_v13 = vld [vmem:[%s6275_s0 + $0x538] sm:$0xff] }
  0x52   :  { %1231 = vmatpush1.msra.mxu1 %v76_v14  ;;  %3821 = vmatmul.mubr.msk.f32.vlgmr.msra.gmra.mxu0 %vm178_vm1, %v4149_v20  ;;  %v3968_v14 = vld [vmem:[%s6275_s0 + $0x948] sm:$0xf] }
  0x53   :  { %1232 = vmatprep.subr.mxu1 %v45_v15  ;;  %3825 = vmatprep.subr.msk.mxu0 %vm182_vm0, %v175_v16  ;;  %v3837_v15 = vld [vmem:[%s6275_s0 + $0x530] sm:$0xff]  ;;  %v3967_v16 = vld [vmem:[%s6275_s0 + $0x940] sm:$0xf] }
  0x54   :  { %1233 = vmatpush1.msra.mxu1 %v44_v17  ;;  %3826 = vmatpush1.msk.msra.mxu0 %vm182_vm0, %v174_v18  ;;  %v3936_v17 = vld [vmem:[%s6275_s0 + $0x848] sm:$0xff]  ;;  %v3970_v18 = vld [vmem:[%s6275_s0 + $0x958] sm:$0xf] }
  0x55   :  { %1266 = vmatprep.mubr.f32.mxu1 %v4055_v3  ;;  %1297 = vmatprep.subr.mxu0 %v143_v19  ;;  %v3935_v19 = vld [vmem:[%s6275_s0 + $0x840] sm:$0xff] }
  0x56   :  { %3828 = vmatprep.subr.msk.mxu1 %vm182_vm0, %v177_v21  ;;  %3824 = vmatmul.mubr.msk.f32.vlgmr.msra.gmra.mxu1 %vm178_vm1, %v4149_v20  ;;  %v3969_v21 = vld [vmem:[%s6275_s0 + $0x950] sm:$0xf] }
  0x57   :  { %1298 = vmatpush1.msra.mxu0 %v142_v22  ;;  %3829 = vmatpush1.msk.msra.mxu1 %vm182_vm0, %v176_v23  ;;  %v3904_v22 = vld [vmem:[%s6275_s0 + $0x748] sm:$0xff]  ;;  %v3938_v23 = vld [vmem:[%s6275_s0 + $0x858] sm:$0xff] }
  0x58   :  { %1299 = vmatprep.subr.mxu0 %v111_v24  ;;  %1368 = vmatprep.subr.mxu1 %v145_v25  ;;  %v3903_v24 = vld [vmem:[%s6275_s0 + $0x740] sm:$0xff]  ;;  %v3937_v25 = vld [vmem:[%s6275_s0 + $0x850] sm:$0xff] }
  0x59   :  { %1300 = vmatpush1.msra.mxu0 %v110_v26  ;;  %1369 = vmatpush1.msra.mxu1 %v144_v27  ;;  %v3872_v26 = vld [vmem:[%s6275_s0 + $0x648] sm:$0xff]  ;;  %v3906_v27 = vld [vmem:[%s6275_s0 + $0x758] sm:$0xff] }
  0x5a   :  { %1301 = vmatprep.subr.mxu0 %v79_v28  ;;  %1370 = vmatprep.subr.mxu1 %v113_v29  ;;  %v3871_v28 = vld [vmem:[%s6275_s0 + $0x640] sm:$0xff]  ;;  %v3905_v29 = vld [vmem:[%s6275_s0 + $0x750] sm:$0xff] }
  0x5b   :  { %1302 = vmatpush1.msra.mxu0 %v78_v30  ;;  %1371 = vmatpush1.msra.mxu1 %v112_v31  ;;  %v3840_v30 = vld [vmem:[%s6275_s0 + $0x548] sm:$0xff]  ;;  %v3874_v31 = vld [vmem:[%s6275_s0 + $0x658] sm:$0xff] }
  0x5c   :  { %1303 = vmatprep.subr.mxu0 %v47_v32  ;;  %1372 = vmatprep.subr.mxu1 %v81_v33  ;;  %v3839_v32 = vld [vmem:[%s6275_s0 + $0x540] sm:$0xff]  ;;  %v3873_v33 = vld [vmem:[%s6275_s0 + $0x650] sm:$0xff] }
  0x5d   :  { %1304 = vmatpush1.msra.mxu0 %v46_v34  ;;  %1337 = vmatprep.mubr.f32.mxu0 %v4055_v3  ;;  %v3842_v34 = vld [vmem:[%s6275_s0 + $0x558] sm:$0xff] }
  0x5e   :  { %1373 = vmatpush1.msra.mxu1 %v80_v35  ;;  %3827 = vmatmul.mubr.msk.f32.vlgmr.msra.gmra.mxu0 %vm178_vm1, %v4149_v20  ;;  %v3972_v35 = vld [vmem:[%s6275_s0 + $0x968] sm:$0xf] }
  0x5f   :  { %1374 = vmatprep.subr.mxu1 %v49_v36  ;;  %3991 = vmatprep.subr.msk.mxu0 %vm182_vm0, %v3960_v37  ;;  %v3841_v36 = vld [vmem:[%s6275_s0 + $0x550] sm:$0xff]  ;;  %v3971_v37 = vld [vmem:[%s6275_s0 + $0x960] sm:$0xf] }
  0x60   :  { %1375 = vmatpush1.msra.mxu1 %v48_v38  ;;  %3992 = vmatpush1.msk.msra.mxu0 %vm182_vm0, %v3959_v39  ;;  %v3940_v38 = vld [vmem:[%s6275_s0 + $0x868] sm:$0xff]  ;;  %v3974_v39 = vld [vmem:[%s6275_s0 + $0x978] sm:$0xf] }
  0x61   :  { %1408 = vmatprep.mubr.f32.mxu1 %v4055_v3  ;;  %1696 = vmatprep.subr.mxu0 %v3928_v40  ;;  %v3939_v40 = vld [vmem:[%s6275_s0 + $0x860] sm:$0xff] }
  0x62   :  { %3994 = vmatprep.subr.msk.mxu1 %vm182_vm0, %v3962_v41  ;;  %3830 = vmatmul.mubr.msk.f32.vlgmr.msra.gmra.mxu1 %vm178_vm1, %v4149_v20  ;;  %v3973_v41 = vld [vmem:[%s6275_s0 + $0x970] sm:$0xf] }
  0x63   :  { %1697 = vmatpush1.msra.mxu0 %v3927_v42  ;;  %3995 = vmatpush1.msk.msra.mxu1 %vm182_vm0, %v3961_v43  ;;  %v3908_v42 = vld [vmem:[%s6275_s0 + $0x768] sm:$0xff]  ;;  %v3942_v43 = vld [vmem:[%s6275_s0 + $0x878] sm:$0xff] }
  0x64   :  { %1698 = vmatprep.subr.mxu0 %v3896_v44  ;;  %1767 = vmatprep.subr.mxu1 %v3930_v45  ;;  %v3907_v44 = vld [vmem:[%s6275_s0 + $0x760] sm:$0xff]  ;;  %v3941_v45 = vld [vmem:[%s6275_s0 + $0x870] sm:$0xff] }
  0x65   :  { %1699 = vmatpush1.msra.mxu0 %v3895_v46  ;;  %1768 = vmatpush1.msra.mxu1 %v3929_v47  ;;  %v3876_v46 = vld [vmem:[%s6275_s0 + $0x668] sm:$0xff]  ;;  %v3910_v47 = vld [vmem:[%s6275_s0 + $0x778] sm:$0xff] }
  0x66   :  { %1700 = vmatprep.subr.mxu0 %v3864_v48  ;;  %1769 = vmatprep.subr.mxu1 %v3898_v49  ;;  %v3875_v48 = vld [vmem:[%s6275_s0 + $0x660] sm:$0xff]  ;;  %v3909_v49 = vld [vmem:[%s6275_s0 + $0x770] sm:$0xff] }
  0x67   :  { %1701 = vmatpush1.msra.mxu0 %v3863_v50  ;;  %1770 = vmatpush1.msra.mxu1 %v3897_v51  ;;  %v3844_v50 = vld [vmem:[%s6275_s0 + $0x568] sm:$0xff]  ;;  %v3878_v51 = vld [vmem:[%s6275_s0 + $0x678] sm:$0xff] }
  0x68   :  { %1702 = vmatprep.subr.mxu0 %v3832_v52  ;;  %1771 = vmatprep.subr.mxu1 %v3866_v53  ;;  %v3843_v52 = vld [vmem:[%s6275_s0 + $0x560] sm:$0xff]  ;;  %v3877_v53 = vld [vmem:[%s6275_s0 + $0x670] sm:$0xff] }
  0x69   :  { %1703 = vmatpush1.msra.mxu0 %v3831_v54  ;;  %1736 = vmatprep.mubr.f32.mxu0 %v4055_v3  ;;  %v3846_v54 = vld [vmem:[%s6275_s0 + $0x578] sm:$0xff] }
  0x6a   :  { %1772 = vmatpush1.msra.mxu1 %v3865_v55  ;;  %3993 = vmatmul.mubr.msk.f32.vlgmr.msra.gmra.mxu0 %vm178_vm1, %v4149_v20  ;;  %v3976_v55 = vld [vmem:[%s6275_s0 + $0x988] sm:$0xf] }
  0x6b   :  { %1773 = vmatprep.subr.mxu1 %v3834_v56  ;;  %3997 = vmatprep.subr.msk.mxu0 %vm182_vm0, %v3964_v57  ;;  %v3845_v56 = vld [vmem:[%s6275_s0 + $0x570] sm:$0xff]  ;;  %v3975_v57 = vld [vmem:[%s6275_s0 + $0x980] sm:$0xf] }
  0x6c   :  { %1774 = vmatpush1.msra.mxu1 %v3833_v58  ;;  %3998 = vmatpush1.msk.msra.mxu0 %vm182_vm0, %v3963_v59  ;;  %v3944_v58 = vld [vmem:[%s6275_s0 + $0x888] sm:$0xff]  ;;  %v3978_v59 = vld [vmem:[%s6275_s0 + $0x998] sm:$0xf] }
  0x6d   :  { %1807 = vmatprep.mubr.f32.mxu1 %v4055_v3  ;;  %1838 = vmatprep.subr.mxu0 %v3932_v60  ;;  %v3943_v60 = vld [vmem:[%s6275_s0 + $0x880] sm:$0xff] }
  0x6e   :  { %4000 = vmatprep.subr.msk.mxu1 %vm182_vm0, %v3966_v61  ;;  %3996 = vmatmul.mubr.msk.f32.vlgmr.msra.gmra.mxu1 %vm178_vm1, %v4149_v20  ;;  %v3977_v61 = vld [vmem:[%s6275_s0 + $0x990] sm:$0xf] }
  0x6f   :  { %1839 = vmatpush1.msra.mxu0 %v3931_v62  ;;  %4001 = vmatpush1.msk.msra.mxu1 %vm182_vm0, %v3965_v63  ;;  %v3912_v62 = vld [vmem:[%s6275_s0 + $0x788] sm:$0xff]  ;;  %v3946_v63 = vld [vmem:[%s6275_s0 + $0x898] sm:$0xff] }
  0x70   :  { %1840 = vmatprep.subr.mxu0 %v3900_v0  ;;  %1909 = vmatprep.subr.mxu1 %v3934_v1  ;;  %v3911_v0 = vld [vmem:[%s6275_s0 + $0x780] sm:$0xff]  ;;  %v3945_v1 = vld [vmem:[%s6275_s0 + $0x890] sm:$0xff] }
  0x71   :  { %1841 = vmatpush1.msra.mxu0 %v3899_v2  ;;  %1910 = vmatpush1.msra.mxu1 %v3933_v4  ;;  %v3880_v2 = vld [vmem:[%s6275_s0 + $0x688] sm:$0xff]  ;;  %v3914_v4 = vld [vmem:[%s6275_s0 + $0x798] sm:$0xff] }
  0x72   :  { %1842 = vmatprep.subr.mxu0 %v3868_v5  ;;  %1911 = vmatprep.subr.mxu1 %v3902_v6  ;;  %v3913_v5 = vld [vmem:[%s6275_s0 + $0x790] sm:$0xff]  ;;  %v3848_v6 = vld [vmem:[%s6275_s0 + $0x588] sm:$0xff] }
  0x73   :  { %1843 = vmatpush1.msra.mxu0 %v3867_v7  ;;  %1912 = vmatpush1.msra.mxu1 %v3901_v8  ;;  %v3882_v7 = vld [vmem:[%s6275_s0 + $0x698] sm:$0xff]  ;;  %v3847_v8 = vld [vmem:[%s6275_s0 + $0x580] sm:$0xff] }
  0x74   :  { %1844 = vmatprep.subr.mxu0 %v3836_v9  ;;  %1913 = vmatprep.subr.mxu1 %v3870_v10  ;;  %v3881_v9 = vld [vmem:[%s6275_s0 + $0x690] sm:$0xff]  ;;  %v3850_v10 = vld [vmem:[%s6275_s0 + $0x598] sm:$0xff] }
  0x75   :  { %1845 = vmatpush1.msra.mxu0 %v3835_v11  ;;  %1878 = vmatprep.mubr.f32.mxu0 %v4055_v3  ;;  %v3980_v11 = vld [vmem:[%s6275_s0 + $0x9a8] sm:$0xf] }
  0x76   :  { %1914 = vmatpush1.msra.mxu1 %v3869_v12  ;;  %3999 = vmatmul.mubr.msk.f32.vlgmr.msra.gmra.mxu0 %vm178_vm1, %v4149_v20  ;;  %v3849_v12 = vld [vmem:[%s6275_s0 + $0x590] sm:$0xff] }
  0x77   :  { %1915 = vmatprep.subr.mxu1 %v3838_v13  ;;  %4003 = vmatprep.subr.msk.mxu0 %vm182_vm0, %v3968_v14  ;;  %v3979_v13 = vld [vmem:[%s6275_s0 + $0x9a0] sm:$0xf] }
  0x78   :  { %1916 = vmatpush1.msra.mxu1 %v3837_v15  ;;  %4004 = vmatpush1.msk.msra.mxu0 %vm182_vm0, %v3967_v16  ;;  %v5002_v14 = vld [vmem:[%s6276_s1] sm:$0x3]  ;;  %v3948_v15 = vld [vmem:[%s6275_s0 + $0x8a8] sm:$0xff]  ;;  %v3982_v16 = vld [vmem:[%s6275_s0 + $0x9b8] sm:$0xf] }
  0x79   :  { %1949 = vmatprep.mubr.f32.mxu1 %v4055_v3  ;;  %1980 = vmatprep.subr.mxu0 %v3936_v17  ;;  %v3947_v17 = vld [vmem:[%s6275_s0 + $0x8a0] sm:$0xff] }
  0x7a   :  { %4006 = vmatprep.subr.msk.mxu1 %vm182_vm0, %v3970_v18  ;;  %4002 = vmatmul.mubr.msk.f32.vlgmr.msra.gmra.mxu1 %vm178_vm1, %v4149_v20  ;;  %v3981_v18 = vld [vmem:[%s6275_s0 + $0x9b0] sm:$0xf] }
  0x7b   :  { %1981 = vmatpush1.msra.mxu0 %v3935_v19  ;;  %4007 = vmatpush1.msk.msra.mxu1 %vm182_vm0, %v3969_v21  ;;  %v3916_v19 = vld [vmem:[%s6275_s0 + $0x7a8] sm:$0xff]  ;;  %v3950_v21 = vld [vmem:[%s6275_s0 + $0x8b8] sm:$0xff] }
  0x7c   :  { %1982 = vmatprep.subr.mxu0 %v3904_v22  ;;  %2051 = vmatprep.subr.mxu1 %v3938_v23  ;;  %v3915_v22 = vld [vmem:[%s6275_s0 + $0x7a0] sm:$0xff]  ;;  %v3949_v23 = vld [vmem:[%s6275_s0 + $0x8b0] sm:$0xff] }
  0x7d   :  { %1983 = vmatpush1.msra.mxu0 %v3903_v24  ;;  %2052 = vmatpush1.msra.mxu1 %v3937_v25  ;;  %v3884_v24 = vld [vmem:[%s6275_s0 + $0x6a8] sm:$0xff]  ;;  %v3918_v25 = vld [vmem:[%s6275_s0 + $0x7b8] sm:$0xff] }
  0x7e   :  { %1984 = vmatprep.subr.mxu0 %v3872_v26  ;;  %2053 = vmatprep.subr.mxu1 %v3906_v27  ;;  %v3883_v26 = vld [vmem:[%s6275_s0 + $0x6a0] sm:$0xff]  ;;  %v3917_v27 = vld [vmem:[%s6275_s0 + $0x7b0] sm:$0xff] }
  0x7f   :  { %1985 = vmatpush1.msra.mxu0 %v3871_v28  ;;  %2054 = vmatpush1.msra.mxu1 %v3905_v29  ;;  %v3852_v28 = vld [vmem:[%s6275_s0 + $0x5a8] sm:$0xff]  ;;  %v3886_v29 = vld [vmem:[%s6275_s0 + $0x6b8] sm:$0xff] }
  0x80   :  { %1986 = vmatprep.subr.mxu0 %v3840_v30  ;;  %2055 = vmatprep.subr.mxu1 %v3874_v31  ;;  %v3851_v30 = vld [vmem:[%s6275_s0 + $0x5a0] sm:$0xff]  ;;  %v3885_v31 = vld [vmem:[%s6275_s0 + $0x6b0] sm:$0xff] }
  0x81   :  { %1987 = vmatpush1.msra.mxu0 %v3839_v32  ;;  %2020 = vmatprep.mubr.f32.mxu0 %v4055_v3  ;;  %v3854_v32 = vld [vmem:[%s6275_s0 + $0x5b8] sm:$0xff] }
  0x82   :  { %2056 = vmatpush1.msra.mxu1 %v3873_v33  ;;  %4005 = vmatmul.mubr.msk.f32.vlgmr.msra.gmra.mxu0 %vm178_vm1, %v4149_v20  ;;  %v3984_v33 = vld [vmem:[%s6275_s0 + $0x9c8] sm:$0xf] }
  0x83   :  { %2057 = vmatprep.subr.mxu1 %v3842_v34  ;;  %4009 = vmatprep.subr.msk.mxu0 %vm182_vm0, %v3972_v35  ;;  %v3853_v34 = vld [vmem:[%s6275_s0 + $0x5b0] sm:$0xff]  ;;  %v3983_v35 = vld [vmem:[%s6275_s0 + $0x9c0] sm:$0xf] }
  0x84   :  { %2058 = vmatpush1.msra.mxu1 %v3841_v36  ;;  %4010 = vmatpush1.msk.msra.mxu0 %vm182_vm0, %v3971_v37  ;;  %v3952_v36 = vld [vmem:[%s6275_s0 + $0x8c8] sm:$0xff]  ;;  %v3986_v37 = vld [vmem:[%s6275_s0 + $0x9d8] sm:$0xf] }
  0x85   :  { %2091 = vmatprep.mubr.f32.mxu1 %v4055_v3  ;;  %2122 = vmatprep.subr.mxu0 %v3940_v38  ;;  %v3951_v38 = vld [vmem:[%s6275_s0 + $0x8c0] sm:$0xff] }
  0x86   :  { %4012 = vmatprep.subr.msk.mxu1 %vm182_vm0, %v3974_v39  ;;  %4008 = vmatmul.mubr.msk.f32.vlgmr.msra.gmra.mxu1 %vm178_vm1, %v4149_v20  ;;  %v3985_v39 = vld [vmem:[%s6275_s0 + $0x9d0] sm:$0xf] }
  0x87   :  { %2123 = vmatpush1.msra.mxu0 %v3939_v40  ;;  %4013 = vmatpush1.msk.msra.mxu1 %vm182_vm0, %v3973_v41  ;;  %v3920_v40 = vld [vmem:[%s6275_s0 + $0x7c8] sm:$0xff]  ;;  %v3954_v41 = vld [vmem:[%s6275_s0 + $0x8d8] sm:$0xff] }
  0x88   :  { %2124 = vmatprep.subr.mxu0 %v3908_v42  ;;  %2193 = vmatprep.subr.mxu1 %v3942_v43  ;;  %v3919_v42 = vld [vmem:[%s6275_s0 + $0x7c0] sm:$0xff]  ;;  %v3953_v43 = vld [vmem:[%s6275_s0 + $0x8d0] sm:$0xff] }
  0x89   :  { %2125 = vmatpush1.msra.mxu0 %v3907_v44  ;;  %2194 = vmatpush1.msra.mxu1 %v3941_v45  ;;  %v3888_v44 = vld [vmem:[%s6275_s0 + $0x6c8] sm:$0xff]  ;;  %v3922_v45 = vld [vmem:[%s6275_s0 + $0x7d8] sm:$0xff] }
  0x8a   :  { %2126 = vmatprep.subr.mxu0 %v3876_v46  ;;  %2195 = vmatprep.subr.mxu1 %v3910_v47  ;;  %v3887_v46 = vld [vmem:[%s6275_s0 + $0x6c0] sm:$0xff]  ;;  %v3921_v47 = vld [vmem:[%s6275_s0 + $0x7d0] sm:$0xff] }
  0x8b   :  { %2127 = vmatpush1.msra.mxu0 %v3875_v48  ;;  %2196 = vmatpush1.msra.mxu1 %v3909_v49  ;;  %v3856_v48 = vld [vmem:[%s6275_s0 + $0x5c8] sm:$0xff]  ;;  %v3890_v49 = vld [vmem:[%s6275_s0 + $0x6d8] sm:$0xff] }
  0x8c   :  { %2128 = vmatprep.subr.mxu0 %v3844_v50  ;;  %2197 = vmatprep.subr.mxu1 %v3878_v51  ;;  %v3855_v50 = vld [vmem:[%s6275_s0 + $0x5c0] sm:$0xff]  ;;  %v3889_v51 = vld [vmem:[%s6275_s0 + $0x6d0] sm:$0xff] }
  0x8d   :  { %2129 = vmatpush1.msra.mxu0 %v3843_v52  ;;  %2162 = vmatprep.mubr.f32.mxu0 %v4055_v3  ;;  %v3858_v52 = vld [vmem:[%s6275_s0 + $0x5d8] sm:$0xff] }
  0x8e   :  { %2198 = vmatpush1.msra.mxu1 %v3877_v53  ;;  %4011 = vmatmul.mubr.msk.f32.vlgmr.msra.gmra.mxu0 %vm178_vm1, %v4149_v20  ;;  %v3988_v53 = vld [vmem:[%s6275_s0 + $0x9e8] sm:$0xf] }
  0x8f   :  { %2199 = vmatprep.subr.mxu1 %v3846_v54  ;;  %4015 = vmatprep.subr.msk.mxu0 %vm182_vm0, %v3976_v55  ;;  %v3857_v54 = vld [vmem:[%s6275_s0 + $0x5d0] sm:$0xff]  ;;  %v3987_v55 = vld [vmem:[%s6275_s0 + $0x9e0] sm:$0xf] }
  0x90   :  { %2200 = vmatpush1.msra.mxu1 %v3845_v56  ;;  %4016 = vmatpush1.msk.msra.mxu0 %vm182_vm0, %v3975_v57  ;;  %v3956_v56 = vld [vmem:[%s6275_s0 + $0x8e8] sm:$0xff]  ;;  %v3990_v57 = vld [vmem:[%s6275_s0 + $0x9f8] sm:$0xf] }
  0x91   :  { %2233 = vmatprep.mubr.f32.mxu1 %v4055_v3  ;;  %2264 = vmatprep.subr.mxu0 %v3944_v58  ;;  %v3955_v58 = vld [vmem:[%s6275_s0 + $0x8e0] sm:$0xff] }
  0x92   :  { %4018 = vmatprep.subr.msk.mxu1 %vm182_vm0, %v3978_v59  ;;  %4014 = vmatmul.mubr.msk.f32.vlgmr.msra.gmra.mxu1 %vm178_vm1, %v4149_v20  ;;  %v3879_v20 = vld [vmem:[%s6275_s0 + $0x680] sm:$0xff]  ;;  %v3989_v59 = vld [vmem:[%s6275_s0 + $0x9f0] sm:$0xf] }
  0x93   :  { %2265 = vmatpush1.msra.mxu0 %v3943_v60  ;;  %4019 = vmatpush1.msk.msra.mxu1 %vm182_vm0, %v3977_v61  ;;  %v3924_v60 = vld [vmem:[%s6275_s0 + $0x7e8] sm:$0xff]  ;;  %v3958_v61 = vld [vmem:[%s6275_s0 + $0x8f8] sm:$0xff] }
  0x94   :  { %2266 = vmatprep.subr.mxu0 %v3912_v62  ;;  %2335 = vmatprep.subr.mxu1 %v3946_v63  ;;  %v3923_v62 = vld [vmem:[%s6275_s0 + $0x7e0] sm:$0xff]  ;;  %v3957_v63 = vld [vmem:[%s6275_s0 + $0x8f0] sm:$0xff] }
  0x95   :  { %2267 = vmatpush1.msra.mxu0 %v3911_v0  ;;  %2336 = vmatpush1.msra.mxu1 %v3945_v1  ;;  %v3892_v0 = vld [vmem:[%s6275_s0 + $0x6e8] sm:$0xff]  ;;  %v3926_v1 = vld [vmem:[%s6275_s0 + $0x7f8] sm:$0xff] }
  0x96   :  { %2268 = vmatprep.subr.mxu0 %v3880_v2  ;;  %2337 = vmatprep.subr.mxu1 %v3914_v4  ;;  %v3891_v2 = vld [vmem:[%s6275_s0 + $0x6e0] sm:$0xff]  ;;  %v3925_v4 = vld [vmem:[%s6275_s0 + $0x7f0] sm:$0xff] }
  0x97   :  { %2269 = vmatpush1.msra.mxu0 %v3879_v20  ;;  %2338 = vmatpush1.msra.mxu1 %v3913_v5  ;;  %v3860_v20 = vld [vmem:[%s6275_s0 + $0x5e8] sm:$0xff]  ;;  %v3894_v5 = vld [vmem:[%s6275_s0 + $0x6f8] sm:$0xff] }
  0x98   :  { %2270 = vmatprep.subr.mxu0 %v3848_v6  ;;  %2339 = vmatprep.subr.mxu1 %v3882_v7  ;;  %v3859_v6 = vld [vmem:[%s6275_s0 + $0x5e0] sm:$0xff]  ;;  %v3893_v7 = vld [vmem:[%s6275_s0 + $0x6f0] sm:$0xff] }
  0x99   :  { %2271 = vmatpush1.msra.mxu0 %v3847_v8  ;;  %2304 = vmatprep.mubr.f32.mxu0 %v4055_v3  ;;  %v3862_v8 = vld [vmem:[%s6275_s0 + $0x5f8] sm:$0xff] }
  0x9a   :  { %2340 = vmatpush1.msra.mxu1 %v3881_v9  ;;  %4017 = vmatmul.mubr.msk.f32.vlgmr.msra.gmra.mxu0 %vm178_vm1, %v5002_v14  ;;  %v3861_v9 = vld [vmem:[%s6275_s0 + $0x5f0] sm:$0xff] }
  0x9b   :  { %2341 = vmatprep.subr.mxu1 %v3850_v10  ;;  %4021 = vmatprep.subr.msk.mxu0 %vm182_vm0, %v3980_v11 }
  0x9c   :  { %2342 = vmatpush1.msra.mxu1 %v3849_v12  ;;  %4022 = vmatpush1.msk.msra.mxu0 %vm182_vm0, %v3979_v13 }
  0x9d   :  { %2375 = vmatprep.mubr.f32.mxu1 %v4055_v3  ;;  %2406 = vmatprep.subr.mxu0 %v3948_v15 }
  0x9e   :  { %4024 = vmatprep.subr.msk.mxu1 %vm182_vm0, %v3982_v16  ;;  %4020 = vmatmul.mubr.msk.f32.vlgmr.msra.gmra.mxu1 %vm178_vm1, %v5002_v14 }
  0x9f   :  { %2407 = vmatpush1.msra.mxu0 %v3947_v17  ;;  %4025 = vmatpush1.msk.msra.mxu1 %vm182_vm0, %v3981_v18 }
  0xa0   :  { %2408 = vmatprep.subr.mxu0 %v3916_v19  ;;  %2477 = vmatprep.subr.mxu1 %v3950_v21 }
  0xa1   :  { %2409 = vmatpush1.msra.mxu0 %v3915_v22  ;;  %2478 = vmatpush1.msra.mxu1 %v3949_v23 }
  0xa2   :  { %2410 = vmatprep.subr.mxu0 %v3884_v24  ;;  %2479 = vmatprep.subr.mxu1 %v3918_v25 }
  0xa3   :  { %2411 = vmatpush1.msra.mxu0 %v3883_v26  ;;  %2480 = vmatpush1.msra.mxu1 %v3917_v27 }
  0xa4   :  { %2412 = vmatprep.subr.mxu0 %v3852_v28  ;;  %2481 = vmatprep.subr.mxu1 %v3886_v29 }
  0xa5   :  { %2413 = vmatpush1.msra.mxu0 %v3851_v30  ;;  %2446 = vmatprep.mubr.f32.mxu0 %v4055_v3 }
  0xa6   :  { %2482 = vmatpush1.msra.mxu1 %v3885_v31  ;;  %4023 = vmatmul.mubr.msk.f32.vlgmr.msra.gmra.mxu0 %vm178_vm1, %v5002_v14 }
  0xa7   :  { %2483 = vmatprep.subr.mxu1 %v3854_v32  ;;  %4027 = vmatprep.subr.msk.mxu0 %vm182_vm0, %v3984_v33 }
  0xa8   :  { %2484 = vmatpush1.msra.mxu1 %v3853_v34  ;;  %4028 = vmatpush1.msk.msra.mxu0 %vm182_vm0, %v3983_v35 }
  0xa9   :  { %2517 = vmatprep.mubr.f32.mxu1 %v4055_v3  ;;  %2548 = vmatprep.subr.mxu0 %v3952_v36 }
  0xaa   :  { %4030 = vmatprep.subr.msk.mxu1 %vm182_vm0, %v3986_v37  ;;  %4026 = vmatmul.mubr.msk.f32.vlgmr.msra.gmra.mxu1 %vm178_vm1, %v5002_v14 }
  0xab   :  { %2549 = vmatpush1.msra.mxu0 %v3951_v38  ;;  %4031 = vmatpush1.msk.msra.mxu1 %vm182_vm0, %v3985_v39 }
  0xac   :  { %2550 = vmatprep.subr.mxu0 %v3920_v40  ;;  %2619 = vmatprep.subr.mxu1 %v3954_v41 }
  0xad   :  { %2551 = vmatpush1.msra.mxu0 %v3919_v42  ;;  %2620 = vmatpush1.msra.mxu1 %v3953_v43 }
  0xae   :  { %2552 = vmatprep.subr.mxu0 %v3888_v44  ;;  %2621 = vmatprep.subr.mxu1 %v3922_v45 }
  0xaf   :  { %2553 = vmatpush1.msra.mxu0 %v3887_v46  ;;  %2622 = vmatpush1.msra.mxu1 %v3921_v47 }
  0xb0   :  { %2554 = vmatprep.subr.mxu0 %v3856_v48  ;;  %2623 = vmatprep.subr.mxu1 %v3890_v49 }
  0xb1   :  { %2555 = vmatpush1.msra.mxu0 %v3855_v50  ;;  %2588 = vmatprep.mubr.f32.mxu0 %v4055_v3 }
  0xb2   :  { %2624 = vmatpush1.msra.mxu1 %v3889_v51  ;;  %4029 = vmatmul.mubr.msk.f32.vlgmr.msra.gmra.mxu0 %vm178_vm1, %v5002_v14 }
  0xb3   :  { %2625 = vmatprep.subr.mxu1 %v3858_v52  ;;  %4033 = vmatprep.subr.msk.mxu0 %vm182_vm0, %v3988_v53 }
  0xb4   :  { %2626 = vmatpush1.msra.mxu1 %v3857_v54  ;;  %4034 = vmatpush1.msk.msra.mxu0 %vm182_vm0, %v3987_v55 }
  0xb5   :  { %2659 = vmatprep.mubr.f32.mxu1 %v4055_v3  ;;  %2690 = vmatprep.subr.mxu0 %v3956_v56 }
  0xb6   :  { %4036 = vmatprep.subr.msk.mxu1 %vm182_vm0, %v3990_v57  ;;  %4032 = vmatmul.mubr.msk.f32.vlgmr.msra.gmra.mxu1 %vm178_vm1, %v5002_v14 }
  0xb7   :  { %2691 = vmatpush1.msra.mxu0 %v3955_v58  ;;  %4037 = vmatpush1.msk.msra.mxu1 %vm182_vm0, %v3989_v59 }
  0xb8   :  { %2692 = vmatprep.subr.mxu0 %v3924_v60  ;;  %2761 = vmatprep.subr.mxu1 %v3958_v61 }
  0xb9   :  { %2693 = vmatpush1.msra.mxu0 %v3923_v62  ;;  %2762 = vmatpush1.msra.mxu1 %v3957_v63 }
  0xba   :  { %2694 = vmatprep.subr.mxu0 %v3892_v0  ;;  %2763 = vmatprep.subr.mxu1 %v3926_v1 }
  0xbb   :  { %2695 = vmatpush1.msra.mxu0 %v3891_v2  ;;  %2764 = vmatpush1.msra.mxu1 %v3925_v4 }
  0xbc   :  { %2696 = vmatprep.subr.mxu0 %v3860_v20  ;;  %2765 = vmatprep.subr.mxu1 %v3894_v5 }
  0xbd   :  { %2697 = vmatpush1.msra.mxu0 %v3859_v6  ;;  %2730 = vmatprep.mubr.f32.mxu0 %v4055_v3 }
  0xbe   :  { %2766 = vmatpush1.msra.mxu1 %v3893_v7  ;;  %4035 = vmatmul.mubr.msk.f32.vlgmr.msra.gmra.mxu0 %vm178_vm1, %v5002_v14 }
  0xbf   :  { %2767 = vmatprep.subr.mxu1 %v3862_v8  ;;  %2801 = vmatprep.mubr.f32.mxu1 %v4055_v3 }
  0xc0   :  { %2768 = vmatpush1.msra.mxu1 %v3861_v9 }
  0xc1   :  { %4038 = vmatmul.mubr.msk.f32.vlgmr.msra.gmra.mxu1 %vm178_vm1, %v5002_v14 }
  0xcc   :  { %v5213_v10 = vpop.f32.mrf.mxu0 }
  0xcd   :  { %6324 = vst [vmem:[#allocation2_spill] sm:$0xff] %v5213_v10  ;;  %v2809_v11 = vsel %vm2808_vm2, %v5213_v10, 0.0 }
  0xce   :  { %v5217_v12 = vpop.f32.mrf.mxu0  ;;  %v5221_v15 = vpop.f32.mrf.mxu1 }
  0xcf   :  { %6325 = vst [vmem:[#allocation3_spill] sm:$0xff] %v5217_v12  ;;  %v2810_v13 = vsel %vm2808_vm2, %v5217_v12, 0.0  ;;  %6326 = vst [vmem:[#allocation4_spill] sm:$0xff] %v5221_v15  ;;  %v2812_v3 = vsel %vm2808_vm2, %v5221_v15, 0.0 }
  0xd0   :  { %v2811_v16 = vadd.f32 %v2810_v13, %v2809_v11  ;;  %v5225_v17 = vpop.f32.mrf.mxu1 }
  0xd1   :  { %6327 = vst [vmem:[#allocation5_spill] sm:$0xff] %v5225_v17  ;;  %v2814_v18 = vsel %vm2808_vm2, %v5225_v17, 0.0 }
  0xd2   :  { %v2813_v14 = vadd.f32 %v2812_v3, %v2811_v16 }
  0xd4   :  { %v2815_v19 = vadd.f32 %v2814_v18, %v2813_v14 }
  0xd6   :  { %v5229_v21 = vpop.f32.mrf.mxu0 }
  0xd7   :  { %6328 = vst [vmem:[#allocation6_spill] sm:$0xff] %v5229_v21  ;;  %v2816_v22 = vsel %vm2808_vm2, %v5229_v21, 0.0 }
  0xd8   :  { %v2817_v23 = vadd.f32 %v2816_v22, %v2815_v19  ;;  %v5233_v24 = vpop.f32.mrf.mxu0 }
  0xd9   :  { %6329 = vst [vmem:[#allocation7_spill] sm:$0xff] %v5233_v24  ;;  %v2818_v25 = vsel %vm2808_vm2, %v5233_v24, 0.0 }
  0xda   :  { %v2819_v26 = vadd.f32 %v2818_v25, %v2817_v23  ;;  %v5237_v27 = vpop.f32.mrf.mxu1 }
  0xdb   :  { %v2820_v28 = vsel %vm2808_vm2, %v5237_v27, 0.0 }
  0xdc   :  { %v5241_v29 = vpop.f32.mrf.mxu1  ;;  %v2821_v30 = vadd.f32 %v2820_v28, %v2819_v26 }
  0xdd   :  { %v2822_v31 = vsel %vm2808_vm2, %v5241_v29, 0.0 }
  0xde   :  { %v2823_v32 = vadd.f32 %v2822_v31, %v2821_v30 }
  0xe2   :  { %v5245_v33 = vpop.f32.mrf.mxu0 }
  0xe3   :  { %v2824_v34 = vsel %vm2808_vm2, %v5245_v33, 0.0 }
  0xe4   :  { %v2825_v35 = vadd.f32 %v2824_v34, %v2823_v32  ;;  %v5249_v36 = vpop.f32.mrf.mxu0 }
  0xe5   :  { %v2826_v37 = vsel %vm2808_vm2, %v5249_v36, 0.0 }
  0xe6   :  { %v2827_v38 = vadd.f32 %v2826_v37, %v2825_v35  ;;  %v5253_v39 = vpop.f32.mrf.mxu1 }
  0xe7   :  { %v2828_v40 = vsel %vm2808_vm2, %v5253_v39, 0.0 }
  0xe8   :  { %v5257_v41 = vpop.f32.mrf.mxu1  ;;  %v2829_v42 = vadd.f32 %v2828_v40, %v2827_v38 }
  0xe9   :  { %v2830_v43 = vsel %vm2808_vm2, %v5257_v41, 0.0 }
  0xea   :  { %v2831_v44 = vadd.f32 %v2830_v43, %v2829_v42 }
  0xee   :  { %v5261_v45 = vpop.f32.mrf.mxu0 }
  0xef   :  { %6330 = vst [vmem:[#allocation8_spill] sm:$0xff] %v5261_v45  ;;  %v2832_v46 = vsel %vm2808_vm2, %v5261_v45, 0.0 }
  0xf0   :  { %v2833_v47 = vadd.f32 %v2832_v46, %v2831_v44  ;;  %v5265_v48 = vpop.f32.mrf.mxu0 }
  0xf1   :  { %v2834_v49 = vsel %vm2808_vm2, %v5265_v48, 0.0 }
  0xf2   :  { %v2835_v50 = vadd.f32 %v2834_v49, %v2833_v47  ;;  %v5269_v51 = vpop.f32.mrf.mxu1 }
  0xf3   :  { %v2836_v52 = vsel %vm2808_vm2, %v5269_v51, 0.0 }
  0xf4   :  { %v5273_v53 = vpop.f32.mrf.mxu1  ;;  %v2837_v54 = vadd.f32 %v2836_v52, %v2835_v50 }
  0xf5   :  { %6331 = vst [vmem:[#allocation9_spill] sm:$0xff] %v5273_v53  ;;  %v2838_v55 = vsel %vm2808_vm2, %v5273_v53, 0.0 }
  0xf6   :  { %v2839_v56 = vadd.f32 %v2838_v55, %v2837_v54 }
  0xfa   :  { %v5277_v57 = vpop.f32.mrf.mxu0 }
  0xfb   :  { %v2840_v58 = vsel %vm2808_vm2, %v5277_v57, 0.0 }
  0xfc   :  { %v2841_v59 = vadd.f32 %v2840_v58, %v2839_v56  ;;  %v5281_v60 = vpop.f32.mrf.mxu0 }
  0xfd   :  { %v2842_v61 = vsel %vm2808_vm2, %v5281_v60, 0.0 }
  0xfe   :  { %v2843_v62 = vadd.f32 %v2842_v61, %v2841_v59  ;;  %v5285_v63 = vpop.f32.mrf.mxu1 }
  0xff   :  { %v2844_v0 = vsel %vm2808_vm2, %v5285_v63, 0.0 }
 0x100   :  { %v5289_v1 = vpop.f32.mrf.mxu1  ;;  %v2845_v2 = vadd.f32 %v2844_v0, %v2843_v62 }
 0x101   :  { %v2846_v4 = vsel %vm2808_vm2, %v5289_v1, 0.0 }
 0x102   :  { %v2847_v20 = vadd.f32 %v2846_v4, %v2845_v2 }
 0x106   :  { %v5293_v5 = vpop.f32.mrf.mxu0 }
 0x107   :  { %v2848_v6 = vsel %vm2808_vm2, %v5293_v5, 0.0 }
 0x108   :  { %v2849_v7 = vadd.f32 %v2848_v6, %v2847_v20  ;;  %v5297_v8 = vpop.f32.mrf.mxu0 }
 0x109   :  { %v2850_v9 = vsel %vm2808_vm2, %v5297_v8, 0.0 }
 0x10a   :  { %v2851_v11 = vadd.f32 %v2850_v9, %v2849_v7  ;;  %v5301_v13 = vpop.f32.mrf.mxu1 }
 0x10b   :  { %v2852_v16 = vsel %vm2808_vm2, %v5301_v13, 0.0 }
 0x10c   :  { %v5305_v3 = vpop.f32.mrf.mxu1  ;;  %v2853_v14 = vadd.f32 %v2852_v16, %v2851_v11 }
 0x10d   :  { %v2854_v18 = vsel %vm2808_vm2, %v5305_v3, 0.0 }
 0x10e   :  { %v2855_v19 = vadd.f32 %v2854_v18, %v2853_v14 }
 0x112   :  { %v5309_v22 = vpop.f32.mrf.mxu0 }
 0x113   :  { %v2856_v23 = vsel %vm2808_vm2, %v5309_v22, 0.0 }
 0x114   :  { %v2857_v25 = vadd.f32 %v2856_v23, %v2855_v19  ;;  %v5313_v26 = vpop.f32.mrf.mxu0 }
 0x115   :  { %v2858_v28 = vsel %vm2808_vm2, %v5313_v26, 0.0 }
 0x116   :  { %v2859_v30 = vadd.f32 %v2858_v28, %v2857_v25  ;;  %v5317_v31 = vpop.f32.mrf.mxu1 }
 0x117   :  { %v2860_v32 = vsel %vm2808_vm2, %v5317_v31, 0.0 }
 0x118   :  { %v5321_v34 = vpop.f32.mrf.mxu1  ;;  %v2861_v35 = vadd.f32 %v2860_v32, %v2859_v30 }
 0x119   :  { %v2862_v37 = vsel %vm2808_vm2, %v5321_v34, 0.0 }
 0x11a   :  { %v2863_v38 = vadd.f32 %v2862_v37, %v2861_v35 }
 0x11e   :  { %v5325_v40 = vpop.f32.mrf.mxu0 }
 0x11f   :  { %v2864_v42 = vsel %vm2808_vm2, %v5325_v40, 0.0 }
 0x120   :  { %v2865_v43 = vadd.f32 %v2864_v42, %v2863_v38  ;;  %v5329_v44 = vpop.f32.mrf.mxu0 }
 0x121   :  { %v2866_v46 = vsel %vm2808_vm2, %v5329_v44, 0.0 }
 0x122   :  { %v5333_v47 = vpop.f32.mrf.mxu1  ;;  %v2867_v49 = vadd.f32 %v2866_v46, %v2865_v43 }
 0x123   :  { %6332 = vst [vmem:[#allocation10_spill] sm:$0xff] %v5333_v47  ;;  %v2868_v50 = vsel %vm2808_vm2, %v5333_v47, 0.0 }
 0x124   :  { %v5337_v52 = vpop.f32.mrf.mxu1  ;;  %v2869_v54 = vadd.f32 %v2868_v50, %v2867_v49 }
 0x125   :  { %6333 = vst [vmem:[#allocation11_spill] sm:$0xff] %v5337_v52  ;;  %v2870_v55 = vsel %vm2808_vm2, %v5337_v52, 0.0 }
 0x126   :  { %v2871_v56 = vadd.f32 %v2870_v55, %v2869_v54 }
 0x128   :  { %2872 = vadd.xlane.f32.xlu0 %v2871_v56 }
 0x12a   :  { %v5341_v58 = vpop.f32.mrf.mxu0 }
 0x12b   :  { %6334 = vst [vmem:[#allocation12_spill] sm:$0xff] %v5341_v58  ;;  %v2874_v59 = vsel %vm2808_vm2, %v5341_v58, 0.0 }
 0x12c   :  { %v5345_v61 = vpop.f32.mrf.mxu0 }
 0x12d   :  { %6335 = vst [vmem:[#allocation13_spill] sm:$0xff] %v5345_v61  ;;  %v2875_v62 = vsel %vm2808_vm2, %v5345_v61, 0.0 }
 0x12e   :  { %v2876_v0 = vadd.f32 %v2875_v62, %v2874_v59  ;;  %v5349_v2 = vpop.f32.mrf.mxu1 }
 0x12f   :  { %6336 = vst [vmem:[#allocation14_spill] sm:$0xff] %v5349_v2  ;;  %v2877_v4 = vsel %vm2808_vm2, %v5349_v2, 0.0 }
 0x130   :  { %v5353_v20 = vpop.f32.mrf.mxu1  ;;  %v2878_v6 = vadd.f32 %v2877_v4, %v2876_v0 }
 0x131   :  { %6337 = vst [vmem:[#allocation15_spill] sm:$0xff] %v5353_v20  ;;  %v2879_v7 = vsel %vm2808_vm2, %v5353_v20, 0.0 }
 0x132   :  { %v2880_v9 = vadd.f32 %v2879_v7, %v2878_v6 }
 0x136   :  { %v5357_v11 = vpop.f32.mrf.mxu0 }
 0x137   :  { %6338 = vst [vmem:[#allocation16_spill] sm:$0xff] %v5357_v11  ;;  %v2881_v16 = vsel %vm2808_vm2, %v5357_v11, 0.0 }
 0x138   :  { %v2882_v14 = vadd.f32 %v2881_v16, %v2880_v9  ;;  %v5361_v18 = vpop.f32.mrf.mxu0 }
 0x139   :  { %6339 = vst [vmem:[#allocation17_spill] sm:$0xff] %v5361_v18  ;;  %v2883_v19 = vsel %vm2808_vm2, %v5361_v18, 0.0 }
 0x13a   :  { %v2884_v23 = vadd.f32 %v2883_v19, %v2882_v14  ;;  %v5365_v25 = vpop.f32.mrf.mxu1 }
 0x13b   :  { %6340 = vst [vmem:[#allocation18_spill] sm:$0xff] %v5365_v25  ;;  %v2885_v28 = vsel %vm2808_vm2, %v5365_v25, 0.0 }
 0x13c   :  { %v5369_v30 = vpop.f32.mrf.mxu1  ;;  %v2886_v32 = vadd.f32 %v2885_v28, %v2884_v23 }
 0x13d   :  { %v2887_v35 = vsel %vm2808_vm2, %v5369_v30, 0.0 }
 0x13e   :  { %v2888_v37 = vadd.f32 %v2887_v35, %v2886_v32 }
 0x142   :  { %v5373_v38 = vpop.f32.mrf.mxu0 }
 0x143   :  { %v2889_v42 = vsel %vm2808_vm2, %v5373_v38, 0.0 }
 0x144   :  { %v2890_v43 = vadd.f32 %v2889_v42, %v2888_v37  ;;  %v5377_v46 = vpop.f32.mrf.mxu0 }
 0x145   :  { %v2891_v49 = vsel %vm2808_vm2, %v5377_v46, 0.0 }
 0x146   :  { %v2892_v50 = vadd.f32 %v2891_v49, %v2890_v43  ;;  %v5381_v54 = vpop.f32.mrf.mxu1 }
 0x147   :  { %v2893_v55 = vsel %vm2808_vm2, %v5381_v54, 0.0 }
 0x148   :  { %v5385_v56 = vpop.f32.mrf.mxu1  ;;  %v2894_v59 = vadd.f32 %v2893_v55, %v2892_v50 }
 0x149   :  { %v2895_v62 = vsel %vm2808_vm2, %v5385_v56, 0.0 }
 0x14a   :  { %v2896_v0 = vadd.f32 %v2895_v62, %v2894_v59 }
 0x14e   :  { %v5389_v4 = vpop.f32.mrf.mxu0 }
 0x14f   :  { %v2897_v6 = vsel %vm2808_vm2, %v5389_v4, 0.0 }
 0x150   :  { %v2898_v7 = vadd.f32 %v2897_v6, %v2896_v0  ;;  %v5393_v9 = vpop.f32.mrf.mxu0 }
 0x151   :  { %v2899_v16 = vsel %vm2808_vm2, %v5393_v9, 0.0 }
 0x152   :  { %v2900_v14 = vadd.f32 %v2899_v16, %v2898_v7  ;;  %v5397_v19 = vpop.f32.mrf.mxu1 }
 0x153   :  { %v2901_v23 = vsel %vm2808_vm2, %v5397_v19, 0.0 }
 0x154   :  { %v5401_v28 = vpop.f32.mrf.mxu1  ;;  %v2902_v32 = vadd.f32 %v2901_v23, %v2900_v14 }
 0x155   :  { %v2903_v35 = vsel %vm2808_vm2, %v5401_v28, 0.0 }
 0x156   :  { %v2904_v37 = vadd.f32 %v2903_v35, %v2902_v32 }
 0x15a   :  { %v5405_v42 = vpop.f32.mrf.mxu0 }
 0x15b   :  { %v2905_v43 = vsel %vm2808_vm2, %v5405_v42, 0.0 }
 0x15c   :  { %v2906_v49 = vadd.f32 %v2905_v43, %v2904_v37  ;;  %v5409_v50 = vpop.f32.mrf.mxu0 }
 0x15d   :  { %6341 = vst [vmem:[#allocation19_spill] sm:$0xff] %v5409_v50  ;;  %v2907_v55 = vsel %vm2808_vm2, %v5409_v50, 0.0 }
 0x15e   :  { %v2908_v59 = vadd.f32 %v2907_v55, %v2906_v49  ;;  %v5413_v62 = vpop.f32.mrf.mxu1 }
 0x15f   :  { %6342 = vst [vmem:[#allocation20_spill] sm:$0xff] %v5413_v62  ;;  %v2909_v0 = vsel %vm2808_vm2, %v5413_v62, 0.0 }
 0x160   :  { %v5417_v6 = vpop.f32.mrf.mxu1  ;;  %v2910_v7 = vadd.f32 %v2909_v0, %v2908_v59 }
 0x161   :  { %6343 = vst [vmem:[#allocation21_spill] sm:$0xff] %v5417_v6  ;;  %v2911_v16 = vsel %vm2808_vm2, %v5417_v6, 0.0 }
 0x162   :  { %v2912_v14 = vadd.f32 %v2911_v16, %v2910_v7 }
 0x166   :  { %v5421_v23 = vpop.f32.mrf.mxu0 }
 0x167   :  { %6344 = vst [vmem:[#allocation22_spill] sm:$0xff] %v5421_v23  ;;  %v2913_v32 = vsel %vm2808_vm2, %v5421_v23, 0.0 }
 0x168   :  { %v2914_v35 = vadd.f32 %v2913_v32, %v2912_v14  ;;  %v5425_v37 = vpop.f32.mrf.mxu0 }
 0x169   :  { %6345 = vst [vmem:[#allocation23_spill] sm:$0xff] %v5425_v37  ;;  %v2915_v43 = vsel %vm2808_vm2, %v5425_v37, 0.0 }
 0x16a   :  { %v2916_v49 = vadd.f32 %v2915_v43, %v2914_v35  ;;  %v5429_v55 = vpop.f32.mrf.mxu1 }
 0x16b   :  { %6346 = vst [vmem:[#allocation24_spill] sm:$0xff] %v5429_v55  ;;  %v2917_v59 = vsel %vm2808_vm2, %v5429_v55, 0.0 }
 0x16c   :  { %v5433_v0 = vpop.f32.mrf.mxu1  ;;  %v2918_v7 = vadd.f32 %v2917_v59, %v2916_v49 }
 0x16d   :  { %6347 = vst [vmem:[#allocation25_spill] sm:$0xff] %v5433_v0  ;;  %v2919_v16 = vsel %vm2808_vm2, %v5433_v0, 0.0 }
 0x16e   :  { %v2920_v52 = vadd.f32 %v2919_v16, %v2918_v7 }
 0x172   :  { %v5437_v47 = vpop.f32.mrf.mxu0 }
 0x173   :  { %6348 = vst [vmem:[#allocation26_spill] sm:$0xff] %v5437_v47  ;;  %v2921_v14 = vsel %vm2808_vm2, %v5437_v47, 0.0 }
 0x174   :  { %v2922_v32 = vadd.f32 %v2921_v14, %v2920_v52  ;;  %v5441_v37 = vpop.f32.mrf.mxu0 }
 0x175   :  { %6349 = vst [vmem:[#allocation27_spill] sm:$0xff] %v5441_v37  ;;  %v2923_v35 = vsel %vm2808_vm2, %v5441_v37, 0.0 }
 0x176   :  { %v2924_v43 = vadd.f32 %v2923_v35, %v2922_v32  ;;  %v5445_v55 = vpop.f32.mrf.mxu1 }
 0x177   :  { %6350 = vst [vmem:[#allocation28_spill] sm:$0xff] %v5445_v55  ;;  %v2925_v49 = vsel %vm2808_vm2, %v5445_v55, 0.0 }
 0x178   :  { %v5449_v59 = vpop.f32.mrf.mxu1  ;;  %v2926_v7 = vadd.f32 %v2925_v49, %v2924_v43 }
 0x179   :  { %6351 = vst [vmem:[#allocation29_spill] sm:$0xff] %v5449_v59  ;;  %v2927_v16 = vsel %vm2808_vm2, %v5449_v59, 0.0 }
 0x17a   :  { %v2928_v0 = vadd.f32 %v2927_v16, %v2926_v7 }
 0x17e   :  { %v5453_v47 = vpop.f32.mrf.mxu0 }
 0x17f   :  { %6352 = vst [vmem:[#allocation30_spill] sm:$0xff] %v5453_v47  ;;  %v2929_v52 = vsel %vm2808_vm2, %v5453_v47, 0.0 }
 0x180   :  { %v2930_v14 = vadd.f32 %v2929_v52, %v2928_v0  ;;  %v5457_v37 = vpop.f32.mrf.mxu0 }
 0x181   :  { %6353 = vst [vmem:[#allocation31_spill] sm:$0xff] %v5457_v37  ;;  %v5459_v32 = vpop.f32.mrf.mxu1  ;;  %v2931_v35 = vsel %vm2808_vm2, %v5457_v37, 0.0 }
 0x182   :  { %6354 = vst [vmem:[#allocation32_spill] sm:$0xff] %v5459_v32  ;;  %v2933_v43 = vsel %vm2808_vm2, %v5459_v32, 0.0  ;;  %v2932_v49 = vadd.f32 %v2931_v35, %v2930_v14 }
 0x183   :  { %v5465_v55 = vpop.f32.mrf.mxu1 }
 0x184   :  { %v2934_v7 = vadd.f32 %v2933_v43, %v2932_v49  ;;  %v2935_v16 = vsel %vm2808_vm2, %v5465_v55, 0.0 }
 0x186   :  { %v2936_v59 = vadd.f32 %v2935_v16, %v2934_v7 }
 0x188   :  { %2937 = vadd.xlane.f32.xlu0 %v2936_v59 }
 0x1b1   :  { %v2873_v0 = vpop.xlane.xlu0 %2872 }
 0x211   :  { %v2938_v52 = vpop.xlane.xlu0 %2937 }
 0x212   :  { %v2939_v47 = vadd.f32 %v2938_v52, %v2873_v0 }
 0x214   :  { %v5469_v23 = vmul.f32 0.00012207031, %v2939_v47 }
 0x216   :  { %v2941_v37 = vsub.f32 %v5213_v10, %v5469_v23  ;;  %v2942_v32 = vsub.f32 %v5217_v12, %v5469_v23  ;;  %v2943_v14 = vsub.f32 %v5221_v15, %v5469_v23  ;;  %v2944_v35 = vsub.f32 %v5225_v17, %v5469_v23 }
 0x217   :  { %v2945_v59 = vsub.f32 %v5229_v21, %v5469_v23  ;;  %v2946_v47 = vsub.f32 %v5233_v24, %v5469_v23  ;;  %v2947_v15 = vsub.f32 %v5237_v27, %v5469_v23  ;;  %v2948_v21 = vsub.f32 %v5241_v29, %v5469_v23 }
 0x218   :  { %v2973_v43 = vmul.f32 %v2941_v37, %v2941_v37  ;;  %v2974_v49 = vmul.f32 %v2942_v32, %v2942_v32  ;;  %v2975_v7 = vmul.f32 %v2943_v14, %v2943_v14  ;;  %v2976_v16 = vmul.f32 %v2944_v35, %v2944_v35 }
 0x219   :  { %v2977_v10 = vmul.f32 %v2945_v59, %v2945_v59  ;;  %v2978_v14 = vmul.f32 %v2946_v47, %v2946_v47  ;;  %v2949_v35 = vsub.f32 %v5245_v33, %v5469_v23  ;;  %v2950_v59 = vsub.f32 %v5249_v36, %v5469_v23 }
 0x21a   :  { %v3005_v0 = vsel %vm2808_vm2, %v2973_v43, 0.0  ;;  %v3006_v52 = vsel %vm2808_vm2, %v2974_v49, 0.0  ;;  %v3008_v37 = vsel %vm2808_vm2, %v2975_v7, 0.0  ;;  %v3010_v17 = vsel %vm2808_vm2, %v2976_v16, 0.0 }
 0x21b   :  { %v3007_v12 = vadd.f32 %v3006_v52, %v3005_v0  ;;  %v2979_v43 = vmul.f32 %v2947_v15, %v2947_v15  ;;  %v3012_v49 = vsel %vm2808_vm2, %v2977_v10, 0.0  ;;  %v2980_v52 = vmul.f32 %v2948_v21, %v2948_v21 }
 0x21c   :  { %v2951_v7 = vsub.f32 %v5253_v39, %v5469_v23  ;;  %v3071_v16 = vsub.f32 %v5345_v61, %v5469_v23  ;;  %v2981_v15 = vmul.f32 %v2949_v35, %v2949_v35  ;;  %v3072_v21 = vsub.f32 %v5349_v2, %v5469_v23 }
 0x21d   :  { %v3009_v32 = vadd.f32 %v3008_v37, %v3007_v12  ;;  %v3014_v12 = vsel %vm2808_vm2, %v2978_v14, 0.0  ;;  %v3016_v10 = vsel %vm2808_vm2, %v2979_v43, 0.0  ;;  %v2952_v37 = vsub.f32 %v5257_v41, %v5469_v23 }
 0x21e   :  { %v3018_v14 = vsel %vm2808_vm2, %v2980_v52, 0.0  ;;  %v2983_v35 = vmul.f32 %v2951_v7, %v2951_v7  ;;  %v3020_v43 = vsel %vm2808_vm2, %v2981_v15, 0.0  ;;  %v2954_v61 = vsub.f32 %v5265_v48, %v5469_v23 }
 0x21f   :  { %v3011_v24 = vadd.f32 %v3010_v17, %v3009_v32  ;;  %v3070_v17 = vsub.f32 %v5341_v58, %v5469_v23  ;;  %v2982_v32 = vmul.f32 %v2950_v59, %v2950_v59  ;;  %v3074_v59 = vsub.f32 %v5357_v11, %v5469_v23 }
 0x220   :  { %v2984_v52 = vmul.f32 %v2952_v37, %v2952_v37  ;;  %v3075_v7 = vsub.f32 %v5361_v18, %v5469_v23  ;;  %v2956_v37 = vsub.f32 %v5273_v53, %v5469_v23  ;;  %v2986_v11 = vmul.f32 %v2954_v61, %v2954_v61 }
 0x221   :  { %v3013_v0 = vadd.f32 %v3012_v49, %v3011_v24  ;;  %v2953_v49 = vsub.f32 %v5261_v45, %v5469_v23  ;;  %v3022_v2 = vsel %vm2808_vm2, %v2982_v32, 0.0  ;;  %v3104_v45 = vmul.f32 %v3072_v21, %v3072_v21 }
 0x222   :  { %v3076_v21 = vsub.f32 %v5365_v25, %v5469_v23  ;;  %v3026_v18 = vsel %vm2808_vm2, %v2984_v52, 0.0  ;;  %v3107_v25 = vmul.f32 %v3075_v7, %v3075_v7  ;;  %v2958_v61 = vsub.f32 %v5281_v60, %v5469_v23 }
 0x223   :  { %v3015_v47 = vadd.f32 %v3014_v12, %v3013_v0  ;;  %v3073_v0 = vsub.f32 %v5353_v20, %v5469_v23  ;;  %v2955_v20 = vsub.f32 %v5269_v51, %v5469_v23  ;;  %v2985_v15 = vmul.f32 %v2953_v49, %v2953_v49 }
 0x224   :  { %v3106_v49 = vmul.f32 %v3074_v59, %v3074_v59  ;;  %v3079_v7 = vsub.f32 %v5377_v46, %v5469_v23 }
 0x225   :  { %v3017_v24 = vadd.f32 %v3016_v10, %v3015_v47  ;;  %v3102_v47 = vmul.f32 %v3070_v17, %v3070_v17  ;;  %v3103_v10 = vmul.f32 %v3071_v16, %v3071_v16  ;;  %v3024_v16 = vsel %vm2808_vm2, %v2983_v35, 0.0 }
 0x226   :  { %v3028_v53 = vsel %vm2808_vm2, %v2985_v15, 0.0 }
 0x227   :  { %v3019_v12 = vadd.f32 %v3018_v14, %v3017_v24  ;;  %v3105_v24 = vmul.f32 %v3073_v0, %v3073_v0  ;;  %v3134_v14 = vsel %vm2808_vm2, %v3102_v47, 0.0  ;;  %v3077_v0 = vsub.f32 %v5369_v30, %v5469_v23 }
 0x229   :  { %v3021_v58 = vadd.f32 %v3020_v43, %v3019_v12  ;;  %v3135_v12 = vsel %vm2808_vm2, %v3103_v10, 0.0  ;;  %v2987_v10 = vmul.f32 %v2955_v20, %v2955_v20  ;;  %v2959_v20 = vsub.f32 %v5285_v63, %v5469_v23 }
 0x22a   :  { %v3136_v43 = vadd.f32 %v3135_v12, %v3134_v14  ;;  %v3030_v14 = vsel %vm2808_vm2, %v2986_v11, 0.0  ;;  %v3108_v12 = vmul.f32 %v3076_v21, %v3076_v21  ;;  %v2960_v11 = vsub.f32 %v5289_v1, %v5469_v23 }
 0x22b   :  { %v3023_v17 = vadd.f32 %v3022_v2, %v3021_v58  ;;  %v3137_v58 = vsel %vm2808_vm2, %v3104_v45, 0.0  ;;  %v2957_v2 = vsub.f32 %v5277_v57, %v5469_v23  ;;  %v3078_v45 = vsub.f32 %v5373_v38, %v5469_v23 }
 0x22c   :  { %v3138_v47 = vadd.f32 %v3137_v58, %v3136_v43  ;;  %v3032_v43 = vsel %vm2808_vm2, %v2987_v10, 0.0  ;;  %v3109_v58 = vmul.f32 %v3077_v0, %v3077_v0 }
 0x22d   :  { %v3025_v32 = vadd.f32 %v3024_v16, %v3023_v17  ;;  %v3139_v17 = vsel %vm2808_vm2, %v3105_v24, 0.0  ;;  %v2988_v16 = vmul.f32 %v2956_v37, %v2956_v37  ;;  %v3080_v37 = vsub.f32 %v5381_v54, %v5469_v23 }
 0x22e   :  { %v3140_v52 = vadd.f32 %v3139_v17, %v3138_v47  ;;  %v3110_v17 = vmul.f32 %v3078_v45, %v3078_v45  ;;  %v3082_v45 = vsub.f32 %v5389_v4, %v5469_v23 }
 0x22f   :  { %v3027_v35 = vadd.f32 %v3026_v18, %v3025_v32  ;;  %v3141_v18 = vsel %vm2808_vm2, %v3106_v49, 0.0  ;;  %v2989_v32 = vmul.f32 %v2957_v2, %v2957_v2  ;;  %v3034_v47 = vsel %vm2808_vm2, %v2988_v16, 0.0 }
 0x230   :  { %v3142_v24 = vadd.f32 %v3141_v18, %v3140_v52  ;;  %v2961_v2 = vsub.f32 %v5293_v5, %v5469_v23  ;;  %v2991_v52 = vmul.f32 %v2959_v20, %v2959_v20  ;;  %v3111_v18 = vmul.f32 %v3079_v7, %v3079_v7 }
 0x231   :  { %v3029_v59 = vadd.f32 %v3028_v53, %v3027_v35  ;;  %v3143_v53 = vsel %vm2808_vm2, %v3107_v25, 0.0  ;;  %v2990_v35 = vmul.f32 %v2958_v61, %v2958_v61  ;;  %v3081_v25 = vsub.f32 %v5385_v56, %v5469_v23 }
 0x232   :  { %v3144_v49 = vadd.f32 %v3143_v53, %v3142_v24  ;;  %v2962_v61 = vsub.f32 %v5297_v8, %v5469_v23  ;;  %v2992_v24 = vmul.f32 %v2960_v11, %v2960_v11  ;;  %v3112_v53 = vmul.f32 %v3080_v37, %v3080_v37 }
 0x233   :  { %v3031_v15 = vadd.f32 %v3030_v14, %v3029_v59  ;;  %v3145_v59 = vsel %vm2808_vm2, %v3108_v12, 0.0  ;;  %v3036_v14 = vsel %vm2808_vm2, %v2989_v32, 0.0  ;;  %v2963_v20 = vsub.f32 %v5301_v13, %v5469_v23 }
 0x234   :  { %v3146_v10 = vadd.f32 %v3145_v59, %v3144_v49  ;;  %v3083_v7 = vsub.f32 %v5393_v9, %v5469_v23  ;;  %v2993_v49 = vmul.f32 %v2961_v2, %v2961_v2  ;;  %v3113_v59 = vmul.f32 %v3081_v25, %v3081_v25 }
 0x235   :  { %v3033_v21 = vadd.f32 %v3032_v43, %v3031_v15  ;;  %v3147_v15 = vsel %vm2808_vm2, %v3109_v58, 0.0  ;;  %v3038_v43 = vsel %vm2808_vm2, %v2990_v35, 0.0  ;;  %v2964_v11 = vsub.f32 %v5305_v3, %v5469_v23 }
 0x236   :  { %v3148_v12 = vadd.f32 %v3147_v15, %v3146_v10  ;;  %v3084_v37 = vsub.f32 %v5397_v19, %v5469_v23  ;;  %v2994_v10 = vmul.f32 %v2962_v61, %v2962_v61  ;;  %v3114_v15 = vmul.f32 %v3082_v45, %v3082_v45 }
 0x237   :  { %v3035_v0 = vadd.f32 %v3034_v47, %v3033_v21  ;;  %v3149_v21 = vsel %vm2808_vm2, %v3110_v17, 0.0  ;;  %v3040_v47 = vsel %vm2808_vm2, %v2991_v52, 0.0  ;;  %v2965_v2 = vsub.f32 %v5309_v22, %v5469_v23 }
 0x238   :  { %v3150_v58 = vadd.f32 %v3149_v21, %v3148_v12  ;;  %v3085_v25 = vsub.f32 %v5401_v28, %v5469_v23  ;;  %v2995_v12 = vmul.f32 %v2963_v20, %v2963_v20  ;;  %v3115_v21 = vmul.f32 %v3083_v7, %v3083_v7 }
 0x239   :  { %v3037_v16 = vadd.f32 %v3036_v14, %v3035_v0  ;;  %v3151_v0 = vsel %vm2808_vm2, %v3111_v18, 0.0  ;;  %v3042_v14 = vsel %vm2808_vm2, %v2992_v24, 0.0  ;;  %v2966_v61 = vsub.f32 %v5313_v26, %v5469_v23 }
 0x23a   :  { %v3152_v17 = vadd.f32 %v3151_v0, %v3150_v58  ;;  %v3086_v45 = vsub.f32 %v5405_v42, %v5469_v23  ;;  %v2996_v58 = vmul.f32 %v2964_v11, %v2964_v11  ;;  %v3116_v0 = vmul.f32 %v3084_v37, %v3084_v37 }
 0x23b   :  { %v3039_v32 = vadd.f32 %v3038_v43, %v3037_v16  ;;  %v3153_v16 = vsel %vm2808_vm2, %v3112_v53, 0.0  ;;  %v3044_v43 = vsel %vm2808_vm2, %v2993_v49, 0.0  ;;  %v2967_v20 = vsub.f32 %v5317_v31, %v5469_v23 }
 0x23c   :  { %v3154_v18 = vadd.f32 %v3153_v16, %v3152_v17  ;;  %v3087_v7 = vsub.f32 %v5409_v50, %v5469_v23  ;;  %v2997_v17 = vmul.f32 %v2965_v2, %v2965_v2  ;;  %v3117_v16 = vmul.f32 %v3085_v25, %v3085_v25 }
 0x23d   :  { %v3041_v35 = vadd.f32 %v3040_v47, %v3039_v32  ;;  %v3155_v32 = vsel %vm2808_vm2, %v3113_v59, 0.0  ;;  %v3046_v47 = vsel %vm2808_vm2, %v2994_v10, 0.0  ;;  %v2968_v11 = vsub.f32 %v5321_v34, %v5469_v23 }
 0x23e   :  { %v3156_v53 = vadd.f32 %v3155_v32, %v3154_v18  ;;  %v3088_v37 = vsub.f32 %v5413_v62, %v5469_v23  ;;  %v2998_v18 = vmul.f32 %v2966_v61, %v2966_v61  ;;  %v3118_v32 = vmul.f32 %v3086_v45, %v3086_v45  ;;  %v6355_v45 = vld [vmem:[#allocation22_spill] sm:$0xff] }
 0x23f   :  { %v3043_v52 = vadd.f32 %v3042_v14, %v3041_v35  ;;  %v3157_v35 = vsel %vm2808_vm2, %v3114_v15, 0.0  ;;  %v3048_v14 = vsel %vm2808_vm2, %v2995_v12, 0.0  ;;  %v2969_v2 = vsub.f32 %v5325_v40, %v5469_v23 }
 0x240   :  { %v3158_v59 = vadd.f32 %v3157_v35, %v3156_v53  ;;  %v3089_v25 = vsub.f32 %v5417_v6, %v5469_v23  ;;  %v2999_v53 = vmul.f32 %v2967_v20, %v2967_v20  ;;  %v3119_v35 = vmul.f32 %v3087_v7, %v3087_v7  ;;  %v6356_v20 = vld [vmem:[#allocation10_spill] sm:$0xff]  ;;  %v6357_v7 = vld [vmem:[#allocation23_spill] sm:$0xff] }
 0x241   :  { %v3045_v24 = vadd.f32 %v3044_v43, %v3043_v52  ;;  %v3159_v52 = vsel %vm2808_vm2, %v3115_v21, 0.0  ;;  %v3050_v43 = vsel %vm2808_vm2, %v2996_v58, 0.0  ;;  %v2970_v61 = vsub.f32 %v5329_v44, %v5469_v23 }
 0x242   :  { %v3160_v15 = vadd.f32 %v3159_v52, %v3158_v59  ;;  %v3090_v58 = vsub.f32 %v6355_v45, %v5469_v23  ;;  %v3054_v52 = vsel %vm2808_vm2, %v2998_v18, 0.0  ;;  %v3120_v6 = vmul.f32 %v3088_v37, %v3088_v37  ;;  %v6359_v37 = vld [vmem:[#allocation11_spill] sm:$0xff] }
 0x243   :  { %v3047_v49 = vadd.f32 %v3046_v47, %v3045_v24  ;;  %v3161_v24 = vsel %vm2808_vm2, %v3116_v0, 0.0  ;;  %v3052_v47 = vsel %vm2808_vm2, %v2997_v17, 0.0  ;;  %v2971_v17 = vsub.f32 %v6356_v20, %v5469_v23 }
 0x244   :  { %v3162_v21 = vadd.f32 %v3161_v24, %v3160_v15  ;;  %v3001_v24 = vmul.f32 %v2969_v2, %v2969_v2  ;;  %v3056_v62 = vsel %vm2808_vm2, %v2999_v53, 0.0  ;;  %v3121_v45 = vmul.f32 %v3089_v25, %v3089_v25  ;;  %v6360_v2 = vld [vmem:[#allocation25_spill] sm:$0xff] }
 0x245   :  { %v3049_v10 = vadd.f32 %v3048_v14, %v3047_v49  ;;  %v3163_v49 = vsel %vm2808_vm2, %v3117_v16, 0.0  ;;  %v3000_v14 = vmul.f32 %v2968_v11, %v2968_v11  ;;  %v3091_v16 = vsub.f32 %v6357_v7, %v5469_v23  ;;  %v6358_v11 = vld [vmem:[#allocation24_spill] sm:$0xff] }
 0x246   :  { %v3164_v59 = vadd.f32 %v3163_v49, %v3162_v21  ;;  %v3092_v18 = vsub.f32 %v6358_v11, %v5469_v23  ;;  %v3002_v49 = vmul.f32 %v2970_v61, %v2970_v61  ;;  %v3122_v7 = vmul.f32 %v3090_v58, %v3090_v58 }
 0x247   :  { %v3051_v12 = vadd.f32 %v3050_v43, %v3049_v10  ;;  %v3165_v10 = vsel %vm2808_vm2, %v3118_v32, 0.0  ;;  %v2972_v32 = vsub.f32 %v6359_v37, %v5469_v23  ;;  %v3058_v50 = vsel %vm2808_vm2, %v3000_v14, 0.0 }
 0x248   :  { %v3166_v43 = vadd.f32 %v3165_v10, %v3164_v59  ;;  %v3093_v53 = vsub.f32 %v6360_v2, %v5469_v23  ;;  %v3123_v10 = vmul.f32 %v3091_v16, %v3091_v16  ;;  %v3171_v11 = vsel %vm2808_vm2, %v3121_v45, 0.0 }
 0x249   :  { %v3053_v0 = vadd.f32 %v3052_v47, %v3051_v12  ;;  %v3167_v12 = vsel %vm2808_vm2, %v3119_v35, 0.0  ;;  %v3003_v35 = vmul.f32 %v2971_v17, %v2971_v17  ;;  %v3004_v14 = vmul.f32 %v2972_v32, %v2972_v32  ;;  %v6362_v17 = vld [vmem:[#allocation27_spill] sm:$0xff] }
 0x24a   :  { %v3168_v47 = vadd.f32 %v3167_v12, %v3166_v43  ;;  %v3062_v58 = vsel %vm2808_vm2, %v3002_v49, 0.0  ;;  %v3173_v12 = vsel %vm2808_vm2, %v3122_v7, 0.0  ;;  %v3175_v45 = vsel %vm2808_vm2, %v3123_v10, 0.0 }
 0x24b   :  { %v3055_v15 = vadd.f32 %v3054_v52, %v3053_v0  ;;  %v3169_v0 = vsel %vm2808_vm2, %v3120_v6, 0.0  ;;  %v3060_v52 = vsel %vm2808_vm2, %v3001_v24, 0.0  ;;  %v3124_v6 = vmul.f32 %v3092_v18, %v3092_v18 }
 0x24c   :  { %v3170_v59 = vadd.f32 %v3169_v0, %v3168_v47  ;;  %v3064_v16 = vsel %vm2808_vm2, %v3003_v35, 0.0  ;;  %v3125_v24 = vmul.f32 %v3093_v53, %v3093_v53  ;;  %v3066_v49 = vsel %vm2808_vm2, %v3004_v14, 0.0 }
 0x24d   :  { %v3057_v21 = vadd.f32 %v3056_v62, %v3055_v15  ;;  %v6361_v62 = vld [vmem:[#allocation26_spill] sm:$0xff]  ;;  %v3177_v7 = vsel %vm2808_vm2, %v3124_v6, 0.0 }
 0x24e   :  { %v3094_v15 = vsub.f32 %v6361_v62, %v5469_v23  ;;  %v3172_v43 = vadd.f32 %v3171_v11, %v3170_v59  ;;  %v6363_v11 = vld [vmem:[#allocation28_spill] sm:$0xff]  ;;  %v3179_v53 = vsel %vm2808_vm2, %v3125_v24, 0.0 }
 0x24f   :  { %v3059_v25 = vadd.f32 %v3058_v50, %v3057_v21  ;;  %v3095_v21 = vsub.f32 %v6362_v17, %v5469_v23  ;;  %v3096_v32 = vsub.f32 %v6363_v11, %v5469_v23 }
 0x250   :  { %v3174_v50 = vadd.f32 %v3173_v12, %v3172_v43  ;;  %v3126_v18 = vmul.f32 %v3094_v15, %v3094_v15  ;;  %v6366_v15 = vld [vmem:[#allocation31_spill] sm:$0xff] }
 0x251   :  { %v3061_v61 = vadd.f32 %v3060_v52, %v3059_v25  ;;  %v6364_v52 = vld [vmem:[#allocation29_spill] sm:$0xff]  ;;  %v3127_v43 = vmul.f32 %v3095_v21, %v3095_v21  ;;  %v3099_v6 = vsub.f32 %v6366_v15, %v5469_v23  ;;  %v6367_v21 = vld [vmem:[#allocation32_spill] sm:$0xff] }
 0x252   :  { %v3176_v0 = vadd.f32 %v3175_v45, %v3174_v50  ;;  %v3181_v12 = vsel %vm2808_vm2, %v3126_v18, 0.0 }
 0x253   :  { %v3063_v2 = vadd.f32 %v3062_v58, %v3061_v61  ;;  %v3097_v61 = vsub.f32 %v6364_v52, %v5469_v23  ;;  %v3128_v58 = vmul.f32 %v3096_v32, %v3096_v32  ;;  %v3101_v32 = vsub.f32 %v5465_v55, %v5469_v23 }
 0x254   :  { %v3178_v59 = vadd.f32 %v3177_v7, %v3176_v0  ;;  %v3131_v7 = vmul.f32 %v3099_v6, %v3099_v6 }
 0x255   :  { %v3065_v47 = vadd.f32 %v3064_v16, %v3063_v2  ;;  %v6365_v2 = vld [vmem:[#allocation30_spill] sm:$0xff]  ;;  %v3129_v50 = vmul.f32 %v3097_v61, %v3097_v61  ;;  %v3183_v16 = vsel %vm2808_vm2, %v3127_v43, 0.0  ;;  %v3185_v0 = vsel %vm2808_vm2, %v3128_v58, 0.0 }
 0x256   :  { %v3180_v35 = vadd.f32 %v3179_v53, %v3178_v59  ;;  %v3098_v10 = vsub.f32 %v6365_v2, %v5469_v23  ;;  %v3133_v43 = vmul.f32 %v3101_v32, %v3101_v32 }
 0x257   :  { %v3067_v25 = vadd.f32 %v3066_v49, %v3065_v47  ;;  %v3100_v47 = vsub.f32 %v6367_v21, %v5469_v23  ;;  %v3187_v18 = vsel %vm2808_vm2, %v3129_v50, 0.0 }
 0x258   :  { %v3182_v14 = vadd.f32 %v3181_v12, %v3180_v35  ;;  %v3130_v24 = vmul.f32 %v3098_v10, %v3098_v10  ;;  %v3191_v35 = vsel %vm2808_vm2, %v3131_v7, 0.0  ;;  %v3195_v58 = vsel %vm2808_vm2, %v3133_v43, 0.0 }
 0x259   :  { %3068 = vadd.xlane.f32.xlu1 %v3067_v25  ;;  %v3132_v59 = vmul.f32 %v3100_v47, %v3100_v47  ;;  %v3351_v43 = vlaneseq }
 0x25a   :  { %v3184_v45 = vadd.f32 %v3183_v16, %v3182_v14  ;;  %v3189_v61 = vsel %vm2808_vm2, %v3130_v24, 0.0 }
 0x25b   :  { %v3193_v10 = vsel %vm2808_vm2, %v3132_v59, 0.0 }
 0x25c   :  { %v3186_v49 = vadd.f32 %v3185_v0, %v3184_v45  ;;  %v4056_v45 = vmov 0  }
 0x25d   :  { %4050 = vset.pattern.permute.xlu0 %v4056_v45  ;;  %4051 = vset.pattern.permute.xlu1 %v4056_v45  ;;  %v6369_v45 = vld [vmem:[#allocation3_spill] sm:$0xff] }
 0x25e   :  { %v3188_v25 = vadd.f32 %v3187_v18, %v3186_v49  ;;  %v3201_v49 = vld [vmem:[%s6277_s2] sm:$0x3] }
 0x25f   :  { %v3205_v18 = vld [vmem:[%s6278_s3] sm:$0x3] }
 0x260   :  { %v3190_v53 = vadd.f32 %v3189_v61, %v3188_v25  ;;  %v4057_v61 = vmov 1983009808  }
 0x262   :  { %v3192_v12 = vadd.f32 %v3191_v35, %v3190_v53  ;;  %v3349_v53 = vunpack.c.l.s4 %v4057_v61 }
 0x264   :  { %v3194_v14 = vadd.f32 %v3193_v10, %v3192_v12  ;;  %v3350_v35 = vunpack.c.0.s8 %v3349_v53  ;;  %v3352_v12 = vshrl.u32 %v3351_v43, 7  ;;  %v6374_v43 = vld [vmem:[#allocation8_spill] sm:$0xff] }
 0x266   :  { %v3196_v16 = vadd.f32 %v3195_v58, %v3194_v14  ;;  %v5672_v14 = vsub.s32 %v3350_v35, %v3352_v12  ;;  %v6368_v58 = vld [vmem:[#allocation2_spill] sm:$0xff]  ;;  %v6375_v35 = vld [vmem:[#allocation9_spill] sm:$0xff] }
 0x268   :  { %3197 = vadd.xlane.f32.xlu1 %v3196_v16 }
 0x2e2   :  { %v3069_v6 = vpop.xlane.xlu1 %3068 }
 0x2f1   :  { %v3198_v50 = vpop.xlane.xlu1 %3197 }
 0x2f2   :  { %v3199_v47 = vadd.f32 %v3198_v50, %v3069_v6 }
 0x2f4   :  { %v3200_v0 = vmul.f32 0.00012207031, %v3199_v47  ;;  %v6371_v47 = vld [vmem:[#allocation5_spill] sm:$0xff] }
 0x2f6   :  { %v3202_v24 = vadd.f32 1e-05, %v3200_v0 }
 0x2f8   :  { %4052 = vrsqrt.f32 %v3202_v24  ;;  %v6372_v24 = vld [vmem:[#allocation6_spill] sm:$0xff] }
 0x305   :  { %v4053_v32 = vpop.eup %4052 }
 0x306   :  { %v3204_v7 = vmul.f32 %v4053_v32, %v3201_v49  ;;  %v6373_v32 = vld [vmem:[#allocation7_spill] sm:$0xff] }
 0x308   :  { %3210 = vperm.xlu0 %4050, %v3204_v7   ;;  %v3206_v25 = vmul.f32 %v3204_v7, %v5469_v23  ;;  %v6370_v23 = vld [vmem:[#allocation4_spill] sm:$0xff] }
 0x30a   :  { %v3207_v59 = vsub.f32 %v3205_v18, %v3206_v25 }
 0x30c   :  { %3247 = vperm.xlu1 %4051, %v3207_v59  }
 0x383   :  { %v5670_v10 = vpop.permute.xlu0 %3210 }
 0x384   :  { %v5676_v16 = vmul.f32 %v5670_v10, %v6368_v58  ;;  %v5680_v6 = vmul.f32 %v5670_v10, %v6369_v45  ;;  %v5684_v50 = vmul.f32 %v5670_v10, %v6370_v23  ;;  %v5688_v0 = vmul.f32 %v5670_v10, %v6371_v47  ;;  %v6376_v45 = vld [vmem:[#allocation12_spill] sm:$0xff]  ;;  %v6377_v23 = vld [vmem:[#allocation13_spill] sm:$0xff]  ;;  %v6378_v47 = vld [vmem:[#allocation14_spill] sm:$0xff] }
 0x385   :  { %v5692_v49 = vmul.f32 %v5670_v10, %v6372_v24  ;;  %v5696_v7 = vmul.f32 %v5670_v10, %v6373_v32  ;;  %v5700_v18 = vmul.f32 %v5670_v10, %v5237_v27  ;;  %v5704_v25 = vmul.f32 %v5670_v10, %v5241_v29  ;;  %v6379_v24 = vld [vmem:[#allocation15_spill] sm:$0xff]  ;;  %v6380_v32 = vld [vmem:[#allocation16_spill] sm:$0xff] }
 0x386   :  { %v5708_v59 = vmul.f32 %v5670_v10, %v5245_v33  ;;  %v5712_v61 = vmul.f32 %v5670_v10, %v5249_v36  ;;  %v5716_v53 = vmul.f32 %v5670_v10, %v5253_v39  ;;  %v5720_v27 = vmul.f32 %v5670_v10, %v5257_v41 }
 0x387   :  { %v5724_v29 = vmul.f32 %v5670_v10, %v6374_v43  ;;  %v5728_v33 = vmul.f32 %v5670_v10, %v5265_v48  ;;  %v5732_v36 = vmul.f32 %v5670_v10, %v5269_v51  ;;  %v5736_v39 = vmul.f32 %v5670_v10, %v6375_v35  ;;  %v6381_v43 = vld [vmem:[#allocation17_spill] sm:$0xff] }
 0x388   :  { %v5740_v41 = vmul.f32 %v5670_v10, %v5277_v57  ;;  %v5744_v12 = vmul.f32 %v5670_v10, %v5281_v60  ;;  %v5748_v48 = vmul.f32 %v5670_v10, %v5285_v63  ;;  %v5752_v51 = vmul.f32 %v5670_v10, %v5289_v1 }
 0x389   :  { %v5756_v58 = vmul.f32 %v5670_v10, %v5293_v5  ;;  %v5760_v57 = vmul.f32 %v5670_v10, %v5297_v8  ;;  %v5764_v60 = vmul.f32 %v5670_v10, %v5301_v13  ;;  %v5768_v63 = vmul.f32 %v5670_v10, %v5305_v3 }
 0x38a   :  { %v5772_v1 = vmul.f32 %v5670_v10, %v5309_v22  ;;  %v5776_v5 = vmul.f32 %v5670_v10, %v5313_v26  ;;  %v5780_v8 = vmul.f32 %v5670_v10, %v5317_v31  ;;  %v5784_v13 = vmul.f32 %v5670_v10, %v5321_v34 }
 0x38b   :  { %v5788_v3 = vmul.f32 %v5670_v10, %v5325_v40  ;;  %v5792_v22 = vmul.f32 %v5670_v10, %v5329_v44  ;;  %v5796_v26 = vmul.f32 %v5670_v10, %v6356_v20  ;;  %v5800_v31 = vmul.f32 %v5670_v10, %v6359_v37 }
 0x38c   :  { %v5804_v34 = vmul.f32 %v5670_v10, %v6376_v45  ;;  %v5808_v40 = vmul.f32 %v5670_v10, %v6377_v23  ;;  %v5812_v44 = vmul.f32 %v5670_v10, %v6378_v47  ;;  %v5816_v20 = vmul.f32 %v5670_v10, %v6379_v24  ;;  %v6382_v45 = vld [vmem:[#allocation18_spill] sm:$0xff] }
 0x38d   :  { %v5820_v37 = vmul.f32 %v5670_v10, %v6380_v32  ;;  %v5824_v35 = vmul.f32 %v5670_v10, %v6381_v43  ;;  %v5828_v23 = vmul.f32 %v5670_v10, %v6382_v45  ;;  %v5832_v47 = vmul.f32 %v5670_v10, %v5369_v30 }
 0x38e   :  { %v5836_v24 = vmul.f32 %v5670_v10, %v5373_v38  ;;  %v5840_v32 = vmul.f32 %v5670_v10, %v5377_v46  ;;  %v5844_v43 = vmul.f32 %v5670_v10, %v5381_v54  ;;  %v5848_v45 = vmul.f32 %v5670_v10, %v5385_v56 }
 0x38f   :  { %v5852_v30 = vmul.f32 %v5670_v10, %v5389_v4  ;;  %v5856_v38 = vmul.f32 %v5670_v10, %v5393_v9  ;;  %v5860_v46 = vmul.f32 %v5670_v10, %v5397_v19  ;;  %v5864_v54 = vmul.f32 %v5670_v10, %v5401_v28 }
 0x390   :  { %6383 = vst [vmem:[#allocation10_spill] sm:$0xff] %v5848_v45  ;;  %v5868_v56 = vmul.f32 %v5670_v10, %v5405_v42  ;;  %v6389_v45 = vld [vmem:[#allocation19_spill] sm:$0xff] }
 0x391   :  { %6384 = vst [vmem:[#allocation11_spill] sm:$0xff] %v5852_v30  ;;  %6385 = vst [vmem:[#allocation26_spill] sm:$0xff] %v5856_v38  ;;  %v5872_v4 = vmul.f32 %v5670_v10, %v6389_v45  ;;  %v6391_v30 = vld [vmem:[#allocation20_spill] sm:$0xff]  ;;  %v6393_v38 = vld [vmem:[#allocation21_spill] sm:$0xff] }
 0x392   :  { %6386 = vst [vmem:[#allocation27_spill] sm:$0xff] %v5860_v46  ;;  %6387 = vst [vmem:[#allocation28_spill] sm:$0xff] %v5864_v54  ;;  %v5876_v9 = vmul.f32 %v5670_v10, %v6391_v30  ;;  %v5880_v19 = vmul.f32 %v5670_v10, %v6393_v38  ;;  %v6394_v46 = vld [vmem:[#allocation22_spill] sm:$0xff]  ;;  %v6395_v54 = vld [vmem:[#allocation23_spill] sm:$0xff]  ;;  %v5902_v38 = vmul.f32 %v5670_v10, %v6361_v62 }
 0x393   :  { %6388 = vst [vmem:[#allocation29_spill] sm:$0xff] %v5868_v56  ;;  %6390 = vst [vmem:[#allocation30_spill] sm:$0xff] %v5872_v4  ;;  %v5884_v28 = vmul.f32 %v5670_v10, %v6394_v46  ;;  %v5888_v42 = vmul.f32 %v5670_v10, %v6395_v54  ;;  %v6396_v56 = vld [vmem:[#allocation24_spill] sm:$0xff]  ;;  %v6398_v4 = vld [vmem:[#allocation25_spill] sm:$0xff]  ;;  %v5906_v46 = vmul.f32 %v5670_v10, %v6362_v17 }
 0x394   :  { %6392 = vst [vmem:[#allocation31_spill] sm:$0xff] %v5876_v9  ;;  %v5892_v45 = vmul.f32 %v5670_v10, %v6396_v56  ;;  %v5896_v30 = vmul.f32 %v5670_v10, %v6398_v4  ;;  %v5898_v9 = vpop.permute.xlu1 %3247  ;;  %6400 = vst [vmem:[#allocation3_spill] sm:$0xff] %v5902_v38  ;;  %v5910_v54 = vmul.f32 %v5670_v10, %v6363_v11 }
 0x395   :  { %6401 = vst [vmem:[#allocation4_spill] sm:$0xff] %v5906_v46  ;;  %v5914_v56 = vmul.f32 %v5670_v10, %v6364_v52  ;;  %v5918_v4 = vmul.f32 %v5670_v10, %v6365_v2  ;;  %v5922_v62 = vmul.f32 %v5670_v10, %v6366_v15  ;;  %v5926_v17 = vmul.f32 %v5670_v10, %v6367_v21 }
 0x396   :  { %6397 = vst [vmem:[#allocation32_spill] sm:$0xff] %v5892_v45  ;;  %6399 = vst [vmem:[#allocation2_spill] sm:$0xff] %v5896_v30  ;;  %v5930_v11 = vmul.f32 %v5670_v10, %v5465_v55  ;;  %v5934_v52 = vadd.f32 %v5898_v9, %v5676_v16  ;;  %v5938_v2 = vadd.f32 %v5898_v9, %v5680_v6 }
 0x397   :  { %6402 = vst [vmem:[#allocation5_spill] sm:$0xff] %v5910_v54  ;;  %6403 = vst [vmem:[#allocation6_spill] sm:$0xff] %v5914_v56  ;;  %v5942_v15 = vadd.f32 %v5898_v9, %v5684_v50  ;;  %v5946_v21 = vadd.f32 %v5898_v9, %v5688_v0  ;;  %v5950_v55 = vadd.f32 %v5898_v9, %v5692_v49 }
 0x398   :  { %6404 = vst [vmem:[#allocation7_spill] sm:$0xff] %v5918_v4  ;;  %6405 = vst [vmem:[#allocation8_spill] sm:$0xff] %v5922_v62  ;;  %v3255_v10 = vadd.f32 %v5898_v9, %v5696_v7  ;;  %v3256_v16 = vadd.f32 %v5898_v9, %v5700_v18  ;;  %v3257_v6 = vadd.f32 %v5898_v9, %v5704_v25 }
 0x399   :  { %6406 = vst [vmem:[#allocation9_spill] sm:$0xff] %v5926_v17  ;;  %6407 = vst [vmem:[#allocation12_spill] sm:$0xff] %v5930_v11  ;;  %v3258_v50 = vadd.f32 %v5898_v9, %v5708_v59  ;;  %v3259_v0 = vadd.f32 %v5898_v9, %v5712_v61  ;;  %v3260_v11 = vadd.f32 %v5898_v9, %v5716_v53  ;;  %v3286_v17 = vmax.f32 %v5950_v55, 0.0 }
 0x39a   :  { %v3261_v49 = vadd.f32 %v5898_v9, %v5720_v27  ;;  %v3262_v7 = vadd.f32 %v5898_v9, %v5724_v29  ;;  %v3263_v18 = vadd.f32 %v5898_v9, %v5728_v33  ;;  %v3264_v25 = vadd.f32 %v5898_v9, %v5732_v36 }
 0x39b   :  { %v3265_v59 = vadd.f32 %v5898_v9, %v5736_v39  ;;  %v5976_v61 = vadd.f32 %v5898_v9, %v5740_v41  ;;  %v5980_v53 = vadd.f32 %v5898_v9, %v5744_v12  ;;  %v5984_v27 = vadd.f32 %v5898_v9, %v5748_v48 }
 0x39c   :  { %v5988_v29 = vadd.f32 %v5898_v9, %v5752_v51  ;;  %v5992_v33 = vadd.f32 %v5898_v9, %v5756_v58  ;;  %v5996_v36 = vadd.f32 %v5898_v9, %v5760_v57  ;;  %v6000_v39 = vadd.f32 %v5898_v9, %v5764_v60 }
 0x39d   :  { %v6004_v41 = vadd.f32 %v5898_v9, %v5768_v63  ;;  %v6008_v12 = vadd.f32 %v5898_v9, %v5772_v1  ;;  %v6012_v48 = vadd.f32 %v5898_v9, %v5776_v5  ;;  %v6016_v51 = vadd.f32 %v5898_v9, %v5780_v8 }
 0x39e   :  { %v6020_v58 = vadd.f32 %v5898_v9, %v5784_v13  ;;  %v6024_v57 = vadd.f32 %v5898_v9, %v5788_v3  ;;  %v6028_v60 = vadd.f32 %v5898_v9, %v5792_v22  ;;  %v6032_v63 = vadd.f32 %v5898_v9, %v5796_v26 }
 0x39f   :  { %v6036_v1 = vadd.f32 %v5898_v9, %v5800_v31  ;;  %v3282_v5 = vmax.f32 %v5934_v52, 0.0  ;;  %v3283_v8 = vmax.f32 %v5938_v2, 0.0  ;;  %v3284_v13 = vmax.f32 %v5942_v15, 0.0 }
 0x3a0   :  { %v3285_v3 = vmax.f32 %v5946_v21, 0.0  ;;  %v3287_v22 = vmax.f32 %v3255_v10, 0.0  ;;  %v3288_v62 = vmax.f32 %v3256_v16, 0.0  ;;  %v3289_v4 = vmax.f32 %v3257_v6, 0.0 }
 0x3a1   :  { %v3290_v56 = vmax.f32 %v3258_v50, 0.0  ;;  %v3291_v26 = vmax.f32 %v3259_v0, 0.0  ;;  %v3292_v54 = vmax.f32 %v3260_v11, 0.0  ;;  %v3293_v46 = vmax.f32 %v3261_v49, 0.0 }
 0x3a2   :  { %v3294_v38 = vmax.f32 %v3262_v7, 0.0  ;;  %v3295_v31 = vmax.f32 %v3263_v18, 0.0  ;;  %v3296_v30 = vmax.f32 %v3264_v25, 0.0  ;;  %v3297_v45 = vmax.f32 %v3265_v59, 0.0 }
 0x3a3   :  { %v3298_v52 = vmax.f32 %v5976_v61, 0.0  ;;  %v3299_v2 = vmax.f32 %v5980_v53, 0.0  ;;  %v3300_v15 = vmax.f32 %v5984_v27, 0.0  ;;  %v3301_v21 = vmax.f32 %v5988_v29, 0.0 }
 0x3a4   :  { %v3302_v55 = vmax.f32 %v5992_v33, 0.0  ;;  %v3303_v10 = vmax.f32 %v5996_v36, 0.0  ;;  %v3304_v16 = vmax.f32 %v6000_v39, 0.0  ;;  %v3305_v11 = vmax.f32 %v6004_v41, 0.0 }
 0x3a5   :  { %v3306_v6 = vmax.f32 %v6008_v12, 0.0  ;;  %v3307_v50 = vmax.f32 %v6012_v48, 0.0  ;;  %v3308_v0 = vmax.f32 %v6016_v51, 0.0  ;;  %v3309_v49 = vmax.f32 %v6020_v58, 0.0 }
 0x3a6   :  { %v3310_v7 = vmax.f32 %v6024_v57, 0.0  ;;  %v3311_v18 = vmax.f32 %v6028_v60, 0.0  ;;  %v3312_v25 = vmax.f32 %v6032_v63, 0.0  ;;  %v3313_v59 = vmax.f32 %v6036_v1, 0.0 }
 0x3a7   :  { %v3346_v61 = vcombine.low %v3282_v5, %v3283_v8  ;;  %v3347_v53 = vcombine.low %v3284_v13, %v3285_v3  ;;  %v3363_v27 = vcombine.low %v3286_v17, %v3287_v22  ;;  %v3364_v29 = vcombine.low %v3288_v62, %v3289_v4 }
 0x3a8   :  { %v3380_v33 = vcombine.low %v3290_v56, %v3291_v26  ;;  %v3381_v36 = vcombine.low %v3292_v54, %v3293_v46  ;;  %v3397_v39 = vcombine.low %v3294_v38, %v3295_v31  ;;  %v3398_v41 = vcombine.low %v3296_v30, %v3297_v45 }
 0x3a9   :  { %v3354_v12 = vrot.slane %v3346_v61, %v5672_v14  ;;  %v3361_v48 = vrot.slane %v3347_v53, %v5672_v14  ;;  %v3371_v51 = vrot.slane %v3363_v27, %v5672_v14  ;;  %v3378_v58 = vrot.slane %v3364_v29, %v5672_v14 }
 0x3aa   :  { %v3388_v57 = vrot.slane %v3380_v33, %v5672_v14  ;;  %v3395_v60 = vrot.slane %v3381_v36, %v5672_v14  ;;  %v3405_v63 = vrot.slane %v3397_v39, %v5672_v14  ;;  %v3412_v4 = vrot.slane %v3398_v41, %v5672_v14  ;;  %v6414_v33 = vld [vmem:[#allocation30_spill] sm:$0xff]  ;;  %v6415_v39 = vld [vmem:[#allocation31_spill] sm:$0xff] }
 0x3ab   :  { %v3362_v56 = vcombine.low %v3354_v12, %v3361_v48  ;;  %v3379_v46 = vcombine.low %v3371_v51, %v3378_v58  ;;  %v3414_v38 = vcombine.low %v3298_v52, %v3299_v2  ;;  %v3415_v45 = vcombine.low %v3300_v15, %v3301_v21  ;;  %v6416_v58 = vld [vmem:[#allocation32_spill] sm:$0xff] }
 0x3ac   :  { %v3396_v30 = vcombine.low %v3388_v57, %v3395_v60  ;;  %v3413_v54 = vcombine.low %v3405_v63, %v3412_v4  ;;  %v3431_v62 = vcombine.low %v3302_v55, %v3303_v10  ;;  %v3432_v17 = vcombine.low %v3304_v16, %v3305_v11  ;;  %v6417_v60 = vld [vmem:[#allocation2_spill] sm:$0xff]  ;;  %v6418_v4 = vld [vmem:[#allocation3_spill] sm:$0xff] }
 0x3ad   :  { %v3422_v1 = vrot.slane %v3414_v38, %v5672_v14  ;;  %v3429_v5 = vrot.slane %v3415_v45, %v5672_v14  ;;  %v3448_v8 = vcombine.low %v3306_v6, %v3307_v50  ;;  %v3449_v13 = vcombine.low %v3308_v0, %v3309_v49  ;;  %3490 = vst [vmem:[%s6279_s4] sm:$0xff] %v3362_v56  ;;  %v6419_v56 = vld [vmem:[#allocation4_spill] sm:$0xff]  ;;  %v6421_v38 = vld [vmem:[#allocation6_spill] sm:$0xff] }
 0x3ae   :  { %3491 = vst [vmem:[%s6279_s4 + $0x8] sm:$0xff] %v3379_v46  ;;  %v3439_v3 = vrot.slane %v3431_v62, %v5672_v14  ;;  %v3446_v22 = vrot.slane %v3432_v17, %v5672_v14  ;;  %v3465_v26 = vcombine.low %v3310_v7, %v3311_v18  ;;  %v3466_v31 = vcombine.low %v3312_v25, %v3313_v59  ;;  %v6410_v59 = vld [vmem:[#allocation26_spill] sm:$0xff]  ;;  %v6420_v46 = vld [vmem:[#allocation5_spill] sm:$0xff]  ;;  %v6423_v62 = vld [vmem:[#allocation8_spill] sm:$0xff] }
 0x3af   :  { %3492 = vst [vmem:[%s6279_s4 + $0x10] sm:$0xff] %v3396_v30  ;;  %3493 = vst [vmem:[%s6279_s4 + $0x18] sm:$0xff] %v3413_v54  ;;  %v3430_v52 = vcombine.low %v3422_v1, %v3429_v5  ;;  %v3456_v2 = vrot.slane %v3448_v8, %v5672_v14  ;;  %v3463_v15 = vrot.slane %v3449_v13, %v5672_v14  ;;  %v6422_v30 = vld [vmem:[#allocation7_spill] sm:$0xff]  ;;  %v6424_v1 = vld [vmem:[#allocation9_spill] sm:$0xff] }
 0x3b0   :  { %v6087_v21 = vadd.f32 %v5804_v34, %v5898_v9  ;;  %v3447_v55 = vcombine.low %v3439_v3, %v3446_v22  ;;  %v3473_v10 = vrot.slane %v3465_v26, %v5672_v14  ;;  %v3480_v16 = vrot.slane %v3466_v31, %v5672_v14  ;;  %v6425_v8 = vld [vmem:[#allocation12_spill] sm:$0xff] }
 0x3b1   :  { %v6093_v11 = vadd.f32 %v5808_v40, %v5898_v9  ;;  %v3464_v6 = vcombine.low %v3456_v2, %v3463_v15  ;;  %3494 = vst [vmem:[%s6279_s4 + $0x20] sm:$0xff] %v3430_v52  ;;  %v6100_v50 = vadd.f32 %v5812_v44, %v5898_v9  ;;  %v6104_v34 = vadd.f32 %v5816_v20, %v5898_v9 }
 0x3b2   :  { %v6108_v0 = vadd.f32 %v5820_v37, %v5898_v9  ;;  %v3481_v49 = vcombine.low %v3473_v10, %v3480_v16  ;;  %3495 = vst [vmem:[%s6279_s4 + $0x28] sm:$0xff] %v3447_v55  ;;  %v6115_v40 = vadd.f32 %v5824_v35, %v5898_v9  ;;  %v6119_v44 = vadd.f32 %v5828_v23, %v5898_v9  ;;  %v6408_v23 = vld [vmem:[#allocation10_spill] sm:$0xff] }
 0x3b3   :  { %v6123_v20 = vadd.f32 %v5832_v47, %v5898_v9  ;;  %3496 = vst [vmem:[%s6279_s4 + $0x30] sm:$0xff] %v3464_v6  ;;  %v3538_v37 = vadd.f32 %v5836_v24, %v5898_v9  ;;  %v3539_v7 = vadd.f32 %v5840_v32, %v5898_v9  ;;  %v3540_v35 = vadd.f32 %v5844_v43, %v5898_v9  ;;  %v6409_v47 = vld [vmem:[#allocation11_spill] sm:$0xff]  ;;  %v6412_v32 = vld [vmem:[#allocation28_spill] sm:$0xff]  ;;  %v6413_v43 = vld [vmem:[#allocation29_spill] sm:$0xff] }
 0x3b4   :  { %v3541_v18 = vadd.f32 %v6408_v23, %v5898_v9  ;;  %3497 = vst [vmem:[%s6279_s4 + $0x38] sm:$0xff] %v3481_v49  ;;  %v3542_v25 = vadd.f32 %v6409_v47, %v5898_v9  ;;  %v3543_v61 = vadd.f32 %v6410_v59, %v5898_v9  ;;  %v6411_v24 = vld [vmem:[#allocation27_spill] sm:$0xff]  ;;  %v3545_v27 = vadd.f32 %v6412_v32, %v5898_v9 }
 0x3b5   :  { %v3544_v53 = vadd.f32 %v6411_v24, %v5898_v9  ;;  %v6149_v29 = vadd.f32 %v6413_v43, %v5898_v9  ;;  %v6153_v36 = vadd.f32 %v6414_v33, %v5898_v9  ;;  %v6157_v41 = vadd.f32 %v6415_v39, %v5898_v9 }
 0x3b6   :  { %v6161_v12 = vadd.f32 %v5880_v19, %v5898_v9  ;;  %v6165_v48 = vadd.f32 %v5884_v28, %v5898_v9  ;;  %v6169_v51 = vadd.f32 %v5888_v42, %v5898_v9  ;;  %v6173_v57 = vadd.f32 %v6416_v58, %v5898_v9 }
 0x3b7   :  { %v6177_v63 = vadd.f32 %v6417_v60, %v5898_v9  ;;  %v6181_v19 = vadd.f32 %v6418_v4, %v5898_v9  ;;  %v6185_v28 = vadd.f32 %v6419_v56, %v5898_v9  ;;  %v6189_v42 = vadd.f32 %v6420_v46, %v5898_v9 }
 0x3b8   :  { %v6193_v45 = vadd.f32 %v6421_v38, %v5898_v9  ;;  %v6197_v54 = vadd.f32 %v6422_v30, %v5898_v9  ;;  %v6201_v17 = vadd.f32 %v6423_v62, %v5898_v9  ;;  %v6205_v5 = vadd.f32 %v6424_v1, %v5898_v9 }
 0x3b9   :  { %v6209_v13 = vadd.f32 %v6425_v8, %v5898_v9  ;;  %v3562_v3 = vmax.f32 %v6087_v21, 0.0  ;;  %v3563_v22 = vmax.f32 %v6093_v11, 0.0  ;;  %v3564_v26 = vmax.f32 %v6100_v50, 0.0 }
 0x3ba   :  { %v3565_v31 = vmax.f32 %v6104_v34, 0.0  ;;  %v3566_v52 = vmax.f32 %v6108_v0, 0.0  ;;  %v3567_v2 = vmax.f32 %v6115_v40, 0.0  ;;  %v3568_v15 = vmax.f32 %v6119_v44, 0.0 }
 0x3bb   :  { %v3569_v55 = vmax.f32 %v6123_v20, 0.0  ;;  %v3570_v10 = vmax.f32 %v3538_v37, 0.0  ;;  %v3571_v16 = vmax.f32 %v3539_v7, 0.0  ;;  %v3572_v9 = vmax.f32 %v3540_v35, 0.0 }
 0x3bc   :  { %v3573_v6 = vmax.f32 %v3541_v18, 0.0  ;;  %v3574_v49 = vmax.f32 %v3542_v25, 0.0  ;;  %v3575_v21 = vmax.f32 %v3543_v61, 0.0  ;;  %v3576_v23 = vmax.f32 %v3544_v53, 0.0 }
 0x3bd   :  { %v3577_v11 = vmax.f32 %v3545_v27, 0.0  ;;  %v3578_v50 = vmax.f32 %v6149_v29, 0.0  ;;  %v3579_v34 = vmax.f32 %v6153_v36, 0.0  ;;  %v3580_v0 = vmax.f32 %v6157_v41, 0.0 }
 0x3be   :  { %v3581_v40 = vmax.f32 %v6161_v12, 0.0  ;;  %v3582_v44 = vmax.f32 %v6165_v48, 0.0  ;;  %v3583_v20 = vmax.f32 %v6169_v51, 0.0  ;;  %v3584_v37 = vmax.f32 %v6173_v57, 0.0 }
 0x3bf   :  { %v3585_v7 = vmax.f32 %v6177_v63, 0.0  ;;  %v3586_v35 = vmax.f32 %v6181_v19, 0.0  ;;  %v3587_v18 = vmax.f32 %v6185_v28, 0.0  ;;  %v3588_v47 = vmax.f32 %v6189_v42, 0.0 }
 0x3c0   :  { %v3589_v25 = vmax.f32 %v6193_v45, 0.0  ;;  %v3590_v59 = vmax.f32 %v6197_v54, 0.0  ;;  %v3591_v61 = vmax.f32 %v6201_v17, 0.0  ;;  %v3592_v24 = vmax.f32 %v6205_v5, 0.0 }
 0x3c1   :  { %v3593_v53 = vmax.f32 %v6209_v13, 0.0  ;;  %v3626_v32 = vcombine.low %v3562_v3, %v3563_v22  ;;  %v3627_v27 = vcombine.low %v3564_v26, %v3565_v31  ;;  %v3643_v43 = vcombine.low %v3566_v52, %v3567_v2 }
 0x3c2   :  { %v3644_v29 = vcombine.low %v3568_v15, %v3569_v55  ;;  %v3660_v33 = vcombine.low %v3570_v10, %v3571_v16  ;;  %v3661_v36 = vcombine.low %v3572_v9, %v3573_v6  ;;  %v3677_v39 = vcombine.low %v3574_v49, %v3575_v21 }
 0x3c3   :  { %v3678_v41 = vcombine.low %v3576_v23, %v3577_v11  ;;  %v3634_v12 = vrot.slane %v3626_v32, %v5672_v14  ;;  %v3641_v48 = vrot.slane %v3627_v27, %v5672_v14  ;;  %v3651_v51 = vrot.slane %v3643_v43, %v5672_v14 }
 0x3c4   :  { %v3658_v58 = vrot.slane %v3644_v29, %v5672_v14  ;;  %v3668_v57 = vrot.slane %v3660_v33, %v5672_v14  ;;  %v3675_v60 = vrot.slane %v3661_v36, %v5672_v14  ;;  %v3685_v63 = vrot.slane %v3677_v39, %v5672_v14 }
 0x3c5   :  { %v3692_v4 = vrot.slane %v3678_v41, %v5672_v14  ;;  %v3642_v19 = vcombine.low %v3634_v12, %v3641_v48  ;;  %v3694_v28 = vcombine.low %v3578_v50, %v3579_v34  ;;  %v3695_v46 = vcombine.low %v3580_v0, %v3581_v40 }
 0x3c6   :  { %v3659_v56 = vcombine.low %v3651_v51, %v3658_v58  ;;  %v3676_v42 = vcombine.low %v3668_v57, %v3675_v60  ;;  %v3711_v45 = vcombine.low %v3582_v44, %v3583_v20  ;;  %v3712_v30 = vcombine.low %v3584_v37, %v3585_v7 }
 0x3c7   :  { %v3693_v38 = vcombine.low %v3685_v63, %v3692_v4  ;;  %v3702_v54 = vrot.slane %v3694_v28, %v5672_v14  ;;  %v3709_v62 = vrot.slane %v3695_v46, %v5672_v14  ;;  %v3728_v17 = vcombine.low %v3586_v35, %v3587_v18  ;;  %4039 = vst [vmem:[%s6279_s4 + $0x40] sm:$0xff] %v3642_v19 }
 0x3c8   :  { %v3729_v1 = vcombine.low %v3588_v47, %v3589_v25  ;;  %4040 = vst [vmem:[%s6279_s4 + $0x48] sm:$0xff] %v3659_v56  ;;  %v3719_v5 = vrot.slane %v3711_v45, %v5672_v14  ;;  %v3726_v8 = vrot.slane %v3712_v30, %v5672_v14  ;;  %v3745_v13 = vcombine.low %v3590_v59, %v3591_v61 }
 0x3c9   :  { %v3746_v3 = vcombine.low %v3592_v24, %v3593_v53  ;;  %4041 = vst [vmem:[%s6279_s4 + $0x50] sm:$0xff] %v3676_v42  ;;  %4042 = vst [vmem:[%s6279_s4 + $0x58] sm:$0xff] %v3693_v38  ;;  %v3710_v22 = vcombine.low %v3702_v54, %v3709_v62  ;;  %v3736_v26 = vrot.slane %v3728_v17, %v5672_v14 }
 0x3ca   :  { %v3743_v31 = vrot.slane %v3729_v1, %v5672_v14  ;;  %v3727_v52 = vcombine.low %v3719_v5, %v3726_v8  ;;  %v3753_v2 = vrot.slane %v3745_v13, %v5672_v14 }
 0x3cb   :  { %v3760_v15 = vrot.slane %v3746_v3, %v5672_v14  ;;  %4043 = vst [vmem:[%s6279_s4 + $0x60] sm:$0xff] %v3710_v22 }
 0x3cc   :  { %v3744_v55 = vcombine.low %v3736_v26, %v3743_v31  ;;  %4044 = vst [vmem:[%s6279_s4 + $0x68] sm:$0xff] %v3727_v52 }
 0x3cd   :  { %v3761_v10 = vcombine.low %v3753_v2, %v3760_v15 }
 0x3ce   :  { %4045 = vst [vmem:[%s6279_s4 + $0x70] sm:$0xff] %v3744_v55 }
 0x3cf   :  { %4046 = vst [vmem:[%s6279_s4 + $0x78] sm:$0xff] %v3761_v10 }

// kernel: stage1_g_forward.13
= control target key start
LH: loop header
LB: loop body
LE: loop exit
PB: predicated region body
PF: predicated region fallthrough
CT: control target
= control target key end

     0   :  { %vm112_vm0 = vcmask 1041408   ;;  %v3240_v3 = vmov 0.0   ;;  %vm108_vm1 = vcmask 146432   ;;  %s4093_s0 = inlined_call_operand.vmem [shape: f32[2,18,4096], index: 0, kind: input, shape index: {}]   ;;  %s4094_s1 = inlined_call_operand.vmem [shape: f32[3,18], index: 1, kind: input, shape index: {}]   ;;  %s4095_s2 = inlined_call_operand.vmem [shape: f32[2,3,4096], index: 2, kind: output, shape index: {}]  }
   0x1   :  { %v77_v0 = vld [vmem:[%s4093_s0 + $0x208] sm:$0x3]  ;;  %v79_v1 = vld [vmem:[%s4093_s0 + $0x218] sm:$0x3]  ;;  %v76_v2 = vld [vmem:[%s4093_s0 + $0x200] sm:$0x3]  ;;  %273 = vmatprep.mubr.f32.mxu0 %v3240_v3  ;;  %344 = vmatprep.mubr.f32.mxu1 %v3240_v3 }
   0x2   :  { %2903 = vmatprep.subr.msk.mxu0 %vm112_vm0, %v77_v0  ;;  %2906 = vmatprep.subr.msk.mxu1 %vm112_vm0, %v79_v1  ;;  %v78_v4 = vld [vmem:[%s4093_s0 + $0x210] sm:$0x3]  ;;  %v45_v5 = vld [vmem:[%s4093_s0 + $0x108] sm:$0xff]  ;;  %v47_v6 = vld [vmem:[%s4093_s0 + $0x118] sm:$0xff] }
   0x3   :  { %2904 = vmatpush1.msk.msra.mxu0 %vm112_vm0, %v76_v2  ;;  %2907 = vmatpush1.msk.msra.mxu1 %vm112_vm0, %v78_v4  ;;  %v44_v7 = vld [vmem:[%s4093_s0 + $0x100] sm:$0xff]  ;;  %v46_v8 = vld [vmem:[%s4093_s0 + $0x110] sm:$0xff]  ;;  %v13_v9 = vld [vmem:[%s4093_s0 + $0x8] sm:$0xff] }
   0x4   :  { %237 = vmatprep.subr.mxu0 %v45_v5  ;;  %308 = vmatprep.subr.mxu1 %v47_v6  ;;  %v15_v10 = vld [vmem:[%s4093_s0 + $0x18] sm:$0xff]  ;;  %v12_v11 = vld [vmem:[%s4093_s0] sm:$0xff]  ;;  %v14_v12 = vld [vmem:[%s4093_s0 + $0x10] sm:$0xff] }
   0x5   :  { %238 = vmatpush1.msra.mxu0 %v44_v7  ;;  %309 = vmatpush1.msra.mxu1 %v46_v8  ;;  %v3301_v13 = vld [vmem:[%s4094_s1] sm:$0x7]  ;;  %v81_v14 = vld [vmem:[%s4093_s0 + $0x228] sm:$0x3]  ;;  %v83_v15 = vld [vmem:[%s4093_s0 + $0x238] sm:$0x3] }
   0x6   :  { %239 = vmatprep.subr.mxu0 %v13_v9  ;;  %310 = vmatprep.subr.mxu1 %v15_v10  ;;  %v80_v16 = vld [vmem:[%s4093_s0 + $0x220] sm:$0x3]  ;;  %v82_v17 = vld [vmem:[%s4093_s0 + $0x230] sm:$0x3]  ;;  %v49_v18 = vld [vmem:[%s4093_s0 + $0x128] sm:$0xff] }
   0x7   :  { %240 = vmatpush1.msra.mxu0 %v12_v11  ;;  %311 = vmatpush1.msra.mxu1 %v14_v12  ;;  %v51_v19 = vld [vmem:[%s4093_s0 + $0x138] sm:$0xff]  ;;  %v48_v20 = vld [vmem:[%s4093_s0 + $0x120] sm:$0xff]  ;;  %v50_v21 = vld [vmem:[%s4093_s0 + $0x130] sm:$0xff] }
   0x8   :  { %2905 = vmatmul.mubr.msk.f32.vlgmr.msra.gmra.mxu0 %vm108_vm1, %v3301_v13  ;;  %2908 = vmatmul.mubr.msk.f32.vlgmr.msra.gmra.mxu1 %vm108_vm1, %v3301_v13  ;;  %v17_v22 = vld [vmem:[%s4093_s0 + $0x28] sm:$0xff]  ;;  %v19_v23 = vld [vmem:[%s4093_s0 + $0x38] sm:$0xff]  ;;  %v16_v24 = vld [vmem:[%s4093_s0 + $0x20] sm:$0xff] }
   0x9   :  { %2909 = vmatprep.subr.msk.mxu0 %vm112_vm0, %v81_v14  ;;  %2912 = vmatprep.subr.msk.mxu1 %vm112_vm0, %v83_v15  ;;  %v18_v25 = vld [vmem:[%s4093_s0 + $0x30] sm:$0xff]  ;;  %v85_v26 = vld [vmem:[%s4093_s0 + $0x248] sm:$0x3]  ;;  %v87_v27 = vld [vmem:[%s4093_s0 + $0x258] sm:$0x3] }
   0xa   :  { %2910 = vmatpush1.msk.msra.mxu0 %vm112_vm0, %v80_v16  ;;  %2913 = vmatpush1.msk.msra.mxu1 %vm112_vm0, %v82_v17  ;;  %v84_v28 = vld [vmem:[%s4093_s0 + $0x240] sm:$0x3]  ;;  %v86_v29 = vld [vmem:[%s4093_s0 + $0x250] sm:$0x3]  ;;  %v53_v30 = vld [vmem:[%s4093_s0 + $0x148] sm:$0xff] }
   0xb   :  { %379 = vmatprep.subr.mxu0 %v49_v18  ;;  %450 = vmatprep.subr.mxu1 %v51_v19  ;;  %v55_v31 = vld [vmem:[%s4093_s0 + $0x158] sm:$0xff]  ;;  %v52_v32 = vld [vmem:[%s4093_s0 + $0x140] sm:$0xff]  ;;  %v54_v33 = vld [vmem:[%s4093_s0 + $0x150] sm:$0xff] }
   0xc   :  { %380 = vmatpush1.msra.mxu0 %v48_v20  ;;  %451 = vmatpush1.msra.mxu1 %v50_v21  ;;  %v21_v34 = vld [vmem:[%s4093_s0 + $0x48] sm:$0xff]  ;;  %v23_v35 = vld [vmem:[%s4093_s0 + $0x58] sm:$0xff]  ;;  %v20_v36 = vld [vmem:[%s4093_s0 + $0x40] sm:$0xff] }
   0xd   :  { %381 = vmatprep.subr.mxu0 %v17_v22  ;;  %452 = vmatprep.subr.mxu1 %v19_v23  ;;  %v22_v37 = vld [vmem:[%s4093_s0 + $0x50] sm:$0xff]  ;;  %v89_v38 = vld [vmem:[%s4093_s0 + $0x268] sm:$0x3]  ;;  %v91_v39 = vld [vmem:[%s4093_s0 + $0x278] sm:$0x3] }
   0xe   :  { %382 = vmatpush1.msra.mxu0 %v16_v24  ;;  %415 = vmatprep.mubr.f32.mxu0 %v3240_v3  ;;  %v88_v40 = vld [vmem:[%s4093_s0 + $0x260] sm:$0x3]  ;;  %v90_v41 = vld [vmem:[%s4093_s0 + $0x270] sm:$0x3]  ;;  %v57_v42 = vld [vmem:[%s4093_s0 + $0x168] sm:$0xff] }
   0xf   :  { %453 = vmatpush1.msra.mxu1 %v18_v25  ;;  %486 = vmatprep.mubr.f32.mxu1 %v3240_v3  ;;  %v59_v43 = vld [vmem:[%s4093_s0 + $0x178] sm:$0xff]  ;;  %v56_v44 = vld [vmem:[%s4093_s0 + $0x160] sm:$0xff]  ;;  %v58_v45 = vld [vmem:[%s4093_s0 + $0x170] sm:$0xff] }
  0x10   :  { %2911 = vmatmul.mubr.msk.f32.vlgmr.msra.gmra.mxu0 %vm108_vm1, %v3301_v13  ;;  %2914 = vmatmul.mubr.msk.f32.vlgmr.msra.gmra.mxu1 %vm108_vm1, %v3301_v13  ;;  %v25_v46 = vld [vmem:[%s4093_s0 + $0x68] sm:$0xff]  ;;  %v27_v47 = vld [vmem:[%s4093_s0 + $0x78] sm:$0xff]  ;;  %v24_v48 = vld [vmem:[%s4093_s0 + $0x60] sm:$0xff] }
  0x11   :  { %2915 = vmatprep.subr.msk.mxu0 %vm112_vm0, %v85_v26  ;;  %2918 = vmatprep.subr.msk.mxu1 %vm112_vm0, %v87_v27  ;;  %v26_v49 = vld [vmem:[%s4093_s0 + $0x70] sm:$0xff]  ;;  %v93_v50 = vld [vmem:[%s4093_s0 + $0x288] sm:$0x3]  ;;  %v95_v51 = vld [vmem:[%s4093_s0 + $0x298] sm:$0x3] }
  0x12   :  { %2916 = vmatpush1.msk.msra.mxu0 %vm112_vm0, %v84_v28  ;;  %2919 = vmatpush1.msk.msra.mxu1 %vm112_vm0, %v86_v29  ;;  %v92_v52 = vld [vmem:[%s4093_s0 + $0x280] sm:$0x3]  ;;  %v94_v53 = vld [vmem:[%s4093_s0 + $0x290] sm:$0x3]  ;;  %v61_v54 = vld [vmem:[%s4093_s0 + $0x188] sm:$0xff] }
  0x13   :  { %521 = vmatprep.subr.mxu0 %v53_v30  ;;  %592 = vmatprep.subr.mxu1 %v55_v31  ;;  %v63_v55 = vld [vmem:[%s4093_s0 + $0x198] sm:$0xff]  ;;  %v60_v56 = vld [vmem:[%s4093_s0 + $0x180] sm:$0xff]  ;;  %v62_v57 = vld [vmem:[%s4093_s0 + $0x190] sm:$0xff] }
  0x14   :  { %522 = vmatpush1.msra.mxu0 %v52_v32  ;;  %593 = vmatpush1.msra.mxu1 %v54_v33  ;;  %v29_v58 = vld [vmem:[%s4093_s0 + $0x88] sm:$0xff]  ;;  %v31_v59 = vld [vmem:[%s4093_s0 + $0x98] sm:$0xff]  ;;  %v28_v60 = vld [vmem:[%s4093_s0 + $0x80] sm:$0xff] }
  0x15   :  { %523 = vmatprep.subr.mxu0 %v21_v34  ;;  %594 = vmatprep.subr.mxu1 %v23_v35  ;;  %v30_v61 = vld [vmem:[%s4093_s0 + $0x90] sm:$0xff]  ;;  %v97_v62 = vld [vmem:[%s4093_s0 + $0x2a8] sm:$0x3]  ;;  %v99_v63 = vld [vmem:[%s4093_s0 + $0x2b8] sm:$0x3] }
  0x16   :  { %524 = vmatpush1.msra.mxu0 %v20_v36  ;;  %557 = vmatprep.mubr.f32.mxu0 %v3240_v3  ;;  %v96_v0 = vld [vmem:[%s4093_s0 + $0x2a0] sm:$0x3]  ;;  %v98_v1 = vld [vmem:[%s4093_s0 + $0x2b0] sm:$0x3]  ;;  %v65_v2 = vld [vmem:[%s4093_s0 + $0x1a8] sm:$0xff] }
  0x17   :  { %595 = vmatpush1.msra.mxu1 %v22_v37  ;;  %628 = vmatprep.mubr.f32.mxu1 %v3240_v3  ;;  %v67_v4 = vld [vmem:[%s4093_s0 + $0x1b8] sm:$0xff]  ;;  %v64_v5 = vld [vmem:[%s4093_s0 + $0x1a0] sm:$0xff]  ;;  %v66_v6 = vld [vmem:[%s4093_s0 + $0x1b0] sm:$0xff] }
  0x18   :  { %2917 = vmatmul.mubr.msk.f32.vlgmr.msra.gmra.mxu0 %vm108_vm1, %v3301_v13  ;;  %2920 = vmatmul.mubr.msk.f32.vlgmr.msra.gmra.mxu1 %vm108_vm1, %v3301_v13  ;;  %v33_v7 = vld [vmem:[%s4093_s0 + $0xa8] sm:$0xff]  ;;  %v35_v8 = vld [vmem:[%s4093_s0 + $0xb8] sm:$0xff]  ;;  %v32_v9 = vld [vmem:[%s4093_s0 + $0xa0] sm:$0xff] }
  0x19   :  { %2921 = vmatprep.subr.msk.mxu0 %vm112_vm0, %v89_v38  ;;  %2924 = vmatprep.subr.msk.mxu1 %vm112_vm0, %v91_v39  ;;  %v34_v10 = vld [vmem:[%s4093_s0 + $0xb0] sm:$0xff]  ;;  %v101_v11 = vld [vmem:[%s4093_s0 + $0x2c8] sm:$0x3]  ;;  %v103_v12 = vld [vmem:[%s4093_s0 + $0x2d8] sm:$0x3] }
  0x1a   :  { %2922 = vmatpush1.msk.msra.mxu0 %vm112_vm0, %v88_v40  ;;  %2925 = vmatpush1.msk.msra.mxu1 %vm112_vm0, %v90_v41  ;;  %v100_v14 = vld [vmem:[%s4093_s0 + $0x2c0] sm:$0x3]  ;;  %v102_v15 = vld [vmem:[%s4093_s0 + $0x2d0] sm:$0x3]  ;;  %v69_v16 = vld [vmem:[%s4093_s0 + $0x1c8] sm:$0xff] }
  0x1b   :  { %663 = vmatprep.subr.mxu0 %v57_v42  ;;  %734 = vmatprep.subr.mxu1 %v59_v43  ;;  %v71_v17 = vld [vmem:[%s4093_s0 + $0x1d8] sm:$0xff]  ;;  %v68_v18 = vld [vmem:[%s4093_s0 + $0x1c0] sm:$0xff]  ;;  %v70_v19 = vld [vmem:[%s4093_s0 + $0x1d0] sm:$0xff] }
  0x1c   :  { %664 = vmatpush1.msra.mxu0 %v56_v44  ;;  %735 = vmatpush1.msra.mxu1 %v58_v45  ;;  %v37_v20 = vld [vmem:[%s4093_s0 + $0xc8] sm:$0xff]  ;;  %v39_v21 = vld [vmem:[%s4093_s0 + $0xd8] sm:$0xff]  ;;  %v36_v22 = vld [vmem:[%s4093_s0 + $0xc0] sm:$0xff] }
  0x1d   :  { %665 = vmatprep.subr.mxu0 %v25_v46  ;;  %736 = vmatprep.subr.mxu1 %v27_v47  ;;  %v38_v23 = vld [vmem:[%s4093_s0 + $0xd0] sm:$0xff]  ;;  %v105_v24 = vld [vmem:[%s4093_s0 + $0x2e8] sm:$0x3]  ;;  %v107_v25 = vld [vmem:[%s4093_s0 + $0x2f8] sm:$0x3] }
  0x1e   :  { %666 = vmatpush1.msra.mxu0 %v24_v48  ;;  %699 = vmatprep.mubr.f32.mxu0 %v3240_v3  ;;  %v104_v26 = vld [vmem:[%s4093_s0 + $0x2e0] sm:$0x3]  ;;  %v106_v27 = vld [vmem:[%s4093_s0 + $0x2f0] sm:$0x3]  ;;  %v73_v28 = vld [vmem:[%s4093_s0 + $0x1e8] sm:$0xff] }
  0x1f   :  { %737 = vmatpush1.msra.mxu1 %v26_v49  ;;  %770 = vmatprep.mubr.f32.mxu1 %v3240_v3  ;;  %v75_v29 = vld [vmem:[%s4093_s0 + $0x1f8] sm:$0xff]  ;;  %v72_v30 = vld [vmem:[%s4093_s0 + $0x1e0] sm:$0xff]  ;;  %v74_v31 = vld [vmem:[%s4093_s0 + $0x1f0] sm:$0xff] }
  0x20   :  { %2923 = vmatmul.mubr.msk.f32.vlgmr.msra.gmra.mxu0 %vm108_vm1, %v3301_v13  ;;  %2926 = vmatmul.mubr.msk.f32.vlgmr.msra.gmra.mxu1 %vm108_vm1, %v3301_v13  ;;  %v41_v32 = vld [vmem:[%s4093_s0 + $0xe8] sm:$0xff]  ;;  %v43_v33 = vld [vmem:[%s4093_s0 + $0xf8] sm:$0xff]  ;;  %v40_v34 = vld [vmem:[%s4093_s0 + $0xe0] sm:$0xff] }
  0x21   :  { %2927 = vmatprep.subr.msk.mxu0 %vm112_vm0, %v93_v50  ;;  %2930 = vmatprep.subr.msk.mxu1 %vm112_vm0, %v95_v51  ;;  %v42_v35 = vld [vmem:[%s4093_s0 + $0xf0] sm:$0xff]  ;;  %v3016_v36 = vld [vmem:[%s4093_s0 + $0x508] sm:$0x3]  ;;  %v3018_v37 = vld [vmem:[%s4093_s0 + $0x518] sm:$0x3] }
  0x22   :  { %2928 = vmatpush1.msk.msra.mxu0 %vm112_vm0, %v92_v52  ;;  %2931 = vmatpush1.msk.msra.mxu1 %vm112_vm0, %v94_v53  ;;  %v3015_v38 = vld [vmem:[%s4093_s0 + $0x500] sm:$0x3]  ;;  %v3017_v39 = vld [vmem:[%s4093_s0 + $0x510] sm:$0x3]  ;;  %v2984_v40 = vld [vmem:[%s4093_s0 + $0x408] sm:$0xff] }
  0x23   :  { %805 = vmatprep.subr.mxu0 %v61_v54  ;;  %876 = vmatprep.subr.mxu1 %v63_v55  ;;  %v2986_v41 = vld [vmem:[%s4093_s0 + $0x418] sm:$0xff]  ;;  %v2983_v42 = vld [vmem:[%s4093_s0 + $0x400] sm:$0xff]  ;;  %v2985_v43 = vld [vmem:[%s4093_s0 + $0x410] sm:$0xff] }
  0x24   :  { %806 = vmatpush1.msra.mxu0 %v60_v56  ;;  %877 = vmatpush1.msra.mxu1 %v62_v57  ;;  %v2952_v44 = vld [vmem:[%s4093_s0 + $0x308] sm:$0xff]  ;;  %v2954_v45 = vld [vmem:[%s4093_s0 + $0x318] sm:$0xff]  ;;  %v2951_v46 = vld [vmem:[%s4093_s0 + $0x300] sm:$0xff] }
  0x25   :  { %807 = vmatprep.subr.mxu0 %v29_v58  ;;  %878 = vmatprep.subr.mxu1 %v31_v59  ;;  %v2953_v47 = vld [vmem:[%s4093_s0 + $0x310] sm:$0xff]  ;;  %v3020_v48 = vld [vmem:[%s4093_s0 + $0x528] sm:$0x3]  ;;  %v3022_v49 = vld [vmem:[%s4093_s0 + $0x538] sm:$0x3] }
  0x26   :  { %808 = vmatpush1.msra.mxu0 %v28_v60  ;;  %841 = vmatprep.mubr.f32.mxu0 %v3240_v3  ;;  %v3019_v50 = vld [vmem:[%s4093_s0 + $0x520] sm:$0x3]  ;;  %v3021_v51 = vld [vmem:[%s4093_s0 + $0x530] sm:$0x3]  ;;  %v2988_v52 = vld [vmem:[%s4093_s0 + $0x428] sm:$0xff] }
  0x27   :  { %879 = vmatpush1.msra.mxu1 %v30_v61  ;;  %912 = vmatprep.mubr.f32.mxu1 %v3240_v3  ;;  %v2990_v53 = vld [vmem:[%s4093_s0 + $0x438] sm:$0xff]  ;;  %v2987_v54 = vld [vmem:[%s4093_s0 + $0x420] sm:$0xff]  ;;  %v2989_v55 = vld [vmem:[%s4093_s0 + $0x430] sm:$0xff] }
  0x28   :  { %2929 = vmatmul.mubr.msk.f32.vlgmr.msra.gmra.mxu0 %vm108_vm1, %v3301_v13  ;;  %2932 = vmatmul.mubr.msk.f32.vlgmr.msra.gmra.mxu1 %vm108_vm1, %v3301_v13  ;;  %v2956_v56 = vld [vmem:[%s4093_s0 + $0x328] sm:$0xff]  ;;  %v2958_v57 = vld [vmem:[%s4093_s0 + $0x338] sm:$0xff]  ;;  %v2955_v58 = vld [vmem:[%s4093_s0 + $0x320] sm:$0xff] }
  0x29   :  { %2933 = vmatprep.subr.msk.mxu0 %vm112_vm0, %v97_v62  ;;  %2936 = vmatprep.subr.msk.mxu1 %vm112_vm0, %v99_v63  ;;  %v2957_v59 = vld [vmem:[%s4093_s0 + $0x330] sm:$0xff]  ;;  %v3024_v60 = vld [vmem:[%s4093_s0 + $0x548] sm:$0x3]  ;;  %v3026_v61 = vld [vmem:[%s4093_s0 + $0x558] sm:$0x3] }
  0x2a   :  { %2934 = vmatpush1.msk.msra.mxu0 %vm112_vm0, %v96_v0  ;;  %2937 = vmatpush1.msk.msra.mxu1 %vm112_vm0, %v98_v1  ;;  %v3023_v62 = vld [vmem:[%s4093_s0 + $0x540] sm:$0x3]  ;;  %v3025_v63 = vld [vmem:[%s4093_s0 + $0x550] sm:$0x3]  ;;  %v2992_v0 = vld [vmem:[%s4093_s0 + $0x448] sm:$0xff] }
  0x2b   :  { %947 = vmatprep.subr.mxu0 %v65_v2  ;;  %1018 = vmatprep.subr.mxu1 %v67_v4  ;;  %v2994_v1 = vld [vmem:[%s4093_s0 + $0x458] sm:$0xff]  ;;  %v2991_v2 = vld [vmem:[%s4093_s0 + $0x440] sm:$0xff]  ;;  %v2993_v4 = vld [vmem:[%s4093_s0 + $0x450] sm:$0xff] }
  0x2c   :  { %948 = vmatpush1.msra.mxu0 %v64_v5  ;;  %1019 = vmatpush1.msra.mxu1 %v66_v6  ;;  %v2960_v5 = vld [vmem:[%s4093_s0 + $0x348] sm:$0xff]  ;;  %v2962_v6 = vld [vmem:[%s4093_s0 + $0x358] sm:$0xff] }
  0x2d   :  { %949 = vmatprep.subr.mxu0 %v33_v7  ;;  %1020 = vmatprep.subr.mxu1 %v35_v8  ;;  %v2959_v7 = vld [vmem:[%s4093_s0 + $0x340] sm:$0xff]  ;;  %v2961_v8 = vld [vmem:[%s4093_s0 + $0x350] sm:$0xff] }
  0x2e   :  { %950 = vmatpush1.msra.mxu0 %v32_v9  ;;  %983 = vmatprep.mubr.f32.mxu0 %v3240_v3  ;;  %v3028_v9 = vld [vmem:[%s4093_s0 + $0x568] sm:$0x3] }
  0x2f   :  { %1021 = vmatpush1.msra.mxu1 %v34_v10  ;;  %1054 = vmatprep.mubr.f32.mxu1 %v3240_v3  ;;  %v3030_v10 = vld [vmem:[%s4093_s0 + $0x578] sm:$0x3] }
  0x30   :  { %2935 = vmatmul.mubr.msk.f32.vlgmr.msra.gmra.mxu0 %vm108_vm1, %v3301_v13  ;;  %2938 = vmatmul.mubr.msk.f32.vlgmr.msra.gmra.mxu1 %vm108_vm1, %v3301_v13 }
  0x31   :  { %2939 = vmatprep.subr.msk.mxu0 %vm112_vm0, %v101_v11  ;;  %2942 = vmatprep.subr.msk.mxu1 %vm112_vm0, %v103_v12  ;;  %v3027_v11 = vld [vmem:[%s4093_s0 + $0x560] sm:$0x3]  ;;  %v3029_v12 = vld [vmem:[%s4093_s0 + $0x570] sm:$0x3] }
  0x32   :  { %2940 = vmatpush1.msk.msra.mxu0 %vm112_vm0, %v100_v14  ;;  %2943 = vmatpush1.msk.msra.mxu1 %vm112_vm0, %v102_v15  ;;  %v2996_v14 = vld [vmem:[%s4093_s0 + $0x468] sm:$0xff]  ;;  %v2998_v15 = vld [vmem:[%s4093_s0 + $0x478] sm:$0xff] }
  0x33   :  { %1089 = vmatprep.subr.mxu0 %v69_v16  ;;  %1160 = vmatprep.subr.mxu1 %v71_v17  ;;  %v2995_v16 = vld [vmem:[%s4093_s0 + $0x460] sm:$0xff]  ;;  %v2997_v17 = vld [vmem:[%s4093_s0 + $0x470] sm:$0xff] }
  0x34   :  { %1090 = vmatpush1.msra.mxu0 %v68_v18  ;;  %1161 = vmatpush1.msra.mxu1 %v70_v19  ;;  %v2964_v18 = vld [vmem:[%s4093_s0 + $0x368] sm:$0xff]  ;;  %v2966_v19 = vld [vmem:[%s4093_s0 + $0x378] sm:$0xff] }
  0x35   :  { %1091 = vmatprep.subr.mxu0 %v37_v20  ;;  %1162 = vmatprep.subr.mxu1 %v39_v21  ;;  %v2963_v20 = vld [vmem:[%s4093_s0 + $0x360] sm:$0xff]  ;;  %v2965_v21 = vld [vmem:[%s4093_s0 + $0x370] sm:$0xff] }
  0x36   :  { %1092 = vmatpush1.msra.mxu0 %v36_v22  ;;  %1125 = vmatprep.mubr.f32.mxu0 %v3240_v3  ;;  %v3032_v22 = vld [vmem:[%s4093_s0 + $0x588] sm:$0x3] }
  0x37   :  { %1163 = vmatpush1.msra.mxu1 %v38_v23  ;;  %1196 = vmatprep.mubr.f32.mxu1 %v3240_v3  ;;  %v3034_v23 = vld [vmem:[%s4093_s0 + $0x598] sm:$0x3] }
  0x38   :  { %2941 = vmatmul.mubr.msk.f32.vlgmr.msra.gmra.mxu0 %vm108_vm1, %v3301_v13  ;;  %2944 = vmatmul.mubr.msk.f32.vlgmr.msra.gmra.mxu1 %vm108_vm1, %v3301_v13 }
  0x39   :  { %2945 = vmatprep.subr.msk.mxu0 %vm112_vm0, %v105_v24  ;;  %2948 = vmatprep.subr.msk.mxu1 %vm112_vm0, %v107_v25  ;;  %v3031_v24 = vld [vmem:[%s4093_s0 + $0x580] sm:$0x3]  ;;  %v3033_v25 = vld [vmem:[%s4093_s0 + $0x590] sm:$0x3] }
  0x3a   :  { %2946 = vmatpush1.msk.msra.mxu0 %vm112_vm0, %v104_v26  ;;  %2949 = vmatpush1.msk.msra.mxu1 %vm112_vm0, %v106_v27  ;;  %v3000_v26 = vld [vmem:[%s4093_s0 + $0x488] sm:$0xff]  ;;  %v3002_v27 = vld [vmem:[%s4093_s0 + $0x498] sm:$0xff] }
  0x3b   :  { %1231 = vmatprep.subr.mxu0 %v73_v28  ;;  %1302 = vmatprep.subr.mxu1 %v75_v29  ;;  %v2999_v28 = vld [vmem:[%s4093_s0 + $0x480] sm:$0xff]  ;;  %v3001_v29 = vld [vmem:[%s4093_s0 + $0x490] sm:$0xff] }
  0x3c   :  { %1232 = vmatpush1.msra.mxu0 %v72_v30  ;;  %1303 = vmatpush1.msra.mxu1 %v74_v31  ;;  %v2968_v30 = vld [vmem:[%s4093_s0 + $0x388] sm:$0xff]  ;;  %v2970_v31 = vld [vmem:[%s4093_s0 + $0x398] sm:$0xff] }
  0x3d   :  { %1233 = vmatprep.subr.mxu0 %v41_v32  ;;  %1304 = vmatprep.subr.mxu1 %v43_v33  ;;  %v2967_v32 = vld [vmem:[%s4093_s0 + $0x380] sm:$0xff]  ;;  %v2969_v33 = vld [vmem:[%s4093_s0 + $0x390] sm:$0xff] }
  0x3e   :  { %1234 = vmatpush1.msra.mxu0 %v40_v34  ;;  %1267 = vmatprep.mubr.f32.mxu0 %v3240_v3  ;;  %v3036_v34 = vld [vmem:[%s4093_s0 + $0x5a8] sm:$0x3] }
  0x3f   :  { %1305 = vmatpush1.msra.mxu1 %v42_v35  ;;  %1338 = vmatprep.mubr.f32.mxu1 %v3240_v3  ;;  %v3038_v35 = vld [vmem:[%s4093_s0 + $0x5b8] sm:$0x3] }
  0x40   :  { %2947 = vmatmul.mubr.msk.f32.vlgmr.msra.gmra.mxu0 %vm108_vm1, %v3301_v13  ;;  %2950 = vmatmul.mubr.msk.f32.vlgmr.msra.gmra.mxu1 %vm108_vm1, %v3301_v13 }
  0x41   :  { %3047 = vmatprep.subr.msk.mxu0 %vm112_vm0, %v3016_v36  ;;  %3050 = vmatprep.subr.msk.mxu1 %vm112_vm0, %v3018_v37  ;;  %v3035_v36 = vld [vmem:[%s4093_s0 + $0x5a0] sm:$0x3]  ;;  %v3037_v37 = vld [vmem:[%s4093_s0 + $0x5b0] sm:$0x3] }
  0x42   :  { %3048 = vmatpush1.msk.msra.mxu0 %vm112_vm0, %v3015_v38  ;;  %3051 = vmatpush1.msk.msra.mxu1 %vm112_vm0, %v3017_v39  ;;  %v3004_v38 = vld [vmem:[%s4093_s0 + $0x4a8] sm:$0xff]  ;;  %v3006_v39 = vld [vmem:[%s4093_s0 + $0x4b8] sm:$0xff] }
  0x43   :  { %1678 = vmatprep.subr.mxu0 %v2984_v40  ;;  %1749 = vmatprep.subr.mxu1 %v2986_v41  ;;  %v3003_v40 = vld [vmem:[%s4093_s0 + $0x4a0] sm:$0xff]  ;;  %v3005_v41 = vld [vmem:[%s4093_s0 + $0x4b0] sm:$0xff] }
  0x44   :  { %1679 = vmatpush1.msra.mxu0 %v2983_v42  ;;  %1750 = vmatpush1.msra.mxu1 %v2985_v43  ;;  %v2972_v42 = vld [vmem:[%s4093_s0 + $0x3a8] sm:$0xff]  ;;  %v2974_v43 = vld [vmem:[%s4093_s0 + $0x3b8] sm:$0xff] }
  0x45   :  { %1680 = vmatprep.subr.mxu0 %v2952_v44  ;;  %1751 = vmatprep.subr.mxu1 %v2954_v45  ;;  %v2971_v44 = vld [vmem:[%s4093_s0 + $0x3a0] sm:$0xff]  ;;  %v2973_v45 = vld [vmem:[%s4093_s0 + $0x3b0] sm:$0xff] }
  0x46   :  { %1681 = vmatpush1.msra.mxu0 %v2951_v46  ;;  %1714 = vmatprep.mubr.f32.mxu0 %v3240_v3  ;;  %v3040_v46 = vld [vmem:[%s4093_s0 + $0x5c8] sm:$0x3] }
  0x47   :  { %1752 = vmatpush1.msra.mxu1 %v2953_v47  ;;  %1785 = vmatprep.mubr.f32.mxu1 %v3240_v3  ;;  %v3042_v47 = vld [vmem:[%s4093_s0 + $0x5d8] sm:$0x3] }
  0x48   :  { %3049 = vmatmul.mubr.msk.f32.vlgmr.msra.gmra.mxu0 %vm108_vm1, %v3301_v13  ;;  %3052 = vmatmul.mubr.msk.f32.vlgmr.msra.gmra.mxu1 %vm108_vm1, %v3301_v13 }
  0x49   :  { %3053 = vmatprep.subr.msk.mxu0 %vm112_vm0, %v3020_v48  ;;  %3056 = vmatprep.subr.msk.mxu1 %vm112_vm0, %v3022_v49  ;;  %v3039_v48 = vld [vmem:[%s4093_s0 + $0x5c0] sm:$0x3]  ;;  %v3041_v49 = vld [vmem:[%s4093_s0 + $0x5d0] sm:$0x3] }
  0x4a   :  { %3054 = vmatpush1.msk.msra.mxu0 %vm112_vm0, %v3019_v50  ;;  %3057 = vmatpush1.msk.msra.mxu1 %vm112_vm0, %v3021_v51  ;;  %v3008_v50 = vld [vmem:[%s4093_s0 + $0x4c8] sm:$0xff]  ;;  %v3010_v51 = vld [vmem:[%s4093_s0 + $0x4d8] sm:$0xff] }
  0x4b   :  { %1820 = vmatprep.subr.mxu0 %v2988_v52  ;;  %1891 = vmatprep.subr.mxu1 %v2990_v53  ;;  %v3007_v52 = vld [vmem:[%s4093_s0 + $0x4c0] sm:$0xff]  ;;  %v3009_v53 = vld [vmem:[%s4093_s0 + $0x4d0] sm:$0xff] }
  0x4c   :  { %1821 = vmatpush1.msra.mxu0 %v2987_v54  ;;  %1892 = vmatpush1.msra.mxu1 %v2989_v55  ;;  %v2976_v54 = vld [vmem:[%s4093_s0 + $0x3c8] sm:$0xff]  ;;  %v2978_v55 = vld [vmem:[%s4093_s0 + $0x3d8] sm:$0xff] }
  0x4d   :  { %1822 = vmatprep.subr.mxu0 %v2956_v56  ;;  %1893 = vmatprep.subr.mxu1 %v2958_v57  ;;  %v2975_v56 = vld [vmem:[%s4093_s0 + $0x3c0] sm:$0xff]  ;;  %v2977_v57 = vld [vmem:[%s4093_s0 + $0x3d0] sm:$0xff] }
  0x4e   :  { %1823 = vmatpush1.msra.mxu0 %v2955_v58  ;;  %1856 = vmatprep.mubr.f32.mxu0 %v3240_v3  ;;  %v3044_v58 = vld [vmem:[%s4093_s0 + $0x5e8] sm:$0x3] }
  0x4f   :  { %1894 = vmatpush1.msra.mxu1 %v2957_v59  ;;  %1927 = vmatprep.mubr.f32.mxu1 %v3240_v3  ;;  %v3046_v59 = vld [vmem:[%s4093_s0 + $0x5f8] sm:$0x3] }
  0x50   :  { %3055 = vmatmul.mubr.msk.f32.vlgmr.msra.gmra.mxu0 %vm108_vm1, %v3301_v13  ;;  %3058 = vmatmul.mubr.msk.f32.vlgmr.msra.gmra.mxu1 %vm108_vm1, %v3301_v13 }
  0x51   :  { %3059 = vmatprep.subr.msk.mxu0 %vm112_vm0, %v3024_v60  ;;  %3062 = vmatprep.subr.msk.mxu1 %vm112_vm0, %v3026_v61  ;;  %v3043_v60 = vld [vmem:[%s4093_s0 + $0x5e0] sm:$0x3]  ;;  %v3045_v61 = vld [vmem:[%s4093_s0 + $0x5f0] sm:$0x3] }
  0x52   :  { %3060 = vmatpush1.msk.msra.mxu0 %vm112_vm0, %v3023_v62  ;;  %3063 = vmatpush1.msk.msra.mxu1 %vm112_vm0, %v3025_v63  ;;  %v3012_v62 = vld [vmem:[%s4093_s0 + $0x4e8] sm:$0xff]  ;;  %v3014_v63 = vld [vmem:[%s4093_s0 + $0x4f8] sm:$0xff] }
  0x53   :  { %1962 = vmatprep.subr.mxu0 %v2992_v0  ;;  %2033 = vmatprep.subr.mxu1 %v2994_v1  ;;  %v3011_v0 = vld [vmem:[%s4093_s0 + $0x4e0] sm:$0xff]  ;;  %v3013_v1 = vld [vmem:[%s4093_s0 + $0x4f0] sm:$0xff] }
  0x54   :  { %1963 = vmatpush1.msra.mxu0 %v2991_v2  ;;  %2034 = vmatpush1.msra.mxu1 %v2993_v4  ;;  %v2980_v2 = vld [vmem:[%s4093_s0 + $0x3e8] sm:$0xff]  ;;  %v2982_v4 = vld [vmem:[%s4093_s0 + $0x3f8] sm:$0xff] }
  0x55   :  { %1964 = vmatprep.subr.mxu0 %v2960_v5  ;;  %2035 = vmatprep.subr.mxu1 %v2962_v6  ;;  %v2979_v5 = vld [vmem:[%s4093_s0 + $0x3e0] sm:$0xff]  ;;  %v2981_v6 = vld [vmem:[%s4093_s0 + $0x3f0] sm:$0xff] }
  0x56   :  { %1965 = vmatpush1.msra.mxu0 %v2959_v7  ;;  %1998 = vmatprep.mubr.f32.mxu0 %v3240_v3 }
  0x57   :  { %2036 = vmatpush1.msra.mxu1 %v2961_v8  ;;  %2069 = vmatprep.mubr.f32.mxu1 %v3240_v3 }
  0x58   :  { %3061 = vmatmul.mubr.msk.f32.vlgmr.msra.gmra.mxu0 %vm108_vm1, %v3301_v13  ;;  %3064 = vmatmul.mubr.msk.f32.vlgmr.msra.gmra.mxu1 %vm108_vm1, %v3301_v13 }
  0x59   :  { %3065 = vmatprep.subr.msk.mxu0 %vm112_vm0, %v3028_v9  ;;  %3068 = vmatprep.subr.msk.mxu1 %vm112_vm0, %v3030_v10 }
  0x5a   :  { %3066 = vmatpush1.msk.msra.mxu0 %vm112_vm0, %v3027_v11  ;;  %3069 = vmatpush1.msk.msra.mxu1 %vm112_vm0, %v3029_v12 }
  0x5b   :  { %2104 = vmatprep.subr.mxu0 %v2996_v14  ;;  %2175 = vmatprep.subr.mxu1 %v2998_v15 }
  0x5c   :  { %2105 = vmatpush1.msra.mxu0 %v2995_v16  ;;  %2176 = vmatpush1.msra.mxu1 %v2997_v17 }
  0x5d   :  { %2106 = vmatprep.subr.mxu0 %v2964_v18  ;;  %2177 = vmatprep.subr.mxu1 %v2966_v19 }
  0x5e   :  { %2107 = vmatpush1.msra.mxu0 %v2963_v20  ;;  %2140 = vmatprep.mubr.f32.mxu0 %v3240_v3 }
  0x5f   :  { %2178 = vmatpush1.msra.mxu1 %v2965_v21  ;;  %2211 = vmatprep.mubr.f32.mxu1 %v3240_v3 }
  0x60   :  { %3067 = vmatmul.mubr.msk.f32.vlgmr.msra.gmra.mxu0 %vm108_vm1, %v3301_v13  ;;  %3070 = vmatmul.mubr.msk.f32.vlgmr.msra.gmra.mxu1 %vm108_vm1, %v3301_v13 }
  0x61   :  { %3071 = vmatprep.subr.msk.mxu0 %vm112_vm0, %v3032_v22  ;;  %3074 = vmatprep.subr.msk.mxu1 %vm112_vm0, %v3034_v23 }
  0x62   :  { %3072 = vmatpush1.msk.msra.mxu0 %vm112_vm0, %v3031_v24  ;;  %3075 = vmatpush1.msk.msra.mxu1 %vm112_vm0, %v3033_v25 }
  0x63   :  { %2246 = vmatprep.subr.mxu0 %v3000_v26  ;;  %2317 = vmatprep.subr.mxu1 %v3002_v27 }
  0x64   :  { %2247 = vmatpush1.msra.mxu0 %v2999_v28  ;;  %2318 = vmatpush1.msra.mxu1 %v3001_v29 }
  0x65   :  { %2248 = vmatprep.subr.mxu0 %v2968_v30  ;;  %2319 = vmatprep.subr.mxu1 %v2970_v31 }
  0x66   :  { %2249 = vmatpush1.msra.mxu0 %v2967_v32  ;;  %2282 = vmatprep.mubr.f32.mxu0 %v3240_v3 }
  0x67   :  { %2320 = vmatpush1.msra.mxu1 %v2969_v33  ;;  %2353 = vmatprep.mubr.f32.mxu1 %v3240_v3 }
  0x68   :  { %3073 = vmatmul.mubr.msk.f32.vlgmr.msra.gmra.mxu0 %vm108_vm1, %v3301_v13  ;;  %3076 = vmatmul.mubr.msk.f32.vlgmr.msra.gmra.mxu1 %vm108_vm1, %v3301_v13 }
  0x69   :  { %3077 = vmatprep.subr.msk.mxu0 %vm112_vm0, %v3036_v34  ;;  %3080 = vmatprep.subr.msk.mxu1 %vm112_vm0, %v3038_v35 }
  0x6a   :  { %3078 = vmatpush1.msk.msra.mxu0 %vm112_vm0, %v3035_v36  ;;  %3081 = vmatpush1.msk.msra.mxu1 %vm112_vm0, %v3037_v37 }
  0x6b   :  { %2388 = vmatprep.subr.mxu0 %v3004_v38  ;;  %2459 = vmatprep.subr.mxu1 %v3006_v39 }
  0x6c   :  { %2389 = vmatpush1.msra.mxu0 %v3003_v40  ;;  %2460 = vmatpush1.msra.mxu1 %v3005_v41 }
  0x6d   :  { %2390 = vmatprep.subr.mxu0 %v2972_v42  ;;  %2461 = vmatprep.subr.mxu1 %v2974_v43 }
  0x6e   :  { %2391 = vmatpush1.msra.mxu0 %v2971_v44  ;;  %2424 = vmatprep.mubr.f32.mxu0 %v3240_v3 }
  0x6f   :  { %2462 = vmatpush1.msra.mxu1 %v2973_v45  ;;  %2495 = vmatprep.mubr.f32.mxu1 %v3240_v3 }
  0x70   :  { %3079 = vmatmul.mubr.msk.f32.vlgmr.msra.gmra.mxu0 %vm108_vm1, %v3301_v13  ;;  %3082 = vmatmul.mubr.msk.f32.vlgmr.msra.gmra.mxu1 %vm108_vm1, %v3301_v13 }
  0x71   :  { %3083 = vmatprep.subr.msk.mxu0 %vm112_vm0, %v3040_v46  ;;  %3086 = vmatprep.subr.msk.mxu1 %vm112_vm0, %v3042_v47 }
  0x72   :  { %3084 = vmatpush1.msk.msra.mxu0 %vm112_vm0, %v3039_v48  ;;  %3087 = vmatpush1.msk.msra.mxu1 %vm112_vm0, %v3041_v49 }
  0x73   :  { %2530 = vmatprep.subr.mxu0 %v3008_v50  ;;  %2601 = vmatprep.subr.mxu1 %v3010_v51 }
  0x74   :  { %2531 = vmatpush1.msra.mxu0 %v3007_v52  ;;  %2602 = vmatpush1.msra.mxu1 %v3009_v53 }
  0x75   :  { %2532 = vmatprep.subr.mxu0 %v2976_v54  ;;  %2603 = vmatprep.subr.mxu1 %v2978_v55 }
  0x76   :  { %2533 = vmatpush1.msra.mxu0 %v2975_v56  ;;  %2566 = vmatprep.mubr.f32.mxu0 %v3240_v3 }
  0x77   :  { %2604 = vmatpush1.msra.mxu1 %v2977_v57  ;;  %2637 = vmatprep.mubr.f32.mxu1 %v3240_v3 }
  0x78   :  { %3085 = vmatmul.mubr.msk.f32.vlgmr.msra.gmra.mxu0 %vm108_vm1, %v3301_v13  ;;  %3088 = vmatmul.mubr.msk.f32.vlgmr.msra.gmra.mxu1 %vm108_vm1, %v3301_v13 }
  0x79   :  { %3089 = vmatprep.subr.msk.mxu0 %vm112_vm0, %v3044_v58  ;;  %3092 = vmatprep.subr.msk.mxu1 %vm112_vm0, %v3046_v59 }
  0x7a   :  { %3090 = vmatpush1.msk.msra.mxu0 %vm112_vm0, %v3043_v60  ;;  %3093 = vmatpush1.msk.msra.mxu1 %vm112_vm0, %v3045_v61 }
  0x7b   :  { %2672 = vmatprep.subr.mxu0 %v3012_v62  ;;  %2743 = vmatprep.subr.mxu1 %v3014_v63 }
  0x7c   :  { %2673 = vmatpush1.msra.mxu0 %v3011_v0  ;;  %2744 = vmatpush1.msra.mxu1 %v3013_v1 }
  0x7d   :  { %2674 = vmatprep.subr.mxu0 %v2980_v2  ;;  %2745 = vmatprep.subr.mxu1 %v2982_v4 }
  0x7e   :  { %2675 = vmatpush1.msra.mxu0 %v2979_v5  ;;  %2708 = vmatprep.mubr.f32.mxu0 %v3240_v3 }
  0x7f   :  { %2746 = vmatpush1.msra.mxu1 %v2981_v6  ;;  %2779 = vmatprep.mubr.f32.mxu1 %v3240_v3 }
  0x80   :  { %3091 = vmatmul.mubr.msk.f32.vlgmr.msra.gmra.mxu0 %vm108_vm1, %v3301_v13  ;;  %3094 = vmatmul.mubr.msk.f32.vlgmr.msra.gmra.mxu1 %vm108_vm1, %v3301_v13 }
  0xc8   :  { %v275_v7 = vpop.f32.mrf.mxu0  ;;  %v346_v8 = vpop.f32.mrf.mxu1 }
  0xc9   :  { %3112 = vtanh.f32 %v275_v7 }
  0xca   :  { %3114 = vtanh.f32 %v346_v8  ;;  %v277_v9 = vpop.f32.mrf.mxu0  ;;  %v348_v10 = vpop.f32.mrf.mxu1 }
  0xcb   :  { %3116 = vtanh.f32 %v277_v9 }
  0xcc   :  { %3118 = vtanh.f32 %v348_v10 }
  0xd0   :  { %v417_v11 = vpop.f32.mrf.mxu0  ;;  %v488_v12 = vpop.f32.mrf.mxu1 }
  0xd1   :  { %3120 = vtanh.f32 %v417_v11 }
  0xd2   :  { %3122 = vtanh.f32 %v488_v12  ;;  %v419_v14 = vpop.f32.mrf.mxu0  ;;  %v490_v3 = vpop.f32.mrf.mxu1 }
  0xd3   :  { %3124 = vtanh.f32 %v419_v14 }
  0xd4   :  { %3126 = vtanh.f32 %v490_v3 }
  0xd6   :  { %v3113_v15 = vpop.eup %3112 }
  0xd7   :  { %v3115_v16 = vpop.eup %3114 }
  0xd8   :  { %v3117_v17 = vpop.eup %3116  ;;  %v559_v13 = vpop.f32.mrf.mxu0 }
  0xd9   :  { %v630_v18 = vpop.f32.mrf.mxu1  ;;  %v3119_v19 = vpop.eup %3118  ;;  %v1409_v20 = vcombine.low %v3113_v15, %v3117_v17  ;;  %3128 = vtanh.f32 %v559_v13 }
  0xda   :  { %v1410_v21 = vcombine.low %v3115_v16, %v3119_v19  ;;  %3130 = vtanh.f32 %v630_v18  ;;  %v561_v22 = vpop.f32.mrf.mxu0 }
  0xdb   :  { %v632_v23 = vpop.f32.mrf.mxu1  ;;  %1441 = vst [vmem:[%s4095_s2] sm:$0x77] %v1409_v20  ;;  %3132 = vtanh.f32 %v561_v22 }
  0xdc   :  { %1442 = vst [vmem:[%s4095_s2 + $0x8] sm:$0x77] %v1410_v21  ;;  %3134 = vtanh.f32 %v632_v23 }
  0xde   :  { %v3121_v24 = vpop.eup %3120 }
  0xdf   :  { %v3123_v25 = vpop.eup %3122 }
  0xe0   :  { %v3125_v26 = vpop.eup %3124  ;;  %v701_v27 = vpop.f32.mrf.mxu0 }
  0xe1   :  { %v772_v28 = vpop.f32.mrf.mxu1  ;;  %v3127_v29 = vpop.eup %3126  ;;  %v1411_v30 = vcombine.low %v3121_v24, %v3125_v26  ;;  %3136 = vtanh.f32 %v701_v27 }
  0xe2   :  { %v1412_v31 = vcombine.low %v3123_v25, %v3127_v29  ;;  %3138 = vtanh.f32 %v772_v28  ;;  %v703_v32 = vpop.f32.mrf.mxu0 }
  0xe3   :  { %v774_v33 = vpop.f32.mrf.mxu1  ;;  %1443 = vst [vmem:[%s4095_s2 + $0x10] sm:$0x77] %v1411_v30  ;;  %3140 = vtanh.f32 %v703_v32 }
  0xe4   :  { %1444 = vst [vmem:[%s4095_s2 + $0x18] sm:$0x77] %v1412_v31  ;;  %3142 = vtanh.f32 %v774_v33 }
  0xe6   :  { %v3129_v34 = vpop.eup %3128 }
  0xe7   :  { %v3131_v35 = vpop.eup %3130 }
  0xe8   :  { %v3133_v36 = vpop.eup %3132  ;;  %v843_v37 = vpop.f32.mrf.mxu0 }
  0xe9   :  { %v914_v38 = vpop.f32.mrf.mxu1  ;;  %v3135_v39 = vpop.eup %3134  ;;  %v1413_v40 = vcombine.low %v3129_v34, %v3133_v36  ;;  %3144 = vtanh.f32 %v843_v37 }
  0xea   :  { %v1414_v41 = vcombine.low %v3131_v35, %v3135_v39  ;;  %3146 = vtanh.f32 %v914_v38  ;;  %v845_v42 = vpop.f32.mrf.mxu0 }
  0xeb   :  { %v916_v43 = vpop.f32.mrf.mxu1  ;;  %1445 = vst [vmem:[%s4095_s2 + $0x20] sm:$0x77] %v1413_v40  ;;  %3148 = vtanh.f32 %v845_v42 }
  0xec   :  { %1446 = vst [vmem:[%s4095_s2 + $0x28] sm:$0x77] %v1414_v41  ;;  %3150 = vtanh.f32 %v916_v43 }
  0xee   :  { %v3137_v44 = vpop.eup %3136 }
  0xef   :  { %v3139_v45 = vpop.eup %3138 }
  0xf0   :  { %v3141_v46 = vpop.eup %3140  ;;  %v985_v47 = vpop.f32.mrf.mxu0 }
  0xf1   :  { %v1056_v48 = vpop.f32.mrf.mxu1  ;;  %v3143_v49 = vpop.eup %3142  ;;  %v1415_v50 = vcombine.low %v3137_v44, %v3141_v46  ;;  %3152 = vtanh.f32 %v985_v47 }
  0xf2   :  { %v1416_v51 = vcombine.low %v3139_v45, %v3143_v49  ;;  %3154 = vtanh.f32 %v1056_v48  ;;  %v987_v52 = vpop.f32.mrf.mxu0 }
  0xf3   :  { %v1058_v53 = vpop.f32.mrf.mxu1  ;;  %1447 = vst [vmem:[%s4095_s2 + $0x30] sm:$0x77] %v1415_v50  ;;  %3156 = vtanh.f32 %v987_v52 }
  0xf4   :  { %1448 = vst [vmem:[%s4095_s2 + $0x38] sm:$0x77] %v1416_v51  ;;  %3158 = vtanh.f32 %v1058_v53 }
  0xf6   :  { %v3145_v54 = vpop.eup %3144 }
  0xf7   :  { %v3147_v55 = vpop.eup %3146 }
  0xf8   :  { %v3149_v56 = vpop.eup %3148  ;;  %v1127_v57 = vpop.f32.mrf.mxu0 }
  0xf9   :  { %v1198_v58 = vpop.f32.mrf.mxu1  ;;  %v3151_v59 = vpop.eup %3150  ;;  %v1417_v60 = vcombine.low %v3145_v54, %v3149_v56  ;;  %3160 = vtanh.f32 %v1127_v57 }
  0xfa   :  { %v1418_v61 = vcombine.low %v3147_v55, %v3151_v59  ;;  %3162 = vtanh.f32 %v1198_v58  ;;  %v1129_v62 = vpop.f32.mrf.mxu0 }
  0xfb   :  { %v1200_v63 = vpop.f32.mrf.mxu1  ;;  %1449 = vst [vmem:[%s4095_s2 + $0x40] sm:$0x77] %v1417_v60  ;;  %3164 = vtanh.f32 %v1129_v62 }
  0xfc   :  { %1450 = vst [vmem:[%s4095_s2 + $0x48] sm:$0x77] %v1418_v61  ;;  %3166 = vtanh.f32 %v1200_v63 }
  0xfe   :  { %v3153_v0 = vpop.eup %3152 }
  0xff   :  { %v3155_v1 = vpop.eup %3154 }
 0x100   :  { %v3157_v2 = vpop.eup %3156  ;;  %v1269_v4 = vpop.f32.mrf.mxu0 }
 0x101   :  { %v1340_v5 = vpop.f32.mrf.mxu1  ;;  %v3159_v6 = vpop.eup %3158  ;;  %v1419_v7 = vcombine.low %v3153_v0, %v3157_v2  ;;  %3168 = vtanh.f32 %v1269_v4 }
 0x102   :  { %v1420_v8 = vcombine.low %v3155_v1, %v3159_v6  ;;  %3170 = vtanh.f32 %v1340_v5  ;;  %v1271_v9 = vpop.f32.mrf.mxu0 }
 0x103   :  { %v1342_v10 = vpop.f32.mrf.mxu1  ;;  %1451 = vst [vmem:[%s4095_s2 + $0x50] sm:$0x77] %v1419_v7  ;;  %3172 = vtanh.f32 %v1271_v9 }
 0x104   :  { %1452 = vst [vmem:[%s4095_s2 + $0x58] sm:$0x77] %v1420_v8  ;;  %3174 = vtanh.f32 %v1342_v10 }
 0x106   :  { %v3161_v11 = vpop.eup %3160 }
 0x107   :  { %v3163_v12 = vpop.eup %3162 }
 0x108   :  { %v3165_v14 = vpop.eup %3164  ;;  %v1716_v3 = vpop.f32.mrf.mxu0 }
 0x109   :  { %v1787_v15 = vpop.f32.mrf.mxu1  ;;  %v3167_v16 = vpop.eup %3166  ;;  %v1421_v17 = vcombine.low %v3161_v11, %v3165_v14  ;;  %3176 = vtanh.f32 %v1716_v3 }
 0x10a   :  { %v1422_v13 = vcombine.low %v3163_v12, %v3167_v16  ;;  %3178 = vtanh.f32 %v1787_v15  ;;  %v1718_v18 = vpop.f32.mrf.mxu0 }
 0x10b   :  { %v1789_v19 = vpop.f32.mrf.mxu1  ;;  %1453 = vst [vmem:[%s4095_s2 + $0x60] sm:$0x77] %v1421_v17  ;;  %3180 = vtanh.f32 %v1718_v18 }
 0x10c   :  { %1454 = vst [vmem:[%s4095_s2 + $0x68] sm:$0x77] %v1422_v13  ;;  %3182 = vtanh.f32 %v1789_v19 }
 0x10e   :  { %v3169_v20 = vpop.eup %3168 }
 0x10f   :  { %v3171_v21 = vpop.eup %3170 }
 0x110   :  { %v3173_v22 = vpop.eup %3172  ;;  %v1858_v23 = vpop.f32.mrf.mxu0 }
 0x111   :  { %v1929_v24 = vpop.f32.mrf.mxu1  ;;  %v3175_v25 = vpop.eup %3174  ;;  %v1423_v26 = vcombine.low %v3169_v20, %v3173_v22  ;;  %3184 = vtanh.f32 %v1858_v23 }
 0x112   :  { %v1424_v27 = vcombine.low %v3171_v21, %v3175_v25  ;;  %3186 = vtanh.f32 %v1929_v24  ;;  %v1860_v28 = vpop.f32.mrf.mxu0 }
 0x113   :  { %v1931_v29 = vpop.f32.mrf.mxu1  ;;  %1455 = vst [vmem:[%s4095_s2 + $0x70] sm:$0x77] %v1423_v26  ;;  %3188 = vtanh.f32 %v1860_v28 }
 0x114   :  { %1456 = vst [vmem:[%s4095_s2 + $0x78] sm:$0x77] %v1424_v27  ;;  %3190 = vtanh.f32 %v1931_v29 }
 0x116   :  { %v3177_v30 = vpop.eup %3176 }
 0x117   :  { %v3179_v31 = vpop.eup %3178 }
 0x118   :  { %v3181_v32 = vpop.eup %3180  ;;  %v2000_v33 = vpop.f32.mrf.mxu0 }
 0x119   :  { %v2071_v34 = vpop.f32.mrf.mxu1  ;;  %v3183_v35 = vpop.eup %3182  ;;  %v2850_v36 = vcombine.low %v3177_v30, %v3181_v32  ;;  %3192 = vtanh.f32 %v2000_v33 }
 0x11a   :  { %v2851_v37 = vcombine.low %v3179_v31, %v3183_v35  ;;  %3194 = vtanh.f32 %v2071_v34  ;;  %v2002_v38 = vpop.f32.mrf.mxu0 }
 0x11b   :  { %v2073_v39 = vpop.f32.mrf.mxu1  ;;  %3095 = vst [vmem:[%s4095_s2 + $0x80] sm:$0x77] %v2850_v36  ;;  %3196 = vtanh.f32 %v2002_v38 }
 0x11c   :  { %3096 = vst [vmem:[%s4095_s2 + $0x88] sm:$0x77] %v2851_v37  ;;  %3198 = vtanh.f32 %v2073_v39 }
 0x11e   :  { %v3185_v40 = vpop.eup %3184 }
 0x11f   :  { %v3187_v41 = vpop.eup %3186 }
 0x120   :  { %v3189_v42 = vpop.eup %3188  ;;  %v2142_v43 = vpop.f32.mrf.mxu0 }
 0x121   :  { %v2213_v44 = vpop.f32.mrf.mxu1  ;;  %v3191_v45 = vpop.eup %3190  ;;  %v2852_v46 = vcombine.low %v3185_v40, %v3189_v42  ;;  %3200 = vtanh.f32 %v2142_v43 }
 0x122   :  { %v2853_v47 = vcombine.low %v3187_v41, %v3191_v45  ;;  %3202 = vtanh.f32 %v2213_v44  ;;  %v2144_v48 = vpop.f32.mrf.mxu0 }
 0x123   :  { %v2215_v49 = vpop.f32.mrf.mxu1  ;;  %3097 = vst [vmem:[%s4095_s2 + $0x90] sm:$0x77] %v2852_v46  ;;  %3204 = vtanh.f32 %v2144_v48 }
 0x124   :  { %3098 = vst [vmem:[%s4095_s2 + $0x98] sm:$0x77] %v2853_v47  ;;  %3206 = vtanh.f32 %v2215_v49 }
 0x126   :  { %v3193_v50 = vpop.eup %3192 }
 0x127   :  { %v3195_v51 = vpop.eup %3194 }
 0x128   :  { %v3197_v52 = vpop.eup %3196  ;;  %v2284_v53 = vpop.f32.mrf.mxu0 }
 0x129   :  { %v2355_v54 = vpop.f32.mrf.mxu1  ;;  %v3199_v55 = vpop.eup %3198  ;;  %v2854_v56 = vcombine.low %v3193_v50, %v3197_v52  ;;  %3208 = vtanh.f32 %v2284_v53 }
 0x12a   :  { %v2855_v57 = vcombine.low %v3195_v51, %v3199_v55  ;;  %3210 = vtanh.f32 %v2355_v54  ;;  %v2286_v58 = vpop.f32.mrf.mxu0 }
 0x12b   :  { %v2357_v59 = vpop.f32.mrf.mxu1  ;;  %3099 = vst [vmem:[%s4095_s2 + $0xa0] sm:$0x77] %v2854_v56  ;;  %3212 = vtanh.f32 %v2286_v58 }
 0x12c   :  { %3100 = vst [vmem:[%s4095_s2 + $0xa8] sm:$0x77] %v2855_v57  ;;  %3214 = vtanh.f32 %v2357_v59 }
 0x12e   :  { %v3201_v60 = vpop.eup %3200 }
 0x12f   :  { %v3203_v61 = vpop.eup %3202 }
 0x130   :  { %v3205_v62 = vpop.eup %3204  ;;  %v2426_v63 = vpop.f32.mrf.mxu0 }
 0x131   :  { %v2497_v0 = vpop.f32.mrf.mxu1  ;;  %v3207_v1 = vpop.eup %3206  ;;  %v2856_v2 = vcombine.low %v3201_v60, %v3205_v62  ;;  %3216 = vtanh.f32 %v2426_v63 }
 0x132   :  { %v2857_v4 = vcombine.low %v3203_v61, %v3207_v1  ;;  %3218 = vtanh.f32 %v2497_v0  ;;  %v2428_v5 = vpop.f32.mrf.mxu0 }
 0x133   :  { %v2499_v6 = vpop.f32.mrf.mxu1  ;;  %3101 = vst [vmem:[%s4095_s2 + $0xb0] sm:$0x77] %v2856_v2  ;;  %3220 = vtanh.f32 %v2428_v5 }
 0x134   :  { %3102 = vst [vmem:[%s4095_s2 + $0xb8] sm:$0x77] %v2857_v4  ;;  %3222 = vtanh.f32 %v2499_v6 }
 0x136   :  { %v3209_v7 = vpop.eup %3208 }
 0x137   :  { %v3211_v8 = vpop.eup %3210 }
 0x138   :  { %v3213_v9 = vpop.eup %3212  ;;  %v2568_v10 = vpop.f32.mrf.mxu0 }
 0x139   :  { %v2639_v11 = vpop.f32.mrf.mxu1  ;;  %v3215_v12 = vpop.eup %3214  ;;  %v2858_v14 = vcombine.low %v3209_v7, %v3213_v9  ;;  %3224 = vtanh.f32 %v2568_v10 }
 0x13a   :  { %v2859_v3 = vcombine.low %v3211_v8, %v3215_v12  ;;  %3226 = vtanh.f32 %v2639_v11  ;;  %v2570_v15 = vpop.f32.mrf.mxu0 }
 0x13b   :  { %v2641_v16 = vpop.f32.mrf.mxu1  ;;  %3103 = vst [vmem:[%s4095_s2 + $0xc0] sm:$0x77] %v2858_v14  ;;  %3228 = vtanh.f32 %v2570_v15 }
 0x13c   :  { %3104 = vst [vmem:[%s4095_s2 + $0xc8] sm:$0x77] %v2859_v3  ;;  %3230 = vtanh.f32 %v2641_v16 }
 0x13e   :  { %v3217_v17 = vpop.eup %3216 }
 0x13f   :  { %v3219_v13 = vpop.eup %3218 }
 0x140   :  { %v3221_v18 = vpop.eup %3220  ;;  %v2710_v19 = vpop.f32.mrf.mxu0 }
 0x141   :  { %v2781_v20 = vpop.f32.mrf.mxu1  ;;  %v3223_v21 = vpop.eup %3222  ;;  %v2860_v22 = vcombine.low %v3217_v17, %v3221_v18  ;;  %3232 = vtanh.f32 %v2710_v19 }
 0x142   :  { %v2861_v23 = vcombine.low %v3219_v13, %v3223_v21  ;;  %3234 = vtanh.f32 %v2781_v20  ;;  %v2712_v24 = vpop.f32.mrf.mxu0 }
 0x143   :  { %v2783_v25 = vpop.f32.mrf.mxu1  ;;  %3105 = vst [vmem:[%s4095_s2 + $0xd0] sm:$0x77] %v2860_v22  ;;  %3236 = vtanh.f32 %v2712_v24 }
 0x144   :  { %3106 = vst [vmem:[%s4095_s2 + $0xd8] sm:$0x77] %v2861_v23  ;;  %3238 = vtanh.f32 %v2783_v25 }
 0x146   :  { %v3225_v26 = vpop.eup %3224 }
 0x147   :  { %v3227_v27 = vpop.eup %3226 }
 0x148   :  { %v3229_v28 = vpop.eup %3228 }
 0x149   :  { %v3231_v29 = vpop.eup %3230  ;;  %v2862_v30 = vcombine.low %v3225_v26, %v3229_v28 }
 0x14a   :  { %v2863_v31 = vcombine.low %v3227_v27, %v3231_v29 }
 0x14b   :  { %3107 = vst [vmem:[%s4095_s2 + $0xe0] sm:$0x77] %v2862_v30 }
 0x14c   :  { %3108 = vst [vmem:[%s4095_s2 + $0xe8] sm:$0x77] %v2863_v31 }
 0x14e   :  { %v3233_v32 = vpop.eup %3232 }
 0x14f   :  { %v3235_v33 = vpop.eup %3234 }
 0x150   :  { %v3237_v34 = vpop.eup %3236 }
 0x151   :  { %v3239_v35 = vpop.eup %3238  ;;  %v2864_v36 = vcombine.low %v3233_v32, %v3237_v34 }
 0x152   :  { %v2865_v37 = vcombine.low %v3235_v33, %v3239_v35 }
 0x153   :  { %3109 = vst [vmem:[%s4095_s2 + $0xf0] sm:$0x77] %v2864_v36 }
 0x154   :  { %3110 = vst [vmem:[%s4095_s2 + $0xf8] sm:$0x77] %v2865_v37 }

</bundles_post_ra>
